<compile_context>
chip_gen: v5e
topology: v5e:2x2
jax: 0.10.0
libtpu: 0.0.40
codegen_flags: <defaults>
</compile_context>

<pallas_src>
import jax
import jax.numpy as jnp
from jax import lax
from jax.experimental import pallas as pl
from jax.experimental.pallas import tpu as pltpu


def _make_kernel(fused):
    """fused=True : one (M, 9C) x (9C, Cout) MXU matmul per conv (C % 128 == 0).
       fused=False: 9 accumulating (M, C) x (C, Cout) matmuls, no col buffer."""

    def kernel(x_ref, w1_ref, s1_ref, b1_ref, w2_ref, s2_ref, b2_ref,
               o_ref, pad2_ref, *col):
        B, Hp, Wp, Cin = x_ref.shape
        H, W = Hp - 2, Wp - 2
        Cout = o_ref.shape[-1]
        M = B * H * W
        col_ref = col[0] if fused else None

        def conv3x3(src_ref, w_ref, cin):
            # 3x3 "valid" conv over the zero-padded src (B,Hp,Wp,cin) -> f32 (M,Cout).
            if fused:
                # Column writes start at t*cin (a multiple of 128) -> aligned vst.
                for dy in range(3):
                    for dx in range(3):
                        t = dy * 3 + dx
                        tap = src_ref[:, dy:dy + H, dx:dx + W, :].reshape(M, cin)
                        col_ref[:, t * cin:(t + 1) * cin] = tap.astype(jnp.bfloat16)
                return jnp.dot(col_ref[...], w_ref[...],
                               preferred_element_type=jnp.float32)
            # Per-tap path: feed each shifted window straight to the MXU; no
            # col-buffer stores at all (removes the masked lane-offset vst's).
            acc = None
            for dy in range(3):
                for dx in range(3):
                    t = dy * 3 + dx
                    tap = src_ref[:, dy:dy + H, dx:dx + W, :].reshape(M, cin)
                    part = jnp.dot(tap.astype(jnp.bfloat16),
                                   w_ref[t * cin:(t + 1) * cin, :],
                                   preferred_element_type=jnp.float32)
                    acc = part if acc is None else acc + part
            return acc

        # ---- conv1 + bn1 + relu (f32 epilogue) ----
        acc1 = conv3x3(x_ref, w1_ref, Cin)
        out1 = jnp.maximum(acc1 * s1_ref[...] + b1_ref[...], 0.0)

        # ---- conv2 input: zero-halo scratch.  Only the 1-pixel halo strips are
        # re-zeroed (the interior is fully overwritten).  Done every step so the
        # kernel stays correct when the batch axis is sharded across TensorCores.
        zrow = jnp.zeros((B, 1, Wp, Cout), jnp.float32)
        zcol = jnp.zeros((B, Hp, 1, Cout), jnp.float32)
        pad2_ref[:, 0:1, :, :] = zrow
        pad2_ref[:, Hp - 1:Hp, :, :] = zrow
        pad2_ref[:, :, 0:1, :] = zcol
        pad2_ref[:, :, Wp - 1:Wp, :] = zcol
        pad2_ref[:, 1:H + 1, 1:W + 1, :] = out1.reshape(B, H, W, Cout)

        # ---- conv2 + bn2 + residual add + relu ----
        acc2 = conv3x3(pad2_ref, w2_ref, Cout)
        res = x_ref[:, 1:H + 1, 1:W + 1, :]       # centre window == unpadded input
        out2 = acc2.reshape(B, H, W, Cout) * s2_ref[...] + b2_ref[...] + res
        o_ref[...] = jnp.maximum(out2, 0.0).astype(o_ref.dtype)

    return kernel


def _flatten_w(w_oihw):
    # OIHW -> (ky, kx, I, O) -> (9*I, O); row index (ky*3+kx)*I + i matches the
    # kernel's tap ordering.  Pre-cast to bf16 (MXU operand dtype).
    o, i = w_oihw.shape[0], w_oihw.shape[1]
    return jnp.transpose(w_oihw, (2, 3, 1, 0)).reshape(9 * i, o).astype(jnp.bfloat16)


def _fold_bn(bn, eps):
    gamma, beta, mean, var = bn
    scale = gamma / jnp.sqrt(var + eps)
    bias = beta - mean * scale
    return (scale.reshape(1, -1).astype(jnp.float32),
            bias.reshape(1, -1).astype(jnp.float32))


def _round_up(n, m):
    return ((n + m - 1) // m) * m


def _padded_bytes(shape, itemsize):
    # Rough VMEM footprint: last dim -> 128 lanes, second-to-last -> sublane tile.
    s = list(shape)
    s[-1] = _round_up(s[-1], 128)
    if len(s) >= 2:
        s[-2] = _round_up(s[-2], 32 // itemsize)
    n = 1
    for v in s:
        n *= v
    return n * itemsize


def basic_block_pallas(x_nchw, w1_oihw, bn1, w2_oihw, bn2, eps=1e-5,
                       batch_tile=None, vmem_budget_bytes=24 * 1024 * 1024):
    """Fused BasicBlock forward.  x_nchw: (N, C, H, W) float32 -> (N, C, H, W)."""
    x = jnp.transpose(x_nchw, (0, 2, 3, 1))                 # NCHW -> NHWC
    N, H, W, Cin = x.shape
    Cout = w1_oihw.shape[0]
    assert Cin == Cout, "no-downsample BasicBlock requires inplanes == planes"
    xp = jnp.pad(x, ((0, 0), (1, 1), (1, 1), (0, 0)))       # conv1 "same" pad, once
    Hp, Wp = H + 2, W + 2

    fused = (Cin % 128 == 0)   # fused-K im2col only when col columns are lane aligned

    w1, w2 = _flatten_w(w1_oihw), _flatten_w(w2_oihw)
    s1, b1 = _fold_bn(bn1, eps)
    s2, b2 = _fold_bn(bn2, eps)

    def step_vmem(bt):
        n = 2 * _padded_bytes((bt, Hp, Wp, Cin), 4)          # input block, double-buffered
        n += 2 * _padded_bytes((bt, H, W, Cout), 4)          # output block, double-buffered
        n += _padded_bytes((bt, Hp, Wp, Cout), 4)            # conv2 zero-halo scratch
        if fused:
            n += _padded_bytes((bt * H * W, 9 * Cin), 2)     # im2col buffer
        n += 2 * (2 * _padded_bytes((9 * Cin, Cout), 2)      # weights (conservative x2)
                  + 4 * _padded_bytes((1, Cout), 4))         # scales / biases
        return n

    if batch_tile is None:
        batch_tile = 1
        for bt in range(N, 0, -1):
            if N % bt:
                continue
            if N // bt < min(2, N):      # keep >= 2 grid steps (v7x: 2 TensorCores)
                continue
            if step_vmem(bt) <= vmem_budget_bytes:
                batch_tile = bt
                break
    assert N % batch_tile == 0
    B = batch_tile
    grid = (N // B,)

    vmem_limit = int(min(64 * 1024 * 1024, max(32 * 1024 * 1024, 2 * step_vmem(B))))

    kernel = _make_kernel(fused)
    scratch = [pltpu.VMEM((B, Hp, Wp, Cout), jnp.float32)]   # conv2 zero-halo pad
    if fused:
        scratch.append(pltpu.VMEM((B * H * W, 9 * Cin), jnp.bfloat16))

    def run(const_mode):
        # Grid-constant operands (weights / BN scale+bias): single-buffer them
        # when const_mode is pl.Buffered(1); None -> default double buffering.
        def const_spec(shape):
            if const_mode is None:
                return pl.BlockSpec(shape, lambda n: (0, 0))
            return pl.BlockSpec(shape, lambda n: (0, 0), pipeline_mode=const_mode)

        return pl.pallas_call(
            kernel,
            out_shape=jax.ShapeDtypeStruct((N, H, W, Cout), x.dtype),
            grid=grid,
            in_specs=[
                pl.BlockSpec((B, Hp, Wp, Cin), lambda n: (n, 0, 0, 0)),
                const_spec((9 * Cin, Cout)),
                const_spec((1, Cout)),
                const_spec((1, Cout)),
                const_spec((9 * Cout, Cout)),
                const_spec((1, Cout)),
                const_spec((1, Cout)),
            ],
            out_specs=pl.BlockSpec((B, H, W, Cout), lambda n: (n, 0, 0, 0)),
            scratch_shapes=scratch,
            compiler_params=pltpu.CompilerParams(
                dimension_semantics=("parallel",),
                vmem_limit_bytes=vmem_limit),
        )(xp, w1, s1, b1, w2, s2, b2)

    try:
        out_nhwc = jax.block_until_ready(run(pl.Buffered(1)))
    except Exception:
        # TODO(synk): this JAX/Mosaic build rejected pl.Buffered(1) on constant
        # operands; fall back to default (double-buffered) BlockSpecs.
        out_nhwc = run(None)

    return jnp.transpose(out_nhwc, (0, 3, 1, 2))             # NHWC -> NCHW


def basic_block_reference(x_nchw, w1_oihw, bn1, w2_oihw, bn2, eps=1e-5):
    """Pure-JAX f32 reference (NHWC convs) for correctness checking."""
    x = jnp.transpose(x_nchw, (0, 2, 3, 1))
    w1 = jnp.transpose(w1_oihw, (2, 3, 1, 0))
    w2 = jnp.transpose(w2_oihw, (2, 3, 1, 0))
    dn = ('NHWC', 'HWIO', 'NHWC')

    def bn(y, p):
        gamma, beta, mean, var = p
        return (y - mean) / jnp.sqrt(var + eps) * gamma + beta

    out = lax.conv_general_dilated(x, w1, (1, 1), ((1, 1), (1, 1)),
                                   dimension_numbers=dn)
    out = jnp.maximum(bn(out, bn1), 0.0)
    out = lax.conv_general_dilated(out, w2, (1, 1), ((1, 1), (1, 1)),
                                   dimension_numbers=dn)
    out = bn(out, bn2) + x
    out = jnp.maximum(out, 0.0)
    return jnp.transpose(out, (0, 3, 1, 2))


if __name__ == "__main__":
    key = jax.random.PRNGKey(0)
    N, C, H, W = 2, 8, 16, 16          # inplanes == planes == 8, stride=1
    ks = jax.random.split(key, 11)

    x = jax.random.normal(ks[0], (N, C, H, W), jnp.float32)

    w1 = 0.1 * jax.random.normal(ks[1], (C, C, 3, 3), jnp.float32)   # conv1 (OIHW)
    w2 = 0.1 * jax.random.normal(ks[2], (C, C, 3, 3), jnp.float32)   # conv2 (OIHW)

    bn1 = (1.0 + 0.1 * jax.random.normal(ks[3], (C,), jnp.float32),  # gamma
           0.1 * jax.random.normal(ks[4], (C,), jnp.float32),        # beta
           0.1 * jax.random.normal(ks[5], (C,), jnp.float32),        # running_mean
           0.5 + jax.random.uniform(ks[6], (C,), jnp.float32))       # running_var
    bn2 = (1.0 + 0.1 * jax.random.normal(ks[7], (C,), jnp.float32),
           0.1 * jax.random.normal(ks[8], (C,), jnp.float32),
           0.1 * jax.random.normal(ks[9], (C,), jnp.float32),
           0.5 + jax.random.uniform(ks[10], (C,), jnp.float32))

    out = basic_block_pallas(x, w1, bn1, w2, bn2)
    out = jax.block_until_ready(out)

    ref = basic_block_reference(x, w1, bn1, w2, bn2)
    assert out.shape == (N, C, H, W)
    # bf16 MXU operands (f32 accumulate) -> loosened tolerance vs. f32 reference.
    assert jnp.allclose(out, ref, atol=5e-2, rtol=5e-2), \
        f"max abs err {jnp.max(jnp.abs(out - ref))}"

    print("KERNEL_OK")
</pallas_src>

<mosaic_0001>
module attributes {stable_mosaic.version = 11 : i64} {
  func.func @kernel(%arg0: i32, %arg1: memref<1x18x18x8xf32, #tpu.memory_space<vmem>>, %arg2: memref<72x8xbf16, #tpu.memory_space<vmem>>, %arg3: memref<1x8xf32, #tpu.memory_space<vmem>>, %arg4: memref<1x8xf32, #tpu.memory_space<vmem>>, %arg5: memref<72x8xbf16, #tpu.memory_space<vmem>>, %arg6: memref<1x8xf32, #tpu.memory_space<vmem>>, %arg7: memref<1x8xf32, #tpu.memory_space<vmem>>, %arg8: memref<1x16x16x8xf32, #tpu.memory_space<vmem>>, %arg9: memref<1x18x18x8xf32, #tpu.memory_space<vmem>>) attributes {dimension_semantics = [#tpu.dimension_semantics<parallel>], iteration_bounds = array<i64: 2>, scalar_prefetch = 0 : i64, scratch_operands = 1 : i64, tpu.core_type = #tpu.core_type<tc>, window_params = [{transform_indices = @transform_0, window_bounds = array<i64: 1, 18, 18, 8>}, {pipeline_mode = #tpu.pipeline_mode<synchronous>, transform_indices = @transform_1, window_bounds = array<i64: 72, 8>}, {pipeline_mode = #tpu.pipeline_mode<synchronous>, transform_indices = @transform_2, window_bounds = array<i64: 1, 8>}, {pipeline_mode = #tpu.pipeline_mode<synchronous>, transform_indices = @transform_3, window_bounds = array<i64: 1, 8>}, {pipeline_mode = #tpu.pipeline_mode<synchronous>, transform_indices = @transform_4, window_bounds = array<i64: 72, 8>}, {pipeline_mode = #tpu.pipeline_mode<synchronous>, transform_indices = @transform_5, window_bounds = array<i64: 1, 8>}, {pipeline_mode = #tpu.pipeline_mode<synchronous>, transform_indices = @transform_6, window_bounds = array<i64: 1, 8>}, {transform_indices = @transform_7, window_bounds = array<i64: 1, 16, 16, 8>}]} {
    %c0 = arith.constant 0 : index
    %c0_0 = arith.constant 0 : index
    %c0_1 = arith.constant 0 : index
    %c0_2 = arith.constant 0 : index
    %0 = vector.load %arg1[%c0, %c0_0, %c0_1, %c0_2] : memref<1x18x18x8xf32, #tpu.memory_space<vmem>>, vector<1x16x16x8xf32>
    %1 = vector.shape_cast %0 : vector<1x16x16x8xf32> to vector<256x8xf32>
    %2 = arith.truncf %1 : vector<256x8xf32> to vector<256x8xbf16>
    %c0_3 = arith.constant 0 : index
    %c0_4 = arith.constant 0 : index
    %3 = vector.load %arg2[%c0_3, %c0_4] : memref<72x8xbf16, #tpu.memory_space<vmem>>, vector<8x8xbf16>
    %cst = arith.constant dense<0.000000e+00> : vector<256x8xf32>
    %4 = tpu.matmul %2, %3, %cst {dimension_numbers = #tpu.dot_dimension_numbers<[1], [0], [0], [1], [0, 0, 1, 1], [], []>} : vector<256x8xbf16>, vector<8x8xbf16>, vector<256x8xf32> -> vector<256x8xf32>
    %c0_5 = arith.constant 0 : index
    %c0_6 = arith.constant 0 : index
    %c1 = arith.constant 1 : index
    %c0_7 = arith.constant 0 : index
    %5 = vector.load %arg1[%c0_5, %c0_6, %c1, %c0_7] : memref<1x18x18x8xf32, #tpu.memory_space<vmem>>, vector<1x16x16x8xf32>
    %6 = vector.shape_cast %5 : vector<1x16x16x8xf32> to vector<256x8xf32>
    %7 = arith.truncf %6 : vector<256x8xf32> to vector<256x8xbf16>
    %c8 = arith.constant 8 : index
    %c0_8 = arith.constant 0 : index
    %8 = vector.load %arg2[%c8, %c0_8] : memref<72x8xbf16, #tpu.memory_space<vmem>>, vector<8x8xbf16>
    %cst_9 = arith.constant dense<0.000000e+00> : vector<256x8xf32>
    %9 = tpu.matmul %7, %8, %cst_9 {dimension_numbers = #tpu.dot_dimension_numbers<[1], [0], [0], [1], [0, 0, 1, 1], [], []>} : vector<256x8xbf16>, vector<8x8xbf16>, vector<256x8xf32> -> vector<256x8xf32>
    %10 = arith.addf %4, %9 : vector<256x8xf32>
    %c0_10 = arith.constant 0 : index
    %c0_11 = arith.constant 0 : index
    %c2 = arith.constant 2 : index
    %c0_12 = arith.constant 0 : index
    %11 = vector.load %arg1[%c0_10, %c0_11, %c2, %c0_12] : memref<1x18x18x8xf32, #tpu.memory_space<vmem>>, vector<1x16x16x8xf32>
    %12 = vector.shape_cast %11 : vector<1x16x16x8xf32> to vector<256x8xf32>
    %13 = arith.truncf %12 : vector<256x8xf32> to vector<256x8xbf16>
    %c16 = arith.constant 16 : index
    %c0_13 = arith.constant 0 : index
    %14 = vector.load %arg2[%c16, %c0_13] : memref<72x8xbf16, #tpu.memory_space<vmem>>, vector<8x8xbf16>
    %cst_14 = arith.constant dense<0.000000e+00> : vector<256x8xf32>
    %15 = tpu.matmul %13, %14, %cst_14 {dimension_numbers = #tpu.dot_dimension_numbers<[1], [0], [0], [1], [0, 0, 1, 1], [], []>} : vector<256x8xbf16>, vector<8x8xbf16>, vector<256x8xf32> -> vector<256x8xf32>
    %16 = arith.addf %10, %15 : vector<256x8xf32>
    %c0_15 = arith.constant 0 : index
    %c1_16 = arith.constant 1 : index
    %c0_17 = arith.constant 0 : index
    %c0_18 = arith.constant 0 : index
    %17 = vector.load %arg1[%c0_15, %c1_16, %c0_17, %c0_18] : memref<1x18x18x8xf32, #tpu.memory_space<vmem>>, vector<1x16x16x8xf32>
    %18 = vector.shape_cast %17 : vector<1x16x16x8xf32> to vector<256x8xf32>
    %19 = arith.truncf %18 : vector<256x8xf32> to vector<256x8xbf16>
    %c24 = arith.constant 24 : index
    %c0_19 = arith.constant 0 : index
    %20 = vector.load %arg2[%c24, %c0_19] : memref<72x8xbf16, #tpu.memory_space<vmem>>, vector<8x8xbf16>
    %cst_20 = arith.constant dense<0.000000e+00> : vector<256x8xf32>
    %21 = tpu.matmul %19, %20, %cst_20 {dimension_numbers = #tpu.dot_dimension_numbers<[1], [0], [0], [1], [0, 0, 1, 1], [], []>} : vector<256x8xbf16>, vector<8x8xbf16>, vector<256x8xf32> -> vector<256x8xf32>
    %22 = arith.addf %16, %21 : vector<256x8xf32>
    %c0_21 = arith.constant 0 : index
    %c1_22 = arith.constant 1 : index
    %c1_23 = arith.constant 1 : index
    %c0_24 = arith.constant 0 : index
    %23 = vector.load %arg1[%c0_21, %c1_22, %c1_23, %c0_24] : memref<1x18x18x8xf32, #tpu.memory_space<vmem>>, vector<1x16x16x8xf32>
    %24 = vector.shape_cast %23 : vector<1x16x16x8xf32> to vector<256x8xf32>
    %25 = arith.truncf %24 : vector<256x8xf32> to vector<256x8xbf16>
    %c32 = arith.constant 32 : index
    %c0_25 = arith.constant 0 : index
    %26 = vector.load %arg2[%c32, %c0_25] : memref<72x8xbf16, #tpu.memory_space<vmem>>, vector<8x8xbf16>
    %cst_26 = arith.constant dense<0.000000e+00> : vector<256x8xf32>
    %27 = tpu.matmul %25, %26, %cst_26 {dimension_numbers = #tpu.dot_dimension_numbers<[1], [0], [0], [1], [0, 0, 1, 1], [], []>} : vector<256x8xbf16>, vector<8x8xbf16>, vector<256x8xf32> -> vector<256x8xf32>
    %28 = arith.addf %22, %27 : vector<256x8xf32>
    %c0_27 = arith.constant 0 : index
    %c1_28 = arith.constant 1 : index
    %c2_29 = arith.constant 2 : index
    %c0_30 = arith.constant 0 : index
    %29 = vector.load %arg1[%c0_27, %c1_28, %c2_29, %c0_30] : memref<1x18x18x8xf32, #tpu.memory_space<vmem>>, vector<1x16x16x8xf32>
    %30 = vector.shape_cast %29 : vector<1x16x16x8xf32> to vector<256x8xf32>
    %31 = arith.truncf %30 : vector<256x8xf32> to vector<256x8xbf16>
    %c40 = arith.constant 40 : index
    %c0_31 = arith.constant 0 : index
    %32 = vector.load %arg2[%c40, %c0_31] : memref<72x8xbf16, #tpu.memory_space<vmem>>, vector<8x8xbf16>
    %cst_32 = arith.constant dense<0.000000e+00> : vector<256x8xf32>
    %33 = tpu.matmul %31, %32, %cst_32 {dimension_numbers = #tpu.dot_dimension_numbers<[1], [0], [0], [1], [0, 0, 1, 1], [], []>} : vector<256x8xbf16>, vector<8x8xbf16>, vector<256x8xf32> -> vector<256x8xf32>
    %34 = arith.addf %28, %33 : vector<256x8xf32>
    %c0_33 = arith.constant 0 : index
    %c2_34 = arith.constant 2 : index
    %c0_35 = arith.constant 0 : index
    %c0_36 = arith.constant 0 : index
    %35 = vector.load %arg1[%c0_33, %c2_34, %c0_35, %c0_36] : memref<1x18x18x8xf32, #tpu.memory_space<vmem>>, vector<1x16x16x8xf32>
    %36 = vector.shape_cast %35 : vector<1x16x16x8xf32> to vector<256x8xf32>
    %37 = arith.truncf %36 : vector<256x8xf32> to vector<256x8xbf16>
    %c48 = arith.constant 48 : index
    %c0_37 = arith.constant 0 : index
    %38 = vector.load %arg2[%c48, %c0_37] : memref<72x8xbf16, #tpu.memory_space<vmem>>, vector<8x8xbf16>
    %cst_38 = arith.constant dense<0.000000e+00> : vector<256x8xf32>
    %39 = tpu.matmul %37, %38, %cst_38 {dimension_numbers = #tpu.dot_dimension_numbers<[1], [0], [0], [1], [0, 0, 1, 1], [], []>} : vector<256x8xbf16>, vector<8x8xbf16>, vector<256x8xf32> -> vector<256x8xf32>
    %40 = arith.addf %34, %39 : vector<256x8xf32>
    %c0_39 = arith.constant 0 : index
    %c2_40 = arith.constant 2 : index
    %c1_41 = arith.constant 1 : index
    %c0_42 = arith.constant 0 : index
    %41 = vector.load %arg1[%c0_39, %c2_40, %c1_41, %c0_42] : memref<1x18x18x8xf32, #tpu.memory_space<vmem>>, vector<1x16x16x8xf32>
    %42 = vector.shape_cast %41 : vector<1x16x16x8xf32> to vector<256x8xf32>
    %43 = arith.truncf %42 : vector<256x8xf32> to vector<256x8xbf16>
    %c56 = arith.constant 56 : index
    %c0_43 = arith.constant 0 : index
    %44 = vector.load %arg2[%c56, %c0_43] : memref<72x8xbf16, #tpu.memory_space<vmem>>, vector<8x8xbf16>
    %cst_44 = arith.constant dense<0.000000e+00> : vector<256x8xf32>
    %45 = tpu.matmul %43, %44, %cst_44 {dimension_numbers = #tpu.dot_dimension_numbers<[1], [0], [0], [1], [0, 0, 1, 1], [], []>} : vector<256x8xbf16>, vector<8x8xbf16>, vector<256x8xf32> -> vector<256x8xf32>
    %46 = arith.addf %40, %45 : vector<256x8xf32>
    %c0_45 = arith.constant 0 : index
    %c2_46 = arith.constant 2 : index
    %c2_47 = arith.constant 2 : index
    %c0_48 = arith.constant 0 : index
    %47 = vector.load %arg1[%c0_45, %c2_46, %c2_47, %c0_48] : memref<1x18x18x8xf32, #tpu.memory_space<vmem>>, vector<1x16x16x8xf32>
    %48 = vector.shape_cast %47 : vector<1x16x16x8xf32> to vector<256x8xf32>
    %49 = arith.truncf %48 : vector<256x8xf32> to vector<256x8xbf16>
    %c64 = arith.constant 64 : index
    %c0_49 = arith.constant 0 : index
    %50 = vector.load %arg2[%c64, %c0_49] : memref<72x8xbf16, #tpu.memory_space<vmem>>, vector<8x8xbf16>
    %cst_50 = arith.constant dense<0.000000e+00> : vector<256x8xf32>
    %51 = tpu.matmul %49, %50, %cst_50 {dimension_numbers = #tpu.dot_dimension_numbers<[1], [0], [0], [1], [0, 0, 1, 1], [], []>} : vector<256x8xbf16>, vector<8x8xbf16>, vector<256x8xf32> -> vector<256x8xf32>
    %52 = arith.addf %46, %51 : vector<256x8xf32>
    %c0_51 = arith.constant 0 : index
    %c0_52 = arith.constant 0 : index
    %53 = vector.load %arg3[%c0_51, %c0_52] : memref<1x8xf32, #tpu.memory_space<vmem>>, vector<1x8xf32>
    %54 = vector.broadcast %53 : vector<1x8xf32> to vector<256x8xf32>
    %55 = arith.mulf %52, %54 : vector<256x8xf32>
    %c0_53 = arith.constant 0 : index
    %c0_54 = arith.constant 0 : index
    %56 = vector.load %arg4[%c0_53, %c0_54] : memref<1x8xf32, #tpu.memory_space<vmem>>, vector<1x8xf32>
    %57 = vector.broadcast %56 : vector<1x8xf32> to vector<256x8xf32>
    %58 = arith.addf %55, %57 : vector<256x8xf32>
    %cst_55 = arith.constant 0.000000e+00 : f32
    %59 = vector.broadcast %cst_55 : f32 to vector<256x8xf32>
    %60 = arith.maximumf %58, %59 : vector<256x8xf32>
    %cst_56 = arith.constant 0.000000e+00 : f32
    %61 = vector.broadcast %cst_56 : f32 to vector<1x1x18x8xf32>
    %cst_57 = arith.constant 0.000000e+00 : f32
    %62 = vector.broadcast %cst_57 : f32 to vector<1x18x1x8xf32>
    %c0_58 = arith.constant 0 : index
    %c0_59 = arith.constant 0 : index
    %c0_60 = arith.constant 0 : index
    %c0_61 = arith.constant 0 : index
    %63 = vector.load %arg9[%c0_58, %c0_59, %c0_60, %c0_61] : memref<1x18x18x8xf32, #tpu.memory_space<vmem>>, vector<1x1x18x8xf32>
    tpu.vector_store %arg9[%c0_58, %c0_59, %c0_60, %c0_61], %61 {strides = array<i32>} : memref<1x18x18x8xf32, #tpu.memory_space<vmem>>, vector<1x1x18x8xf32>,
    %c0_62 = arith.constant 0 : index
    %c17 = arith.constant 17 : index
    %c0_63 = arith.constant 0 : index
    %c0_64 = arith.constant 0 : index
    %64 = vector.load %arg9[%c0_62, %c17, %c0_63, %c0_64] : memref<1x18x18x8xf32, #tpu.memory_space<vmem>>, vector<1x1x18x8xf32>
    tpu.vector_store %arg9[%c0_62, %c17, %c0_63, %c0_64], %61 {strides = array<i32>} : memref<1x18x18x8xf32, #tpu.memory_space<vmem>>, vector<1x1x18x8xf32>,
    %c0_65 = arith.constant 0 : index
    %c0_66 = arith.constant 0 : index
    %c0_67 = arith.constant 0 : index
    %c0_68 = arith.constant 0 : index
    %65 = vector.load %arg9[%c0_65, %c0_66, %c0_67, %c0_68] : memref<1x18x18x8xf32, #tpu.memory_space<vmem>>, vector<1x18x1x8xf32>
    tpu.vector_store %arg9[%c0_65, %c0_66, %c0_67, %c0_68], %62 {strides = array<i32>} : memref<1x18x18x8xf32, #tpu.memory_space<vmem>>, vector<1x18x1x8xf32>,
    %c0_69 = arith.constant 0 : index
    %c0_70 = arith.constant 0 : index
    %c17_71 = arith.constant 17 : index
    %c0_72 = arith.constant 0 : index
    %66 = vector.load %arg9[%c0_69, %c0_70, %c17_71, %c0_72] : memref<1x18x18x8xf32, #tpu.memory_space<vmem>>, vector<1x18x1x8xf32>
    tpu.vector_store %arg9[%c0_69, %c0_70, %c17_71, %c0_72], %62 {strides = array<i32>} : memref<1x18x18x8xf32, #tpu.memory_space<vmem>>, vector<1x18x1x8xf32>,
    %67 = vector.shape_cast %60 : vector<256x8xf32> to vector<1x16x16x8xf32>
    %c0_73 = arith.constant 0 : index
    %c1_74 = arith.constant 1 : index
    %c1_75 = arith.constant 1 : index
    %c0_76 = arith.constant 0 : index
    %68 = vector.load %arg9[%c0_73, %c1_74, %c1_75, %c0_76] : memref<1x18x18x8xf32, #tpu.memory_space<vmem>>, vector<1x16x16x8xf32>
    tpu.vector_store %arg9[%c0_73, %c1_74, %c1_75, %c0_76], %67 {strides = array<i32>} : memref<1x18x18x8xf32, #tpu.memory_space<vmem>>, vector<1x16x16x8xf32>,
    %c0_77 = arith.constant 0 : index
    %c0_78 = arith.constant 0 : index
    %c0_79 = arith.constant 0 : index
    %c0_80 = arith.constant 0 : index
    %69 = vector.load %arg9[%c0_77, %c0_78, %c0_79, %c0_80] : memref<1x18x18x8xf32, #tpu.memory_space<vmem>>, vector<1x16x16x8xf32>
    %70 = vector.shape_cast %69 : vector<1x16x16x8xf32> to vector<256x8xf32>
    %71 = arith.truncf %70 : vector<256x8xf32> to vector<256x8xbf16>
    %c0_81 = arith.constant 0 : index
    %c0_82 = arith.constant 0 : index
    %72 = vector.load %arg5[%c0_81, %c0_82] : memref<72x8xbf16, #tpu.memory_space<vmem>>, vector<8x8xbf16>
    %cst_83 = arith.constant dense<0.000000e+00> : vector<256x8xf32>
    %73 = tpu.matmul %71, %72, %cst_83 {dimension_numbers = #tpu.dot_dimension_numbers<[1], [0], [0], [1], [0, 0, 1, 1], [], []>} : vector<256x8xbf16>, vector<8x8xbf16>, vector<256x8xf32> -> vector<256x8xf32>
    %c0_84 = arith.constant 0 : index
    %c0_85 = arith.constant 0 : index
    %c1_86 = arith.constant 1 : index
    %c0_87 = arith.constant 0 : index
    %74 = vector.load %arg9[%c0_84, %c0_85, %c1_86, %c0_87] : memref<1x18x18x8xf32, #tpu.memory_space<vmem>>, vector<1x16x16x8xf32>
    %75 = vector.shape_cast %74 : vector<1x16x16x8xf32> to vector<256x8xf32>
    %76 = arith.truncf %75 : vector<256x8xf32> to vector<256x8xbf16>
    %c8_88 = arith.constant 8 : index
    %c0_89 = arith.constant 0 : index
    %77 = vector.load %arg5[%c8_88, %c0_89] : memref<72x8xbf16, #tpu.memory_space<vmem>>, vector<8x8xbf16>
    %cst_90 = arith.constant dense<0.000000e+00> : vector<256x8xf32>
    %78 = tpu.matmul %76, %77, %cst_90 {dimension_numbers = #tpu.dot_dimension_numbers<[1], [0], [0], [1], [0, 0, 1, 1], [], []>} : vector<256x8xbf16>, vector<8x8xbf16>, vector<256x8xf32> -> vector<256x8xf32>
    %79 = arith.addf %73, %78 : vector<256x8xf32>
    %c0_91 = arith.constant 0 : index
    %c0_92 = arith.constant 0 : index
    %c2_93 = arith.constant 2 : index
    %c0_94 = arith.constant 0 : index
    %80 = vector.load %arg9[%c0_91, %c0_92, %c2_93, %c0_94] : memref<1x18x18x8xf32, #tpu.memory_space<vmem>>, vector<1x16x16x8xf32>
    %81 = vector.shape_cast %80 : vector<1x16x16x8xf32> to vector<256x8xf32>
    %82 = arith.truncf %81 : vector<256x8xf32> to vector<256x8xbf16>
    %c16_95 = arith.constant 16 : index
    %c0_96 = arith.constant 0 : index
    %83 = vector.load %arg5[%c16_95, %c0_96] : memref<72x8xbf16, #tpu.memory_space<vmem>>, vector<8x8xbf16>
    %cst_97 = arith.constant dense<0.000000e+00> : vector<256x8xf32>
    %84 = tpu.matmul %82, %83, %cst_97 {dimension_numbers = #tpu.dot_dimension_numbers<[1], [0], [0], [1], [0, 0, 1, 1], [], []>} : vector<256x8xbf16>, vector<8x8xbf16>, vector<256x8xf32> -> vector<256x8xf32>
    %85 = arith.addf %79, %84 : vector<256x8xf32>
    %c0_98 = arith.constant 0 : index
    %c1_99 = arith.constant 1 : index
    %c0_100 = arith.constant 0 : index
    %c0_101 = arith.constant 0 : index
    %86 = vector.load %arg9[%c0_98, %c1_99, %c0_100, %c0_101] : memref<1x18x18x8xf32, #tpu.memory_space<vmem>>, vector<1x16x16x8xf32>
    %87 = vector.shape_cast %86 : vector<1x16x16x8xf32> to vector<256x8xf32>
    %88 = arith.truncf %87 : vector<256x8xf32> to vector<256x8xbf16>
    %c24_102 = arith.constant 24 : index
    %c0_103 = arith.constant 0 : index
    %89 = vector.load %arg5[%c24_102, %c0_103] : memref<72x8xbf16, #tpu.memory_space<vmem>>, vector<8x8xbf16>
    %cst_104 = arith.constant dense<0.000000e+00> : vector<256x8xf32>
    %90 = tpu.matmul %88, %89, %cst_104 {dimension_numbers = #tpu.dot_dimension_numbers<[1], [0], [0], [1], [0, 0, 1, 1], [], []>} : vector<256x8xbf16>, vector<8x8xbf16>, vector<256x8xf32> -> vector<256x8xf32>
    %91 = arith.addf %85, %90 : vector<256x8xf32>
    %c0_105 = arith.constant 0 : index
    %c1_106 = arith.constant 1 : index
    %c1_107 = arith.constant 1 : index
    %c0_108 = arith.constant 0 : index
    %92 = vector.load %arg9[%c0_105, %c1_106, %c1_107, %c0_108] : memref<1x18x18x8xf32, #tpu.memory_space<vmem>>, vector<1x16x16x8xf32>
    %93 = vector.shape_cast %92 : vector<1x16x16x8xf32> to vector<256x8xf32>
    %94 = arith.truncf %93 : vector<256x8xf32> to vector<256x8xbf16>
    %c32_109 = arith.constant 32 : index
    %c0_110 = arith.constant 0 : index
    %95 = vector.load %arg5[%c32_109, %c0_110] : memref<72x8xbf16, #tpu.memory_space<vmem>>, vector<8x8xbf16>
    %cst_111 = arith.constant dense<0.000000e+00> : vector<256x8xf32>
    %96 = tpu.matmul %94, %95, %cst_111 {dimension_numbers = #tpu.dot_dimension_numbers<[1], [0], [0], [1], [0, 0, 1, 1], [], []>} : vector<256x8xbf16>, vector<8x8xbf16>, vector<256x8xf32> -> vector<256x8xf32>
    %97 = arith.addf %91, %96 : vector<256x8xf32>
    %c0_112 = arith.constant 0 : index
    %c1_113 = arith.constant 1 : index
    %c2_114 = arith.constant 2 : index
    %c0_115 = arith.constant 0 : index
    %98 = vector.load %arg9[%c0_112, %c1_113, %c2_114, %c0_115] : memref<1x18x18x8xf32, #tpu.memory_space<vmem>>, vector<1x16x16x8xf32>
    %99 = vector.shape_cast %98 : vector<1x16x16x8xf32> to vector<256x8xf32>
    %100 = arith.truncf %99 : vector<256x8xf32> to vector<256x8xbf16>
    %c40_116 = arith.constant 40 : index
    %c0_117 = arith.constant 0 : index
    %101 = vector.load %arg5[%c40_116, %c0_117] : memref<72x8xbf16, #tpu.memory_space<vmem>>, vector<8x8xbf16>
    %cst_118 = arith.constant dense<0.000000e+00> : vector<256x8xf32>
    %102 = tpu.matmul %100, %101, %cst_118 {dimension_numbers = #tpu.dot_dimension_numbers<[1], [0], [0], [1], [0, 0, 1, 1], [], []>} : vector<256x8xbf16>, vector<8x8xbf16>, vector<256x8xf32> -> vector<256x8xf32>
    %103 = arith.addf %97, %102 : vector<256x8xf32>
    %c0_119 = arith.constant 0 : index
    %c2_120 = arith.constant 2 : index
    %c0_121 = arith.constant 0 : index
    %c0_122 = arith.constant 0 : index
    %104 = vector.load %arg9[%c0_119, %c2_120, %c0_121, %c0_122] : memref<1x18x18x8xf32, #tpu.memory_space<vmem>>, vector<1x16x16x8xf32>
    %105 = vector.shape_cast %104 : vector<1x16x16x8xf32> to vector<256x8xf32>
    %106 = arith.truncf %105 : vector<256x8xf32> to vector<256x8xbf16>
    %c48_123 = arith.constant 48 : index
    %c0_124 = arith.constant 0 : index
    %107 = vector.load %arg5[%c48_123, %c0_124] : memref<72x8xbf16, #tpu.memory_space<vmem>>, vector<8x8xbf16>
    %cst_125 = arith.constant dense<0.000000e+00> : vector<256x8xf32>
    %108 = tpu.matmul %106, %107, %cst_125 {dimension_numbers = #tpu.dot_dimension_numbers<[1], [0], [0], [1], [0, 0, 1, 1], [], []>} : vector<256x8xbf16>, vector<8x8xbf16>, vector<256x8xf32> -> vector<256x8xf32>
    %109 = arith.addf %103, %108 : vector<256x8xf32>
    %c0_126 = arith.constant 0 : index
    %c2_127 = arith.constant 2 : index
    %c1_128 = arith.constant 1 : index
    %c0_129 = arith.constant 0 : index
    %110 = vector.load %arg9[%c0_126, %c2_127, %c1_128, %c0_129] : memref<1x18x18x8xf32, #tpu.memory_space<vmem>>, vector<1x16x16x8xf32>
    %111 = vector.shape_cast %110 : vector<1x16x16x8xf32> to vector<256x8xf32>
    %112 = arith.truncf %111 : vector<256x8xf32> to vector<256x8xbf16>
    %c56_130 = arith.constant 56 : index
    %c0_131 = arith.constant 0 : index
    %113 = vector.load %arg5[%c56_130, %c0_131] : memref<72x8xbf16, #tpu.memory_space<vmem>>, vector<8x8xbf16>
    %cst_132 = arith.constant dense<0.000000e+00> : vector<256x8xf32>
    %114 = tpu.matmul %112, %113, %cst_132 {dimension_numbers = #tpu.dot_dimension_numbers<[1], [0], [0], [1], [0, 0, 1, 1], [], []>} : vector<256x8xbf16>, vector<8x8xbf16>, vector<256x8xf32> -> vector<256x8xf32>
    %115 = arith.addf %109, %114 : vector<256x8xf32>
    %c0_133 = arith.constant 0 : index
    %c2_134 = arith.constant 2 : index
    %c2_135 = arith.constant 2 : index
    %c0_136 = arith.constant 0 : index
    %116 = vector.load %arg9[%c0_133, %c2_134, %c2_135, %c0_136] : memref<1x18x18x8xf32, #tpu.memory_space<vmem>>, vector<1x16x16x8xf32>
    %117 = vector.shape_cast %116 : vector<1x16x16x8xf32> to vector<256x8xf32>
    %118 = arith.truncf %117 : vector<256x8xf32> to vector<256x8xbf16>
    %c64_137 = arith.constant 64 : index
    %c0_138 = arith.constant 0 : index
    %119 = vector.load %arg5[%c64_137, %c0_138] : memref<72x8xbf16, #tpu.memory_space<vmem>>, vector<8x8xbf16>
    %cst_139 = arith.constant dense<0.000000e+00> : vector<256x8xf32>
    %120 = tpu.matmul %118, %119, %cst_139 {dimension_numbers = #tpu.dot_dimension_numbers<[1], [0], [0], [1], [0, 0, 1, 1], [], []>} : vector<256x8xbf16>, vector<8x8xbf16>, vector<256x8xf32> -> vector<256x8xf32>
    %121 = arith.addf %115, %120 : vector<256x8xf32>
    %c0_140 = arith.constant 0 : index
    %c1_141 = arith.constant 1 : index
    %c1_142 = arith.constant 1 : index
    %c0_143 = arith.constant 0 : index
    %122 = vector.load %arg1[%c0_140, %c1_141, %c1_142, %c0_143] : memref<1x18x18x8xf32, #tpu.memory_space<vmem>>, vector<1x16x16x8xf32>
    %123 = vector.shape_cast %121 : vector<256x8xf32> to vector<1x16x16x8xf32>
    %c0_144 = arith.constant 0 : index
    %c0_145 = arith.constant 0 : index
    %124 = vector.load %arg6[%c0_144, %c0_145] : memref<1x8xf32, #tpu.memory_space<vmem>>, vector<1x8xf32>
    %125 = vector.shape_cast %124 : vector<1x8xf32> to vector<1x1x1x8xf32>
    %126 = vector.broadcast %125 : vector<1x1x1x8xf32> to vector<1x16x16x8xf32>
    %127 = arith.mulf %123, %126 : vector<1x16x16x8xf32>
    %c0_146 = arith.constant 0 : index
    %c0_147 = arith.constant 0 : index
    %128 = vector.load %arg7[%c0_146, %c0_147] : memref<1x8xf32, #tpu.memory_space<vmem>>, vector<1x8xf32>
    %129 = vector.shape_cast %128 : vector<1x8xf32> to vector<1x1x1x8xf32>
    %130 = vector.broadcast %129 : vector<1x1x1x8xf32> to vector<1x16x16x8xf32>
    %131 = arith.addf %127, %130 : vector<1x16x16x8xf32>
    %132 = arith.addf %131, %122 : vector<1x16x16x8xf32>
    %cst_148 = arith.constant 0.000000e+00 : f32
    %133 = vector.broadcast %cst_148 : f32 to vector<1x16x16x8xf32>
    %134 = arith.maximumf %132, %133 : vector<1x16x16x8xf32>
    %c0_149 = arith.constant 0 : index
    %c0_150 = arith.constant 0 : index
    %c0_151 = arith.constant 0 : index
    %c0_152 = arith.constant 0 : index
    %135 = vector.load %arg8[%c0_149, %c0_150, %c0_151, %c0_152] : memref<1x16x16x8xf32, #tpu.memory_space<vmem>>, vector<1x16x16x8xf32>
    tpu.vector_store %arg8[%c0_149, %c0_150, %c0_151, %c0_152], %134 {strides = array<i32>} : memref<1x16x16x8xf32, #tpu.memory_space<vmem>>, vector<1x16x16x8xf32>,
    return
  }
  func.func @transform_0(%arg0: i32) -> (i32, i32, i32, i32) {
    %c0_i32 = arith.constant 0 : i32
    %c0_i32_0 = arith.constant 0 : i32
    %c0_i32_1 = arith.constant 0 : i32
    %c0_i32_2 = arith.constant 0 : i32
    return %arg0, %c0_i32, %c0_i32_0, %c0_i32_1 : i32, i32, i32, i32
  }
  func.func @transform_1(%arg0: i32) -> (i32, i32) {
    %c0_i32 = arith.constant 0 : i32
    %c0_i32_0 = arith.constant 0 : i32
    %c0_i32_1 = arith.constant 0 : i32
    return %c0_i32, %c0_i32_0 : i32, i32
  }
  func.func @transform_2(%arg0: i32) -> (i32, i32) {
    %c0_i32 = arith.constant 0 : i32
    %c0_i32_0 = arith.constant 0 : i32
    %c0_i32_1 = arith.constant 0 : i32
    return %c0_i32, %c0_i32_0 : i32, i32
  }
  func.func @transform_3(%arg0: i32) -> (i32, i32) {
    %c0_i32 = arith.constant 0 : i32
    %c0_i32_0 = arith.constant 0 : i32
    %c0_i32_1 = arith.constant 0 : i32
    return %c0_i32, %c0_i32_0 : i32, i32
  }
  func.func @transform_4(%arg0: i32) -> (i32, i32) {
    %c0_i32 = arith.constant 0 : i32
    %c0_i32_0 = arith.constant 0 : i32
    %c0_i32_1 = arith.constant 0 : i32
    return %c0_i32, %c0_i32_0 : i32, i32
  }
  func.func @transform_5(%arg0: i32) -> (i32, i32) {
    %c0_i32 = arith.constant 0 : i32
    %c0_i32_0 = arith.constant 0 : i32
    %c0_i32_1 = arith.constant 0 : i32
    return %c0_i32, %c0_i32_0 : i32, i32
  }
  func.func @transform_6(%arg0: i32) -> (i32, i32) {
    %c0_i32 = arith.constant 0 : i32
    %c0_i32_0 = arith.constant 0 : i32
    %c0_i32_1 = arith.constant 0 : i32
    return %c0_i32, %c0_i32_0 : i32, i32
  }
  func.func @transform_7(%arg0: i32) -> (i32, i32, i32, i32) {
    %c0_i32 = arith.constant 0 : i32
    %c0_i32_0 = arith.constant 0 : i32
    %c0_i32_1 = arith.constant 0 : i32
    %c0_i32_2 = arith.constant 0 : i32
    return %arg0, %c0_i32, %c0_i32_0, %c0_i32_1 : i32, i32, i32, i32
  }
}

module attributes {stable_mosaic.version = 11 : i64} {
  func.func @kernel(%arg0: i32, %arg1: memref<1x18x18x8xf32, #tpu.memory_space<vmem>>, %arg2: memref<72x8xbf16, #tpu.memory_space<vmem>>, %arg3: memref<1x8xf32, #tpu.memory_space<vmem>>, %arg4: memref<1x8xf32, #tpu.memory_space<vmem>>, %arg5: memref<72x8xbf16, #tpu.memory_space<vmem>>, %arg6: memref<1x8xf32, #tpu.memory_space<vmem>>, %arg7: memref<1x8xf32, #tpu.memory_space<vmem>>, %arg8: memref<1x16x16x8xf32, #tpu.memory_space<vmem>>, %arg9: memref<1x18x18x8xf32, #tpu.memory_space<vmem>>) attributes {dimension_semantics = [#tpu.dimension_semantics<parallel>], iteration_bounds = array<i64: 2>, scalar_prefetch = 0 : i64, scratch_operands = 1 : i64, tpu.core_type = #tpu.core_type<tc>, window_params = [{transform_indices = @transform_0, window_bounds = array<i64: 1, 18, 18, 8>}, {pipeline_mode = #tpu.pipeline_mode<synchronous>, transform_indices = @transform_1, window_bounds = array<i64: 72, 8>}, {pipeline_mode = #tpu.pipeline_mode<synchronous>, transform_indices = @transform_2, window_bounds = array<i64: 1, 8>}, {pipeline_mode = #tpu.pipeline_mode<synchronous>, transform_indices = @transform_3, window_bounds = array<i64: 1, 8>}, {pipeline_mode = #tpu.pipeline_mode<synchronous>, transform_indices = @transform_4, window_bounds = array<i64: 72, 8>}, {pipeline_mode = #tpu.pipeline_mode<synchronous>, transform_indices = @transform_5, window_bounds = array<i64: 1, 8>}, {pipeline_mode = #tpu.pipeline_mode<synchronous>, transform_indices = @transform_6, window_bounds = array<i64: 1, 8>}, {transform_indices = @transform_7, window_bounds = array<i64: 1, 16, 16, 8>}]} {
    %c0 = arith.constant 0 : index
    %c0_0 = arith.constant 0 : index
    %c0_1 = arith.constant 0 : index
    %c0_2 = arith.constant 0 : index
    %0 = vector.load %arg1[%c0, %c0_0, %c0_1, %c0_2] : memref<1x18x18x8xf32, #tpu.memory_space<vmem>>, vector<1x16x16x8xf32>
    %1 = vector.shape_cast %0 : vector<1x16x16x8xf32> to vector<256x8xf32>
    %2 = arith.truncf %1 : vector<256x8xf32> to vector<256x8xbf16>
    %c0_3 = arith.constant 0 : index
    %c0_4 = arith.constant 0 : index
    %3 = vector.load %arg2[%c0_3, %c0_4] : memref<72x8xbf16, #tpu.memory_space<vmem>>, vector<8x8xbf16>
    %cst = arith.constant dense<0.000000e+00> : vector<256x8xf32>
    %4 = tpu.matmul %2, %3, %cst {dimension_numbers = #tpu.dot_dimension_numbers<[1], [0], [0], [1], [0, 0, 1, 1], [], []>} : vector<256x8xbf16>, vector<8x8xbf16>, vector<256x8xf32> -> vector<256x8xf32>
    %c0_5 = arith.constant 0 : index
    %c0_6 = arith.constant 0 : index
    %c1 = arith.constant 1 : index
    %c0_7 = arith.constant 0 : index
    %5 = vector.load %arg1[%c0_5, %c0_6, %c1, %c0_7] : memref<1x18x18x8xf32, #tpu.memory_space<vmem>>, vector<1x16x16x8xf32>
    %6 = vector.shape_cast %5 : vector<1x16x16x8xf32> to vector<256x8xf32>
    %7 = arith.truncf %6 : vector<256x8xf32> to vector<256x8xbf16>
    %c8 = arith.constant 8 : index
    %c0_8 = arith.constant 0 : index
    %8 = vector.load %arg2[%c8, %c0_8] : memref<72x8xbf16, #tpu.memory_space<vmem>>, vector<8x8xbf16>
    %cst_9 = arith.constant dense<0.000000e+00> : vector<256x8xf32>
    %9 = tpu.matmul %7, %8, %cst_9 {dimension_numbers = #tpu.dot_dimension_numbers<[1], [0], [0], [1], [0, 0, 1, 1], [], []>} : vector<256x8xbf16>, vector<8x8xbf16>, vector<256x8xf32> -> vector<256x8xf32>
    %10 = arith.addf %4, %9 : vector<256x8xf32>
    %c0_10 = arith.constant 0 : index
    %c0_11 = arith.constant 0 : index
    %c2 = arith.constant 2 : index
    %c0_12 = arith.constant 0 : index
    %11 = vector.load %arg1[%c0_10, %c0_11, %c2, %c0_12] : memref<1x18x18x8xf32, #tpu.memory_space<vmem>>, vector<1x16x16x8xf32>
    %12 = vector.shape_cast %11 : vector<1x16x16x8xf32> to vector<256x8xf32>
    %13 = arith.truncf %12 : vector<256x8xf32> to vector<256x8xbf16>
    %c16 = arith.constant 16 : index
    %c0_13 = arith.constant 0 : index
    %14 = vector.load %arg2[%c16, %c0_13] : memref<72x8xbf16, #tpu.memory_space<vmem>>, vector<8x8xbf16>
    %cst_14 = arith.constant dense<0.000000e+00> : vector<256x8xf32>
    %15 = tpu.matmul %13, %14, %cst_14 {dimension_numbers = #tpu.dot_dimension_numbers<[1], [0], [0], [1], [0, 0, 1, 1], [], []>} : vector<256x8xbf16>, vector<8x8xbf16>, vector<256x8xf32> -> vector<256x8xf32>
    %16 = arith.addf %10, %15 : vector<256x8xf32>
    %c0_15 = arith.constant 0 : index
    %c1_16 = arith.constant 1 : index
    %c0_17 = arith.constant 0 : index
    %c0_18 = arith.constant 0 : index
    %17 = vector.load %arg1[%c0_15, %c1_16, %c0_17, %c0_18] : memref<1x18x18x8xf32, #tpu.memory_space<vmem>>, vector<1x16x16x8xf32>
    %18 = vector.shape_cast %17 : vector<1x16x16x8xf32> to vector<256x8xf32>
    %19 = arith.truncf %18 : vector<256x8xf32> to vector<256x8xbf16>
    %c24 = arith.constant 24 : index
    %c0_19 = arith.constant 0 : index
    %20 = vector.load %arg2[%c24, %c0_19] : memref<72x8xbf16, #tpu.memory_space<vmem>>, vector<8x8xbf16>
    %cst_20 = arith.constant dense<0.000000e+00> : vector<256x8xf32>
    %21 = tpu.matmul %19, %20, %cst_20 {dimension_numbers = #tpu.dot_dimension_numbers<[1], [0], [0], [1], [0, 0, 1, 1], [], []>} : vector<256x8xbf16>, vector<8x8xbf16>, vector<256x8xf32> -> vector<256x8xf32>
    %22 = arith.addf %16, %21 : vector<256x8xf32>
    %c0_21 = arith.constant 0 : index
    %c1_22 = arith.constant 1 : index
    %c1_23 = arith.constant 1 : index
    %c0_24 = arith.constant 0 : index
    %23 = vector.load %arg1[%c0_21, %c1_22, %c1_23, %c0_24] : memref<1x18x18x8xf32, #tpu.memory_space<vmem>>, vector<1x16x16x8xf32>
    %24 = vector.shape_cast %23 : vector<1x16x16x8xf32> to vector<256x8xf32>
    %25 = arith.truncf %24 : vector<256x8xf32> to vector<256x8xbf16>
    %c32 = arith.constant 32 : index
    %c0_25 = arith.constant 0 : index
    %26 = vector.load %arg2[%c32, %c0_25] : memref<72x8xbf16, #tpu.memory_space<vmem>>, vector<8x8xbf16>
    %cst_26 = arith.constant dense<0.000000e+00> : vector<256x8xf32>
    %27 = tpu.matmul %25, %26, %cst_26 {dimension_numbers = #tpu.dot_dimension_numbers<[1], [0], [0], [1], [0, 0, 1, 1], [], []>} : vector<256x8xbf16>, vector<8x8xbf16>, vector<256x8xf32> -> vector<256x8xf32>
    %28 = arith.addf %22, %27 : vector<256x8xf32>
    %c0_27 = arith.constant 0 : index
    %c1_28 = arith.constant 1 : index
    %c2_29 = arith.constant 2 : index
    %c0_30 = arith.constant 0 : index
    %29 = vector.load %arg1[%c0_27, %c1_28, %c2_29, %c0_30] : memref<1x18x18x8xf32, #tpu.memory_space<vmem>>, vector<1x16x16x8xf32>
    %30 = vector.shape_cast %29 : vector<1x16x16x8xf32> to vector<256x8xf32>
    %31 = arith.truncf %30 : vector<256x8xf32> to vector<256x8xbf16>
    %c40 = arith.constant 40 : index
    %c0_31 = arith.constant 0 : index
    %32 = vector.load %arg2[%c40, %c0_31] : memref<72x8xbf16, #tpu.memory_space<vmem>>, vector<8x8xbf16>
    %cst_32 = arith.constant dense<0.000000e+00> : vector<256x8xf32>
    %33 = tpu.matmul %31, %32, %cst_32 {dimension_numbers = #tpu.dot_dimension_numbers<[1], [0], [0], [1], [0, 0, 1, 1], [], []>} : vector<256x8xbf16>, vector<8x8xbf16>, vector<256x8xf32> -> vector<256x8xf32>
    %34 = arith.addf %28, %33 : vector<256x8xf32>
    %c0_33 = arith.constant 0 : index
    %c2_34 = arith.constant 2 : index
    %c0_35 = arith.constant 0 : index
    %c0_36 = arith.constant 0 : index
    %35 = vector.load %arg1[%c0_33, %c2_34, %c0_35, %c0_36] : memref<1x18x18x8xf32, #tpu.memory_space<vmem>>, vector<1x16x16x8xf32>
    %36 = vector.shape_cast %35 : vector<1x16x16x8xf32> to vector<256x8xf32>
    %37 = arith.truncf %36 : vector<256x8xf32> to vector<256x8xbf16>
    %c48 = arith.constant 48 : index
    %c0_37 = arith.constant 0 : index
    %38 = vector.load %arg2[%c48, %c0_37] : memref<72x8xbf16, #tpu.memory_space<vmem>>, vector<8x8xbf16>
    %cst_38 = arith.constant dense<0.000000e+00> : vector<256x8xf32>
    %39 = tpu.matmul %37, %38, %cst_38 {dimension_numbers = #tpu.dot_dimension_numbers<[1], [0], [0], [1], [0, 0, 1, 1], [], []>} : vector<256x8xbf16>, vector<8x8xbf16>, vector<256x8xf32> -> vector<256x8xf32>
    %40 = arith.addf %34, %39 : vector<256x8xf32>
    %c0_39 = arith.constant 0 : index
    %c2_40 = arith.constant 2 : index
    %c1_41 = arith.constant 1 : index
    %c0_42 = arith.constant 0 : index
    %41 = vector.load %arg1[%c0_39, %c2_40, %c1_41, %c0_42] : memref<1x18x18x8xf32, #tpu.memory_space<vmem>>, vector<1x16x16x8xf32>
    %42 = vector.shape_cast %41 : vector<1x16x16x8xf32> to vector<256x8xf32>
    %43 = arith.truncf %42 : vector<256x8xf32> to vector<256x8xbf16>
    %c56 = arith.constant 56 : index
    %c0_43 = arith.constant 0 : index
    %44 = vector.load %arg2[%c56, %c0_43] : memref<72x8xbf16, #tpu.memory_space<vmem>>, vector<8x8xbf16>
    %cst_44 = arith.constant dense<0.000000e+00> : vector<256x8xf32>
    %45 = tpu.matmul %43, %44, %cst_44 {dimension_numbers = #tpu.dot_dimension_numbers<[1], [0], [0], [1], [0, 0, 1, 1], [], []>} : vector<256x8xbf16>, vector<8x8xbf16>, vector<256x8xf32> -> vector<256x8xf32>
    %46 = arith.addf %40, %45 : vector<256x8xf32>
    %c0_45 = arith.constant 0 : index
    %c2_46 = arith.constant 2 : index
    %c2_47 = arith.constant 2 : index
    %c0_48 = arith.constant 0 : index
    %47 = vector.load %arg1[%c0_45, %c2_46, %c2_47, %c0_48] : memref<1x18x18x8xf32, #tpu.memory_space<vmem>>, vector<1x16x16x8xf32>
    %48 = vector.shape_cast %47 : vector<1x16x16x8xf32> to vector<256x8xf32>
    %49 = arith.truncf %48 : vector<256x8xf32> to vector<256x8xbf16>
    %c64 = arith.constant 64 : index
    %c0_49 = arith.constant 0 : index
    %50 = vector.load %arg2[%c64, %c0_49] : memref<72x8xbf16, #tpu.memory_space<vmem>>, vector<8x8xbf16>
    %cst_50 = arith.constant dense<0.000000e+00> : vector<256x8xf32>
    %51 = tpu.matmul %49, %50, %cst_50 {dimension_numbers = #tpu.dot_dimension_numbers<[1], [0], [0], [1], [0, 0, 1, 1], [], []>} : vector<256x8xbf16>, vector<8x8xbf16>, vector<256x8xf32> -> vector<256x8xf32>
    %52 = arith.addf %46, %51 : vector<256x8xf32>
    %c0_51 = arith.constant 0 : index
    %c0_52 = arith.constant 0 : index
    %53 = vector.load %arg3[%c0_51, %c0_52] : memref<1x8xf32, #tpu.memory_space<vmem>>, vector<1x8xf32>
    %54 = vector.broadcast %53 : vector<1x8xf32> to vector<256x8xf32>
    %55 = arith.mulf %52, %54 : vector<256x8xf32>
    %c0_53 = arith.constant 0 : index
    %c0_54 = arith.constant 0 : index
    %56 = vector.load %arg4[%c0_53, %c0_54] : memref<1x8xf32, #tpu.memory_space<vmem>>, vector<1x8xf32>
    %57 = vector.broadcast %56 : vector<1x8xf32> to vector<256x8xf32>
    %58 = arith.addf %55, %57 : vector<256x8xf32>
    %cst_55 = arith.constant 0.000000e+00 : f32
    %59 = vector.broadcast %cst_55 : f32 to vector<256x8xf32>
    %60 = arith.maximumf %58, %59 : vector<256x8xf32>
    %cst_56 = arith.constant 0.000000e+00 : f32
    %61 = vector.broadcast %cst_56 : f32 to vector<1x1x18x8xf32>
    %cst_57 = arith.constant 0.000000e+00 : f32
    %62 = vector.broadcast %cst_57 : f32 to vector<1x18x1x8xf32>
    %c0_58 = arith.constant 0 : index
    %c0_59 = arith.constant 0 : index
    %c0_60 = arith.constant 0 : index
    %c0_61 = arith.constant 0 : index
    %63 = vector.load %arg9[%c0_58, %c0_59, %c0_60, %c0_61] : memref<1x18x18x8xf32, #tpu.memory_space<vmem>>, vector<1x1x18x8xf32>
    tpu.vector_store %arg9[%c0_58, %c0_59, %c0_60, %c0_61], %61 {strides = array<i32>} : memref<1x18x18x8xf32, #tpu.memory_space<vmem>>, vector<1x1x18x8xf32>,
    %c0_62 = arith.constant 0 : index
    %c17 = arith.constant 17 : index
    %c0_63 = arith.constant 0 : index
    %c0_64 = arith.constant 0 : index
    %64 = vector.load %arg9[%c0_62, %c17, %c0_63, %c0_64] : memref<1x18x18x8xf32, #tpu.memory_space<vmem>>, vector<1x1x18x8xf32>
    tpu.vector_store %arg9[%c0_62, %c17, %c0_63, %c0_64], %61 {strides = array<i32>} : memref<1x18x18x8xf32, #tpu.memory_space<vmem>>, vector<1x1x18x8xf32>,
    %c0_65 = arith.constant 0 : index
    %c0_66 = arith.constant 0 : index
    %c0_67 = arith.constant 0 : index
    %c0_68 = arith.constant 0 : index
    %65 = vector.load %arg9[%c0_65, %c0_66, %c0_67, %c0_68] : memref<1x18x18x8xf32, #tpu.memory_space<vmem>>, vector<1x18x1x8xf32>
    tpu.vector_store %arg9[%c0_65, %c0_66, %c0_67, %c0_68], %62 {strides = array<i32>} : memref<1x18x18x8xf32, #tpu.memory_space<vmem>>, vector<1x18x1x8xf32>,
    %c0_69 = arith.constant 0 : index
    %c0_70 = arith.constant 0 : index
    %c17_71 = arith.constant 17 : index
    %c0_72 = arith.constant 0 : index
    %66 = vector.load %arg9[%c0_69, %c0_70, %c17_71, %c0_72] : memref<1x18x18x8xf32, #tpu.memory_space<vmem>>, vector<1x18x1x8xf32>
    tpu.vector_store %arg9[%c0_69, %c0_70, %c17_71, %c0_72], %62 {strides = array<i32>} : memref<1x18x18x8xf32, #tpu.memory_space<vmem>>, vector<1x18x1x8xf32>,
    %67 = vector.shape_cast %60 : vector<256x8xf32> to vector<1x16x16x8xf32>
    %c0_73 = arith.constant 0 : index
    %c1_74 = arith.constant 1 : index
    %c1_75 = arith.constant 1 : index
    %c0_76 = arith.constant 0 : index
    %68 = vector.load %arg9[%c0_73, %c1_74, %c1_75, %c0_76] : memref<1x18x18x8xf32, #tpu.memory_space<vmem>>, vector<1x16x16x8xf32>
    tpu.vector_store %arg9[%c0_73, %c1_74, %c1_75, %c0_76], %67 {strides = array<i32>} : memref<1x18x18x8xf32, #tpu.memory_space<vmem>>, vector<1x16x16x8xf32>,
    %c0_77 = arith.constant 0 : index
    %c0_78 = arith.constant 0 : index
    %c0_79 = arith.constant 0 : index
    %c0_80 = arith.constant 0 : index
    %69 = vector.load %arg9[%c0_77, %c0_78, %c0_79, %c0_80] : memref<1x18x18x8xf32, #tpu.memory_space<vmem>>, vector<1x16x16x8xf32>
    %70 = vector.shape_cast %69 : vector<1x16x16x8xf32> to vector<256x8xf32>
    %71 = arith.truncf %70 : vector<256x8xf32> to vector<256x8xbf16>
    %c0_81 = arith.constant 0 : index
    %c0_82 = arith.constant 0 : index
    %72 = vector.load %arg5[%c0_81, %c0_82] : memref<72x8xbf16, #tpu.memory_space<vmem>>, vector<8x8xbf16>
    %cst_83 = arith.constant dense<0.000000e+00> : vector<256x8xf32>
    %73 = tpu.matmul %71, %72, %cst_83 {dimension_numbers = #tpu.dot_dimension_numbers<[1], [0], [0], [1], [0, 0, 1, 1], [], []>} : vector<256x8xbf16>, vector<8x8xbf16>, vector<256x8xf32> -> vector<256x8xf32>
    %c0_84 = arith.constant 0 : index
    %c0_85 = arith.constant 0 : index
    %c1_86 = arith.constant 1 : index
    %c0_87 = arith.constant 0 : index
    %74 = vector.load %arg9[%c0_84, %c0_85, %c1_86, %c0_87] : memref<1x18x18x8xf32, #tpu.memory_space<vmem>>, vector<1x16x16x8xf32>
    %75 = vector.shape_cast %74 : vector<1x16x16x8xf32> to vector<256x8xf32>
    %76 = arith.truncf %75 : vector<256x8xf32> to vector<256x8xbf16>
    %c8_88 = arith.constant 8 : index
    %c0_89 = arith.constant 0 : index
    %77 = vector.load %arg5[%c8_88, %c0_89] : memref<72x8xbf16, #tpu.memory_space<vmem>>, vector<8x8xbf16>
    %cst_90 = arith.constant dense<0.000000e+00> : vector<256x8xf32>
    %78 = tpu.matmul %76, %77, %cst_90 {dimension_numbers = #tpu.dot_dimension_numbers<[1], [0], [0], [1], [0, 0, 1, 1], [], []>} : vector<256x8xbf16>, vector<8x8xbf16>, vector<256x8xf32> -> vector<256x8xf32>
    %79 = arith.addf %73, %78 : vector<256x8xf32>
    %c0_91 = arith.constant 0 : index
    %c0_92 = arith.constant 0 : index
    %c2_93 = arith.constant 2 : index
    %c0_94 = arith.constant 0 : index
    %80 = vector.load %arg9[%c0_91, %c0_92, %c2_93, %c0_94] : memref<1x18x18x8xf32, #tpu.memory_space<vmem>>, vector<1x16x16x8xf32>
    %81 = vector.shape_cast %80 : vector<1x16x16x8xf32> to vector<256x8xf32>
    %82 = arith.truncf %81 : vector<256x8xf32> to vector<256x8xbf16>
    %c16_95 = arith.constant 16 : index
    %c0_96 = arith.constant 0 : index
    %83 = vector.load %arg5[%c16_95, %c0_96] : memref<72x8xbf16, #tpu.memory_space<vmem>>, vector<8x8xbf16>
    %cst_97 = arith.constant dense<0.000000e+00> : vector<256x8xf32>
    %84 = tpu.matmul %82, %83, %cst_97 {dimension_numbers = #tpu.dot_dimension_numbers<[1], [0], [0], [1], [0, 0, 1, 1], [], []>} : vector<256x8xbf16>, vector<8x8xbf16>, vector<256x8xf32> -> vector<256x8xf32>
    %85 = arith.addf %79, %84 : vector<256x8xf32>
    %c0_98 = arith.constant 0 : index
    %c1_99 = arith.constant 1 : index
    %c0_100 = arith.constant 0 : index
    %c0_101 = arith.constant 0 : index
    %86 = vector.load %arg9[%c0_98, %c1_99, %c0_100, %c0_101] : memref<1x18x18x8xf32, #tpu.memory_space<vmem>>, vector<1x16x16x8xf32>
    %87 = vector.shape_cast %86 : vector<1x16x16x8xf32> to vector<256x8xf32>
    %88 = arith.truncf %87 : vector<256x8xf32> to vector<256x8xbf16>
    %c24_102 = arith.constant 24 : index
    %c0_103 = arith.constant 0 : index
    %89 = vector.load %arg5[%c24_102, %c0_103] : memref<72x8xbf16, #tpu.memory_space<vmem>>, vector<8x8xbf16>
    %cst_104 = arith.constant dense<0.000000e+00> : vector<256x8xf32>
    %90 = tpu.matmul %88, %89, %cst_104 {dimension_numbers = #tpu.dot_dimension_numbers<[1], [0], [0], [1], [0, 0, 1, 1], [], []>} : vector<256x8xbf16>, vector<8x8xbf16>, vector<256x8xf32> -> vector<256x8xf32>
    %91 = arith.addf %85, %90 : vector<256x8xf32>
    %c0_105 = arith.constant 0 : index
    %c1_106 = arith.constant 1 : index
    %c1_107 = arith.constant 1 : index
    %c0_108 = arith.constant 0 : index
    %92 = vector.load %arg9[%c0_105, %c1_106, %c1_107, %c0_108] : memref<1x18x18x8xf32, #tpu.memory_space<vmem>>, vector<1x16x16x8xf32>
    %93 = vector.shape_cast %92 : vector<1x16x16x8xf32> to vector<256x8xf32>
    %94 = arith.truncf %93 : vector<256x8xf32> to vector<256x8xbf16>
    %c32_109 = arith.constant 32 : index
    %c0_110 = arith.constant 0 : index
    %95 = vector.load %arg5[%c32_109, %c0_110] : memref<72x8xbf16, #tpu.memory_space<vmem>>, vector<8x8xbf16>
    %cst_111 = arith.constant dense<0.000000e+00> : vector<256x8xf32>
    %96 = tpu.matmul %94, %95, %cst_111 {dimension_numbers = #tpu.dot_dimension_numbers<[1], [0], [0], [1], [0, 0, 1, 1], [], []>} : vector<256x8xbf16>, vector<8x8xbf16>, vector<256x8xf32> -> vector<256x8xf32>
    %97 = arith.addf %91, %96 : vector<256x8xf32>
    %c0_112 = arith.constant 0 : index
    %c1_113 = arith.constant 1 : index
    %c2_114 = arith.constant 2 : index
    %c0_115 = arith.constant 0 : index
    %98 = vector.load %arg9[%c0_112, %c1_113, %c2_114, %c0_115] : memref<1x18x18x8xf32, #tpu.memory_space<vmem>>, vector<1x16x16x8xf32>
    %99 = vector.shape_cast %98 : vector<1x16x16x8xf32> to vector<256x8xf32>
    %100 = arith.truncf %99 : vector<256x8xf32> to vector<256x8xbf16>
    %c40_116 = arith.constant 40 : index
    %c0_117 = arith.constant 0 : index
    %101 = vector.load %arg5[%c40_116, %c0_117] : memref<72x8xbf16, #tpu.memory_space<vmem>>, vector<8x8xbf16>
    %cst_118 = arith.constant dense<0.000000e+00> : vector<256x8xf32>
    %102 = tpu.matmul %100, %101, %cst_118 {dimension_numbers = #tpu.dot_dimension_numbers<[1], [0], [0], [1], [0, 0, 1, 1], [], []>} : vector<256x8xbf16>, vector<8x8xbf16>, vector<256x8xf32> -> vector<256x8xf32>
    %103 = arith.addf %97, %102 : vector<256x8xf32>
    %c0_119 = arith.constant 0 : index
    %c2_120 = arith.constant 2 : index
    %c0_121 = arith.constant 0 : index
    %c0_122 = arith.constant 0 : index
    %104 = vector.load %arg9[%c0_119, %c2_120, %c0_121, %c0_122] : memref<1x18x18x8xf32, #tpu.memory_space<vmem>>, vector<1x16x16x8xf32>
    %105 = vector.shape_cast %104 : vector<1x16x16x8xf32> to vector<256x8xf32>
    %106 = arith.truncf %105 : vector<256x8xf32> to vector<256x8xbf16>
    %c48_123 = arith.constant 48 : index
    %c0_124 = arith.constant 0 : index
    %107 = vector.load %arg5[%c48_123, %c0_124] : memref<72x8xbf16, #tpu.memory_space<vmem>>, vector<8x8xbf16>
    %cst_125 = arith.constant dense<0.000000e+00> : vector<256x8xf32>
    %108 = tpu.matmul %106, %107, %cst_125 {dimension_numbers = #tpu.dot_dimension_numbers<[1], [0], [0], [1], [0, 0, 1, 1], [], []>} : vector<256x8xbf16>, vector<8x8xbf16>, vector<256x8xf32> -> vector<256x8xf32>
    %109 = arith.addf %103, %108 : vector<256x8xf32>
    %c0_126 = arith.constant 0 : index
    %c2_127 = arith.constant 2 : index
    %c1_128 = arith.constant 1 : index
    %c0_129 = arith.constant 0 : index
    %110 = vector.load %arg9[%c0_126, %c2_127, %c1_128, %c0_129] : memref<1x18x18x8xf32, #tpu.memory_space<vmem>>, vector<1x16x16x8xf32>
    %111 = vector.shape_cast %110 : vector<1x16x16x8xf32> to vector<256x8xf32>
    %112 = arith.truncf %111 : vector<256x8xf32> to vector<256x8xbf16>
    %c56_130 = arith.constant 56 : index
    %c0_131 = arith.constant 0 : index
    %113 = vector.load %arg5[%c56_130, %c0_131] : memref<72x8xbf16, #tpu.memory_space<vmem>>, vector<8x8xbf16>
    %cst_132 = arith.constant dense<0.000000e+00> : vector<256x8xf32>
    %114 = tpu.matmul %112, %113, %cst_132 {dimension_numbers = #tpu.dot_dimension_numbers<[1], [0], [0], [1], [0, 0, 1, 1], [], []>} : vector<256x8xbf16>, vector<8x8xbf16>, vector<256x8xf32> -> vector<256x8xf32>
    %115 = arith.addf %109, %114 : vector<256x8xf32>
    %c0_133 = arith.constant 0 : index
    %c2_134 = arith.constant 2 : index
    %c2_135 = arith.constant 2 : index
    %c0_136 = arith.constant 0 : index
    %116 = vector.load %arg9[%c0_133, %c2_134, %c2_135, %c0_136] : memref<1x18x18x8xf32, #tpu.memory_space<vmem>>, vector<1x16x16x8xf32>
    %117 = vector.shape_cast %116 : vector<1x16x16x8xf32> to vector<256x8xf32>
    %118 = arith.truncf %117 : vector<256x8xf32> to vector<256x8xbf16>
    %c64_137 = arith.constant 64 : index
    %c0_138 = arith.constant 0 : index
    %119 = vector.load %arg5[%c64_137, %c0_138] : memref<72x8xbf16, #tpu.memory_space<vmem>>, vector<8x8xbf16>
    %cst_139 = arith.constant dense<0.000000e+00> : vector<256x8xf32>
    %120 = tpu.matmul %118, %119, %cst_139 {dimension_numbers = #tpu.dot_dimension_numbers<[1], [0], [0], [1], [0, 0, 1, 1], [], []>} : vector<256x8xbf16>, vector<8x8xbf16>, vector<256x8xf32> -> vector<256x8xf32>
    %121 = arith.addf %115, %120 : vector<256x8xf32>
    %c0_140 = arith.constant 0 : index
    %c1_141 = arith.constant 1 : index
    %c1_142 = arith.constant 1 : index
    %c0_143 = arith.constant 0 : index
    %122 = vector.load %arg1[%c0_140, %c1_141, %c1_142, %c0_143] : memref<1x18x18x8xf32, #tpu.memory_space<vmem>>, vector<1x16x16x8xf32>
    %123 = vector.shape_cast %121 : vector<256x8xf32> to vector<1x16x16x8xf32>
    %c0_144 = arith.constant 0 : index
    %c0_145 = arith.constant 0 : index
    %124 = vector.load %arg6[%c0_144, %c0_145] : memref<1x8xf32, #tpu.memory_space<vmem>>, vector<1x8xf32>
    %125 = vector.shape_cast %124 : vector<1x8xf32> to vector<1x1x1x8xf32>
    %126 = vector.broadcast %125 : vector<1x1x1x8xf32> to vector<1x16x16x8xf32>
    %127 = arith.mulf %123, %126 : vector<1x16x16x8xf32>
    %c0_146 = arith.constant 0 : index
    %c0_147 = arith.constant 0 : index
    %128 = vector.load %arg7[%c0_146, %c0_147] : memref<1x8xf32, #tpu.memory_space<vmem>>, vector<1x8xf32>
    %129 = vector.shape_cast %128 : vector<1x8xf32> to vector<1x1x1x8xf32>
    %130 = vector.broadcast %129 : vector<1x1x1x8xf32> to vector<1x16x16x8xf32>
    %131 = arith.addf %127, %130 : vector<1x16x16x8xf32>
    %132 = arith.addf %131, %122 : vector<1x16x16x8xf32>
    %cst_148 = arith.constant 0.000000e+00 : f32
    %133 = vector.broadcast %cst_148 : f32 to vector<1x16x16x8xf32>
    %134 = arith.maximumf %132, %133 : vector<1x16x16x8xf32>
    %c0_149 = arith.constant 0 : index
    %c0_150 = arith.constant 0 : index
    %c0_151 = arith.constant 0 : index
    %c0_152 = arith.constant 0 : index
    %135 = vector.load %arg8[%c0_149, %c0_150, %c0_151, %c0_152] : memref<1x16x16x8xf32, #tpu.memory_space<vmem>>, vector<1x16x16x8xf32>
    tpu.vector_store %arg8[%c0_149, %c0_150, %c0_151, %c0_152], %134 {strides = array<i32>} : memref<1x16x16x8xf32, #tpu.memory_space<vmem>>, vector<1x16x16x8xf32>,
    return
  }
  func.func @transform_0(%arg0: i32) -> (i32, i32, i32, i32) {
    %c0_i32 = arith.constant 0 : i32
    %c0_i32_0 = arith.constant 0 : i32
    %c0_i32_1 = arith.constant 0 : i32
    %c0_i32_2 = arith.constant 0 : i32
    return %arg0, %c0_i32, %c0_i32_0, %c0_i32_1 : i32, i32, i32, i32
  }
  func.func @transform_1(%arg0: i32) -> (i32, i32) {
    %c0_i32 = arith.constant 0 : i32
    %c0_i32_0 = arith.constant 0 : i32
    %c0_i32_1 = arith.constant 0 : i32
    return %c0_i32, %c0_i32_0 : i32, i32
  }
  func.func @transform_2(%arg0: i32) -> (i32, i32) {
    %c0_i32 = arith.constant 0 : i32
    %c0_i32_0 = arith.constant 0 : i32
    %c0_i32_1 = arith.constant 0 : i32
    return %c0_i32, %c0_i32_0 : i32, i32
  }
  func.func @transform_3(%arg0: i32) -> (i32, i32) {
    %c0_i32 = arith.constant 0 : i32
    %c0_i32_0 = arith.constant 0 : i32
    %c0_i32_1 = arith.constant 0 : i32
    return %c0_i32, %c0_i32_0 : i32, i32
  }
  func.func @transform_4(%arg0: i32) -> (i32, i32) {
    %c0_i32 = arith.constant 0 : i32
    %c0_i32_0 = arith.constant 0 : i32
    %c0_i32_1 = arith.constant 0 : i32
    return %c0_i32, %c0_i32_0 : i32, i32
  }
  func.func @transform_5(%arg0: i32) -> (i32, i32) {
    %c0_i32 = arith.constant 0 : i32
    %c0_i32_0 = arith.constant 0 : i32
    %c0_i32_1 = arith.constant 0 : i32
    return %c0_i32, %c0_i32_0 : i32, i32
  }
  func.func @transform_6(%arg0: i32) -> (i32, i32) {
    %c0_i32 = arith.constant 0 : i32
    %c0_i32_0 = arith.constant 0 : i32
    %c0_i32_1 = arith.constant 0 : i32
    return %c0_i32, %c0_i32_0 : i32, i32
  }
  func.func @transform_7(%arg0: i32) -> (i32, i32, i32, i32) {
    %c0_i32 = arith.constant 0 : i32
    %c0_i32_0 = arith.constant 0 : i32
    %c0_i32_1 = arith.constant 0 : i32
    %c0_i32_2 = arith.constant 0 : i32
    return %arg0, %c0_i32, %c0_i32_0, %c0_i32_1 : i32, i32, i32, i32
  }
}

</mosaic_0001>

<bundles_post_ra>
// kernel: tpu_custom_call.1
= control target key start
LH: loop header
LB: loop body
LE: loop exit
PB: predicated region body
PF: predicated region fallthrough
CT: control target
= control target key end

     0   :  { %s5162_s24 = smov 0   ;;  %s7078_s0 = inlined_call_operand.vmem [shape: f32[2,18,18,8], index: 0, kind: input, shape index: {}]   ;;  %s7079_s1 = inlined_call_operand.vmem [shape: bf16[72,8], index: 1, kind: input, shape index: {}]   ;;  %s7080_s2 = inlined_call_operand.vmem [shape: f32[1,8], index: 2, kind: input, shape index: {}]   ;;  %s7081_s3 = inlined_call_operand.vmem [shape: f32[1,8], index: 3, kind: input, shape index: {}]   ;;  %s7082_s4 = inlined_call_operand.vmem [shape: bf16[72,8], index: 4, kind: input, shape index: {}]   ;;  %s7083_s5 = inlined_call_operand.vmem [shape: f32[1,8], index: 5, kind: input, shape index: {}]   ;;  %s7084_s6 = inlined_call_operand.vmem [shape: f32[1,8], index: 6, kind: input, shape index: {}]   ;;  %s7085_s7 = inlined_call_operand.vmem [shape: f32[2,16,16,8], index: 7, kind: output, shape index: {}]  }
   0x1 LB: > { %s4572_s25 = sadd.s32 4294967295, %s5119_s24   ;;  %p4576_p0 = scmp.ge.s32.totalorder %s5119_s24, 1  ;;  %s5119_s24 = sphi %s5162_s24, %s17_s24  }
   0x2   : > { %p237_p1 = scmp.lt.s32.totalorder %s5119_s24, 3 }
   0x4   : > { %p238_p2 = pnand %p4576_p0, %p237_p1 }
   0x6   : > { %241 = sbr.rel (%p238_p2) target bundleno = 1448 (0x5a8), region = 48 }
   0xb   : > { %v377_v0 = vld [vmem:[%s7079_s1 + $0x4] sm:$0xf]  ;;  %vm427_vm0 = vcmask 1043456   ;;  %v328_v1 = vld [vmem:[%s7079_s1] sm:$0xf]  ;;  %p269_p3 = scmp.lt.s32.totalorder %s4572_s25, 1 }
   0xc   : > { %v429_v2 = vsel %vm427_vm0, %v377_v0, 0  ;;  %v569_v3 = vsel %vm427_vm0, %v328_v1, 0  ;;  %v708_v4 = vld [vmem:[%s7079_s1 + $0x8] sm:$0xf]  ;;  %v930_v6 = vld [vmem:[%s7079_s1 + $0xc] sm:$0xf] }
   0xd   : > { %438 = vmatpush.bf16.msra.mxu0 %v429_v2  ;;  %5095 = vmatpush.bf16.msra.mxu2 %v429_v2  ;;  %s7184_s25 = smov (!%p269_p3, %s4572_s25), 1  ;;  %v758_v5 = vsel %vm427_vm0, %v708_v4, 0  ;;  %v1151_v7 = vld [vmem:[%s7079_s1 + $0x10] sm:$0xf]  ;;  %v980_v8 = vsel %vm427_vm0, %v930_v6, 0  ;;  %vm378_vm1 = vcmask 64512  }
   0xe   : > { %5096 = vmatpush.bf16.msra.mxu3 %v569_v3  ;;  %578 = vmatpush.bf16.msra.mxu1 %v569_v3  ;;  %v1201_v9 = vsel %vm427_vm0, %v1151_v7, 0  ;;  %s5097_s13 = smul.u32 432, %s7184_s25  ;;  %vm2315_vm2 = vcmask 58368   ;;  %vm2321_vm3 = vcmask 57344   ;;  %s5094_s14 = sshll.u32 %s7184_s25, 8 }
   0xf   : > { %s6810_s18 = scalar_lea.vmem %s7085_s7, %s5094_s14 }
  0x10   : > { %s5196_s16 = scalar_lea.vmem %s7078_s0, %s5097_s13 }
  0x11   : > { %767 = vmatpush.bf16.msrb.mxu2 %v758_v5  ;;  %1210 = vmatpush.bf16.msrb.mxu0 %v1201_v9  ;;  %v329_v10 = vld [vmem:[%s5196_s16 + $0x1] sm:$0xff]  ;;  %v330_v11 = vld [vmem:[%s5196_s16 + $0x9] sm:$0xff]  ;;  %v331_v22 = vld [vmem:[%s5196_s16 + $0x19] sm:$0xff] }
  0x12   : > { %989 = vmatpush.bf16.msrb.mxu3 %v980_v8  ;;  %v345_v12 = vld [vmem:[%s5196_s16 + $0xc1] sm:$0xff]  ;;  %v361_v13 = vpack.c.bf16 %v330_v11, %v329_v10  ;;  %v346_v14 = vld [vmem:[%s5196_s16 + $0xc9] sm:$0xff]  ;;  %v347_v24 = vld [vmem:[%s5196_s16 + $0xd9] sm:$0xff] }
  0x13   : > { %v296_v15 = vld [vmem:[%s5196_s16 + $0xc0] sm:$0xff]  ;;  %v297_v16 = vld [vmem:[%s5196_s16 + $0xc8] sm:$0xff]  ;;  %v5204_v17 = vpack.c.bf16 %v346_v14, %v345_v12  ;;  %v298_v26 = vld [vmem:[%s5196_s16 + $0xd8] sm:$0xff] }
  0x14   : > { %v5206_v18 = vpack.c.bf16 %v297_v16, %v296_v15  ;;  %v280_v19 = vld [vmem:[%s5196_s16] sm:$0xff]  ;;  %v281_v20 = vld [vmem:[%s5196_s16 + $0x8] sm:$0xff]  ;;  %4580 = vmatmul.msk.bf16.vlgmr.msra.gmra.mxu0 %vm378_vm1, %v361_v13  ;;  %v282_v28 = vld [vmem:[%s5196_s16 + $0x18] sm:$0xff] }
  0x15   : > { %v312_v21 = vpack.c.bf16 %v281_v20, %v280_v19  ;;  %4588 = vmatmul.msk.bf16.vlgmr.msra.gmra.mxu2 %vm378_vm1, %v5204_v17  ;;  %v332_v23 = vld [vmem:[%s5196_s16 + $0x21] sm:$0xff]  ;;  %v333_v34 = vld [vmem:[%s5196_s16 + $0x31] sm:$0xff]  ;;  %v334_v35 = vld [vmem:[%s5196_s16 + $0x39] sm:$0xff] }
  0x16   : > { %4604 = vmatmul.msk.bf16.vlgmr.msra.gmra.mxu3 %vm378_vm1, %v5206_v18  ;;  %v348_v25 = vld [vmem:[%s5196_s16 + $0xe1] sm:$0xff]  ;;  %v5224_v30 = vpack.c.bf16 %v332_v23, %v331_v22  ;;  %v349_v36 = vld [vmem:[%s5196_s16 + $0xf1] sm:$0xff]  ;;  %v350_v37 = vld [vmem:[%s5196_s16 + $0xf9] sm:$0xff]  ;;  %v5248_v42 = vpack.c.bf16 %v334_v35, %v333_v34 }
  0x17   : > { %4596 = vmatmul.msk.bf16.vlgmr.msra.gmra.mxu1 %vm378_vm1, %v312_v21  ;;  %v299_v27 = vld [vmem:[%s5196_s16 + $0xe0] sm:$0xff]  ;;  %v5226_v31 = vpack.c.bf16 %v348_v25, %v347_v24  ;;  %v300_v38 = vld [vmem:[%s5196_s16 + $0xf0] sm:$0xff]  ;;  %v301_v39 = vld [vmem:[%s5196_s16 + $0xf8] sm:$0xff]  ;;  %v5250_v43 = vpack.c.bf16 %v350_v37, %v349_v36 }
  0x18   : > { %v283_v29 = vld [vmem:[%s5196_s16 + $0x20] sm:$0xff]  ;;  %v5228_v32 = vpack.c.bf16 %v299_v27, %v298_v26  ;;  %v284_v40 = vld [vmem:[%s5196_s16 + $0x30] sm:$0xff]  ;;  %v285_v41 = vld [vmem:[%s5196_s16 + $0x38] sm:$0xff]  ;;  %v5252_v44 = vpack.c.bf16 %v301_v39, %v300_v38 }
  0x19   : > { %v5230_v33 = vpack.c.bf16 %v283_v29, %v282_v28  ;;  %v5254_v45 = vpack.c.bf16 %v285_v41, %v284_v40  ;;  %v335_v46 = vld [vmem:[%s5196_s16 + $0x49] sm:$0xff]  ;;  %v336_v47 = vld [vmem:[%s5196_s16 + $0x51] sm:$0xff]  ;;  %v337_v58 = vld [vmem:[%s5196_s16 + $0x61] sm:$0xff] }
  0x1a   : > { %v351_v48 = vld [vmem:[%s5196_s16 + $0x109] sm:$0xff]  ;;  %v352_v49 = vld [vmem:[%s5196_s16 + $0x111] sm:$0xff]  ;;  %v5272_v54 = vpack.c.bf16 %v336_v47, %v335_v46  ;;  %v353_v60 = vld [vmem:[%s5196_s16 + $0x121] sm:$0xff] }
  0x1b   : > { %v302_v50 = vld [vmem:[%s5196_s16 + $0x108] sm:$0xff]  ;;  %v303_v51 = vld [vmem:[%s5196_s16 + $0x110] sm:$0xff]  ;;  %v5274_v55 = vpack.c.bf16 %v352_v49, %v351_v48  ;;  %v304_v62 = vld [vmem:[%s5196_s16 + $0x120] sm:$0xff] }
  0x1c   : > { %v286_v52 = vld [vmem:[%s5196_s16 + $0x48] sm:$0xff]  ;;  %v287_v53 = vld [vmem:[%s5196_s16 + $0x50] sm:$0xff]  ;;  %v5276_v56 = vpack.c.bf16 %v303_v51, %v302_v50  ;;  %v288_v0 = vld [vmem:[%s5196_s16 + $0x60] sm:$0xff] }
  0x1d   : > { %v5278_v57 = vpack.c.bf16 %v287_v53, %v286_v52  ;;  %v338_v59 = vld [vmem:[%s5196_s16 + $0x69] sm:$0xff]  ;;  %v339_v6 = vld [vmem:[%s5196_s16 + $0x79] sm:$0xff]  ;;  %v340_v7 = vld [vmem:[%s5196_s16 + $0x81] sm:$0xff] }
  0x1e   : > { %v354_v61 = vld [vmem:[%s5196_s16 + $0x129] sm:$0xff]  ;;  %v5296_v2 = vpack.c.bf16 %v338_v59, %v337_v58  ;;  %v355_v8 = vld [vmem:[%s5196_s16 + $0x139] sm:$0xff]  ;;  %v356_v9 = vld [vmem:[%s5196_s16 + $0x141] sm:$0xff]  ;;  %v5320_v14 = vpack.c.bf16 %v340_v7, %v339_v6 }
  0x1f   : > { %v305_v63 = vld [vmem:[%s5196_s16 + $0x128] sm:$0xff]  ;;  %v5298_v3 = vpack.c.bf16 %v354_v61, %v353_v60  ;;  %v306_v10 = vld [vmem:[%s5196_s16 + $0x138] sm:$0xff]  ;;  %v307_v11 = vld [vmem:[%s5196_s16 + $0x140] sm:$0xff]  ;;  %v5322_v15 = vpack.c.bf16 %v356_v9, %v355_v8 }
  0x20   : > { %v289_v1 = vld [vmem:[%s5196_s16 + $0x68] sm:$0xff]  ;;  %v5300_v4 = vpack.c.bf16 %v305_v63, %v304_v62  ;;  %v290_v12 = vld [vmem:[%s5196_s16 + $0x78] sm:$0xff]  ;;  %v291_v13 = vld [vmem:[%s5196_s16 + $0x80] sm:$0xff]  ;;  %v5324_v16 = vpack.c.bf16 %v307_v11, %v306_v10 }
  0x21   : > { %v5302_v5 = vpack.c.bf16 %v289_v1, %v288_v0  ;;  %v5326_v19 = vpack.c.bf16 %v291_v13, %v290_v12  ;;  %v341_v20 = vld [vmem:[%s5196_s16 + $0x91] sm:$0xff]  ;;  %v342_v21 = vld [vmem:[%s5196_s16 + $0x99] sm:$0xff]  ;;  %v343_v46 = vld [vmem:[%s5196_s16 + $0xa9] sm:$0xff] }
  0x22   : > { %v357_v22 = vld [vmem:[%s5196_s16 + $0x151] sm:$0xff]  ;;  %v358_v23 = vld [vmem:[%s5196_s16 + $0x159] sm:$0xff]  ;;  %v5344_v28 = vpack.c.bf16 %v342_v21, %v341_v20  ;;  %v359_v48 = vld [vmem:[%s5196_s16 + $0x169] sm:$0xff] }
  0x23   : > { %v308_v24 = vld [vmem:[%s5196_s16 + $0x150] sm:$0xff]  ;;  %v309_v25 = vld [vmem:[%s5196_s16 + $0x158] sm:$0xff]  ;;  %v5346_v29 = vpack.c.bf16 %v358_v23, %v357_v22  ;;  %v2036_v41 = vld [vmem:[%s7079_s1 + $0x20] sm:$0xf] }
  0x24   : > { %4581 = vmatmul.msk.bf16.gmra.mxu0 %vm378_vm1, %v5224_v30  ;;  %v292_v26 = vld [vmem:[%s5196_s16 + $0x90] sm:$0xff]  ;;  %v293_v27 = vld [vmem:[%s5196_s16 + $0x98] sm:$0xff]  ;;  %v5348_v34 = vpack.c.bf16 %v309_v25, %v308_v24  ;;  %v2086_v50 = vsel %vm427_vm0, %v2036_v41, 0  ;;  %v310_v52 = vld [vmem:[%s5196_s16 + $0x168] sm:$0xff] }
  0x25   : > { %4589 = vmatmul.msk.bf16.gmra.mxu2 %vm378_vm1, %v5226_v31  ;;  %v5350_v35 = vpack.c.bf16 %v293_v27, %v292_v26  ;;  %v1594_v36 = vld [vmem:[%s7079_s1 + $0x18] sm:$0xf]  ;;  %v1815_v37 = vld [vmem:[%s7079_s1 + $0x1c] sm:$0xf]  ;;  %v1372_v40 = vld [vmem:[%s7079_s1 + $0x14] sm:$0xf]  ;;  %2095 = vmatpush.bf16.msra.mxu0 %v2086_v50 }
  0x26   : > { %4605 = vmatmul.msk.bf16.gmra.mxu3 %vm378_vm1, %v5228_v32  ;;  %v1644_v38 = vsel %vm427_vm0, %v1594_v36, 0  ;;  %v1865_v39 = vsel %vm427_vm0, %v1815_v37, 0  ;;  %v344_v47 = vld [vmem:[%s5196_s16 + $0xb1] sm:$0xff]  ;;  %v1422_v49 = vsel %vm427_vm0, %v1372_v40, 0  ;;  %v294_v58 = vld [vmem:[%s5196_s16 + $0xa8] sm:$0xff]  ;;  %v4724_v6 = vld [vmem:[%s5196_s16 + $0x1a] sm:$0xff] }
  0x27   : > { %4597 = vmatmul.msk.bf16.gmra.mxu1 %vm378_vm1, %v5230_v33  ;;  %1653 = vmatpush.bf16.msra.mxu2 %v1644_v38  ;;  %v360_v51 = vld [vmem:[%s5196_s16 + $0x171] sm:$0xff]  ;;  %v5384_v60 = vpack.c.bf16 %v344_v47, %v343_v46  ;;  %v660_v0 = vld [vmem:[%s5196_s16 + $0x2] sm:$0xff]  ;;  %v4727_v26 = vld [vmem:[%s5196_s16 + $0x3a] sm:$0xff] }
  0x28   : > { %1874 = vmatpush.bf16.msra.mxu3 %v1865_v39  ;;  %v311_v53 = vld [vmem:[%s5196_s16 + $0x170] sm:$0xff]  ;;  %1431 = vmatpush.bf16.msrb.mxu1 %v1422_v49  ;;  %v5386_v61 = vpack.c.bf16 %v360_v51, %v359_v48  ;;  %v4725_v7 = vld [vmem:[%s5196_s16 + $0x22] sm:$0xff] }
  0x29   : > { %v295_v59 = vld [vmem:[%s5196_s16 + $0xb0] sm:$0xff]  ;;  %v5388_v62 = vpack.c.bf16 %v311_v53, %v310_v52  ;;  %v1356_v10 = vpack.c.bf16 %v4725_v7, %v4724_v6 }
  0x2a   : > { %v5390_v63 = vpack.c.bf16 %v295_v59, %v294_v58  ;;  %v661_v1 = vld [vmem:[%s5196_s16 + $0xa] sm:$0xff]  ;;  %v4726_v25 = vld [vmem:[%s5196_s16 + $0x32] sm:$0xff] }
  0x2b   : > { %v692_v9 = vpack.c.bf16 %v661_v1, %v660_v0  ;;  %v4728_v50 = vld [vmem:[%s5196_s16 + $0x4a] sm:$0xff]  ;;  %v4729_v51 = vld [vmem:[%s5196_s16 + $0x52] sm:$0xff] }
  0x2c   : > { %v5439_v58 = vpack.c.bf16 %v4729_v51, %v4728_v50 }
  0x34   : > { %4582 = vmatmul.msk.bf16.gmra.mxu0 %vm378_vm1, %v5248_v42 }
  0x35   : > { %4590 = vmatmul.msk.bf16.gmra.mxu2 %vm378_vm1, %v5250_v43 }
  0x36   : > { %4606 = vmatmul.msk.bf16.gmra.mxu3 %vm378_vm1, %v5252_v44 }
  0x37   : > { %4598 = vmatmul.msk.bf16.gmra.mxu1 %vm378_vm1, %v5254_v45 }
  0x44   : > { %4583 = vmatmul.msk.bf16.gmra.mxu0 %vm378_vm1, %v5272_v54 }
  0x45   : > { %4591 = vmatmul.msk.bf16.gmra.mxu2 %vm378_vm1, %v5274_v55 }
  0x46   : > { %4607 = vmatmul.msk.bf16.gmra.mxu3 %vm378_vm1, %v5276_v56 }
  0x47   : > { %4599 = vmatmul.msk.bf16.gmra.mxu1 %vm378_vm1, %v5278_v57 }
  0x54   : > { %4584 = vmatmul.msk.bf16.gmra.mxu0 %vm378_vm1, %v5296_v2 }
  0x55   : > { %4592 = vmatmul.msk.bf16.gmra.mxu2 %vm378_vm1, %v5298_v3 }
  0x56   : > { %4608 = vmatmul.msk.bf16.gmra.mxu3 %vm378_vm1, %v5300_v4 }
  0x57   : > { %4600 = vmatmul.msk.bf16.gmra.mxu1 %vm378_vm1, %v5302_v5 }
  0x64   : > { %4585 = vmatmul.msk.bf16.gmra.mxu0 %vm378_vm1, %v5320_v14 }
  0x65   : > { %4593 = vmatmul.msk.bf16.gmra.mxu2 %vm378_vm1, %v5322_v15 }
  0x66   : > { %4609 = vmatmul.msk.bf16.gmra.mxu3 %vm378_vm1, %v5324_v16 }
  0x67   : > { %4601 = vmatmul.msk.bf16.gmra.mxu1 %vm378_vm1, %v5326_v19 }
  0x74   : > { %4586 = vmatmul.msk.bf16.gmra.mxu0 %vm378_vm1, %v5344_v28 }
  0x75   : > { %4594 = vmatmul.msk.bf16.gmra.mxu2 %vm378_vm1, %v5346_v29 }
  0x76   : > { %4610 = vmatmul.msk.bf16.gmra.mxu3 %vm378_vm1, %v5348_v34 }
  0x77   : > { %4602 = vmatmul.msk.bf16.gmra.mxu1 %vm378_vm1, %v5350_v35 }
  0x84   : > { %4587 = vmatmul.msk.bf16.gmra.mxu0 %vm378_vm1, %v5384_v60 }
  0x85   : > { %4595 = vmatmul.msk.bf16.gmra.mxu2 %vm378_vm1, %v5386_v61 }
  0x86   : > { %4611 = vmatmul.msk.bf16.gmra.mxu3 %vm378_vm1, %v5388_v62 }
  0x87   : > { %4603 = vmatmul.msk.bf16.gmra.mxu1 %vm378_vm1, %v5390_v63 }
  0x91   : > { %v440_v8 = vpop.f32.mrf.mxu0 }
  0x94   : > { %v580_v11 = vpop.f32.mrf.mxu1  ;;  %4708 = vmatmul.msk.bf16.vlgmr.msrb.gmra.mxu0 %vm378_vm1, %v5224_v30 }
  0x95   : > { %v5404_v12 = vadd.f32 %v580_v11, %v440_v8  ;;  %4612 = vmatmul.msk.bf16.vlgmr.msrb.gmra.mxu2 %vm378_vm1, %v692_v9  ;;  %v4730_v11 = vld [vmem:[%s5196_s16 + $0x62] sm:$0xff] }
  0x96   : > { %4660 = vmatmul.msk.bf16.vlgmr.msrb.gmra.mxu3 %vm378_vm1, %v5230_v33  ;;  %v5420_v33 = vpack.c.bf16 %v4727_v26, %v4726_v25 }
  0x97   : > { %4756 = vmatmul.msk.bf16.vlgmr.msrb.gmra.mxu1 %vm378_vm1, %v1356_v10 }
  0x98   : > { %v480_v13 = vpop.f32.mrf.mxu2 }
  0x99   : > { %v620_v20 = vpop.f32.mrf.mxu3  ;;  %v442_v22 = vpop.f32.mrf.mxu0 }
  0x9a   : > { %v5412_v21 = vadd.f32 %v620_v20, %v480_v13  ;;  %v4731_v13 = vld [vmem:[%s5196_s16 + $0x6a] sm:$0xff] }
  0x9c   : > { %v582_v23 = vpop.f32.mrf.mxu1 }
  0x9d   : > { %v5414_v24 = vadd.f32 %v582_v23, %v442_v22  ;;  %v5459_v23 = vpack.c.bf16 %v4731_v13, %v4730_v11  ;;  %v4734_v13 = vld [vmem:[%s5196_s16 + $0x92] sm:$0xff] }
  0xa0   : > { %v482_v27 = vpop.f32.mrf.mxu2 }
  0xa1   : > { %v622_v36 = vpop.f32.mrf.mxu3  ;;  %v445_v37 = vpop.f32.mrf.mxu0 }
  0xa2   : > { %v5418_v30 = vadd.f32 %v622_v36, %v482_v27 }
  0xa4   : > { %v585_v38 = vpop.f32.mrf.mxu1  ;;  %4709 = vmatmul.msk.bf16.gmra.mxu0 %vm378_vm1, %v5248_v42 }
  0xa5   : > { %v5422_v39 = vadd.f32 %v585_v38, %v445_v37  ;;  %4613 = vmatmul.msk.bf16.gmra.mxu2 %vm378_vm1, %v1356_v10 }
  0xa6   : > { %4661 = vmatmul.msk.bf16.gmra.mxu3 %vm378_vm1, %v5254_v45 }
  0xa7   : > { %4757 = vmatmul.msk.bf16.gmra.mxu1 %vm378_vm1, %v5420_v33 }
  0xa8   : > { %v485_v40 = vpop.f32.mrf.mxu2 }
  0xa9   : > { %v625_v41 = vpop.f32.mrf.mxu3  ;;  %v447_v47 = vpop.f32.mrf.mxu0 }
  0xaa   : > { %v5431_v46 = vadd.f32 %v625_v41, %v485_v40 }
  0xac   : > { %v587_v48 = vpop.f32.mrf.mxu1 }
  0xad   : > { %v5433_v49 = vadd.f32 %v587_v48, %v447_v47  ;;  %v4732_v47 = vld [vmem:[%s5196_s16 + $0x7a] sm:$0xff]  ;;  %v4733_v48 = vld [vmem:[%s5196_s16 + $0x82] sm:$0xff] }
  0xb0   : > { %v487_v52 = vpop.f32.mrf.mxu2 }
  0xb1   : > { %v627_v42 = vpop.f32.mrf.mxu3  ;;  %v450_v45 = vpop.f32.mrf.mxu0 }
  0xb2   : > { %v5437_v53 = vadd.f32 %v627_v42, %v487_v52  ;;  %v5479_v52 = vpack.c.bf16 %v4733_v48, %v4732_v47 }
  0xb4   : > { %v590_v59 = vpop.f32.mrf.mxu1  ;;  %4710 = vmatmul.msk.bf16.gmra.mxu0 %vm378_vm1, %v5272_v54 }
  0xb5   : > { %v5441_v0 = vadd.f32 %v590_v59, %v450_v45  ;;  %4614 = vmatmul.msk.bf16.gmra.mxu2 %vm378_vm1, %v5420_v33 }
  0xb6   : > { %4662 = vmatmul.msk.bf16.gmra.mxu3 %vm378_vm1, %v5278_v57 }
  0xb7   : > { %4758 = vmatmul.msk.bf16.gmra.mxu1 %vm378_vm1, %v5439_v58 }
  0xb8   : > { %v490_v1 = vpop.f32.mrf.mxu2 }
  0xb9   : > { %v630_v6 = vpop.f32.mrf.mxu3  ;;  %v452_v8 = vpop.f32.mrf.mxu0 }
  0xba   : > { %v5451_v7 = vadd.f32 %v630_v6, %v490_v1 }
  0xbc   : > { %v592_v9 = vpop.f32.mrf.mxu1 }
  0xbd   : > { %v5453_v10 = vadd.f32 %v592_v9, %v452_v8 }
  0xc0   : > { %v492_v54 = vpop.f32.mrf.mxu2 }
  0xc1   : > { %v632_v20 = vpop.f32.mrf.mxu3  ;;  %v455_v57 = vpop.f32.mrf.mxu0 }
  0xc2   : > { %v5457_v22 = vadd.f32 %v632_v20, %v492_v54  ;;  %v4735_v54 = vld [vmem:[%s5196_s16 + $0x9a] sm:$0xff] }
  0xc4   : > { %v595_v25 = vpop.f32.mrf.mxu1  ;;  %4711 = vmatmul.msk.bf16.gmra.mxu0 %vm378_vm1, %v5296_v2 }
  0xc5   : > { %v5461_v26 = vadd.f32 %v595_v25, %v455_v57  ;;  %4615 = vmatmul.msk.bf16.gmra.mxu2 %vm378_vm1, %v5439_v58  ;;  %v5499_v25 = vpack.c.bf16 %v4735_v54, %v4734_v13 }
  0xc6   : > { %4663 = vmatmul.msk.bf16.gmra.mxu3 %vm378_vm1, %v5302_v5 }
  0xc7   : > { %4759 = vmatmul.msk.bf16.gmra.mxu1 %vm378_vm1, %v5459_v23 }
  0xc8   : > { %v495_v27 = vpop.f32.mrf.mxu2 }
  0xc9   : > { %v635_v36 = vpop.f32.mrf.mxu3  ;;  %v457_v38 = vpop.f32.mrf.mxu0 }
  0xca   : > { %v5471_v37 = vadd.f32 %v635_v36, %v495_v27 }
  0xcc   : > { %v597_v40 = vpop.f32.mrf.mxu1 }
  0xcd   : > { %v5473_v41 = vadd.f32 %v597_v40, %v457_v38 }
  0xd0   : > { %v497_v2 = vpop.f32.mrf.mxu2 }
  0xd1   : > { %v637_v50 = vpop.f32.mrf.mxu3  ;;  %v460_v5 = vpop.f32.mrf.mxu0 }
  0xd2   : > { %v5477_v51 = vadd.f32 %v637_v50, %v497_v2 }
  0xd4   : > { %v600_v42 = vpop.f32.mrf.mxu1  ;;  %4712 = vmatmul.msk.bf16.gmra.mxu0 %vm378_vm1, %v5320_v14 }
  0xd5   : > { %v5481_v45 = vadd.f32 %v600_v42, %v460_v5  ;;  %4616 = vmatmul.msk.bf16.gmra.mxu2 %vm378_vm1, %v5459_v23  ;;  %v4736_v5 = vld [vmem:[%s5196_s16 + $0xaa] sm:$0xff]  ;;  %v4737_v42 = vld [vmem:[%s5196_s16 + $0xb2] sm:$0xff] }
  0xd6   : > { %4664 = vmatmul.msk.bf16.gmra.mxu3 %vm378_vm1, %v5326_v19 }
  0xd7   : > { %4760 = vmatmul.msk.bf16.gmra.mxu1 %vm378_vm1, %v5479_v52 }
  0xd8   : > { %v500_v59 = vpop.f32.mrf.mxu2 }
  0xd9   : > { %v640_v1 = vpop.f32.mrf.mxu3  ;;  %v462_v8 = vpop.f32.mrf.mxu0 }
  0xda   : > { %v5491_v6 = vadd.f32 %v640_v1, %v500_v59 }
  0xdc   : > { %v602_v9 = vpop.f32.mrf.mxu1 }
  0xdd   : > { %v5493_v11 = vadd.f32 %v602_v9, %v462_v8  ;;  %v5519_v8 = vpack.c.bf16 %v4737_v42, %v4736_v5 }
  0xe0   : > { %v502_v14 = vpop.f32.mrf.mxu2 }
  0xe1   : > { %v642_v20 = vpop.f32.mrf.mxu3  ;;  %v465_v19 = vpop.f32.mrf.mxu0 }
  0xe2   : > { %v5497_v57 = vadd.f32 %v642_v20, %v502_v14 }
  0xe4   : > { %v605_v27 = vpop.f32.mrf.mxu1  ;;  %4713 = vmatmul.msk.bf16.gmra.mxu0 %vm378_vm1, %v5344_v28 }
  0xe5   : > { %v5501_v36 = vadd.f32 %v605_v27, %v465_v19  ;;  %4617 = vmatmul.msk.bf16.gmra.mxu2 %vm378_vm1, %v5479_v52 }
  0xe6   : > { %4665 = vmatmul.msk.bf16.gmra.mxu3 %vm378_vm1, %v5350_v35 }
  0xe7   : > { %4761 = vmatmul.msk.bf16.gmra.mxu1 %vm378_vm1, %v5499_v25 }
  0xe8   : > { %v505_v38 = vpop.f32.mrf.mxu2 }
  0xe9   : > { %v645_v40 = vpop.f32.mrf.mxu3  ;;  %v467_v48 = vpop.f32.mrf.mxu0 }
  0xea   : > { %v5511_v47 = vadd.f32 %v645_v40, %v505_v38  ;;  %v4738_v40 = vld [vmem:[%s5196_s16 + $0xc2] sm:$0xff] }
  0xec   : > { %7107 = vst [vmem:[#allocation3_spill] sm:$0xff] %v5511_v47  ;;  %v607_v2 = vpop.f32.mrf.mxu1 }
  0xed   : > { %v5513_v50 = vadd.f32 %v607_v2, %v467_v48  ;;  %v4739_v48 = vld [vmem:[%s5196_s16 + $0xca] sm:$0xff] }
  0xf0   : > { %v507_v28 = vpop.f32.mrf.mxu2 }
  0xf1   : > { %v647_v59 = vpop.f32.mrf.mxu3  ;;  %v470_v35 = vpop.f32.mrf.mxu0 }
  0xf2   : > { %v5517_v1 = vadd.f32 %v647_v59, %v507_v28  ;;  %v5539_v28 = vpack.c.bf16 %v4739_v48, %v4738_v40  ;;  %v4740_v48 = vld [vmem:[%s5196_s16 + $0xda] sm:$0xff] }
  0xf4   : > { %7108 = vst [vmem:[#allocation4_spill] sm:$0xff] %v5517_v1  ;;  %v610_v9 = vpop.f32.mrf.mxu1  ;;  %4714 = vmatmul.msk.bf16.gmra.mxu0 %vm378_vm1, %v5384_v60 }
  0xf5   : > { %v5521_v13 = vadd.f32 %v610_v9, %v470_v35  ;;  %4618 = vmatmul.msk.bf16.gmra.mxu2 %vm378_vm1, %v5499_v25  ;;  %7111 = vst [vmem:[#allocation7_spill] sm:$0xff] %v5539_v28  ;;  %v2488_v35 = vld [vmem:[%s7082_s4 + $0x4] sm:$0xf] }
  0xf6   : > { %4666 = vmatmul.msk.bf16.gmra.mxu3 %vm378_vm1, %v5390_v63 }
  0xf7   : > { %4762 = vmatmul.msk.bf16.gmra.mxu1 %vm378_vm1, %v5519_v8 }
  0xf8   : > { %v510_v54 = vpop.f32.mrf.mxu2 }
  0xf9   : > { %v650_v14 = vpop.f32.mrf.mxu3  ;;  %v472_v19 = vpop.f32.mrf.mxu0 }
  0xfa   : > { %v5531_v20 = vadd.f32 %v650_v14, %v510_v54  ;;  %v2538_v14 = vsel %vm427_vm0, %v2488_v35, 0 }
  0xfb   : > { %2547 = vmatpush.bf16.msra.mxu1 %v2538_v14 }
  0xfc   : > { %7109 = vst [vmem:[#allocation5_spill] sm:$0xff] %v5531_v20  ;;  %v612_v27 = vpop.f32.mrf.mxu1 }
  0xfd   : > { %v5533_v38 = vadd.f32 %v612_v27, %v472_v19 }
 0x100   : > { %v512_v60 = vpop.f32.mrf.mxu2 }
 0x101   : > { %v652_v2 = vpop.f32.mrf.mxu3  ;;  %v475_v42 = vpop.f32.mrf.mxu0 }
 0x102   : > { %v5537_v5 = vadd.f32 %v652_v2, %v512_v60 }
 0x104   : > { %7110 = vst [vmem:[#allocation6_spill] sm:$0xff] %v5537_v5  ;;  %v615_v63 = vpop.f32.mrf.mxu1  ;;  %4715 = vmatmul.msk.bf16.gmra.mxu0 %vm378_vm1, %v5204_v17 }
 0x105   : > { %v5541_v59 = vadd.f32 %v615_v63, %v475_v42  ;;  %4619 = vmatmul.msk.bf16.gmra.mxu2 %vm378_vm1, %v5519_v8 }
 0x106   : > { %4667 = vmatmul.msk.bf16.gmra.mxu3 %vm378_vm1, %v5206_v18  ;;  %v4741_v18 = vld [vmem:[%s5196_s16 + $0xe2] sm:$0xff] }
 0x107   : > { %4763 = vmatmul.msk.bf16.gmra.mxu1 %vm378_vm1, %v5539_v28  ;;  %v5563_v5 = vpack.c.bf16 %v4741_v18, %v4740_v48 }
 0x108   : > { %v515_v9 = vpop.f32.mrf.mxu2 }
 0x109   : > { %v655_v54 = vpop.f32.mrf.mxu3  ;;  %v477_v17 = vpop.f32.mrf.mxu0 }
 0x10a   : > { %v5555_v19 = vadd.f32 %v655_v54, %v515_v9 }
 0x10c   : > { %7112 = vst [vmem:[#allocation8_spill] sm:$0xff] %v5555_v19  ;;  %v617_v27 = vpop.f32.mrf.mxu1 }
 0x10d   : > { %v5557_v40 = vadd.f32 %v617_v27, %v477_v17 }
 0x110   : > { %v517_v60 = vpop.f32.mrf.mxu2 }
 0x111   : > { %v657_v2 = vpop.f32.mrf.mxu3  ;;  %v1212_v63 = vpop.f32.mrf.mxu0 }
 0x112   : > { %v5561_v42 = vadd.f32 %v657_v2, %v517_v60  ;;  %v4743_v60 = vld [vmem:[%s5196_s16 + $0xfa] sm:$0xff] }
 0x114   : > { %7113 = vst [vmem:[#allocation9_spill] sm:$0xff] %v5561_v42  ;;  %v1433_v20 = vpop.f32.mrf.mxu1  ;;  %4716 = vmatmul.msk.bf16.gmra.mxu0 %vm378_vm1, %v5226_v31  ;;  %v4742_v31 = vld [vmem:[%s5196_s16 + $0xf2] sm:$0xff] }
 0x115   : > { %4620 = vmatmul.msk.bf16.gmra.mxu2 %vm378_vm1, %v5539_v28  ;;  %v5579_v28 = vpack.c.bf16 %v4743_v60, %v4742_v31 }
 0x116   : > { %4668 = vmatmul.msk.bf16.gmra.mxu3 %vm378_vm1, %v5228_v32 }
 0x117   : > { %4764 = vmatmul.msk.bf16.gmra.mxu1 %vm378_vm1, %v5563_v5 }
 0x118   : > { %v769_v35 = vpop.f32.mrf.mxu2 }
 0x119   : > { %v991_v9 = vpop.f32.mrf.mxu3  ;;  %v849_v54 = vadd.f32 %v769_v35, %v5404_v12  ;;  %v1214_v14 = vpop.f32.mrf.mxu0 }
 0x11b   : > { %v1071_v17 = vadd.f32 %v991_v9, %v849_v54 }
 0x11c   : > { %v1435_v27 = vpop.f32.mrf.mxu1 }
 0x11d   : > { %v1292_v48 = vadd.f32 %v1212_v63, %v1071_v17  ;;  %v4744_v17 = vld [vmem:[%s5196_s16 + $0x10a] sm:$0xff] }
 0x11f   : > { %v5574_v18 = vadd.f32 %v1433_v20, %v1292_v48  ;;  %v4745_v48 = vld [vmem:[%s5196_s16 + $0x112] sm:$0xff] }
 0x120   : > { %v771_v2 = vpop.f32.mrf.mxu2  ;;  %v5597_v60 = vpack.c.bf16 %v4745_v48, %v4744_v17  ;;  %v4747_v17 = vld [vmem:[%s5196_s16 + $0x12a] sm:$0xff] }
 0x121   : > { %v993_v42 = vpop.f32.mrf.mxu3  ;;  %v850_v19 = vadd.f32 %v771_v2, %v5414_v24  ;;  %v1217_v32 = vpop.f32.mrf.mxu0 }
 0x123   : > { %v1072_v1 = vadd.f32 %v993_v42, %v850_v19 }
 0x124   : > { %v1438_v47 = vpop.f32.mrf.mxu1  ;;  %4717 = vmatmul.msk.bf16.gmra.mxu0 %vm378_vm1, %v5250_v43 }
 0x125   : > { %4621 = vmatmul.msk.bf16.gmra.mxu2 %vm378_vm1, %v5563_v5  ;;  %v1293_v12 = vadd.f32 %v1214_v14, %v1072_v1 }
 0x126   : > { %4669 = vmatmul.msk.bf16.gmra.mxu3 %vm378_vm1, %v5252_v44 }
 0x127   : > { %4765 = vmatmul.msk.bf16.gmra.mxu1 %vm378_vm1, %v5579_v28  ;;  %v5589_v24 = vadd.f32 %v1435_v27, %v1293_v12 }
 0x128   : > { %v774_v20 = vpop.f32.mrf.mxu2 }
 0x129   : > { %v996_v19 = vpop.f32.mrf.mxu3  ;;  %v851_v42 = vadd.f32 %v774_v20, %v5422_v39  ;;  %v1219_v63 = vpop.f32.mrf.mxu0 }
 0x12b   : > { %v1073_v35 = vadd.f32 %v996_v19, %v851_v42 }
 0x12c   : > { %v1440_v9 = vpop.f32.mrf.mxu1 }
 0x12d   : > { %v1294_v43 = vadd.f32 %v1217_v32, %v1073_v35 }
 0x12f   : > { %v5592_v54 = vadd.f32 %v1438_v47, %v1294_v43  ;;  %v4746_v43 = vld [vmem:[%s5196_s16 + $0x122] sm:$0xff] }
 0x130   : > { %v776_v31 = vpop.f32.mrf.mxu2 }
 0x131   : > { %v998_v44 = vpop.f32.mrf.mxu3  ;;  %v852_v1 = vadd.f32 %v776_v31, %v5433_v49  ;;  %v1222_v14 = vpop.f32.mrf.mxu0 }
 0x133   : > { %v1074_v27 = vadd.f32 %v998_v44, %v852_v1  ;;  %v5615_v44 = vpack.c.bf16 %v4747_v17, %v4746_v43 }
 0x134   : > { %v1443_v2 = vpop.f32.mrf.mxu1  ;;  %4718 = vmatmul.msk.bf16.gmra.mxu0 %vm378_vm1, %v5274_v55 }
 0x135   : > { %4622 = vmatmul.msk.bf16.gmra.mxu2 %vm378_vm1, %v5579_v28  ;;  %v1295_v39 = vadd.f32 %v1219_v63, %v1074_v27 }
 0x136   : > { %4670 = vmatmul.msk.bf16.gmra.mxu3 %vm378_vm1, %v5276_v56 }
 0x137   : > { %4766 = vmatmul.msk.bf16.gmra.mxu1 %vm378_vm1, %v5597_v60  ;;  %v5607_v49 = vadd.f32 %v1440_v9, %v1295_v39 }
 0x138   : > { %v779_v47 = vpop.f32.mrf.mxu2 }
 0x139   : > { %v1001_v32 = vpop.f32.mrf.mxu3  ;;  %v853_v12 = vadd.f32 %v779_v47, %v5441_v0  ;;  %v1224_v20 = vpop.f32.mrf.mxu0 }
 0x13b   : > { %v1075_v19 = vadd.f32 %v1001_v32, %v853_v12 }
 0x13c   : > { %v1445_v42 = vpop.f32.mrf.mxu1 }
 0x13d   : > { %v1296_v55 = vadd.f32 %v1222_v14, %v1075_v19  ;;  %v4748_v19 = vld [vmem:[%s5196_s16 + $0x13a] sm:$0xff] }
 0x13f   : > { %v5610_v35 = vadd.f32 %v1443_v2, %v1296_v55  ;;  %v4749_v55 = vld [vmem:[%s5196_s16 + $0x142] sm:$0xff] }
 0x140   : > { %v781_v48 = vpop.f32.mrf.mxu2 }
 0x141   : > { %v1003_v56 = vpop.f32.mrf.mxu3  ;;  %v854_v63 = vadd.f32 %v781_v48, %v5453_v10  ;;  %v1227_v31 = vpop.f32.mrf.mxu0  ;;  %v5633_v48 = vpack.c.bf16 %v4749_v55, %v4748_v19 }
 0x143   : > { %v1076_v9 = vadd.f32 %v1003_v56, %v854_v63 }
 0x144   : > { %v1448_v1 = vpop.f32.mrf.mxu1  ;;  %4719 = vmatmul.msk.bf16.gmra.mxu0 %vm378_vm1, %v5298_v3 }
 0x145   : > { %4623 = vmatmul.msk.bf16.gmra.mxu2 %vm378_vm1, %v5597_v60  ;;  %v1297_v0 = vadd.f32 %v1224_v20, %v1076_v9 }
 0x146   : > { %4671 = vmatmul.msk.bf16.gmra.mxu3 %vm378_vm1, %v5300_v4 }
 0x147   : > { %4767 = vmatmul.msk.bf16.gmra.mxu1 %vm378_vm1, %v5615_v44  ;;  %v5625_v10 = vadd.f32 %v1445_v42, %v1297_v0 }
 0x148   : > { %v784_v14 = vpop.f32.mrf.mxu2 }
 0x149   : > { %v1006_v27 = vpop.f32.mrf.mxu3  ;;  %v855_v2 = vadd.f32 %v784_v14, %v5461_v26  ;;  %v1229_v39 = vpop.f32.mrf.mxu0 }
 0x14b   : > { %v1077_v47 = vadd.f32 %v1006_v27, %v855_v2  ;;  %v4750_v2 = vld [vmem:[%s5196_s16 + $0x152] sm:$0xff] }
 0x14c   : > { %v1450_v32 = vpop.f32.mrf.mxu1 }
 0x14d   : > { %v1298_v3 = vadd.f32 %v1227_v31, %v1077_v47  ;;  %v4751_v47 = vld [vmem:[%s5196_s16 + $0x15a] sm:$0xff] }
 0x14f   : > { %v5628_v12 = vadd.f32 %v1448_v1, %v1298_v3 }
 0x150   : > { %v786_v43 = vpop.f32.mrf.mxu2 }
 0x151   : > { %v1008_v4 = vpop.f32.mrf.mxu3  ;;  %v856_v20 = vadd.f32 %v786_v43, %v5473_v41  ;;  %v1232_v17 = vpop.f32.mrf.mxu0 }
 0x153   : > { %v1078_v42 = vadd.f32 %v1008_v4, %v856_v20 }
 0x154   : > { %v1453_v56 = vpop.f32.mrf.mxu1  ;;  %4720 = vmatmul.msk.bf16.gmra.mxu0 %vm378_vm1, %v5322_v15 }
 0x155   : > { %4624 = vmatmul.msk.bf16.gmra.mxu2 %vm378_vm1, %v5615_v44  ;;  %v1299_v26 = vadd.f32 %v1229_v39, %v1078_v42 }
 0x156   : > { %4672 = vmatmul.msk.bf16.gmra.mxu3 %vm378_vm1, %v5324_v16 }
 0x157   : > { %4768 = vmatmul.msk.bf16.gmra.mxu1 %vm378_vm1, %v5633_v48  ;;  %v5643_v41 = vadd.f32 %v1450_v32, %v1299_v26  ;;  %v5653_v32 = vpack.c.bf16 %v4751_v47, %v4750_v2 }
 0x158   : > { %v789_v63 = vpop.f32.mrf.mxu2 }
 0x159   : > { %v1011_v31 = vpop.f32.mrf.mxu3  ;;  %v857_v9 = vadd.f32 %v789_v63, %v5481_v45  ;;  %v1234_v1 = vpop.f32.mrf.mxu0  ;;  %v4752_v63 = vld [vmem:[%s5196_s16 + $0x16a] sm:$0xff] }
 0x15b   : > { %v1079_v0 = vadd.f32 %v1011_v31, %v857_v9  ;;  %v4753_v31 = vld [vmem:[%s5196_s16 + $0x172] sm:$0xff] }
 0x15c   : > { %v5646_v14 = vpop.f32.mrf.mxu1 }
 0x15d   : > { %v1300_v15 = vadd.f32 %v1232_v17, %v1079_v0 }
 0x15f   : > { %v5648_v27 = vadd.f32 %v1453_v56, %v1300_v15  ;;  %v5673_v15 = vpack.c.bf16 %v4753_v31, %v4752_v63 }
 0x160   : > { %v791_v16 = vpop.f32.mrf.mxu2 }
 0x161   : > { %v1013_v39 = vpop.f32.mrf.mxu3  ;;  %v858_v3 = vadd.f32 %v791_v16, %v5493_v11  ;;  %v1237_v19 = vpop.f32.mrf.mxu0 }
 0x163   : > { %v1080_v55 = vadd.f32 %v1013_v39, %v858_v3 }
 0x164   : > { %v1458_v45 = vpop.f32.mrf.mxu1  ;;  %4721 = vmatmul.msk.bf16.gmra.mxu0 %vm378_vm1, %v5346_v29 }
 0x165   : > { %4625 = vmatmul.msk.bf16.gmra.mxu2 %vm378_vm1, %v5633_v48  ;;  %v5661_v43 = vadd.f32 %v1234_v1, %v1080_v55 }
 0x166   : > { %4673 = vmatmul.msk.bf16.gmra.mxu3 %vm378_vm1, %v5348_v34 }
 0x167   : > { %4769 = vmatmul.msk.bf16.gmra.mxu1 %vm378_vm1, %v5653_v32 }
 0x168   : > { %v794_v11 = vpop.f32.mrf.mxu2 }
 0x169   : > { %v1016_v4 = vpop.f32.mrf.mxu3  ;;  %v859_v20 = vadd.f32 %v794_v11, %v5501_v36  ;;  %v1239_v17 = vpop.f32.mrf.mxu0  ;;  %v4707_v11 = vld [vmem:[%s5196_s16 + $0x189] sm:$0xff] }
 0x16b   : > { %v1081_v42 = vadd.f32 %v1016_v4, %v859_v20  ;;  %v4658_v4 = vld [vmem:[%s5196_s16 + $0x180] sm:$0xff]  ;;  %v4659_v20 = vld [vmem:[%s5196_s16 + $0x188] sm:$0xff] }
 0x16c   : > { %v5666_v56 = vpop.f32.mrf.mxu1 }
 0x16d   : > { %v1302_v29 = vadd.f32 %v1237_v19, %v1081_v42  ;;  %v4755_v42 = vld [vmem:[%s5196_s16 + $0x18a] sm:$0xff] }
 0x16f   : > { %v5668_v26 = vadd.f32 %v1458_v45, %v1302_v29  ;;  %v4706_v45 = vld [vmem:[%s5196_s16 + $0x181] sm:$0xff] }
 0x170   : > { %v796_v9 = vpop.f32.mrf.mxu2  ;;  %v5696_v31 = vpack.c.bf16 %v4707_v11, %v4706_v45  ;;  %v4772_v11 = vld [vmem:[%s5196_s16 + $0x30] sm:$0xff] }
 0x171   : > { %v1018_v34 = vpop.f32.mrf.mxu3  ;;  %v860_v1 = vadd.f32 %v796_v9, %v5513_v50  ;;  %v1242_v0 = vpop.f32.mrf.mxu0 }
 0x173   : > { %v1082_v2 = vadd.f32 %v1018_v34, %v860_v1  ;;  %v5699_v34 = vpack.c.bf16 %v4659_v20, %v4658_v4  ;;  %v4773_v4 = vld [vmem:[%s5196_s16 + $0x38] sm:$0xff] }
 0x174   : > { %v1463_v36 = vpop.f32.mrf.mxu1  ;;  %4722 = vmatmul.msk.bf16.gmra.mxu0 %vm378_vm1, %v5386_v61  ;;  %v4820_v20 = vld [vmem:[%s5196_s16 + $0x31] sm:$0xff] }
 0x175   : > { %4626 = vmatmul.msk.bf16.gmra.mxu2 %vm378_vm1, %v5653_v32  ;;  %v5681_v50 = vadd.f32 %v1239_v17, %v1082_v2  ;;  %v4754_v17 = vld [vmem:[%s5196_s16 + $0x182] sm:$0xff] }
 0x176   : > { %4674 = vmatmul.msk.bf16.gmra.mxu3 %vm378_vm1, %v5388_v62  ;;  %v5701_v1 = vpack.c.bf16 %v4755_v42, %v4754_v17  ;;  %v4821_v17 = vld [vmem:[%s5196_s16 + $0x39] sm:$0xff] }
 0x177   : > { %4770 = vmatmul.msk.bf16.gmra.mxu1 %vm378_vm1, %v5673_v15 }
 0x178   : > { %v799_v47 = vpop.f32.mrf.mxu2 }
 0x179   : > { %v1021_v16 = vpop.f32.mrf.mxu3  ;;  %v861_v39 = vadd.f32 %v799_v47, %v5521_v13  ;;  %v1244_v3 = vpop.f32.mrf.mxu0 }
 0x17b   : > { %v1083_v19 = vadd.f32 %v1021_v16, %v861_v39 }
 0x17c   : > { %v5686_v61 = vpop.f32.mrf.mxu1 }
 0x17d   : > { %v1304_v55 = vadd.f32 %v1242_v0, %v1083_v19 }
 0x17f   : > { %v5692_v62 = vadd.f32 %v1463_v36, %v1304_v55 }
 0x180   : > { %v801_v29 = vpop.f32.mrf.mxu2 }
 0x181   : > { %v1023_v63 = vpop.f32.mrf.mxu3  ;;  %v862_v9 = vadd.f32 %v801_v29, %v5533_v38  ;;  %v1247_v13 = vpop.f32.mrf.mxu0 }
 0x183   : > { %v1084_v0 = vadd.f32 %v1023_v63, %v862_v9 }
 0x184   : > { %v1468_v2 = vpop.f32.mrf.mxu1  ;;  %4723 = vmatmul.msk.bf16.gmra.mxu0 %vm378_vm1, %v5696_v31 }
 0x185   : > { %4627 = vmatmul.msk.bf16.gmra.mxu2 %vm378_vm1, %v5673_v15  ;;  %v5709_v38 = vadd.f32 %v1244_v3, %v1084_v0  ;;  %v1578_v0 = vpack.c.bf16 %v4773_v4, %v4772_v11 }
 0x186   : > { %4675 = vmatmul.msk.bf16.gmra.mxu3 %vm378_vm1, %v5699_v34 }
 0x187   : > { %4771 = vmatmul.msk.bf16.gmra.mxu1 %vm378_vm1, %v5701_v1 }
 0x188   : > { %v804_v36 = vpop.f32.mrf.mxu2 }
 0x189   : > { %v1026_v47 = vpop.f32.mrf.mxu3  ;;  %v863_v16 = vadd.f32 %v804_v36, %v5541_v59  ;;  %v1249_v39 = vpop.f32.mrf.mxu0  ;;  %v1799_v59 = vpack.c.bf16 %v4821_v17, %v4820_v20  ;;  %v4774_v20 = vld [vmem:[%s5196_s16 + $0x48] sm:$0xff]  ;;  %v4775_v17 = vld [vmem:[%s5196_s16 + $0x50] sm:$0xff] }
 0x18b   : > { %v1085_v19 = vadd.f32 %v1026_v47, %v863_v16 }
 0x18c   : > { %v5714_v55 = vpop.f32.mrf.mxu1 }
 0x18d   : > { %v1306_v45 = vadd.f32 %v1247_v13, %v1085_v19 }
 0x18f   : > { %v5720_v42 = vadd.f32 %v1468_v2, %v1306_v45 }
 0x190   : > { %v806_v3 = vpop.f32.mrf.mxu2 }
 0x191   : > { %v1028_v29 = vpop.f32.mrf.mxu3  ;;  %v864_v63 = vadd.f32 %v806_v3, %v5557_v40  ;;  %v1252_v9 = vpop.f32.mrf.mxu0  ;;  %v4822_v3 = vld [vmem:[%s5196_s16 + $0x49] sm:$0xff] }
 0x193   : > { %v1086_v36 = vadd.f32 %v1028_v29, %v864_v63  ;;  %v4823_v29 = vld [vmem:[%s5196_s16 + $0x51] sm:$0xff] }
 0x194   : > { %v1473_v47 = vpop.f32.mrf.mxu1  ;;  %4900 = vmatmul.msk.bf16.vlgmr.msra.gmra.mxu0 %vm378_vm1, %v5420_v33 }
 0x195   : > { %4804 = vmatmul.msk.bf16.vlgmr.msra.gmra.mxu2 %vm378_vm1, %v1578_v0  ;;  %v5727_v13 = vadd.f32 %v1249_v39, %v1086_v36  ;;  %v1579_v36 = vpack.c.bf16 %v4775_v17, %v4774_v20 }
 0x196   : > { %4852 = vmatmul.msk.bf16.vlgmr.msra.gmra.mxu3 %vm378_vm1, %v1799_v59 }
 0x198   : > { %v809_v2 = vpop.f32.mrf.mxu2 }
 0x199   : > { %v1031_v40 = vpop.f32.mrf.mxu3  ;;  %v865_v16 = vadd.f32 %v809_v2, %v5412_v21  ;;  %v1254_v19 = vpop.f32.mrf.mxu0  ;;  %v1800_v21 = vpack.c.bf16 %v4823_v29, %v4822_v3  ;;  %v4776_v3 = vld [vmem:[%s5196_s16 + $0x60] sm:$0xff]  ;;  %v4777_v29 = vld [vmem:[%s5196_s16 + $0x68] sm:$0xff] }
 0x19b   : > { %v1087_v45 = vadd.f32 %v1031_v40, %v865_v16 }
 0x19c   : > { %v5730_v11 = vpop.f32.mrf.mxu1 }
 0x19d   : > { %v1308_v4 = vadd.f32 %v1252_v9, %v1087_v45 }
 0x19f   : > { %v5736_v33 = vadd.f32 %v1473_v47, %v1308_v4 }
 0x1a0   : > { %v811_v63 = vpop.f32.mrf.mxu2 }
 0x1a1   : > { %v1033_v0 = vpop.f32.mrf.mxu3  ;;  %v866_v39 = vadd.f32 %v811_v63, %v5418_v30  ;;  %v1257_v59 = vpop.f32.mrf.mxu0  ;;  %v4824_v63 = vld [vmem:[%s5196_s16 + $0x61] sm:$0xff] }
 0x1a3   : > { %v1088_v2 = vadd.f32 %v1033_v0, %v866_v39  ;;  %v4825_v0 = vld [vmem:[%s5196_s16 + $0x69] sm:$0xff] }
 0x1a4   : > { %v1478_v40 = vpop.f32.mrf.mxu1  ;;  %4901 = vmatmul.msk.bf16.gmra.mxu0 %vm378_vm1, %v5439_v58 }
 0x1a5   : > { %4805 = vmatmul.msk.bf16.gmra.mxu2 %vm378_vm1, %v1579_v36  ;;  %v5743_v9 = vadd.f32 %v1254_v19, %v1088_v2  ;;  %v1580_v2 = vpack.c.bf16 %v4777_v29, %v4776_v3 }
 0x1a6   : > { %4853 = vmatmul.msk.bf16.gmra.mxu3 %vm378_vm1, %v1800_v21 }
 0x1a8   : > { %v814_v47 = vpop.f32.mrf.mxu2 }
 0x1a9   : > { %v1036_v30 = vpop.f32.mrf.mxu3  ;;  %v867_v16 = vadd.f32 %v814_v47, %v5431_v46  ;;  %v1259_v45 = vpop.f32.mrf.mxu0  ;;  %v1801_v46 = vpack.c.bf16 %v4825_v0, %v4824_v63  ;;  %v4778_v63 = vld [vmem:[%s5196_s16 + $0x78] sm:$0xff]  ;;  %v4779_v0 = vld [vmem:[%s5196_s16 + $0x80] sm:$0xff] }
 0x1ab   : > { %v1089_v4 = vadd.f32 %v1036_v30, %v867_v16 }
 0x1ac   : > { %v5746_v20 = vpop.f32.mrf.mxu1 }
 0x1ad   : > { %v1310_v17 = vadd.f32 %v1257_v59, %v1089_v4 }
 0x1af   : > { %v5752_v58 = vadd.f32 %v1478_v40, %v1310_v17 }
 0x1b0   : > { %v816_v39 = vpop.f32.mrf.mxu2 }
 0x1b1   : > { %v1038_v36 = vpop.f32.mrf.mxu3  ;;  %v868_v19 = vadd.f32 %v816_v39, %v5437_v53  ;;  %v1262_v21 = vpop.f32.mrf.mxu0  ;;  %v4826_v39 = vld [vmem:[%s5196_s16 + $0x79] sm:$0xff] }
 0x1b3   : > { %v1090_v47 = vadd.f32 %v1038_v36, %v868_v19  ;;  %v4827_v36 = vld [vmem:[%s5196_s16 + $0x81] sm:$0xff] }
 0x1b4   : > { %v1483_v30 = vpop.f32.mrf.mxu1  ;;  %4902 = vmatmul.msk.bf16.gmra.mxu0 %vm378_vm1, %v5459_v23 }
 0x1b5   : > { %4806 = vmatmul.msk.bf16.gmra.mxu2 %vm378_vm1, %v1580_v2  ;;  %v5759_v59 = vadd.f32 %v1259_v45, %v1090_v47  ;;  %v1581_v47 = vpack.c.bf16 %v4779_v0, %v4778_v63 }
 0x1b6   : > { %4854 = vmatmul.msk.bf16.gmra.mxu3 %vm378_vm1, %v1801_v46 }
 0x1b8   : > { %v819_v40 = vpop.f32.mrf.mxu2 }
 0x1b9   : > { %v1041_v53 = vpop.f32.mrf.mxu3  ;;  %v869_v16 = vadd.f32 %v819_v40, %v5451_v7  ;;  %v1264_v4 = vpop.f32.mrf.mxu0  ;;  %v1802_v7 = vpack.c.bf16 %v4827_v36, %v4826_v39  ;;  %v4780_v39 = vld [vmem:[%s5196_s16 + $0x90] sm:$0xff]  ;;  %v4781_v36 = vld [vmem:[%s5196_s16 + $0x98] sm:$0xff] }
 0x1bb   : > { %v1091_v17 = vadd.f32 %v1041_v53, %v869_v16 }
 0x1bc   : > { %v5762_v3 = vpop.f32.mrf.mxu1 }
 0x1bd   : > { %v1312_v29 = vadd.f32 %v1262_v21, %v1091_v17 }
 0x1bf   : > { %v5768_v23 = vadd.f32 %v1483_v30, %v1312_v29 }
 0x1c0   : > { %v821_v19 = vpop.f32.mrf.mxu2 }
 0x1c1   : > { %v1043_v2 = vpop.f32.mrf.mxu3  ;;  %v870_v45 = vadd.f32 %v821_v19, %v5457_v22  ;;  %v1267_v46 = vpop.f32.mrf.mxu0  ;;  %v4828_v19 = vld [vmem:[%s5196_s16 + $0x91] sm:$0xff] }
 0x1c3   : > { %v1092_v40 = vadd.f32 %v1043_v2, %v870_v45  ;;  %v4829_v2 = vld [vmem:[%s5196_s16 + $0x99] sm:$0xff] }
 0x1c4   : > { %v1488_v53 = vpop.f32.mrf.mxu1  ;;  %4903 = vmatmul.msk.bf16.gmra.mxu0 %vm378_vm1, %v5479_v52 }
 0x1c5   : > { %4807 = vmatmul.msk.bf16.gmra.mxu2 %vm378_vm1, %v1581_v47  ;;  %v5775_v21 = vadd.f32 %v1264_v4, %v1092_v40  ;;  %v1582_v40 = vpack.c.bf16 %v4781_v36, %v4780_v39 }
 0x1c6   : > { %4855 = vmatmul.msk.bf16.gmra.mxu3 %vm378_vm1, %v1802_v7 }
 0x1c8   : > { %v824_v30 = vpop.f32.mrf.mxu2 }
 0x1c9   : > { %v1046_v22 = vpop.f32.mrf.mxu3  ;;  %v871_v16 = vadd.f32 %v824_v30, %v5471_v37  ;;  %v1269_v17 = vpop.f32.mrf.mxu0  ;;  %v1803_v37 = vpack.c.bf16 %v4829_v2, %v4828_v19  ;;  %v4782_v19 = vld [vmem:[%s5196_s16 + $0xa8] sm:$0xff]  ;;  %v4783_v2 = vld [vmem:[%s5196_s16 + $0xb0] sm:$0xff] }
 0x1cb   : > { %v1093_v29 = vadd.f32 %v1046_v22, %v871_v16 }
 0x1cc   : > { %v5778_v63 = vpop.f32.mrf.mxu1 }
 0x1cd   : > { %7114 = vst [vmem:[#allocation10_spill] sm:$0xff] %v5778_v63  ;;  %v1314_v0 = vadd.f32 %v1267_v46, %v1093_v29 }
 0x1cf   : > { %v5784_v52 = vadd.f32 %v1488_v53, %v1314_v0 }
 0x1d0   : > { %v826_v45 = vpop.f32.mrf.mxu2 }
 0x1d1   : > { %v1048_v47 = vpop.f32.mrf.mxu3  ;;  %v872_v4 = vadd.f32 %v826_v45, %v5477_v51  ;;  %v1272_v7 = vpop.f32.mrf.mxu0  ;;  %v4830_v45 = vld [vmem:[%s5196_s16 + $0xa9] sm:$0xff] }
 0x1d3   : > { %v1094_v30 = vadd.f32 %v1048_v47, %v872_v4  ;;  %v4831_v47 = vld [vmem:[%s5196_s16 + $0xb1] sm:$0xff] }
 0x1d4   : > { %v1493_v22 = vpop.f32.mrf.mxu1  ;;  %4904 = vmatmul.msk.bf16.gmra.mxu0 %vm378_vm1, %v5499_v25 }
 0x1d5   : > { %4808 = vmatmul.msk.bf16.gmra.mxu2 %vm378_vm1, %v1582_v40  ;;  %v5791_v46 = vadd.f32 %v1269_v17, %v1094_v30  ;;  %v1583_v30 = vpack.c.bf16 %v4783_v2, %v4782_v19 }
 0x1d6   : > { %4856 = vmatmul.msk.bf16.gmra.mxu3 %vm378_vm1, %v1803_v37 }
 0x1d8   : > { %v829_v53 = vpop.f32.mrf.mxu2 }
 0x1d9   : > { %v1051_v51 = vpop.f32.mrf.mxu3  ;;  %v873_v16 = vadd.f32 %v829_v53, %v5491_v6  ;;  %v1274_v29 = vpop.f32.mrf.mxu0  ;;  %v1804_v6 = vpack.c.bf16 %v4831_v47, %v4830_v45  ;;  %v4784_v45 = vld [vmem:[%s5196_s16 + $0xc0] sm:$0xff] }
 0x1db   : > { %v1095_v0 = vadd.f32 %v1051_v51, %v873_v16  ;;  %v7118_v16 = vld [vmem:[#allocation3_spill] sm:$0xff] }
 0x1dc   : > { %v5794_v39 = vpop.f32.mrf.mxu1 }
 0x1dd   : > { %7115 = vst [vmem:[#allocation11_spill] sm:$0xff] %v5794_v39  ;;  %v1316_v36 = vadd.f32 %v1272_v7, %v1095_v0 }
 0x1df   : > { %v5800_v25 = vadd.f32 %v1493_v22, %v1316_v36 }
 0x1e0   : > { %v831_v4 = vpop.f32.mrf.mxu2 }
 0x1e1   : > { %7116 = vst [vmem:[#allocation12_spill] sm:$0xff] %v5800_v25  ;;  %v1053_v40 = vpop.f32.mrf.mxu3  ;;  %v874_v17 = vadd.f32 %v831_v4, %v5497_v57  ;;  %v1277_v37 = vpop.f32.mrf.mxu0  ;;  %v4785_v4 = vld [vmem:[%s5196_s16 + $0xc8] sm:$0xff] }
 0x1e3   : > { %v1096_v53 = vadd.f32 %v1053_v40, %v874_v17  ;;  %v4832_v40 = vld [vmem:[%s5196_s16 + $0xc1] sm:$0xff]  ;;  %v4833_v17 = vld [vmem:[%s5196_s16 + $0xc9] sm:$0xff] }
 0x1e4   : > { %v1498_v51 = vpop.f32.mrf.mxu1  ;;  %4905 = vmatmul.msk.bf16.gmra.mxu0 %vm378_vm1, %v5519_v8  ;;  %v1805_v25 = vpack.c.bf16 %v4833_v17, %v4832_v40  ;;  %v4835_v40 = vld [vmem:[%s5196_s16 + $0xe1] sm:$0xff] }
 0x1e5   : > { %4809 = vmatmul.msk.bf16.gmra.mxu2 %vm378_vm1, %v1583_v30  ;;  %v5807_v7 = vadd.f32 %v1274_v29, %v1096_v53 }
 0x1e6   : > { %4857 = vmatmul.msk.bf16.gmra.mxu3 %vm378_vm1, %v1804_v6  ;;  %v7121_v6 = vld [vmem:[#allocation4_spill] sm:$0xff] }
 0x1e7   : > { %7117 = vst [vmem:[#allocation13_spill] sm:$0xff] %v5807_v7  ;;  %v1584_v7 = vpack.c.bf16 %v4785_v4, %v4784_v45  ;;  %v4834_v4 = vld [vmem:[%s5196_s16 + $0xd9] sm:$0xff] }
 0x1e8   : > { %v834_v22 = vpop.f32.mrf.mxu2 }
 0x1e9   : > { %v1056_v57 = vpop.f32.mrf.mxu3  ;;  %v875_v0 = vadd.f32 %v834_v22, %v7118_v16  ;;  %v1279_v36 = vpop.f32.mrf.mxu0  ;;  %v7122_v22 = vld [vmem:[#allocation7_spill] sm:$0xff] }
 0x1eb   : > { %v1097_v19 = vadd.f32 %v1056_v57, %v875_v0 }
 0x1ec   : > { %v5811_v47 = vpop.f32.mrf.mxu1 }
 0x1ed   : > { %v1318_v2 = vadd.f32 %v1277_v37, %v1097_v19  ;;  %7119 = vst [vmem:[#allocation3_spill] sm:$0xff] %v5811_v47  ;;  %v4786_v19 = vld [vmem:[%s5196_s16 + $0xd8] sm:$0xff] }
 0x1ef   : > { %v5816_v8 = vadd.f32 %v1498_v51, %v1318_v2  ;;  %v5121_v51 = vmov 0.0   ;;  %v4787_v2 = vld [vmem:[%s5196_s16 + $0xe0] sm:$0xff] }
 0x1f0   : > { %v836_v30 = vpop.f32.mrf.mxu2  ;;  %2313 = vst.msk [vmem:[#allocation2] sm:$0xff] %vm378_vm1, %v5121_v51 }
 0x1f1   : > { %7120 = vst [vmem:[#allocation14_spill] sm:$0xff] %v5816_v8  ;;  %v1058_v39 = vpop.f32.mrf.mxu3  ;;  %v876_v29 = vadd.f32 %v836_v30, %v7121_v6  ;;  %v1282_v53 = vpop.f32.mrf.mxu0  ;;  %v1806_v8 = vpack.c.bf16 %v4835_v40, %v4834_v4  ;;  %v4788_v40 = vld [vmem:[%s5196_s16 + $0xf0] sm:$0xff] }
 0x1f2   : > { %2314 = vst.msk [vmem:[#allocation2 + $0x8] sm:$0xff] %vm378_vm1, %v5121_v51 }
 0x1f3   : > { %v1098_v63 = vadd.f32 %v1058_v39, %v876_v29  ;;  %2316 = vst.msk [vmem:[#allocation2 + $0x10] sm:$0x3] %vm2315_vm2, %v5121_v51 }
 0x1f4   : > { %4906 = vmatmul.msk.bf16.gmra.mxu0 %vm378_vm1, %v7122_v22  ;;  %v1503_v39 = vpop.f32.mrf.mxu1  ;;  %2318 = vst.msk [vmem:[#allocation2 + $0x198] sm:$0xff] %vm378_vm1, %v5121_v51 }
 0x1f5   : > { %4810 = vmatmul.msk.bf16.gmra.mxu2 %vm378_vm1, %v1584_v7  ;;  %v5823_v37 = vadd.f32 %v1279_v36, %v1098_v63  ;;  %v7124_v63 = vld [vmem:[#allocation5_spill] sm:$0xff]  ;;  %2319 = vst.msk [vmem:[#allocation2 + $0x1a0] sm:$0xff] %vm378_vm1, %v5121_v51 }
 0x1f6   : > { %4858 = vmatmul.msk.bf16.gmra.mxu3 %vm378_vm1, %v1805_v25  ;;  %2320 = vst.msk [vmem:[#allocation2 + $0x1a8] sm:$0x3] %vm2315_vm2, %v5121_v51 }
 0x1f7   : > { %7123 = vst [vmem:[#allocation4_spill] sm:$0xff] %v5823_v37  ;;  %v1585_v37 = vpack.c.bf16 %v4787_v2, %v4786_v19 }
 0x1f8   : > { %v839_v57 = vpop.f32.mrf.mxu2  ;;  %2322 = vst.msk [vmem:[#allocation2] sm:$0x1] %vm2321_vm3, %v5121_v51 }
 0x1f9   : > { %v1061_v7 = vpop.f32.mrf.mxu3  ;;  %v877_v25 = vadd.f32 %v839_v57, %v7124_v63  ;;  %v1284_v16 = vpop.f32.mrf.mxu0  ;;  %v2440_v45 = vld [vmem:[#allocation2 + $0x1] sm:$0xff]  ;;  %2323 = vst.msk [vmem:[#allocation2 + $0x18] sm:$0x1] %vm2321_vm3, %v5121_v51 }
 0x1fa   : > { %v2441_v17 = vld [vmem:[#allocation2 + $0x9] sm:$0xff]  ;;  %2324 = vst.msk [vmem:[#allocation2 + $0x30] sm:$0x1] %vm2321_vm3, %v5121_v51 }
 0x1fb   : > { %v1099_v0 = vadd.f32 %v1061_v7, %v877_v25  ;;  %v2472_v6 = vpack.c.bf16 %v2441_v17, %v2440_v45  ;;  %v7125_v57 = vld [vmem:[#allocation6_spill] sm:$0xff]  ;;  %v2439_v25 = vld [vmem:[%s7082_s4] sm:$0xf]  ;;  %2325 = vst.msk [vmem:[#allocation2 + $0x48] sm:$0x1] %vm2321_vm3, %v5121_v51  ;;  %v4789_v17 = vld [vmem:[%s5196_s16 + $0xf8] sm:$0xff] }
 0x1fc   : > { %v5844_v7 = vpop.f32.mrf.mxu1  ;;  %2326 = vst.msk [vmem:[#allocation2 + $0x60] sm:$0x1] %vm2321_vm3, %v5121_v51 }
 0x1fd   : > { %v1320_v36 = vadd.f32 %v1282_v53, %v1099_v0  ;;  %4916 = vmatmul.msk.bf16.vlgmr.msra.gmra.mxu1 %vm378_vm1, %v2472_v6  ;;  %v2817_v0 = vld [vmem:[%s7082_s4 + $0x8] sm:$0xf]  ;;  %2327 = vst.msk [vmem:[#allocation2 + $0x78] sm:$0x1] %vm2321_vm3, %v5121_v51 }
 0x1fe   : > { %2328 = vst.msk [vmem:[#allocation2 + $0x90] sm:$0x1] %vm2321_vm3, %v5121_v51 }
 0x1ff   : > { %v5840_v30 = vadd.f32 %v1503_v39, %v1320_v36  ;;  %v7126_v36 = vld [vmem:[#allocation8_spill] sm:$0xff]  ;;  %2329 = vst.msk [vmem:[#allocation2 + $0xa8] sm:$0x1] %vm2321_vm3, %v5121_v51 }
 0x200   : > { %v841_v29 = vpop.f32.mrf.mxu2  ;;  %2330 = vst.msk [vmem:[#allocation2 + $0xc0] sm:$0x1] %vm2321_vm3, %v5121_v51 }
 0x201   : > { %v1063_v22 = vpop.f32.mrf.mxu3  ;;  %v878_v63 = vadd.f32 %v841_v29, %v7125_v57  ;;  %v1287_v47 = vpop.f32.mrf.mxu0  ;;  %v3038_v29 = vld [vmem:[%s7082_s4 + $0xc] sm:$0xf]  ;;  %v4836_v57 = vld [vmem:[%s5196_s16 + $0xf1] sm:$0xff]  ;;  %2331 = vst.msk [vmem:[#allocation2 + $0xd8] sm:$0x1] %vm2321_vm3, %v5121_v51 }
 0x202   : > { %2332 = vst.msk [vmem:[#allocation2 + $0xf0] sm:$0x1] %vm2321_vm3, %v5121_v51 }
 0x203   : > { %v1100_v53 = vadd.f32 %v1063_v22, %v878_v63  ;;  %v3259_v22 = vld [vmem:[%s7082_s4 + $0x10] sm:$0xf]  ;;  %v4837_v63 = vld [vmem:[%s5196_s16 + $0xf9] sm:$0xff]  ;;  %2333 = vst.msk [vmem:[#allocation2 + $0x108] sm:$0x1] %vm2321_vm3, %v5121_v51 }
 0x204   : > { %4907 = vmatmul.msk.bf16.gmra.mxu0 %vm378_vm1, %v5563_v5  ;;  %v2678_v5 = vsel %vm427_vm0, %v2439_v25, 0  ;;  %v1508_v4 = vpop.f32.mrf.mxu1  ;;  %v3309_v25 = vsel %vm427_vm0, %v3259_v22, 0  ;;  %2334 = vst.msk [vmem:[#allocation2 + $0x120] sm:$0x1] %vm2321_vm3, %v5121_v51  ;;  %v5939_v22 = vld [vmem:[%s7081_s3] ss:$0 sm:$0xff] }
 0x205   : > { %4811 = vmatmul.msk.bf16.gmra.mxu2 %vm378_vm1, %v1585_v37  ;;  %v5850_v39 = vadd.f32 %v1284_v16, %v1100_v53  ;;  %v2867_v37 = vsel %vm427_vm0, %v2817_v0, 0  ;;  %v3088_v53 = vsel %vm427_vm0, %v3038_v29, 0  ;;  %3318 = vmatpush.bf16.msrb.mxu1 %v3309_v25  ;;  %2335 = vst.msk [vmem:[#allocation2 + $0x138] sm:$0x1] %vm2321_vm3, %v5121_v51  ;;  %v5930_v29 = vld [vmem:[%s7080_s2] ss:$0 sm:$0xff] }
 0x206   : > { %4859 = vmatmul.msk.bf16.gmra.mxu3 %vm378_vm1, %v1806_v8  ;;  %2687 = vmatpush.bf16.msrb.mxu2 %v2678_v5  ;;  %2336 = vst.msk [vmem:[#allocation2 + $0x150] sm:$0x1] %vm2321_vm3, %v5121_v51  ;;  %v4839_v25 = vld [vmem:[%s5196_s16 + $0x111] sm:$0xff] }
 0x207   : > { %2876 = vmatpush.bf16.msrb.mxu3 %v2867_v37  ;;  %3097 = vmatpush.bf16.msrb.mxu0 %v3088_v53  ;;  %v7127_v37 = vld [vmem:[#allocation9_spill] sm:$0xff]  ;;  %2337 = vst.msk [vmem:[#allocation2 + $0x168] sm:$0x1] %vm2321_vm3, %v5121_v51  ;;  %v4838_v53 = vld [vmem:[%s5196_s16 + $0x109] sm:$0xff] }
 0x208   : > { %v844_v8 = vpop.f32.mrf.mxu2  ;;  %2338 = vst.msk [vmem:[#allocation2 + $0x180] sm:$0x1] %vm2321_vm3, %v5121_v51 }
 0x209   : > { %v1066_v16 = vpop.f32.mrf.mxu3  ;;  %v879_v19 = vadd.f32 %v844_v8, %v7126_v36  ;;  %v1289_v2 = vpop.f32.mrf.mxu0  ;;  %v1586_v36 = vpack.c.bf16 %v4789_v17, %v4788_v40  ;;  %2339 = vst.msk [vmem:[#allocation2 + $0x198] sm:$0x1] %vm2321_vm3, %v5121_v51 }
 0x20a   : > { %2340 = vst.msk [vmem:[#allocation2 + $0x11] sm:$0x1] %vm2321_vm3, %v5121_v51 }
 0x20b   : > { %v1101_v45 = vadd.f32 %v1066_v16, %v879_v19  ;;  %v1807_v19 = vpack.c.bf16 %v4837_v63, %v4836_v57  ;;  %2341 = vst.msk [vmem:[#allocation2 + $0x29] sm:$0x1] %vm2321_vm3, %v5121_v51  ;;  %v4790_v57 = vld [vmem:[%s5196_s16 + $0x108] sm:$0xff]  ;;  %v4791_v63 = vld [vmem:[%s5196_s16 + $0x110] sm:$0xff] }
 0x20c   : > { %2342 = vst.msk [vmem:[#allocation2 + $0x41] sm:$0x1] %vm2321_vm3, %v5121_v51 }
 0x20d   : > { %v1322_v6 = vadd.f32 %v1287_v47, %v1101_v45  ;;  %2343 = vst.msk [vmem:[#allocation2 + $0x59] sm:$0x1] %vm2321_vm3, %v5121_v51 }
 0x20e   : > { %2344 = vst.msk [vmem:[#allocation2 + $0x71] sm:$0x1] %vm2321_vm3, %v5121_v51 }
 0x20f   : > { %v5893_v47 = vadd.f32 %v1508_v4, %v1322_v6  ;;  %2345 = vst.msk [vmem:[#allocation2 + $0x89] sm:$0x1] %vm2321_vm3, %v5121_v51 }
 0x210   : > { %v846_v0 = vpop.f32.mrf.mxu2  ;;  %2346 = vst.msk [vmem:[#allocation2 + $0xa1] sm:$0x1] %vm2321_vm3, %v5121_v51 }
 0x211   : > { %v1068_v5 = vpop.f32.mrf.mxu3  ;;  %v880_v8 = vadd.f32 %v846_v0, %v7127_v37  ;;  %v2097_v16 = vpop.f32.mrf.mxu0  ;;  %2347 = vst.msk [vmem:[#allocation2 + $0xb9] sm:$0x1] %vm2321_vm3, %v5121_v51 }
 0x212   : > { %2348 = vst.msk [vmem:[#allocation2 + $0xd1] sm:$0x1] %vm2321_vm3, %v5121_v51 }
 0x213   : > { %v1102_v45 = vadd.f32 %v1068_v5, %v880_v8  ;;  %2349 = vst.msk [vmem:[#allocation2 + $0xe9] sm:$0x1] %vm2321_vm3, %v5121_v51 }
 0x214   : > { %4908 = vmatmul.msk.bf16.gmra.mxu0 %vm378_vm1, %v5579_v28  ;;  %2350 = vst.msk [vmem:[#allocation2 + $0x101] sm:$0x1] %vm2321_vm3, %v5121_v51 }
 0x215   : > { %4812 = vmatmul.msk.bf16.gmra.mxu2 %vm378_vm1, %v1586_v36  ;;  %v5912_v4 = vadd.f32 %v1289_v2, %v1102_v45  ;;  %v1808_v45 = vpack.c.bf16 %v4839_v25, %v4838_v53  ;;  %2351 = vst.msk [vmem:[#allocation2 + $0x119] sm:$0x1] %vm2321_vm3, %v5121_v51 }
 0x216   : > { %4860 = vmatmul.msk.bf16.gmra.mxu3 %vm378_vm1, %v1807_v19  ;;  %v1587_v19 = vpack.c.bf16 %v4791_v63, %v4790_v57  ;;  %2352 = vst.msk [vmem:[#allocation2 + $0x131] sm:$0x1] %vm2321_vm3, %v5121_v51 }
 0x217   : > { %2353 = vst.msk [vmem:[#allocation2 + $0x149] sm:$0x1] %vm2321_vm3, %v5121_v51 }
 0x218   : > { %v1655_v28 = vpop.f32.mrf.mxu2  ;;  %2354 = vst.msk [vmem:[#allocation2 + $0x161] sm:$0x1] %vm2321_vm3, %v5121_v51 }
 0x219   : > { %v1876_v40 = vpop.f32.mrf.mxu3  ;;  %v1735_v2 = vadd.f32 %v1655_v28, %v5574_v18  ;;  %v2099_v17 = vpop.f32.mrf.mxu0  ;;  %2355 = vst.msk [vmem:[#allocation2 + $0x179] sm:$0x1] %vm2321_vm3, %v5121_v51 }
 0x21a   : > { %2356 = vst.msk [vmem:[#allocation2 + $0x191] sm:$0x1] %vm2321_vm3, %v5121_v51 }
 0x21b   : > { %v1956_v6 = vadd.f32 %v1876_v40, %v1735_v2  ;;  %2357 = vst.msk [vmem:[#allocation2 + $0x1a9] sm:$0x1] %vm2321_vm3, %v5121_v51 }
 0x21d   : > { %v2177_v18 = vadd.f32 %v2097_v16, %v1956_v6 }
 0x21f   : > { %v2213_v0 = vmul.f32 %v5930_v29, %v2177_v18 }
 0x220   : > { %v1657_v5 = vpop.f32.mrf.mxu2 }
 0x221   : > { %v1878_v37 = vpop.f32.mrf.mxu3  ;;  %v2249_v8 = vadd.f32 %v5939_v22, %v2213_v0  ;;  %v1736_v16 = vadd.f32 %v1657_v5, %v5589_v24  ;;  %v2102_v36 = vpop.f32.mrf.mxu0  ;;  %v4792_v0 = vld [vmem:[%s5196_s16 + $0x120] sm:$0xff]  ;;  %v4793_v5 = vld [vmem:[%s5196_s16 + $0x128] sm:$0xff] }
 0x223   : > { %v2281_v28 = vmax.f32 %v2249_v8, 0.0  ;;  %v1957_v40 = vadd.f32 %v1878_v37, %v1736_v16  ;;  %v4840_v37 = vld [vmem:[%s5196_s16 + $0x121] sm:$0xff]  ;;  %v4841_v8 = vld [vmem:[%s5196_s16 + $0x129] sm:$0xff] }
 0x224   : > { %4909 = vmatmul.msk.bf16.gmra.mxu0 %vm378_vm1, %v5597_v60  ;;  %v1809_v51 = vpack.c.bf16 %v4841_v8, %v4840_v37  ;;  %v4794_v8 = vld [vmem:[%s5196_s16 + $0x138] sm:$0xff] }
 0x225   : > { %2359 = vst.msk [vmem:[#allocation2 + $0x19] sm:$0xff] %vm378_vm1, %v2281_v28  ;;  %v2178_v24 = vadd.f32 %v2099_v17, %v1957_v40  ;;  %4813 = vmatmul.msk.bf16.gmra.mxu2 %vm378_vm1, %v1587_v19 }
 0x226   : > { %4861 = vmatmul.msk.bf16.gmra.mxu3 %vm378_vm1, %v1808_v45 }
 0x227   : > { %v2214_v2 = vmul.f32 %v5930_v29, %v2178_v24  ;;  %v1588_v24 = vpack.c.bf16 %v4793_v5, %v4792_v0 }
 0x228   : > { %v1660_v60 = vpop.f32.mrf.mxu2 }
 0x229   : > { %v1881_v6 = vpop.f32.mrf.mxu3  ;;  %v2250_v17 = vadd.f32 %v5939_v22, %v2214_v2  ;;  %v1737_v18 = vadd.f32 %v1660_v60, %v5592_v54  ;;  %v2104_v57 = vpop.f32.mrf.mxu0 }
 0x22b   : > { %v2282_v63 = vmax.f32 %v2250_v17, 0.0  ;;  %v1958_v53 = vadd.f32 %v1881_v6, %v1737_v18 }
 0x22d   : > { %2360 = vst.msk [vmem:[#allocation2 + $0x21] sm:$0xff] %vm378_vm1, %v2282_v63  ;;  %v2179_v25 = vadd.f32 %v2102_v36, %v1958_v53  ;;  %v2442_v36 = vld [vmem:[#allocation2 + $0x19] sm:$0xff] }
 0x22f   : > { %v2215_v16 = vmul.f32 %v5930_v29, %v2179_v25 }
 0x230   : > { %v1662_v19 = vpop.f32.mrf.mxu2 }
 0x231   : > { %v1883_v45 = vpop.f32.mrf.mxu3  ;;  %v2251_v28 = vadd.f32 %v5939_v22, %v2215_v16  ;;  %v1738_v54 = vadd.f32 %v1662_v19, %v5607_v49  ;;  %v2107_v40 = vpop.f32.mrf.mxu0  ;;  %v4795_v16 = vld [vmem:[%s5196_s16 + $0x140] sm:$0xff] }
 0x232   : > { %v4842_v19 = vld [vmem:[%s5196_s16 + $0x139] sm:$0xff] }
 0x233   : > { %v2283_v2 = vmax.f32 %v2251_v28, 0.0  ;;  %v1959_v60 = vadd.f32 %v1883_v45, %v1738_v54  ;;  %v4843_v45 = vld [vmem:[%s5196_s16 + $0x141] sm:$0xff] }
 0x234   : > { %4910 = vmatmul.msk.bf16.gmra.mxu0 %vm378_vm1, %v5615_v44  ;;  %v2443_v6 = vld [vmem:[#allocation2 + $0x21] sm:$0xff] }
 0x235   : > { %2361 = vst.msk [vmem:[#allocation2 + $0x31] sm:$0xff] %vm378_vm1, %v2283_v2  ;;  %v2180_v17 = vadd.f32 %v2104_v57, %v1959_v60  ;;  %4814 = vmatmul.msk.bf16.gmra.mxu2 %vm378_vm1, %v1588_v24  ;;  %v2473_v49 = vpack.c.bf16 %v2443_v6, %v2442_v36  ;;  %v1810_v36 = vpack.c.bf16 %v4843_v45, %v4842_v19  ;;  %v4844_v19 = vld [vmem:[%s5196_s16 + $0x151] sm:$0xff]  ;;  %v4845_v45 = vld [vmem:[%s5196_s16 + $0x159] sm:$0xff] }
 0x236   : > { %4862 = vmatmul.msk.bf16.gmra.mxu3 %vm378_vm1, %v1809_v51 }
 0x237   : > { %v2216_v18 = vmul.f32 %v5930_v29, %v2180_v17  ;;  %4917 = vmatmul.msk.bf16.gmra.mxu1 %vm378_vm1, %v2473_v49 }
 0x238   : > { %v1665_v63 = vpop.f32.mrf.mxu2 }
 0x239   : > { %v1886_v44 = vpop.f32.mrf.mxu3  ;;  %v2252_v53 = vadd.f32 %v5939_v22, %v2216_v18  ;;  %v1739_v25 = vadd.f32 %v1665_v63, %v5610_v35  ;;  %v2109_v0 = vpop.f32.mrf.mxu0  ;;  %v1589_v35 = vpack.c.bf16 %v4795_v16, %v4794_v8  ;;  %v4796_v8 = vld [vmem:[%s5196_s16 + $0x150] sm:$0xff]  ;;  %v4797_v16 = vld [vmem:[%s5196_s16 + $0x158] sm:$0xff] }
 0x23b   : > { %v2284_v57 = vmax.f32 %v2252_v53, 0.0  ;;  %v1960_v5 = vadd.f32 %v1886_v44, %v1739_v25 }
 0x23d   : > { %2362 = vst.msk [vmem:[#allocation2 + $0x39] sm:$0xff] %vm378_vm1, %v2284_v57  ;;  %v2181_v37 = vadd.f32 %v2107_v40, %v1960_v5  ;;  %v2444_v40 = vld [vmem:[#allocation2 + $0x31] sm:$0xff] }
 0x23f   : > { %v2217_v28 = vmul.f32 %v5930_v29, %v2181_v37 }
 0x240   : > { %v1667_v54 = vpop.f32.mrf.mxu2 }
 0x241   : > { %v1888_v24 = vpop.f32.mrf.mxu3  ;;  %v2253_v51 = vadd.f32 %v5939_v22, %v2217_v28  ;;  %v1740_v2 = vadd.f32 %v1667_v54, %v5625_v10  ;;  %v2112_v60 = vpop.f32.mrf.mxu0 }
 0x243   : > { %v2285_v6 = vmax.f32 %v2253_v51, 0.0  ;;  %v1961_v17 = vadd.f32 %v1888_v24, %v1740_v2 }
 0x244   : > { %4911 = vmatmul.msk.bf16.gmra.mxu0 %vm378_vm1, %v5633_v48  ;;  %v2445_v49 = vld [vmem:[#allocation2 + $0x39] sm:$0xff] }
 0x245   : > { %2363 = vst.msk [vmem:[#allocation2 + $0x49] sm:$0xff] %vm378_vm1, %v2285_v6  ;;  %v2182_v18 = vadd.f32 %v2109_v0, %v1961_v17  ;;  %4815 = vmatmul.msk.bf16.gmra.mxu2 %vm378_vm1, %v1589_v35  ;;  %v2474_v10 = vpack.c.bf16 %v2445_v49, %v2444_v40 }
 0x246   : > { %4863 = vmatmul.msk.bf16.gmra.mxu3 %vm378_vm1, %v1810_v36  ;;  %v1811_v36 = vpack.c.bf16 %v4845_v45, %v4844_v19 }
 0x247   : > { %v2218_v63 = vmul.f32 %v5930_v29, %v2182_v18  ;;  %4918 = vmatmul.msk.bf16.gmra.mxu1 %vm378_vm1, %v2474_v10 }
 0x248   : > { %v1670_v44 = vpop.f32.mrf.mxu2 }
 0x249   : > { %v1891_v48 = vpop.f32.mrf.mxu3  ;;  %v2254_v53 = vadd.f32 %v5939_v22, %v2218_v63  ;;  %v1741_v25 = vadd.f32 %v1670_v44, %v5628_v12  ;;  %v2114_v57 = vpop.f32.mrf.mxu0  ;;  %v1590_v12 = vpack.c.bf16 %v4797_v16, %v4796_v8  ;;  %v4847_v8 = vld [vmem:[%s5196_s16 + $0x171] sm:$0xff]  ;;  %v1522_v16 = vadd.f32 %v5646_v14, %v5661_v43 }
 0x24b   : > { %v2286_v0 = vmax.f32 %v2254_v53, 0.0  ;;  %v1962_v5 = vadd.f32 %v1891_v48, %v1741_v25 }
 0x24d   : > { %2364 = vst.msk [vmem:[#allocation2 + $0x51] sm:$0xff] %vm378_vm1, %v2286_v0  ;;  %v2183_v37 = vadd.f32 %v2112_v60, %v1962_v5  ;;  %v2446_v60 = vld [vmem:[#allocation2 + $0x49] sm:$0xff] }
 0x24e   : > { %v4798_v0 = vld [vmem:[%s5196_s16 + $0x168] sm:$0xff]  ;;  %v4799_v5 = vld [vmem:[%s5196_s16 + $0x170] sm:$0xff] }
 0x24f   : > { %v2219_v28 = vmul.f32 %v5930_v29, %v2183_v37  ;;  %v4846_v37 = vld [vmem:[%s5196_s16 + $0x169] sm:$0xff] }
 0x250   : > { %v1672_v54 = vpop.f32.mrf.mxu2 }
 0x251   : > { %v1893_v24 = vpop.f32.mrf.mxu3  ;;  %v2255_v51 = vadd.f32 %v5939_v22, %v2219_v28  ;;  %v1742_v2 = vadd.f32 %v1672_v54, %v5643_v41  ;;  %v2117_v35 = vpop.f32.mrf.mxu0 }
 0x253   : > { %v2287_v6 = vmax.f32 %v2255_v51, 0.0  ;;  %v1963_v17 = vadd.f32 %v1893_v24, %v1742_v2  ;;  %v1591_v51 = vpack.c.bf16 %v4799_v5, %v4798_v0  ;;  %v1812_v2 = vpack.c.bf16 %v4847_v8, %v4846_v37 }
 0x254   : > { %4912 = vmatmul.msk.bf16.gmra.mxu0 %vm378_vm1, %v5653_v32  ;;  %v2447_v40 = vld [vmem:[#allocation2 + $0x51] sm:$0xff] }
 0x255   : > { %2365 = vst.msk [vmem:[#allocation2 + $0x61] sm:$0xff] %vm378_vm1, %v2287_v6  ;;  %v2184_v49 = vadd.f32 %v2114_v57, %v1963_v17  ;;  %4816 = vmatmul.msk.bf16.gmra.mxu2 %vm378_vm1, %v1590_v12  ;;  %v2475_v41 = vpack.c.bf16 %v2447_v40, %v2446_v60 }
 0x256   : > { %4864 = vmatmul.msk.bf16.gmra.mxu3 %vm378_vm1, %v1811_v36 }
 0x257   : > { %v2220_v18 = vmul.f32 %v5930_v29, %v2184_v49  ;;  %4919 = vmatmul.msk.bf16.gmra.mxu1 %vm378_vm1, %v2475_v41 }
 0x258   : > { %v1675_v10 = vpop.f32.mrf.mxu2 }
 0x259   : > { %v1896_v32 = vpop.f32.mrf.mxu3  ;;  %v2256_v63 = vadd.f32 %v5939_v22, %v2220_v18  ;;  %v1743_v44 = vadd.f32 %v1675_v10, %v5648_v27  ;;  %v2119_v48 = vpop.f32.mrf.mxu0 }
 0x25b   : > { %v2288_v53 = vmax.f32 %v2256_v63, 0.0  ;;  %v1964_v25 = vadd.f32 %v1896_v32, %v1743_v44  ;;  %v1524_v63 = vadd.f32 %v5666_v56, %v5681_v50 }
 0x25d   : > { %2366 = vst.msk [vmem:[#allocation2 + $0x69] sm:$0xff] %vm378_vm1, %v2288_v53  ;;  %v2185_v57 = vadd.f32 %v2117_v35, %v1964_v25  ;;  %v2448_v35 = vld [vmem:[#allocation2 + $0x61] sm:$0xff] }
 0x25f   : > { %v2221_v19 = vmul.f32 %v5930_v29, %v2185_v57 }
 0x260   : > { %v1677_v45 = vpop.f32.mrf.mxu2 }
 0x261   : > { %v1898_v28 = vpop.f32.mrf.mxu3  ;;  %v2257_v54 = vadd.f32 %v5939_v22, %v2221_v19  ;;  %v1744_v27 = vadd.f32 %v1677_v45, %v1522_v16  ;;  %v2122_v24 = vpop.f32.mrf.mxu0 }
 0x263   : > { %v2289_v12 = vmax.f32 %v2257_v54, 0.0  ;;  %v1965_v36 = vadd.f32 %v1898_v28, %v1744_v27 }
 0x264   : > { %4913 = vmatmul.msk.bf16.gmra.mxu0 %vm378_vm1, %v5673_v15  ;;  %v2449_v6 = vld [vmem:[#allocation2 + $0x69] sm:$0xff] }
 0x265   : > { %2367 = vst.msk [vmem:[#allocation2 + $0x79] sm:$0xff] %vm378_vm1, %v2289_v12  ;;  %v2186_v14 = vadd.f32 %v2119_v48, %v1965_v36  ;;  %4817 = vmatmul.msk.bf16.gmra.mxu2 %vm378_vm1, %v1591_v51  ;;  %v2476_v43 = vpack.c.bf16 %v2449_v6, %v2448_v35  ;;  %v4898_v51 = vld [vmem:[%s5196_s16 + $0x19a] sm:$0xff]  ;;  %v1526_v6 = vadd.f32 %v5686_v61, %v5709_v38 }
 0x266   : > { %4865 = vmatmul.msk.bf16.gmra.mxu3 %vm378_vm1, %v1812_v2  ;;  %v4899_v2 = vld [vmem:[%s5196_s16 + $0x1a2] sm:$0xff]  ;;  %v4850_v36 = vld [vmem:[%s5196_s16 + $0x199] sm:$0xff] }
 0x267   : > { %v2222_v17 = vmul.f32 %v5930_v29, %v2186_v14  ;;  %4920 = vmatmul.msk.bf16.gmra.mxu1 %vm378_vm1, %v2476_v43  ;;  %v4803_v12 = vld [vmem:[%s5196_s16 + $0x1a0] sm:$0xff] }
 0x268   : > { %v1680_v60 = vpop.f32.mrf.mxu2  ;;  %v4851_v35 = vld [vmem:[%s5196_s16 + $0x1a1] sm:$0xff] }
 0x269   : > { %v1901_v40 = vpop.f32.mrf.mxu3  ;;  %v2258_v49 = vadd.f32 %v5939_v22, %v2222_v17  ;;  %v1745_v15 = vadd.f32 %v1680_v60, %v5668_v26  ;;  %v2124_v41 = vpop.f32.mrf.mxu0 }
 0x26b   : > { %v2290_v18 = vmax.f32 %v2258_v49, 0.0  ;;  %v1966_v10 = vadd.f32 %v1901_v40, %v1745_v15 }
 0x26c   : > { %v2450_v26 = vld [vmem:[#allocation2 + $0x79] sm:$0xff] }
 0x26d   : > { %2368 = vst.msk [vmem:[#allocation2 + $0x81] sm:$0xff] %vm378_vm1, %v2290_v18  ;;  %v2187_v32 = vadd.f32 %v2122_v24, %v1966_v10  ;;  %v4802_v24 = vld [vmem:[%s5196_s16 + $0x198] sm:$0xff] }
 0x26e   : > { %v1593_v15 = vpack.c.bf16 %v4803_v12, %v4802_v24 }
 0x26f   : > { %v2223_v44 = vmul.f32 %v5930_v29, %v2187_v32 }
 0x270   : > { %v1682_v48 = vpop.f32.mrf.mxu2 }
 0x271   : > { %v1903_v53 = vpop.f32.mrf.mxu3  ;;  %v2259_v25 = vadd.f32 %v5939_v22, %v2223_v44  ;;  %v1746_v57 = vadd.f32 %v1682_v48, %v1524_v63  ;;  %v2127_v0 = vpop.f32.mrf.mxu0 }
 0x273   : > { %v2291_v5 = vmax.f32 %v2259_v25, 0.0  ;;  %v1967_v37 = vadd.f32 %v1903_v53, %v1746_v57 }
 0x274   : > { %4914 = vmatmul.msk.bf16.gmra.mxu0 %vm378_vm1, %v5701_v1  ;;  %v2451_v8 = vld [vmem:[#allocation2 + $0x81] sm:$0xff] }
 0x275   : > { %2369 = vst.msk [vmem:[#allocation2 + $0x91] sm:$0xff] %vm378_vm1, %v2291_v5  ;;  %v2188_v16 = vadd.f32 %v2124_v41, %v1967_v37  ;;  %4818 = vmatmul.msk.bf16.gmra.mxu2 %vm378_vm1, %v5699_v34  ;;  %v2477_v56 = vpack.c.bf16 %v2451_v8, %v2450_v26  ;;  %v1814_v41 = vpack.c.bf16 %v4851_v35, %v4850_v36  ;;  %v2391_v8 = vld [vmem:[#allocation2] sm:$0xff] }
 0x276   : > { %4866 = vmatmul.msk.bf16.gmra.mxu3 %vm378_vm1, %v5696_v31 }
 0x277   : > { %v2224_v50 = vmul.f32 %v5930_v29, %v2188_v16  ;;  %4921 = vmatmul.msk.bf16.gmra.mxu1 %vm378_vm1, %v2477_v56  ;;  %v2392_v16 = vld [vmem:[#allocation2 + $0x8] sm:$0xff] }
 0x278   : > { %v1685_v1 = vpop.f32.mrf.mxu2  ;;  %v2769_v56 = vld [vmem:[#allocation2 + $0x2] sm:$0xff] }
 0x279   : > { %v1906_v19 = vpop.f32.mrf.mxu3  ;;  %v2260_v45 = vadd.f32 %v5939_v22, %v2224_v50  ;;  %v1747_v28 = vadd.f32 %v1685_v1, %v5692_v62  ;;  %v2129_v54 = vpop.f32.mrf.mxu0  ;;  %v2035_v62 = vpack.c.bf16 %v4899_v2, %v4898_v51  ;;  %v2770_v50 = vld [vmem:[#allocation2 + $0xa] sm:$0xff]  ;;  %v1528_v1 = vadd.f32 %v5714_v55, %v5727_v13  ;;  %v2990_v51 = vld [vmem:[#allocation2 + $0x18] sm:$0xff] }
 0x27a   : > { %v2801_v24 = vpack.c.bf16 %v2770_v50, %v2769_v56 }
 0x27b   : > { %v2292_v34 = vmax.f32 %v2260_v45, 0.0  ;;  %v1968_v27 = vadd.f32 %v1906_v19, %v1747_v28  ;;  %v2991_v45 = vld [vmem:[#allocation2 + $0x20] sm:$0xff] }
 0x27c   : > { %v2452_v32 = vld [vmem:[#allocation2 + $0x91] sm:$0xff]  ;;  %v3022_v2 = vpack.c.bf16 %v2991_v45, %v2990_v51 }
 0x27d   : > { %2370 = vst.msk [vmem:[#allocation2 + $0x99] sm:$0xff] %vm378_vm1, %v2292_v34  ;;  %v2189_v31 = vadd.f32 %v2127_v0, %v1968_v27 }
 0x27f   : > { %v2225_v14 = vmul.f32 %v5930_v29, %v2189_v31  ;;  %v2423_v31 = vpack.c.bf16 %v2392_v16, %v2391_v8 }
 0x280   : > { %v1687_v43 = vpop.f32.mrf.mxu2 }
 0x281   : > { %v1908_v17 = vpop.f32.mrf.mxu3  ;;  %v2261_v60 = vadd.f32 %v5939_v22, %v2225_v14  ;;  %v1748_v40 = vadd.f32 %v1687_v43, %v1526_v6  ;;  %v2132_v49 = vpop.f32.mrf.mxu0 }
 0x283   : > { %v2293_v18 = vmax.f32 %v2261_v60, 0.0  ;;  %v1969_v10 = vadd.f32 %v1908_v17, %v1748_v40 }
 0x284   : > { %4915 = vmatmul.msk.bf16.gmra.mxu0 %vm378_vm1, %v2035_v62  ;;  %v2453_v63 = vld [vmem:[#allocation2 + $0x99] sm:$0xff] }
 0x285   : > { %2371 = vst.msk [vmem:[#allocation2 + $0xa9] sm:$0xff] %vm378_vm1, %v2293_v18  ;;  %v2190_v61 = vadd.f32 %v2129_v54, %v1969_v10  ;;  %4819 = vmatmul.msk.bf16.gmra.mxu2 %vm378_vm1, %v1593_v15  ;;  %v2478_v38 = vpack.c.bf16 %v2453_v63, %v2452_v32  ;;  %v1530_v10 = vadd.f32 %v5730_v11, %v5743_v9  ;;  %v2993_v63 = vld [vmem:[#allocation2 + $0x38] sm:$0xff] }
 0x286   : > { %4867 = vmatmul.msk.bf16.gmra.mxu3 %vm378_vm1, %v1814_v41 }
 0x287   : > { %v2226_v44 = vmul.f32 %v5930_v29, %v2190_v61  ;;  %4922 = vmatmul.msk.bf16.gmra.mxu1 %vm378_vm1, %v2478_v38 }
 0x288   : > { %v1690_v48 = vpop.f32.mrf.mxu2 }
 0x289   : > { %v1911_v53 = vpop.f32.mrf.mxu3  ;;  %v2262_v25 = vadd.f32 %v5939_v22, %v2226_v44  ;;  %v1749_v57 = vadd.f32 %v1690_v48, %v5720_v42  ;;  %v2134_v0 = vpop.f32.mrf.mxu0  ;;  %v2771_v44 = vld [vmem:[#allocation2 + $0x1a] sm:$0xff]  ;;  %v2772_v48 = vld [vmem:[#allocation2 + $0x22] sm:$0xff] }
 0x28a   : > { %v6111_v8 = vpack.c.bf16 %v2772_v48, %v2771_v44 }
 0x28b   : > { %v2294_v5 = vmax.f32 %v2262_v25, 0.0  ;;  %v1970_v37 = vadd.f32 %v1911_v53, %v1749_v57  ;;  %v2992_v57 = vld [vmem:[#allocation2 + $0x30] sm:$0xff] }
 0x28c   : > { %v2454_v35 = vld [vmem:[#allocation2 + $0xa9] sm:$0xff] }
 0x28d   : > { %2372 = vst.msk [vmem:[#allocation2 + $0xb1] sm:$0xff] %vm378_vm1, %v2294_v5  ;;  %v2191_v26 = vadd.f32 %v2132_v49, %v1970_v37  ;;  %v6100_v49 = vpop.f32.mrf.mxu1  ;;  %v6109_v5 = vpack.c.bf16 %v2993_v63, %v2992_v57  ;;  %v1534_v57 = vadd.f32 %v5762_v3, %v5775_v21 }
 0x28f   : > { %v2227_v19 = vmul.f32 %v5930_v29, %v2191_v26 }
 0x290   : > { %v1692_v28 = vpop.f32.mrf.mxu2 }
 0x291   : > { %v1913_v54 = vpop.f32.mrf.mxu3  ;;  %v2263_v42 = vadd.f32 %v5939_v22, %v2227_v19  ;;  %v1750_v34 = vadd.f32 %v1692_v28, %v1528_v1  ;;  %v2137_v27 = vpop.f32.mrf.mxu0 }
 0x293   : > { %v2295_v12 = vmax.f32 %v2263_v42, 0.0  ;;  %v1971_v36 = vadd.f32 %v1913_v54, %v1750_v34 }
 0x294   : > { %4964 = vmatmul.msk.bf16.vlgmr.msrb.gmra.mxu0 %vm378_vm1, %v3022_v2  ;;  %v2455_v6 = vld [vmem:[#allocation2 + $0xb1] sm:$0xff] }
 0x295   : > { %2373 = vst.msk [vmem:[#allocation2 + $0xc1] sm:$0xff] %vm378_vm1, %v2295_v12  ;;  %v2192_v55 = vadd.f32 %v2134_v0, %v1971_v36  ;;  %4932 = vmatmul.msk.bf16.vlgmr.msrb.gmra.mxu2 %vm378_vm1, %v2423_v31  ;;  %v6093_v13 = vpack.c.bf16 %v2455_v6, %v2454_v35  ;;  %v6107_v0 = vpop.f32.mrf.mxu1  ;;  %v2773_v35 = vld [vmem:[#allocation2 + $0x32] sm:$0xff]  ;;  %v2774_v6 = vld [vmem:[#allocation2 + $0x3a] sm:$0xff] }
 0x296   : > { %4948 = vmatmul.msk.bf16.vlgmr.msrb.gmra.mxu3 %vm378_vm1, %v2801_v24  ;;  %v1532_v24 = vadd.f32 %v5746_v20, %v5759_v59 }
 0x297   : > { %v2228_v14 = vmul.f32 %v5930_v29, %v2192_v55  ;;  %4923 = vmatmul.msk.bf16.gmra.mxu1 %vm378_vm1, %v6093_v13 }
 0x298   : > { %v1695_v43 = vpop.f32.mrf.mxu2 }
 0x299   : > { %v1916_v17 = vpop.f32.mrf.mxu3  ;;  %v2264_v62 = vadd.f32 %v5939_v22, %v2228_v14  ;;  %v1751_v60 = vadd.f32 %v1695_v43, %v5736_v33  ;;  %v2139_v40 = vpop.f32.mrf.mxu0  ;;  %v2994_v43 = vld [vmem:[#allocation2 + $0x48] sm:$0xff] }
 0x29b   : > { %v2296_v15 = vmax.f32 %v2264_v62, 0.0  ;;  %v1972_v41 = vadd.f32 %v1916_v17, %v1751_v60 }
 0x29c   : > { %v2456_v11 = vld [vmem:[#allocation2 + $0xc1] sm:$0xff] }
 0x29d   : > { %2374 = vst.msk [vmem:[#allocation2 + $0xc9] sm:$0xff] %vm378_vm1, %v2296_v15  ;;  %v2193_v18 = vadd.f32 %v2137_v27, %v1972_v41  ;;  %v6126_v27 = vpop.f32.mrf.mxu1 }
 0x29f   : > { %v2229_v32 = vmul.f32 %v5930_v29, %v2193_v18 }
 0x2a0   : > { %v1697_v61 = vpop.f32.mrf.mxu2 }
 0x2a1   : > { %v1918_v38 = vpop.f32.mrf.mxu3  ;;  %v2265_v33 = vadd.f32 %v5939_v22, %v2229_v32  ;;  %v1752_v53 = vadd.f32 %v1697_v61, %v1530_v10  ;;  %v2142_v25 = vpop.f32.mrf.mxu0 }
 0x2a3   : > { %v2297_v37 = vmax.f32 %v2265_v33, 0.0  ;;  %v1973_v26 = vadd.f32 %v1918_v38, %v1752_v53 }
 0x2a4   : > { %4965 = vmatmul.msk.bf16.gmra.mxu0 %vm378_vm1, %v6109_v5  ;;  %v2457_v9 = vld [vmem:[#allocation2 + $0xc9] sm:$0xff] }
 0x2a5   : > { %2375 = vst.msk [vmem:[#allocation2 + $0xd9] sm:$0xff] %vm378_vm1, %v2297_v37  ;;  %v2194_v16 = vadd.f32 %v2139_v40, %v1973_v26  ;;  %4933 = vmatmul.msk.bf16.gmra.mxu2 %vm378_vm1, %v3022_v2  ;;  %v6119_v56 = vpack.c.bf16 %v2457_v9, %v2456_v11  ;;  %v2995_v2 = vld [vmem:[#allocation2 + $0x50] sm:$0xff]  ;;  %v6135_v40 = vpack.c.bf16 %v2774_v6, %v2773_v35  ;;  %v2997_v26 = vld [vmem:[#allocation2 + $0x68] sm:$0xff] }
 0x2a6   : > { %4949 = vmatmul.msk.bf16.gmra.mxu3 %vm378_vm1, %v6111_v8  ;;  %v6133_v17 = vpack.c.bf16 %v2995_v2, %v2994_v43 }
 0x2a7   : > { %v2230_v50 = vmul.f32 %v5930_v29, %v2194_v16  ;;  %4924 = vmatmul.msk.bf16.gmra.mxu1 %vm378_vm1, %v6119_v56  ;;  %v2775_v16 = vld [vmem:[#allocation2 + $0x4a] sm:$0xff] }
 0x2a8   : > { %v1700_v1 = vpop.f32.mrf.mxu2 }
 0x2a9   : > { %v1921_v19 = vpop.f32.mrf.mxu3  ;;  %v2266_v45 = vadd.f32 %v5939_v22, %v2230_v50  ;;  %v1753_v28 = vadd.f32 %v1700_v1, %v5752_v58  ;;  %v2144_v54 = vpop.f32.mrf.mxu0  ;;  %v2776_v50 = vld [vmem:[#allocation2 + $0x52] sm:$0xff] }
 0x2ab   : > { %v2298_v42 = vmax.f32 %v2266_v45, 0.0  ;;  %v1974_v34 = vadd.f32 %v1921_v19, %v1753_v28  ;;  %v2996_v45 = vld [vmem:[#allocation2 + $0x60] sm:$0xff] }
 0x2ac   : > { %v2458_v20 = vld [vmem:[#allocation2 + $0xd9] sm:$0xff]  ;;  %v6160_v28 = vpack.c.bf16 %v2997_v26, %v2996_v45 }
 0x2ad   : > { %2376 = vst.msk [vmem:[#allocation2 + $0xe1] sm:$0xff] %vm378_vm1, %v2298_v42  ;;  %v2195_v31 = vadd.f32 %v2142_v25, %v1974_v34  ;;  %v6162_v34 = vpack.c.bf16 %v2776_v50, %v2775_v16  ;;  %v7129_v45 = vld [vmem:[#allocation12_spill] sm:$0xff] }
 0x2af   : > { %v2231_v51 = vmul.f32 %v5930_v29, %v2195_v31 }
 0x2b0   : > { %v1702_v12 = vpop.f32.mrf.mxu2 }
 0x2b1   : > { %v1923_v36 = vpop.f32.mrf.mxu3  ;;  %v2267_v58 = vadd.f32 %v5939_v22, %v2231_v51  ;;  %v1754_v55 = vadd.f32 %v1702_v12, %v1532_v24  ;;  %v2147_v14 = vpop.f32.mrf.mxu0 }
 0x2b3   : > { %v2299_v62 = vmax.f32 %v2267_v58, 0.0  ;;  %v1975_v60 = vadd.f32 %v1923_v36, %v1754_v55 }
 0x2b4   : > { %v6137_v15 = vpop.f32.mrf.mxu1  ;;  %4966 = vmatmul.msk.bf16.gmra.mxu0 %vm378_vm1, %v6133_v17  ;;  %v2459_v59 = vld [vmem:[#allocation2 + $0xe1] sm:$0xff] }
 0x2b5   : > { %2377 = vst.msk [vmem:[#allocation2 + $0xf1] sm:$0xff] %vm378_vm1, %v2299_v62  ;;  %v2196_v41 = vadd.f32 %v2144_v54, %v1975_v60  ;;  %4934 = vmatmul.msk.bf16.gmra.mxu2 %vm378_vm1, %v6109_v5  ;;  %v6146_v18 = vpack.c.bf16 %v2459_v59, %v2458_v20  ;;  %v7128_v60 = vld [vmem:[#allocation10_spill] sm:$0xff] }
 0x2b6   : > { %4950 = vmatmul.msk.bf16.gmra.mxu3 %vm378_vm1, %v6135_v40  ;;  %v1536_v20 = vadd.f32 %v7128_v60, %v5791_v46  ;;  %v2780_v60 = vld [vmem:[#allocation2 + $0x82] sm:$0xff] }
 0x2b7   : > { %v2232_v10 = vmul.f32 %v5930_v29, %v2196_v41  ;;  %4925 = vmatmul.msk.bf16.gmra.mxu1 %vm378_vm1, %v6146_v18  ;;  %v2999_v41 = vld [vmem:[#allocation2 + $0x80] sm:$0xff] }
 0x2b8   : > { %v1705_v32 = vpop.f32.mrf.mxu2 }
 0x2b9   : > { %v1926_v63 = vpop.f32.mrf.mxu3  ;;  %v2268_v61 = vadd.f32 %v5939_v22, %v2232_v10  ;;  %v1755_v38 = vadd.f32 %v1705_v32, %v5768_v23  ;;  %v2149_v44 = vpop.f32.mrf.mxu0 }
 0x2bb   : > { %v2300_v48 = vmax.f32 %v2268_v61, 0.0  ;;  %v1976_v33 = vadd.f32 %v1926_v63, %v1755_v38  ;;  %v2777_v63 = vld [vmem:[#allocation2 + $0x62] sm:$0xff]  ;;  %v2778_v61 = vld [vmem:[#allocation2 + $0x6a] sm:$0xff] }
 0x2bc   : > { %v6153_v53 = vpop.f32.mrf.mxu1  ;;  %v2460_v3 = vld [vmem:[#allocation2 + $0xf1] sm:$0xff] }
 0x2bd   : > { %2378 = vst.msk [vmem:[#allocation2 + $0xf9] sm:$0xff] %vm378_vm1, %v2300_v48  ;;  %v2197_v25 = vadd.f32 %v2147_v14, %v1976_v33  ;;  %v2998_v48 = vld [vmem:[#allocation2 + $0x78] sm:$0xff] }
 0x2be   : > { %v6187_v33 = vpack.c.bf16 %v2999_v41, %v2998_v48 }
 0x2bf   : > { %v2233_v37 = vmul.f32 %v5930_v29, %v2197_v25 }
 0x2c0   : > { %v1707_v11 = vpop.f32.mrf.mxu2 }
 0x2c1   : > { %v1928_v9 = vpop.f32.mrf.mxu3  ;;  %v2269_v23 = vadd.f32 %v5939_v22, %v2233_v37  ;;  %v1756_v1 = vadd.f32 %v1707_v11, %v1534_v57  ;;  %v2152_v19 = vpop.f32.mrf.mxu0  ;;  %v6189_v37 = vpack.c.bf16 %v2778_v61, %v2777_v63 }
 0x2c3   : > { %v2301_v54 = vmax.f32 %v2269_v23, 0.0  ;;  %v1977_v42 = vadd.f32 %v1928_v9, %v1756_v1 }
 0x2c4   : > { %v6164_v31 = vpop.f32.mrf.mxu1  ;;  %4967 = vmatmul.msk.bf16.gmra.mxu0 %vm378_vm1, %v6160_v28  ;;  %v2461_v21 = vld [vmem:[#allocation2 + $0xf9] sm:$0xff] }
 0x2c5   : > { %2379 = vst.msk [vmem:[#allocation2 + $0x109] sm:$0xff] %vm378_vm1, %v2301_v54  ;;  %v2198_v24 = vadd.f32 %v2149_v44, %v1977_v42  ;;  %4935 = vmatmul.msk.bf16.gmra.mxu2 %vm378_vm1, %v6133_v17  ;;  %v6173_v51 = vpack.c.bf16 %v2461_v21, %v2460_v3 }
 0x2c6   : > { %4951 = vmatmul.msk.bf16.gmra.mxu3 %vm378_vm1, %v6162_v34 }
 0x2c7   : > { %v2234_v2 = vmul.f32 %v5930_v29, %v2198_v24  ;;  %4926 = vmatmul.msk.bf16.gmra.mxu1 %vm378_vm1, %v6173_v51 }
 0x2c8   : > { %v1710_v12 = vpop.f32.mrf.mxu2 }
 0x2c9   : > { %v1931_v36 = vpop.f32.mrf.mxu3  ;;  %v2270_v35 = vadd.f32 %v5939_v22, %v2234_v2  ;;  %v1757_v6 = vadd.f32 %v1710_v12, %v5784_v52  ;;  %v2154_v58 = vpop.f32.mrf.mxu0  ;;  %v7130_v12 = vld [vmem:[#allocation13_spill] sm:$0xff] }
 0x2cb   : > { %v2302_v55 = vmax.f32 %v2270_v35, 0.0  ;;  %v1978_v14 = vadd.f32 %v1931_v36, %v1757_v6  ;;  %v7131_v36 = vld [vmem:[#allocation11_spill] sm:$0xff] }
 0x2cc   : > { %v6180_v43 = vpop.f32.mrf.mxu1  ;;  %v2462_v46 = vld [vmem:[#allocation2 + $0x109] sm:$0xff]  ;;  %v1538_v35 = vadd.f32 %v7131_v36, %v7130_v12 }
 0x2cd   : > { %2380 = vst.msk [vmem:[#allocation2 + $0x111] sm:$0xff] %vm378_vm1, %v2302_v55  ;;  %v2199_v62 = vadd.f32 %v2152_v19, %v1978_v14 }
 0x2cf   : > { %v2235_v59 = vmul.f32 %v5930_v29, %v2199_v62  ;;  %v2779_v62 = vld [vmem:[#allocation2 + $0x7a] sm:$0xff] }
 0x2d0   : > { %v1712_v10 = vpop.f32.mrf.mxu2 }
 0x2d1   : > { %v1933_v32 = vpop.f32.mrf.mxu3  ;;  %v2271_v52 = vadd.f32 %v5939_v22, %v2235_v59  ;;  %v1758_v38 = vadd.f32 %v1712_v10, %v1536_v20  ;;  %v2157_v44 = vpop.f32.mrf.mxu0  ;;  %v3000_v10 = vld [vmem:[#allocation2 + $0x90] sm:$0xff] }
 0x2d3   : > { %v2303_v25 = vmax.f32 %v2271_v52, 0.0  ;;  %v1979_v57 = vadd.f32 %v1933_v32, %v1758_v38  ;;  %v6216_v52 = vpack.c.bf16 %v2780_v60, %v2779_v62 }
 0x2d4   : > { %v6191_v26 = vpop.f32.mrf.mxu1  ;;  %4968 = vmatmul.msk.bf16.gmra.mxu0 %vm378_vm1, %v6187_v33  ;;  %v2463_v11 = vld [vmem:[#allocation2 + $0x111] sm:$0xff] }
 0x2d5   : > { %2381 = vst.msk [vmem:[#allocation2 + $0x121] sm:$0xff] %vm378_vm1, %v2303_v25  ;;  %v2200_v9 = vadd.f32 %v2154_v58, %v1979_v57  ;;  %4936 = vmatmul.msk.bf16.gmra.mxu2 %vm378_vm1, %v6160_v28  ;;  %v6200_v16 = vpack.c.bf16 %v2463_v11, %v2462_v46  ;;  %v3001_v58 = vld [vmem:[#allocation2 + $0x98] sm:$0xff] }
 0x2d6   : > { %4952 = vmatmul.msk.bf16.gmra.mxu3 %vm378_vm1, %v6189_v37  ;;  %v6214_v32 = vpack.c.bf16 %v3001_v58, %v3000_v10 }
 0x2d7   : > { %v2236_v50 = vmul.f32 %v5930_v29, %v2200_v9  ;;  %4927 = vmatmul.msk.bf16.gmra.mxu1 %vm378_vm1, %v6200_v16 }
 0x2d8   : > { %v1715_v23 = vpop.f32.mrf.mxu2 }
 0x2d9   : > { %v1936_v1 = vpop.f32.mrf.mxu3  ;;  %v2272_v19 = vadd.f32 %v5939_v22, %v2236_v50  ;;  %v1759_v54 = vadd.f32 %v1715_v23, %v7129_v45  ;;  %v2159_v42 = vpop.f32.mrf.mxu0  ;;  %v7132_v23 = vld [vmem:[#allocation14_spill] sm:$0xff] }
 0x2db   : > { %v2304_v3 = vmax.f32 %v2272_v19, 0.0  ;;  %v1980_v21 = vadd.f32 %v1936_v1, %v1759_v54 }
 0x2dc   : > { %v6207_v24 = vpop.f32.mrf.mxu1 }
 0x2dd   : > { %2382 = vst.msk [vmem:[#allocation2 + $0x129] sm:$0xff] %vm378_vm1, %v2304_v3  ;;  %v2201_v2 = vadd.f32 %v2157_v44, %v1980_v21  ;;  %v2464_v44 = vld [vmem:[#allocation2 + $0x121] sm:$0xff]  ;;  %v7133_v21 = vld [vmem:[#allocation4_spill] sm:$0xff] }
 0x2df   : > { %v2237_v6 = vmul.f32 %v5930_v29, %v2201_v2  ;;  %v7134_v2 = vld [vmem:[#allocation3_spill] sm:$0xff] }
 0x2e0   : > { %v1717_v55 = vpop.f32.mrf.mxu2  ;;  %v1540_v12 = vadd.f32 %v7134_v2, %v7133_v21 }
 0x2e1   : > { %v1938_v14 = vpop.f32.mrf.mxu3  ;;  %v2273_v20 = vadd.f32 %v5939_v22, %v2237_v6  ;;  %v1760_v59 = vadd.f32 %v1717_v55, %v1538_v35  ;;  %v2162_v41 = vpop.f32.mrf.mxu0  ;;  %v3003_v35 = vld [vmem:[#allocation2 + $0xb0] sm:$0xff] }
 0x2e2   : > { %v2781_v55 = vld [vmem:[#allocation2 + $0x92] sm:$0xff] }
 0x2e3   : > { %v2305_v63 = vmax.f32 %v2273_v20, 0.0  ;;  %v1981_v61 = vadd.f32 %v1938_v14, %v1760_v59  ;;  %v2782_v14 = vld [vmem:[#allocation2 + $0x9a] sm:$0xff]  ;;  %v3002_v59 = vld [vmem:[#allocation2 + $0xa8] sm:$0xff] }
 0x2e4   : > { %v6218_v38 = vpop.f32.mrf.mxu1  ;;  %4969 = vmatmul.msk.bf16.gmra.mxu0 %vm378_vm1, %v6214_v32  ;;  %v2465_v48 = vld [vmem:[#allocation2 + $0x129] sm:$0xff]  ;;  %v6241_v10 = vpack.c.bf16 %v3003_v35, %v3002_v59 }
 0x2e5   : > { %2383 = vst.msk [vmem:[#allocation2 + $0x139] sm:$0xff] %vm378_vm1, %v2305_v63  ;;  %v2202_v25 = vadd.f32 %v2159_v42, %v1981_v61  ;;  %4937 = vmatmul.msk.bf16.gmra.mxu2 %vm378_vm1, %v6187_v33  ;;  %v6227_v57 = vpack.c.bf16 %v2465_v48, %v2464_v44 }
 0x2e6   : > { %4953 = vmatmul.msk.bf16.gmra.mxu3 %vm378_vm1, %v6216_v52  ;;  %7135 = vst [vmem:[#allocation7_spill] sm:$0xff] %v6241_v10 }
 0x2e7   : > { %v2238_v46 = vmul.f32 %v5930_v29, %v2202_v25  ;;  %4928 = vmatmul.msk.bf16.gmra.mxu1 %vm378_vm1, %v6227_v57 }
 0x2e8   : > { %v1720_v11 = vpop.f32.mrf.mxu2 }
 0x2e9   : > { %v1941_v9 = vpop.f32.mrf.mxu3  ;;  %v2274_v50 = vadd.f32 %v5939_v22, %v2238_v46  ;;  %v1761_v1 = vadd.f32 %v1720_v11, %v7132_v23  ;;  %v2164_v19 = vpop.f32.mrf.mxu0 }
 0x2eb   : > { %v2306_v45 = vmax.f32 %v2274_v50, 0.0  ;;  %v1982_v54 = vadd.f32 %v1941_v9, %v1761_v1 }
 0x2ec   : > { %v6234_v42 = vpop.f32.mrf.mxu1  ;;  %v2466_v48 = vld [vmem:[#allocation2 + $0x139] sm:$0xff] }
 0x2ed   : > { %2384 = vst.msk [vmem:[#allocation2 + $0x141] sm:$0xff] %vm378_vm1, %v2306_v45  ;;  %v2203_v3 = vadd.f32 %v2162_v41, %v1982_v54  ;;  %v6243_v41 = vpack.c.bf16 %v2782_v14, %v2781_v55  ;;  %v3005_v55 = vld [vmem:[#allocation2 + $0xc8] sm:$0xff] }
 0x2ef   : > { %v2239_v36 = vmul.f32 %v5930_v29, %v2203_v3  ;;  %7136 = vst [vmem:[#allocation5_spill] sm:$0xff] %v6243_v41 }
 0x2f0   : > { %v1722_v6 = vpop.f32.mrf.mxu2 }
 0x2f1   : > { %v1943_v58 = vpop.f32.mrf.mxu3  ;;  %v2275_v62 = vadd.f32 %v5939_v22, %v2239_v36  ;;  %v1762_v60 = vadd.f32 %v1722_v6, %v1540_v12  ;;  %v2167_v20 = vpop.f32.mrf.mxu0  ;;  %v3480_v12 = vld [vmem:[%s7082_s4 + $0x14] sm:$0xf]  ;;  %v3702_v36 = vld [vmem:[%s7082_s4 + $0x18] sm:$0xf]  ;;  %v1542_v6 = vadd.f32 %v5844_v7, %v5850_v39 }
 0x2f2   : > { %v3530_v35 = vsel %vm427_vm0, %v3480_v12, 0 }
 0x2f3   : > { %v2307_v63 = vmax.f32 %v2275_v62, 0.0  ;;  %v1983_v61 = vadd.f32 %v1943_v58, %v1762_v60  ;;  %3539 = vmatpush.bf16.msra.mxu2 %v3530_v35  ;;  %v2783_v60 = vld [vmem:[#allocation2 + $0xaa] sm:$0xff]  ;;  %v5112_v35 = vld [vmem:[%s7081_s3] ss:$0 sm:$0xff] }
 0x2f4   : > { %v6245_v44 = vpop.f32.mrf.mxu1  ;;  %4970 = vmatmul.msk.bf16.gmra.mxu0 %vm378_vm1, %v6241_v10  ;;  %v2467_v25 = vld [vmem:[#allocation2 + $0x141] sm:$0xff] }
 0x2f5   : > { %2385 = vst.msk [vmem:[#allocation2 + $0x151] sm:$0xff] %vm378_vm1, %v2307_v63  ;;  %v2204_v46 = vadd.f32 %v2164_v19, %v1983_v61  ;;  %4938 = vmatmul.msk.bf16.gmra.mxu2 %vm378_vm1, %v6214_v32  ;;  %v6254_v11 = vpack.c.bf16 %v2467_v25, %v2466_v48  ;;  %v3004_v48 = vld [vmem:[#allocation2 + $0xc0] sm:$0xff] }
 0x2f6   : > { %4954 = vmatmul.msk.bf16.gmra.mxu3 %vm378_vm1, %v6243_v41  ;;  %v6276_v25 = vpack.c.bf16 %v3005_v55, %v3004_v48 }
 0x2f7   : > { %7137 = vst [vmem:[#allocation6_spill] sm:$0xff] %v6254_v11  ;;  %v2240_v9 = vmul.f32 %v5930_v29, %v2204_v46  ;;  %4929 = vmatmul.msk.bf16.gmra.mxu1 %vm378_vm1, %v6254_v11 }
 0x2f8   : > { %v1725_v50 = vpop.f32.mrf.mxu2  ;;  %7138 = vst [vmem:[#allocation8_spill] sm:$0xff] %v6276_v25 }
 0x2f9   : > { %v1946_v23 = vpop.f32.mrf.mxu3  ;;  %v2276_v1 = vadd.f32 %v5939_v22, %v2240_v9  ;;  %v1763_v45 = vadd.f32 %v1725_v50, %v5840_v30  ;;  %v2169_v19 = vpop.f32.mrf.mxu0  ;;  %v3752_v30 = vsel %vm427_vm0, %v3702_v36, 0 }
 0x2fa   : > { %3761 = vmatpush.bf16.msra.mxu3 %v3752_v30 }
 0x2fb   : > { %v2308_v54 = vmax.f32 %v2276_v1, 0.0  ;;  %v1984_v3 = vadd.f32 %v1946_v23, %v1763_v45  ;;  %v3923_v1 = vld [vmem:[%s7082_s4 + $0x1c] sm:$0xf] }
 0x2fc   : > { %v6261_v21 = vpop.f32.mrf.mxu1  ;;  %v2468_v39 = vld [vmem:[#allocation2 + $0x151] sm:$0xff]  ;;  %v3973_v45 = vsel %vm427_vm0, %v3923_v1, 0 }
 0x2fd   : > { %2386 = vst.msk [vmem:[#allocation2 + $0x159] sm:$0xff] %vm378_vm1, %v2308_v54  ;;  %v2205_v2 = vadd.f32 %v2167_v20, %v1984_v3  ;;  %v2784_v20 = vld [vmem:[#allocation2 + $0xb2] sm:$0xff]  ;;  %v5111_v54 = vld [vmem:[%s7080_s2] ss:$0 sm:$0xff]  ;;  %3982 = vmatpush.bf16.msra.mxu0 %v3973_v45 }
 0x2fe   : > { %v6278_v50 = vpack.c.bf16 %v2784_v20, %v2783_v60  ;;  %v1544_v20 = vadd.f32 %v6100_v49, %v5912_v4  ;;  %v3006_v1 = vld [vmem:[#allocation2 + $0xd8] sm:$0xff] }
 0x2ff   : > { %v2241_v58 = vmul.f32 %v5930_v29, %v2205_v2 }
 0x300   : > { %v1727_v14 = vpop.f32.mrf.mxu2  ;;  %7139 = vst [vmem:[#allocation9_spill] sm:$0xff] %v6278_v50 }
 0x301   : > { %v1948_v62 = vpop.f32.mrf.mxu3  ;;  %v2277_v59 = vadd.f32 %v5939_v22, %v2241_v58  ;;  %v1764_v63 = vadd.f32 %v1727_v14, %v1542_v6  ;;  %v2172_v61 = vpop.f32.mrf.mxu0 }
 0x303   : > { %v2309_v46 = vmax.f32 %v2277_v59, 0.0  ;;  %v1985_v9 = vadd.f32 %v1948_v62, %v1764_v63  ;;  %v3007_v63 = vld [vmem:[#allocation2 + $0xe0] sm:$0xff] }
 0x304   : > { %v6280_v7 = vpop.f32.mrf.mxu1  ;;  %4971 = vmatmul.msk.bf16.gmra.mxu0 %vm378_vm1, %v6276_v25  ;;  %v2469_v29 = vld [vmem:[#allocation2 + $0x159] sm:$0xff]  ;;  %v6313_v45 = vpack.c.bf16 %v3007_v63, %v3006_v1 }
 0x305   : > { %2387 = vst.msk [vmem:[#allocation2 + $0x169] sm:$0xff] %vm378_vm1, %v2309_v46  ;;  %v2206_v23 = vadd.f32 %v2169_v19, %v1985_v9  ;;  %4939 = vmatmul.msk.bf16.gmra.mxu2 %vm378_vm1, %v6241_v10  ;;  %v6289_v22 = vpack.c.bf16 %v2469_v29, %v2468_v39  ;;  %v4144_v19 = vld [vmem:[%s7082_s4 + $0x20] sm:$0xf]  ;;  %v2786_v39 = vld [vmem:[#allocation2 + $0xca] sm:$0xff] }
 0x306   : > { %4955 = vmatmul.msk.bf16.gmra.mxu3 %vm378_vm1, %v6278_v50  ;;  %v4194_v36 = vsel %vm427_vm0, %v4144_v19, 0  ;;  %v2785_v9 = vld [vmem:[#allocation2 + $0xc2] sm:$0xff]  ;;  %7141 = vst [vmem:[#allocation12_spill] sm:$0xff] %v6313_v45  ;;  %v3222_v10 = vld [vmem:[#allocation2 + $0x99] sm:$0xff] }
 0x307   : > { %7140 = vst [vmem:[#allocation10_spill] sm:$0xff] %v6289_v22  ;;  %v2242_v3 = vmul.f32 %v5111_v54, %v2206_v23  ;;  %4930 = vmatmul.msk.bf16.gmra.mxu1 %vm378_vm1, %v6289_v22  ;;  %v3220_v50 = vld [vmem:[#allocation2 + $0x81] sm:$0xff] }
 0x308   : > { %v1730_v2 = vpop.f32.mrf.mxu2  ;;  %4203 = vmatpush.bf16.msra.mxu1 %v4194_v36 }
 0x309   : > { %v1951_v12 = vpop.f32.mrf.mxu3  ;;  %v2278_v30 = vadd.f32 %v5112_v35, %v2242_v3  ;;  %v1765_v6 = vadd.f32 %v1730_v2, %v5893_v47  ;;  %v2174_v58 = vpop.f32.mrf.mxu0  ;;  %v6315_v2 = vpack.c.bf16 %v2786_v39, %v2785_v9  ;;  %v2787_v39 = vld [vmem:[#allocation2 + $0xda] sm:$0xff] }
 0x30b   : > { %v2310_v55 = vmax.f32 %v2278_v30, 0.0  ;;  %v1986_v14 = vadd.f32 %v1951_v12, %v1765_v6  ;;  %7142 = vst [vmem:[#allocation13_spill] sm:$0xff] %v6315_v2 }
 0x30c   : > { %v6308_v62 = vpop.f32.mrf.mxu1  ;;  %v2470_v4 = vld [vmem:[#allocation2 + $0x169] sm:$0xff] }
 0x30d   : > { %2388 = vst.msk [vmem:[#allocation2 + $0x171] sm:$0xff] %vm378_vm1, %v2310_v55  ;;  %v2207_v60 = vadd.f32 %v2172_v61, %v1986_v14 }
 0x30f   : > { %v2243_v59 = vmul.f32 %v5111_v54, %v2207_v60 }
 0x310   : > { %v1732_v48 = vpop.f32.mrf.mxu2 }
 0x311   : > { %v1953_v46 = vpop.f32.mrf.mxu3  ;;  %v2279_v29 = vadd.f32 %v5112_v35, %v2243_v59  ;;  %v1766_v47 = vadd.f32 %v1732_v48, %v1544_v20  ;;  %v3099_v23 = vpop.f32.mrf.mxu0 }
 0x313   : > { %v2311_v3 = vmax.f32 %v2279_v29, 0.0  ;;  %v1987_v19 = vadd.f32 %v1953_v46, %v1766_v47  ;;  %v3009_v46 = vld [vmem:[#allocation2 + $0xf8] sm:$0xff]  ;;  %v2788_v29 = vld [vmem:[#allocation2 + $0xe2] sm:$0xff] }
 0x314   : > { %v6317_v61 = vpop.f32.mrf.mxu1  ;;  %4972 = vmatmul.msk.bf16.gmra.mxu0 %vm378_vm1, %v6313_v45  ;;  %v2471_v49 = vld [vmem:[#allocation2 + $0x171] sm:$0xff] }
 0x315   : > { %2389 = vst.msk [vmem:[#allocation2 + $0x181] sm:$0xff] %vm378_vm1, %v2311_v3  ;;  %v2208_v12 = vadd.f32 %v2174_v58, %v1987_v19  ;;  %4940 = vmatmul.msk.bf16.gmra.mxu2 %vm378_vm1, %v6276_v25  ;;  %v6326_v36 = vpack.c.bf16 %v2471_v49, %v2470_v4  ;;  %v6339_v4 = vpack.c.bf16 %v2788_v29, %v2787_v39  ;;  %v2789_v39 = vld [vmem:[#allocation2 + $0xf2] sm:$0xff]  ;;  %v2790_v29 = vld [vmem:[#allocation2 + $0xfa] sm:$0xff] }
 0x316   : > { %4956 = vmatmul.msk.bf16.gmra.mxu3 %vm378_vm1, %v6315_v2  ;;  %v3218_v2 = vld [vmem:[#allocation2 + $0x69] sm:$0xff] }
 0x317   : > { %7143 = vst [vmem:[#allocation11_spill] sm:$0xff] %v6326_v36  ;;  %v2244_v30 = vmul.f32 %v5111_v54, %v2208_v12  ;;  %4931 = vmatmul.msk.bf16.gmra.mxu1 %vm378_vm1, %v6326_v36 }
 0x318   : > { %v2689_v6 = vpop.f32.mrf.mxu2  ;;  %7145 = vst [vmem:[#allocation4_spill] sm:$0xff] %v6339_v4 }
 0x319   : > { %v2878_v55 = vpop.f32.mrf.mxu3  ;;  %v2280_v14 = vadd.f32 %v5112_v35, %v2244_v30  ;;  %v2690_v60 = vadd.f32 %v2689_v6, %v6107_v0  ;;  %v3101_v20 = vpop.f32.mrf.mxu0  ;;  %v3008_v35 = vld [vmem:[#allocation2 + $0xf0] sm:$0xff]  ;;  %v3212_v0 = vld [vmem:[#allocation2 + $0x21] sm:$0xff] }
 0x31a   : > { %v6337_v3 = vpack.c.bf16 %v3009_v46, %v3008_v35  ;;  %v3011_v46 = vld [vmem:[#allocation2 + $0x110] sm:$0xff]  ;;  %v3010_v35 = vld [vmem:[#allocation2 + $0x108] sm:$0xff] }
 0x31b   : > { %v2312_v59 = vmax.f32 %v2280_v14, 0.0  ;;  %v2958_v58 = vadd.f32 %v2878_v55, %v2690_v60 }
 0x31c   : > { %v6331_v63 = vpop.f32.mrf.mxu1  ;;  %7144 = vst [vmem:[#allocation14_spill] sm:$0xff] %v6337_v3 }
 0x31d   : > { %2390 = vst.msk [vmem:[#allocation2 + $0x189] sm:$0xff] %vm378_vm1, %v2312_v59  ;;  %v6334_v48 = vadd.f32 %v3099_v23, %v2958_v58  ;;  %v3211_v23 = vld [vmem:[#allocation2 + $0x19] sm:$0xff] }
 0x320   : > { %v2691_v9 = vpop.f32.mrf.mxu2 }
 0x321   : > { %v2880_v54 = vpop.f32.mrf.mxu3  ;;  %v2692_v47 = vadd.f32 %v2691_v9, %v6126_v27  ;;  %v3104_v1 = vpop.f32.mrf.mxu0  ;;  %v3243_v27 = vpack.c.bf16 %v3212_v0, %v3211_v23  ;;  %v6358_v0 = vpack.c.bf16 %v3011_v46, %v3010_v35 }
 0x323   : > { %v2959_v19 = vadd.f32 %v2880_v54, %v2692_v47  ;;  %7146 = vst [vmem:[#allocation3_spill] sm:$0xff] %v6358_v0 }
 0x324   : > { %v6341_v49 = vpop.f32.mrf.mxu1  ;;  %4973 = vmatmul.msk.bf16.gmra.mxu0 %vm378_vm1, %v6337_v3 }
 0x325   : > { %4941 = vmatmul.msk.bf16.gmra.mxu2 %vm378_vm1, %v6313_v45  ;;  %v6349_v12 = vadd.f32 %v3101_v20, %v2959_v19  ;;  %v3214_v19 = vld [vmem:[#allocation2 + $0x39] sm:$0xff] }
 0x326   : > { %4957 = vmatmul.msk.bf16.gmra.mxu3 %vm378_vm1, %v6339_v4  ;;  %v3216_v4 = vld [vmem:[#allocation2 + $0x51] sm:$0xff] }
 0x327   : > { %4980 = vmatmul.msk.bf16.vlgmr.msrb.gmra.mxu1 %vm378_vm1, %v3243_v27 }
 0x328   : > { %v2694_v30 = vpop.f32.mrf.mxu2 }
 0x329   : > { %v2883_v6 = vpop.f32.mrf.mxu3  ;;  %v2695_v55 = vadd.f32 %v2694_v30, %v6137_v15  ;;  %v3106_v14 = vpop.f32.mrf.mxu0  ;;  %v6360_v15 = vpack.c.bf16 %v2790_v29, %v2789_v39  ;;  %v3013_v29 = vld [vmem:[#allocation2 + $0x128] sm:$0xff] }
 0x32b   : > { %v2960_v60 = vadd.f32 %v2883_v6, %v2695_v55  ;;  %7147 = vst [vmem:[#allocation15_spill] sm:$0xff] %v6360_v15 }
 0x32c   : > { %v6353_v59 = vpop.f32.mrf.mxu1 }
 0x32d   : > { %v6355_v58 = vadd.f32 %v3104_v1, %v2960_v60  ;;  %v3213_v1 = vld [vmem:[#allocation2 + $0x31] sm:$0xff] }
 0x330   : > { %v2696_v9 = vpop.f32.mrf.mxu2 }
 0x331   : > { %v2885_v54 = vpop.f32.mrf.mxu3  ;;  %v2697_v20 = vadd.f32 %v2696_v9, %v6153_v53  ;;  %v3109_v47 = vpop.f32.mrf.mxu0  ;;  %v6370_v53 = vpack.c.bf16 %v3214_v19, %v3213_v1  ;;  %v2791_v19 = vld [vmem:[#allocation2 + $0x10a] sm:$0xff]  ;;  %v2792_v1 = vld [vmem:[#allocation2 + $0x112] sm:$0xff] }
 0x333   : > { %v2961_v23 = vadd.f32 %v2885_v54, %v2697_v20 }
 0x334   : > { %v6362_v27 = vpop.f32.mrf.mxu1  ;;  %4974 = vmatmul.msk.bf16.gmra.mxu0 %vm378_vm1, %v6358_v0 }
 0x335   : > { %4942 = vmatmul.msk.bf16.gmra.mxu2 %vm378_vm1, %v6337_v3  ;;  %v6372_v30 = vadd.f32 %v3106_v14, %v2961_v23 }
 0x336   : > { %4958 = vmatmul.msk.bf16.gmra.mxu3 %vm378_vm1, %v6360_v15  ;;  %v3012_v15 = vld [vmem:[#allocation2 + $0x120] sm:$0xff] }
 0x337   : > { %4981 = vmatmul.msk.bf16.gmra.mxu1 %vm378_vm1, %v6370_v53  ;;  %v6382_v3 = vpack.c.bf16 %v3013_v29, %v3012_v15 }
 0x338   : > { %v2699_v6 = vpop.f32.mrf.mxu2 }
 0x339   : > { %v2888_v55 = vpop.f32.mrf.mxu3  ;;  %v2700_v60 = vadd.f32 %v2699_v6, %v6164_v31  ;;  %v3111_v46 = vpop.f32.mrf.mxu0  ;;  %7148 = vst [vmem:[#allocation16_spill] sm:$0xff] %v6382_v3  ;;  %v6384_v31 = vpack.c.bf16 %v2792_v1, %v2791_v19  ;;  %v3015_v1 = vld [vmem:[#allocation2 + $0x140] sm:$0xff] }
 0x33b   : > { %v2962_v9 = vadd.f32 %v2888_v55, %v2700_v60  ;;  %7149 = vst [vmem:[#allocation17_spill] sm:$0xff] %v6384_v31 }
 0x33c   : > { %v6377_v54 = vpop.f32.mrf.mxu1 }
 0x33d   : > { %v6379_v39 = vadd.f32 %v3109_v47, %v2962_v9  ;;  %v3215_v47 = vld [vmem:[#allocation2 + $0x49] sm:$0xff] }
 0x340   : > { %v2701_v20 = vpop.f32.mrf.mxu2 }
 0x341   : > { %v2890_v35 = vpop.f32.mrf.mxu3  ;;  %v2702_v14 = vadd.f32 %v2701_v20, %v6180_v43  ;;  %v3114_v23 = vpop.f32.mrf.mxu0  ;;  %v6394_v43 = vpack.c.bf16 %v3216_v4, %v3215_v47  ;;  %v2793_v4 = vld [vmem:[#allocation2 + $0x122] sm:$0xff]  ;;  %v2794_v47 = vld [vmem:[#allocation2 + $0x12a] sm:$0xff] }
 0x343   : > { %v2963_v36 = vadd.f32 %v2890_v35, %v2702_v14 }
 0x344   : > { %v6386_v6 = vpop.f32.mrf.mxu1  ;;  %4975 = vmatmul.msk.bf16.gmra.mxu0 %vm378_vm1, %v6382_v3 }
 0x345   : > { %4943 = vmatmul.msk.bf16.gmra.mxu2 %vm378_vm1, %v6358_v0  ;;  %v6396_v15 = vadd.f32 %v3111_v46, %v2963_v36  ;;  %v3014_v0 = vld [vmem:[#allocation2 + $0x138] sm:$0xff] }
 0x346   : > { %4959 = vmatmul.msk.bf16.gmra.mxu3 %vm378_vm1, %v6384_v31  ;;  %v6406_v45 = vpack.c.bf16 %v3015_v1, %v3014_v0 }
 0x347   : > { %4982 = vmatmul.msk.bf16.gmra.mxu1 %vm378_vm1, %v6394_v43 }
 0x348   : > { %v2704_v55 = vpop.f32.mrf.mxu2  ;;  %7150 = vst [vmem:[#allocation18_spill] sm:$0xff] %v6406_v45 }
 0x349   : > { %v2893_v60 = vpop.f32.mrf.mxu3  ;;  %v2705_v9 = vadd.f32 %v2704_v55, %v6191_v26  ;;  %v3116_v29 = vpop.f32.mrf.mxu0  ;;  %v6408_v26 = vpack.c.bf16 %v2794_v47, %v2793_v4  ;;  %v3017_v47 = vld [vmem:[#allocation2 + $0x158] sm:$0xff] }
 0x34b   : > { %v2964_v20 = vadd.f32 %v2893_v60, %v2705_v9  ;;  %7151 = vst [vmem:[#allocation19_spill] sm:$0xff] %v6408_v26 }
 0x34c   : > { %v6401_v35 = vpop.f32.mrf.mxu1 }
 0x34d   : > { %v6403_v19 = vadd.f32 %v3114_v23, %v2964_v20  ;;  %v3217_v23 = vld [vmem:[#allocation2 + $0x61] sm:$0xff] }
 0x350   : > { %v2706_v14 = vpop.f32.mrf.mxu2 }
 0x351   : > { %v2895_v31 = vpop.f32.mrf.mxu3  ;;  %v2707_v36 = vadd.f32 %v2706_v14, %v6207_v24  ;;  %v3119_v46 = vpop.f32.mrf.mxu0  ;;  %v6418_v24 = vpack.c.bf16 %v3218_v2, %v3217_v23  ;;  %v2795_v2 = vld [vmem:[#allocation2 + $0x13a] sm:$0xff]  ;;  %v2796_v23 = vld [vmem:[#allocation2 + $0x142] sm:$0xff] }
 0x353   : > { %v2965_v22 = vadd.f32 %v2895_v31, %v2707_v36 }
 0x354   : > { %v6410_v55 = vpop.f32.mrf.mxu1  ;;  %4976 = vmatmul.msk.bf16.gmra.mxu0 %vm378_vm1, %v6406_v45 }
 0x355   : > { %4944 = vmatmul.msk.bf16.gmra.mxu2 %vm378_vm1, %v6382_v3  ;;  %v6420_v0 = vadd.f32 %v3116_v29, %v2965_v22  ;;  %v3016_v3 = vld [vmem:[#allocation2 + $0x150] sm:$0xff] }
 0x356   : > { %4960 = vmatmul.msk.bf16.gmra.mxu3 %vm378_vm1, %v6408_v26  ;;  %v6430_v25 = vpack.c.bf16 %v3017_v47, %v3016_v3 }
 0x357   : > { %4983 = vmatmul.msk.bf16.gmra.mxu1 %vm378_vm1, %v6418_v24 }
 0x358   : > { %v2709_v31 = vpop.f32.mrf.mxu2  ;;  %7152 = vst [vmem:[#allocation20_spill] sm:$0xff] %v6430_v25 }
 0x359   : > { %v2898_v60 = vpop.f32.mrf.mxu3  ;;  %v2710_v9 = vadd.f32 %v2709_v31, %v6218_v38  ;;  %v3121_v20 = vpop.f32.mrf.mxu0  ;;  %v6432_v38 = vpack.c.bf16 %v2796_v23, %v2795_v2  ;;  %v3019_v23 = vld [vmem:[#allocation2 + $0x170] sm:$0xff] }
 0x35b   : > { %v2966_v1 = vadd.f32 %v2898_v60, %v2710_v9  ;;  %7153 = vst [vmem:[#allocation21_spill] sm:$0xff] %v6432_v38 }
 0x35c   : > { %v6425_v14 = vpop.f32.mrf.mxu1 }
 0x35d   : > { %v6427_v4 = vadd.f32 %v3119_v46, %v2966_v1  ;;  %v3219_v46 = vld [vmem:[#allocation2 + $0x79] sm:$0xff] }
 0x360   : > { %v2711_v36 = vpop.f32.mrf.mxu2 }
 0x361   : > { %v2900_v26 = vpop.f32.mrf.mxu3  ;;  %v2712_v22 = vadd.f32 %v2711_v36, %v6234_v42  ;;  %v3124_v29 = vpop.f32.mrf.mxu0  ;;  %v6442_v42 = vpack.c.bf16 %v3220_v50, %v3219_v46  ;;  %v2797_v50 = vld [vmem:[#allocation2 + $0x152] sm:$0xff]  ;;  %v2798_v46 = vld [vmem:[#allocation2 + $0x15a] sm:$0xff] }
 0x363   : > { %v2967_v11 = vadd.f32 %v2900_v26, %v2712_v22 }
 0x364   : > { %v6434_v31 = vpop.f32.mrf.mxu1  ;;  %4977 = vmatmul.msk.bf16.gmra.mxu0 %vm378_vm1, %v6430_v25 }
 0x365   : > { %4945 = vmatmul.msk.bf16.gmra.mxu2 %vm378_vm1, %v6406_v45  ;;  %v6444_v3 = vadd.f32 %v3121_v20, %v2967_v11  ;;  %v3018_v45 = vld [vmem:[#allocation2 + $0x168] sm:$0xff] }
 0x366   : > { %4961 = vmatmul.msk.bf16.gmra.mxu3 %vm378_vm1, %v6432_v38 }
 0x367   : > { %7154 = vst [vmem:[#allocation22_spill] sm:$0xff] %v6444_v3  ;;  %4984 = vmatmul.msk.bf16.gmra.mxu1 %vm378_vm1, %v6442_v42  ;;  %v6454_v3 = vpack.c.bf16 %v3019_v23, %v3018_v45 }
 0x368   : > { %v2714_v26 = vpop.f32.mrf.mxu2 }
 0x369   : > { %v2903_v60 = vpop.f32.mrf.mxu3  ;;  %v2715_v9 = vadd.f32 %v2714_v26, %v6245_v44  ;;  %v3126_v1 = vpop.f32.mrf.mxu0  ;;  %v6456_v44 = vpack.c.bf16 %v2798_v46, %v2797_v50  ;;  %v3021_v46 = vld [vmem:[#allocation2 + $0x188] sm:$0xff] }
 0x36b   : > { %v2968_v47 = vadd.f32 %v2903_v60, %v2715_v9  ;;  %7156 = vst [vmem:[#allocation24_spill] sm:$0xff] %v6456_v44 }
 0x36c   : > { %v6449_v36 = vpop.f32.mrf.mxu1 }
 0x36d   : > { %v6451_v2 = vadd.f32 %v3124_v29, %v2968_v47  ;;  %v3221_v29 = vld [vmem:[#allocation2 + $0x91] sm:$0xff] }
 0x36f   : > { %7155 = vst [vmem:[#allocation23_spill] sm:$0xff] %v6451_v2 }
 0x370   : > { %v2716_v22 = vpop.f32.mrf.mxu2 }
 0x371   : > { %v2905_v38 = vpop.f32.mrf.mxu3  ;;  %v2717_v11 = vadd.f32 %v2716_v22, %v6261_v21  ;;  %v3129_v20 = vpop.f32.mrf.mxu0  ;;  %v6466_v21 = vpack.c.bf16 %v3222_v10, %v3221_v29  ;;  %v2799_v10 = vld [vmem:[#allocation2 + $0x16a] sm:$0xff]  ;;  %v2800_v29 = vld [vmem:[#allocation2 + $0x172] sm:$0xff] }
 0x373   : > { %v2969_v41 = vadd.f32 %v2905_v38, %v2717_v11 }
 0x374   : > { %v6458_v26 = vpop.f32.mrf.mxu1  ;;  %4978 = vmatmul.msk.bf16.gmra.mxu0 %vm378_vm1, %v6454_v3 }
 0x375   : > { %7157 = vst [vmem:[#allocation25_spill] sm:$0xff] %v6458_v26  ;;  %4946 = vmatmul.msk.bf16.gmra.mxu2 %vm378_vm1, %v6430_v25  ;;  %v6468_v45 = vadd.f32 %v3126_v1, %v2969_v41  ;;  %v3020_v25 = vld [vmem:[#allocation2 + $0x180] sm:$0xff]  ;;  %v6480_v26 = vpack.c.bf16 %v2800_v29, %v2799_v10 }
 0x376   : > { %4962 = vmatmul.msk.bf16.gmra.mxu3 %vm378_vm1, %v6456_v44 }
 0x377   : > { %7158 = vst [vmem:[#allocation26_spill] sm:$0xff] %v6468_v45  ;;  %4985 = vmatmul.msk.bf16.gmra.mxu1 %vm378_vm1, %v6466_v21  ;;  %v6478_v45 = vpack.c.bf16 %v3021_v46, %v3020_v25 }
 0x378   : > { %v2719_v38 = vpop.f32.mrf.mxu2 }
 0x379   : > { %v2908_v60 = vpop.f32.mrf.mxu3  ;;  %v2720_v9 = vadd.f32 %v2719_v38, %v6280_v7  ;;  %v3131_v47 = vpop.f32.mrf.mxu0 }
 0x37b   : > { %v2970_v23 = vadd.f32 %v2908_v60, %v2720_v9 }
 0x37c   : > { %v6473_v22 = vpop.f32.mrf.mxu1 }
 0x37d   : > { %v6475_v50 = vadd.f32 %v3129_v20, %v2970_v23 }
 0x380   : > { %v2721_v11 = vpop.f32.mrf.mxu2 }
 0x381   : > { %v2910_v44 = vpop.f32.mrf.mxu3  ;;  %v2722_v41 = vadd.f32 %v2721_v11, %v6308_v62  ;;  %v3134_v1 = vpop.f32.mrf.mxu0 }
 0x383   : > { %v2971_v2 = vadd.f32 %v2910_v44, %v2722_v41 }
 0x384   : > { %v6482_v7 = vpop.f32.mrf.mxu1  ;;  %4979 = vmatmul.msk.bf16.gmra.mxu0 %vm378_vm1, %v6478_v45 }
 0x385   : > { %4947 = vmatmul.msk.bf16.gmra.mxu2 %vm378_vm1, %v6454_v3  ;;  %v6490_v20 = vadd.f32 %v3131_v47, %v2971_v2 }
 0x386   : > { %4963 = vmatmul.msk.bf16.gmra.mxu3 %vm378_vm1, %v6480_v26 }
 0x387   : > { %4986 = vmatmul.msk.bf16.gmra.mxu1 %vm378_vm1, %v6093_v13 }
 0x388   : > { %v2724_v25 = vpop.f32.mrf.mxu2 }
 0x389   : > { %v2913_v62 = vpop.f32.mrf.mxu3  ;;  %v2725_v44 = vadd.f32 %v2724_v25, %v6317_v61  ;;  %v3136_v38 = vpop.f32.mrf.mxu0 }
 0x38b   : > { %v2972_v60 = vadd.f32 %v2913_v62, %v2725_v44 }
 0x38c   : > { %v6495_v9 = vpop.f32.mrf.mxu1 }
 0x38d   : > { %v6497_v23 = vadd.f32 %v3134_v1, %v2972_v60 }
 0x390   : > { %v2726_v46 = vpop.f32.mrf.mxu2 }
 0x391   : > { %v2915_v11 = vpop.f32.mrf.mxu3  ;;  %v2727_v10 = vadd.f32 %v2726_v46, %v6331_v63  ;;  %v3139_v29 = vpop.f32.mrf.mxu0 }
 0x393   : > { %v2973_v2 = vadd.f32 %v2915_v11, %v2727_v10 }
 0x394   : > { %v6500_v47 = vpop.f32.mrf.mxu1  ;;  %5028 = vmatmul.msk.bf16.vlgmr.msra.gmra.mxu0 %vm378_vm1, %v6370_v53 }
 0x395   : > { %4996 = vmatmul.msk.bf16.vlgmr.msra.gmra.mxu2 %vm378_vm1, %v6111_v8  ;;  %v6508_v13 = vadd.f32 %v3136_v38, %v2973_v2 }
 0x396   : > { %5012 = vmatmul.msk.bf16.vlgmr.msra.gmra.mxu3 %vm378_vm1, %v6109_v5 }
 0x397   : > { %4987 = vmatmul.msk.bf16.gmra.mxu1 %vm378_vm1, %v6119_v56 }
 0x398   : > { %v2729_v61 = vpop.f32.mrf.mxu2 }
 0x399   : > { %v2918_v63 = vpop.f32.mrf.mxu3  ;;  %v2730_v41 = vadd.f32 %v2729_v61, %v6341_v49  ;;  %v3141_v1 = vpop.f32.mrf.mxu0 }
 0x39b   : > { %v2974_v25 = vadd.f32 %v2918_v63, %v2730_v41 }
 0x39c   : > { %v6513_v62 = vpop.f32.mrf.mxu1 }
 0x39d   : > { %v6515_v53 = vadd.f32 %v3139_v29, %v2974_v25 }
 0x3a0   : > { %v2731_v44 = vpop.f32.mrf.mxu2 }
 0x3a1   : > { %v2920_v8 = vpop.f32.mrf.mxu3  ;;  %v2732_v60 = vadd.f32 %v2731_v44, %v6353_v59  ;;  %v3144_v5 = vpop.f32.mrf.mxu0 }
 0x3a3   : > { %v2975_v38 = vadd.f32 %v2920_v8, %v2732_v60 }
 0x3a4   : > { %v3320_v46 = vpop.f32.mrf.mxu1  ;;  %5029 = vmatmul.msk.bf16.gmra.mxu0 %vm378_vm1, %v6394_v43 }
 0x3a5   : > { %v6521_v56 = vadd.f32 %v3320_v46, %v6334_v48  ;;  %4997 = vmatmul.msk.bf16.gmra.mxu2 %vm378_vm1, %v6135_v40  ;;  %v6527_v49 = vadd.f32 %v3141_v1, %v2975_v38 }
 0x3a6   : > { %5013 = vmatmul.msk.bf16.gmra.mxu3 %vm378_vm1, %v6133_v17 }
 0x3a7   : > { %4988 = vmatmul.msk.bf16.gmra.mxu1 %vm378_vm1, %v6146_v18 }
 0x3a8   : > { %v2734_v59 = vpop.f32.mrf.mxu2 }
 0x3a9   : > { %v2923_v11 = vpop.f32.mrf.mxu3  ;;  %v2735_v10 = vadd.f32 %v2734_v59, %v6362_v27  ;;  %v3146_v29 = vpop.f32.mrf.mxu0 }
 0x3ab   : > { %v2976_v43 = vadd.f32 %v2923_v11, %v2735_v10 }
 0x3ac   : > { %v3322_v2 = vpop.f32.mrf.mxu1 }
 0x3ad   : > { %v6533_v48 = vadd.f32 %v3322_v2, %v6349_v12  ;;  %v6535_v61 = vadd.f32 %v3144_v5, %v2976_v43 }
 0x3b0   : > { %v2736_v40 = vpop.f32.mrf.mxu2 }
 0x3b1   : > { %v2925_v63 = vpop.f32.mrf.mxu3  ;;  %v2737_v17 = vadd.f32 %v2736_v40, %v6377_v54  ;;  %v3149_v41 = vpop.f32.mrf.mxu0 }
 0x3b3   : > { %v2977_v1 = vadd.f32 %v2925_v63, %v2737_v17 }
 0x3b4   : > { %v3325_v25 = vpop.f32.mrf.mxu1  ;;  %5030 = vmatmul.msk.bf16.gmra.mxu0 %vm378_vm1, %v6418_v24 }
 0x3b5   : > { %v6541_v18 = vadd.f32 %v3325_v25, %v6355_v58  ;;  %4998 = vmatmul.msk.bf16.gmra.mxu2 %vm378_vm1, %v6162_v34  ;;  %v6547_v12 = vadd.f32 %v3146_v29, %v2977_v1 }
 0x3b6   : > { %5014 = vmatmul.msk.bf16.gmra.mxu3 %vm378_vm1, %v6160_v28 }
 0x3b7   : > { %4989 = vmatmul.msk.bf16.gmra.mxu1 %vm378_vm1, %v6173_v51 }
 0x3b8   : > { %v2739_v27 = vpop.f32.mrf.mxu2 }
 0x3b9   : > { %v2928_v54 = vpop.f32.mrf.mxu3  ;;  %v2740_v44 = vadd.f32 %v2739_v27, %v6386_v6  ;;  %v3151_v8 = vpop.f32.mrf.mxu0 }
 0x3bb   : > { %v2978_v24 = vadd.f32 %v2928_v54, %v2740_v44 }
 0x3bc   : > { %v3327_v60 = vpop.f32.mrf.mxu1 }
 0x3bd   : > { %v6553_v58 = vadd.f32 %v3327_v60, %v6372_v30  ;;  %v6555_v5 = vadd.f32 %v3149_v41, %v2978_v24  ;;  %v3885_v60 = vld [vmem:[#allocation2 + $0xa9] sm:$0xff] }
 0x3c0   : > { %v2741_v34 = vpop.f32.mrf.mxu2 }
 0x3c1   : > { %v2930_v38 = vpop.f32.mrf.mxu3  ;;  %v2742_v28 = vadd.f32 %v2741_v34, %v6401_v35  ;;  %v3154_v46 = vpop.f32.mrf.mxu0 }
 0x3c3   : > { %v2979_v59 = vadd.f32 %v2930_v38, %v2742_v28  ;;  %v7159_v28 = vld [vmem:[#allocation5_spill] sm:$0xff] }
 0x3c4   : > { %v3330_v11 = vpop.f32.mrf.mxu1  ;;  %5031 = vmatmul.msk.bf16.gmra.mxu0 %vm378_vm1, %v6442_v42 }
 0x3c5   : > { %v6561_v51 = vadd.f32 %v3330_v11, %v6379_v39  ;;  %4999 = vmatmul.msk.bf16.gmra.mxu2 %vm378_vm1, %v6189_v37  ;;  %v6567_v30 = vadd.f32 %v3151_v8, %v2979_v59  ;;  %v7161_v59 = vld [vmem:[#allocation6_spill] sm:$0xff] }
 0x3c6   : > { %5015 = vmatmul.msk.bf16.gmra.mxu3 %vm378_vm1, %v6187_v33 }
 0x3c7   : > { %4990 = vmatmul.msk.bf16.gmra.mxu1 %vm378_vm1, %v6200_v16 }
 0x3c8   : > { %v2744_v6 = vpop.f32.mrf.mxu2 }
 0x3c9   : > { %v2933_v35 = vpop.f32.mrf.mxu3  ;;  %v2745_v10 = vadd.f32 %v2744_v6, %v6410_v55  ;;  %v3156_v29 = vpop.f32.mrf.mxu0  ;;  %v7162_v6 = vld [vmem:[#allocation25_spill] sm:$0xff] }
 0x3cb   : > { %v2980_v42 = vadd.f32 %v2933_v35, %v2745_v10 }
 0x3cc   : > { %v3332_v43 = vpop.f32.mrf.mxu1 }
 0x3cd   : > { %v6573_v39 = vadd.f32 %v3332_v43, %v6396_v15  ;;  %v6575_v2 = vadd.f32 %v3154_v46, %v2980_v42 }
 0x3d0   : > { %v2746_v37 = vpop.f32.mrf.mxu2 }
 0x3d1   : > { %v2935_v40 = vpop.f32.mrf.mxu3  ;;  %v2747_v33 = vadd.f32 %v2746_v37, %v6425_v14  ;;  %v3159_v63 = vpop.f32.mrf.mxu0 }
 0x3d3   : > { %v2981_v17 = vadd.f32 %v2935_v40, %v2747_v33  ;;  %v3888_v40 = vld [vmem:[#allocation2 + $0xc9] sm:$0xff] }
 0x3d4   : > { %v3335_v41 = vpop.f32.mrf.mxu1  ;;  %5032 = vmatmul.msk.bf16.gmra.mxu0 %vm378_vm1, %v6466_v21 }
 0x3d5   : > { %v6581_v16 = vadd.f32 %v3335_v41, %v6403_v19  ;;  %5000 = vmatmul.msk.bf16.gmra.mxu2 %vm378_vm1, %v6216_v52  ;;  %v6587_v15 = vadd.f32 %v3156_v29, %v2981_v17  ;;  %v3886_v52 = vld [vmem:[#allocation2 + $0xb1] sm:$0xff] }
 0x3d6   : > { %5016 = vmatmul.msk.bf16.gmra.mxu3 %vm378_vm1, %v6214_v32 }
 0x3d7   : > { %4991 = vmatmul.msk.bf16.gmra.mxu1 %vm378_vm1, %v6227_v57  ;;  %v3912_v57 = vpack.c.bf16 %v3886_v52, %v3885_v60  ;;  %v7165_v52 = vld [vmem:[#allocation9_spill] sm:$0xff] }
 0x3d8   : > { %v2749_v55 = vpop.f32.mrf.mxu2 }
 0x3d9   : > { %v2938_v14 = vpop.f32.mrf.mxu3  ;;  %v2750_v1 = vadd.f32 %v2749_v55, %v6434_v31  ;;  %v3161_v25 = vpop.f32.mrf.mxu0  ;;  %v3887_v55 = vld [vmem:[#allocation2 + $0xc1] sm:$0xff] }
 0x3db   : > { %v2982_v21 = vadd.f32 %v2938_v14, %v2750_v1  ;;  %v3913_v14 = vpack.c.bf16 %v3888_v40, %v3887_v55 }
 0x3dc   : > { %v3337_v27 = vpop.f32.mrf.mxu1 }
 0x3dd   : > { %v6593_v19 = vadd.f32 %v3337_v27, %v6420_v0  ;;  %v6595_v54 = vadd.f32 %v3159_v63, %v2982_v21  ;;  %v7160_v0 = vld [vmem:[#allocation7_spill] sm:$0xff] }
 0x3de   : > { %v7164_v21 = vld [vmem:[#allocation23_spill] sm:$0xff] }
 0x3e0   : > { %v2751_v44 = vpop.f32.mrf.mxu2 }
 0x3e1   : > { %v2940_v32 = vpop.f32.mrf.mxu3  ;;  %v2752_v8 = vadd.f32 %v2751_v44, %v6449_v36  ;;  %v3164_v24 = vpop.f32.mrf.mxu0  ;;  %v7166_v44 = vld [vmem:[#allocation8_spill] sm:$0xff] }
 0x3e3   : > { %v2983_v34 = vadd.f32 %v2940_v32, %v2752_v8  ;;  %v7167_v8 = vld [vmem:[#allocation10_spill] sm:$0xff] }
 0x3e4   : > { %v3340_v38 = vpop.f32.mrf.mxu1  ;;  %5033 = vmatmul.msk.bf16.gmra.mxu0 %vm378_vm1, %v3912_v57 }
 0x3e5   : > { %v6600_v31 = vadd.f32 %v3340_v38, %v6427_v4  ;;  %5001 = vmatmul.msk.bf16.gmra.mxu2 %vm378_vm1, %v7159_v28  ;;  %v6606_v46 = vadd.f32 %v3161_v25, %v2983_v34  ;;  %v7163_v4 = vld [vmem:[#allocation22_spill] sm:$0xff] }
 0x3e6   : > { %5017 = vmatmul.msk.bf16.gmra.mxu3 %vm378_vm1, %v7160_v0  ;;  %v7168_v28 = vld [vmem:[#allocation26_spill] sm:$0xff] }
 0x3e7   : > { %4992 = vmatmul.msk.bf16.gmra.mxu1 %vm378_vm1, %v7161_v59 }
 0x3e8   : > { %v2754_v36 = vpop.f32.mrf.mxu2 }
 0x3e9   : > { %v2943_v11 = vpop.f32.mrf.mxu3  ;;  %v2755_v35 = vadd.f32 %v2754_v36, %v7162_v6  ;;  %v3166_v10 = vpop.f32.mrf.mxu0  ;;  %v3890_v36 = vld [vmem:[#allocation2 + $0xe1] sm:$0xff] }
 0x3eb   : > { %v2984_v29 = vadd.f32 %v2943_v11, %v2755_v35 }
 0x3ec   : > { %v3342_v42 = vpop.f32.mrf.mxu1 }
 0x3ed   : > { %v6612_v43 = vadd.f32 %v3342_v42, %v7163_v4  ;;  %v6614_v37 = vadd.f32 %v3164_v24, %v2984_v29  ;;  %v3889_v29 = vld [vmem:[#allocation2 + $0xd9] sm:$0xff] }
 0x3ee   : > { %v3914_v42 = vpack.c.bf16 %v3890_v36, %v3889_v29 }
 0x3f0   : > { %v2756_v33 = vpop.f32.mrf.mxu2 }
 0x3f1   : > { %v2945_v63 = vpop.f32.mrf.mxu3  ;;  %v2757_v17 = vadd.f32 %v2756_v33, %v6473_v22  ;;  %v3169_v41 = vpop.f32.mrf.mxu0  ;;  %v7169_v33 = vld [vmem:[#allocation13_spill] sm:$0xff] }
 0x3f3   : > { %v2985_v1 = vadd.f32 %v2945_v63, %v2757_v17  ;;  %v7170_v63 = vld [vmem:[#allocation12_spill] sm:$0xff] }
 0x3f4   : > { %v3345_v25 = vpop.f32.mrf.mxu1  ;;  %5034 = vmatmul.msk.bf16.gmra.mxu0 %vm378_vm1, %v3913_v14 }
 0x3f5   : > { %v6619_v27 = vadd.f32 %v3345_v25, %v7164_v21  ;;  %5002 = vmatmul.msk.bf16.gmra.mxu2 %vm378_vm1, %v7165_v52  ;;  %v6625_v32 = vadd.f32 %v3166_v10, %v2985_v1 }
 0x3f6   : > { %5018 = vmatmul.msk.bf16.gmra.mxu3 %vm378_vm1, %v7166_v44  ;;  %v3892_v44 = vld [vmem:[#allocation2 + $0xf9] sm:$0xff] }
 0x3f7   : > { %4993 = vmatmul.msk.bf16.gmra.mxu1 %vm378_vm1, %v7167_v8 }
 0x3f8   : > { %v2759_v22 = vpop.f32.mrf.mxu2 }
 0x3f9   : > { %v2948_v24 = vpop.f32.mrf.mxu3  ;;  %v2760_v60 = vadd.f32 %v2759_v22, %v6482_v7  ;;  %v3171_v57 = vpop.f32.mrf.mxu0 }
 0x3fb   : > { %v2986_v34 = vadd.f32 %v2948_v24, %v2760_v60 }
 0x3fc   : > { %v3347_v38 = vpop.f32.mrf.mxu1 }
 0x3fd   : > { %v6631_v0 = vadd.f32 %v3347_v38, %v7168_v28  ;;  %v6633_v59 = vadd.f32 %v3169_v41, %v2986_v34  ;;  %v7171_v41 = vld [vmem:[#allocation11_spill] sm:$0xff] }
 0x3fe   : > { %v3242_v38 = vld [vmem:[#allocation2 + $0x189] sm:$0xff] }
 0x400   : > { %v2761_v11 = vpop.f32.mrf.mxu2 }
 0x401   : > { %v2950_v6 = vpop.f32.mrf.mxu3  ;;  %v2762_v35 = vadd.f32 %v2761_v11, %v6495_v9  ;;  %v3174_v10 = vpop.f32.mrf.mxu0 }
 0x403   : > { %v2987_v4 = vadd.f32 %v2950_v6, %v2762_v35  ;;  %v7173_v6 = vld [vmem:[#allocation14_spill] sm:$0xff] }
 0x404   : > { %v3350_v40 = vpop.f32.mrf.mxu1  ;;  %5035 = vmatmul.msk.bf16.gmra.mxu0 %vm378_vm1, %v3914_v42 }
 0x405   : > { %v6638_v7 = vadd.f32 %v3350_v40, %v6475_v50  ;;  %5003 = vmatmul.msk.bf16.gmra.mxu2 %vm378_vm1, %v7169_v33  ;;  %v6644_v17 = vadd.f32 %v3171_v57, %v2987_v4  ;;  %v3891_v57 = vld [vmem:[#allocation2 + $0xf1] sm:$0xff] }
 0x406   : > { %5019 = vmatmul.msk.bf16.gmra.mxu3 %vm378_vm1, %v7170_v63  ;;  %v3915_v34 = vpack.c.bf16 %v3892_v44, %v3891_v57  ;;  %v4096_v44 = vld [vmem:[#allocation2 + $0x32] sm:$0xff] }
 0x407   : > { %4994 = vmatmul.msk.bf16.gmra.mxu1 %vm378_vm1, %v7171_v41  ;;  %v3894_v41 = vld [vmem:[#allocation2 + $0x111] sm:$0xff] }
 0x408   : > { %v2764_v9 = vpop.f32.mrf.mxu2 }
 0x409   : > { %v2953_v55 = vpop.f32.mrf.mxu3  ;;  %v2765_v14 = vadd.f32 %v2764_v9, %v6500_v47  ;;  %v3176_v1 = vpop.f32.mrf.mxu0  ;;  %v3241_v47 = vld [vmem:[#allocation2 + $0x181] sm:$0xff] }
 0x40a   : > { %v6663_v35 = vpack.c.bf16 %v3242_v38, %v3241_v47 }
 0x40b   : > { %v2988_v25 = vadd.f32 %v2953_v55, %v2765_v14 }
 0x40c   : > { %v3352_v21 = vpop.f32.mrf.mxu1 }
 0x40d   : > { %v6650_v50 = vadd.f32 %v3352_v21, %v6490_v20  ;;  %v6652_v52 = vadd.f32 %v3174_v10, %v2988_v25  ;;  %v7172_v20 = vld [vmem:[#allocation4_spill] sm:$0xff]  ;;  %v3893_v25 = vld [vmem:[#allocation2 + $0x109] sm:$0xff] }
 0x40e   : > { %v3916_v21 = vpack.c.bf16 %v3894_v41, %v3893_v25  ;;  %v4098_v41 = vld [vmem:[#allocation2 + $0x4a] sm:$0xff] }
 0x410   : > { %v2766_v8 = vpop.f32.mrf.mxu2 }
 0x411   : > { %v2955_v22 = vpop.f32.mrf.mxu3  ;;  %v2767_v24 = vadd.f32 %v2766_v8, %v6513_v62  ;;  %v3984_v60 = vpop.f32.mrf.mxu0  ;;  %v4097_v8 = vld [vmem:[#allocation2 + $0x3a] sm:$0xff] }
 0x412   : > { %v4128_v57 = vpack.c.bf16 %v4097_v8, %v4096_v44 }
 0x413   : > { %v2989_v28 = vadd.f32 %v2955_v22, %v2767_v24 }
 0x414   : > { %v3355_v36 = vpop.f32.mrf.mxu1  ;;  %5036 = vmatmul.msk.bf16.gmra.mxu0 %vm378_vm1, %v3915_v34 }
 0x415   : > { %v6657_v11 = vadd.f32 %v3355_v36, %v6497_v23  ;;  %5004 = vmatmul.msk.bf16.gmra.mxu2 %vm378_vm1, %v7172_v20  ;;  %v6665_v62 = vadd.f32 %v3176_v1, %v2989_v28 }
 0x416   : > { %5020 = vmatmul.msk.bf16.gmra.mxu3 %vm378_vm1, %v7173_v6 }
 0x417   : > { %4995 = vmatmul.msk.bf16.gmra.mxu1 %vm378_vm1, %v6663_v35 }
 0x418   : > { %v3541_v10 = vpop.f32.mrf.mxu2 }
 0x419   : > { %v3763_v29 = vpop.f32.mrf.mxu3  ;;  %v3621_v42 = vadd.f32 %v3541_v10, %v6521_v56  ;;  %v3986_v4 = vpop.f32.mrf.mxu0  ;;  %v3896_v10 = vld [vmem:[#allocation2 + $0x129] sm:$0xff] }
 0x41b   : > { %v3843_v23 = vadd.f32 %v3763_v29, %v3621_v42 }
 0x41c   : > { %v3357_v40 = vpop.f32.mrf.mxu1 }
 0x41d   : > { %v6671_v33 = vadd.f32 %v3357_v40, %v6508_v13  ;;  %v6673_v63 = vadd.f32 %v3984_v60, %v3843_v23  ;;  %v7174_v13 = vld [vmem:[#allocation15_spill] sm:$0xff]  ;;  %v3895_v23 = vld [vmem:[#allocation2 + $0x121] sm:$0xff] }
 0x41e   : > { %v7175_v60 = vld [vmem:[#allocation3_spill] sm:$0xff]  ;;  %v3917_v40 = vpack.c.bf16 %v3896_v10, %v3895_v23  ;;  %v4100_v10 = vld [vmem:[#allocation2 + $0x62] sm:$0xff] }
 0x41f   : > { %v7179_v23 = vld [vmem:[#allocation18_spill] sm:$0xff] }
 0x420   : > { %v3543_v9 = vpop.f32.mrf.mxu2 }
 0x421   : > { %v3765_v55 = vpop.f32.mrf.mxu3  ;;  %v3622_v14 = vadd.f32 %v3543_v9, %v6533_v48  ;;  %v3989_v1 = vpop.f32.mrf.mxu0  ;;  %v4099_v9 = vld [vmem:[#allocation2 + $0x52] sm:$0xff] }
 0x423   : > { %v3844_v22 = vadd.f32 %v3765_v55, %v3622_v14 }
 0x424   : > { %v3360_v56 = vpop.f32.mrf.mxu1  ;;  %5037 = vmatmul.msk.bf16.gmra.mxu0 %vm378_vm1, %v3916_v21  ;;  %v4129_v21 = vpack.c.bf16 %v4099_v9, %v4098_v41 }
 0x425   : > { %v6678_v24 = vadd.f32 %v3360_v56, %v6515_v53  ;;  %5005 = vmatmul.msk.bf16.gmra.mxu2 %vm378_vm1, %v7174_v13  ;;  %v6684_v48 = vadd.f32 %v3986_v4, %v3844_v22 }
 0x426   : > { %5021 = vmatmul.msk.bf16.gmra.mxu3 %vm378_vm1, %v7175_v60 }
 0x427   : > { %5044 = vmatmul.msk.bf16.vlgmr.msra.gmra.mxu1 %vm378_vm1, %v4128_v57 }
 0x428   : > { %v3546_v34 = vpop.f32.mrf.mxu2 }
 0x429   : > { %v3768_v38 = vpop.f32.mrf.mxu3  ;;  %v3623_v28 = vadd.f32 %v3546_v34, %v6541_v18  ;;  %v3991_v47 = vpop.f32.mrf.mxu0  ;;  %v3898_v34 = vld [vmem:[#allocation2 + $0x141] sm:$0xff] }
 0x42b   : > { %v3845_v36 = vadd.f32 %v3768_v38, %v3623_v28 }
 0x42c   : > { %v3362_v20 = vpop.f32.mrf.mxu1 }
 0x42d   : > { %v6689_v53 = vadd.f32 %v3362_v20, %v6527_v49  ;;  %v6691_v6 = vadd.f32 %v3989_v1, %v3845_v36  ;;  %v7176_v49 = vld [vmem:[#allocation17_spill] sm:$0xff]  ;;  %v7177_v1 = vld [vmem:[#allocation16_spill] sm:$0xff] }
 0x430   : > { %v3548_v29 = vpop.f32.mrf.mxu2 }
 0x431   : > { %v3770_v42 = vpop.f32.mrf.mxu3  ;;  %v3624_v4 = vadd.f32 %v3548_v29, %v6553_v58  ;;  %v3994_v18 = vpop.f32.mrf.mxu0  ;;  %v4101_v29 = vld [vmem:[#allocation2 + $0x6a] sm:$0xff] }
 0x433   : > { %v3846_v55 = vadd.f32 %v3770_v42, %v3624_v4 }
 0x434   : > { %v3365_v14 = vpop.f32.mrf.mxu1  ;;  %5038 = vmatmul.msk.bf16.gmra.mxu0 %vm378_vm1, %v3917_v40  ;;  %v4130_v40 = vpack.c.bf16 %v4101_v29, %v4100_v10 }
 0x435   : > { %v6696_v25 = vadd.f32 %v3365_v14, %v6535_v61  ;;  %5006 = vmatmul.msk.bf16.gmra.mxu2 %vm378_vm1, %v7176_v49  ;;  %v6702_v58 = vadd.f32 %v3991_v47, %v3846_v55  ;;  %v3897_v47 = vld [vmem:[#allocation2 + $0x139] sm:$0xff] }
 0x436   : > { %5022 = vmatmul.msk.bf16.gmra.mxu3 %vm378_vm1, %v7177_v1  ;;  %v3918_v20 = vpack.c.bf16 %v3898_v34, %v3897_v47  ;;  %v4103_v34 = vld [vmem:[#allocation2 + $0x82] sm:$0xff]  ;;  %v7181_v47 = vld [vmem:[#allocation20_spill] sm:$0xff] }
 0x437   : > { %5045 = vmatmul.msk.bf16.gmra.mxu1 %vm378_vm1, %v4129_v21  ;;  %v3900_v21 = vld [vmem:[#allocation2 + $0x159] sm:$0xff] }
 0x438   : > { %v3551_v44 = vpop.f32.mrf.mxu2 }
 0x439   : > { %v3773_v8 = vpop.f32.mrf.mxu3  ;;  %v3625_v22 = vadd.f32 %v3551_v44, %v6561_v51  ;;  %v3996_v57 = vpop.f32.mrf.mxu0 }
 0x43b   : > { %v3847_v56 = vadd.f32 %v3773_v8, %v3625_v22  ;;  %v3899_v22 = vld [vmem:[#allocation2 + $0x151] sm:$0xff] }
 0x43c   : > { %v3367_v13 = vpop.f32.mrf.mxu1 }
 0x43d   : > { %v6707_v61 = vadd.f32 %v3367_v13, %v6547_v12  ;;  %v6709_v60 = vadd.f32 %v3994_v18, %v3847_v56  ;;  %v7178_v12 = vld [vmem:[#allocation19_spill] sm:$0xff]  ;;  %v3919_v13 = vpack.c.bf16 %v3900_v21, %v3899_v22  ;;  %v3906_v22 = vld [vmem:[#allocation2 + $0x1a1] sm:$0xff] }
 0x440   : > { %v3553_v38 = vpop.f32.mrf.mxu2 }
 0x441   : > { %v3775_v28 = vpop.f32.mrf.mxu3  ;;  %v3626_v36 = vadd.f32 %v3553_v38, %v6573_v39  ;;  %v3999_v14 = vpop.f32.mrf.mxu0 }
 0x443   : > { %v3848_v42 = vadd.f32 %v3775_v28, %v3626_v36 }
 0x444   : > { %v3370_v4 = vpop.f32.mrf.mxu1  ;;  %5039 = vmatmul.msk.bf16.gmra.mxu0 %vm378_vm1, %v3918_v20 }
 0x445   : > { %v6714_v51 = vadd.f32 %v3370_v4, %v6555_v5  ;;  %5007 = vmatmul.msk.bf16.gmra.mxu2 %vm378_vm1, %v7178_v12  ;;  %v6720_v41 = vadd.f32 %v3996_v57, %v3848_v42  ;;  %v4102_v57 = vld [vmem:[#allocation2 + $0x7a] sm:$0xff]  ;;  %v3902_v42 = vld [vmem:[#allocation2 + $0x171] sm:$0xff]  ;;  %v3901_v4 = vld [vmem:[#allocation2 + $0x169] sm:$0xff] }
 0x446   : > { %5023 = vmatmul.msk.bf16.gmra.mxu3 %vm378_vm1, %v7179_v23  ;;  %v3920_v12 = vpack.c.bf16 %v3902_v42, %v3901_v4  ;;  %v4105_v23 = vld [vmem:[#allocation2 + $0x9a] sm:$0xff] }
 0x447   : > { %5046 = vmatmul.msk.bf16.gmra.mxu1 %vm378_vm1, %v4130_v40 }
 0x448   : > { %v3556_v39 = vpop.f32.mrf.mxu2 }
 0x449   : > { %v3778_v9 = vpop.f32.mrf.mxu3  ;;  %v3627_v55 = vadd.f32 %v3556_v39, %v6581_v16  ;;  %v4001_v28 = vpop.f32.mrf.mxu0 }
 0x44b   : > { %v3849_v18 = vadd.f32 %v3778_v9, %v3627_v55  ;;  %v7182_v9 = vld [vmem:[#allocation24_spill] sm:$0xff] }
 0x44c   : > { %v3372_v49 = vpop.f32.mrf.mxu1 }
 0x44d   : > { %v6725_v5 = vadd.f32 %v3372_v49, %v6567_v30  ;;  %v6727_v1 = vadd.f32 %v3999_v14, %v3849_v18  ;;  %v7180_v30 = vld [vmem:[#allocation21_spill] sm:$0xff]  ;;  %v4106_v18 = vld [vmem:[#allocation2 + $0xaa] sm:$0xff]  ;;  %v4107_v49 = vld [vmem:[#allocation2 + $0xb2] sm:$0xff] }
 0x450   : > { %v3558_v44 = vpop.f32.mrf.mxu2 }
 0x451   : > { %v3628_v8 = vadd.f32 %v3558_v44, %v6593_v19  ;;  %v3780_v56 = vpop.f32.mrf.mxu3  ;;  %v4131_v19 = vpack.c.bf16 %v4103_v34, %v4102_v57 }
 0x453   : > { %v3850_v38 = vadd.f32 %v3780_v56, %v3628_v8  ;;  %v3905_v8 = vld [vmem:[#allocation2 + $0x199] sm:$0xff] }
 0x454   : > { %v3375_v16 = vpop.f32.mrf.mxu1  ;;  %5040 = vmatmul.msk.bf16.gmra.mxu0 %vm378_vm1, %v3919_v13  ;;  %v3684_v56 = vld [vmem:[#allocation2 + $0x198] sm:$0xff]  ;;  %v3462_v13 = vld [vmem:[#allocation2 + $0x182] sm:$0xff]  ;;  %v3922_v57 = vpack.c.bf16 %v3906_v22, %v3905_v8 }
 0x455   : > { %v6732_v36 = vadd.f32 %v3375_v16, %v6575_v2  ;;  %5008 = vmatmul.msk.bf16.gmra.mxu2 %vm378_vm1, %v7180_v30  ;;  %v6738_v20 = vadd.f32 %v4001_v28, %v3850_v38  ;;  %v4104_v2 = vld [vmem:[#allocation2 + $0x92] sm:$0xff]  ;;  %v4108_v38 = vld [vmem:[#allocation2 + $0xc2] sm:$0xff] }
 0x456   : > { %5024 = vmatmul.msk.bf16.gmra.mxu3 %vm378_vm1, %v7181_v47  ;;  %v4132_v55 = vpack.c.bf16 %v4105_v23, %v4104_v2  ;;  %v4112_v23 = vld [vmem:[#allocation2 + $0xf2] sm:$0xff] }
 0x457   : > { %5047 = vmatmul.msk.bf16.gmra.mxu1 %vm378_vm1, %v4131_v19  ;;  %v4110_v19 = vld [vmem:[#allocation2 + $0xda] sm:$0xff] }
 0x45c   : > { %v3377_v10 = vpop.f32.mrf.mxu1 }
 0x45d   : > { %v6742_v29 = vadd.f32 %v3377_v10, %v6587_v15  ;;  %v4111_v10 = vld [vmem:[#allocation2 + $0xe2] sm:$0xff] }
 0x45e   : > { %v4135_v4 = vpack.c.bf16 %v4111_v10, %v4110_v19  ;;  %v5062_v10 = vld [vmem:[%s5196_s16 + $0x31] sm:$0xff] }
 0x464   : > { %v3380_v40 = vpop.f32.mrf.mxu1  ;;  %5041 = vmatmul.msk.bf16.gmra.mxu0 %vm378_vm1, %v3920_v12 }
 0x465   : > { %v6746_v39 = vadd.f32 %v3380_v40, %v6595_v54  ;;  %5009 = vmatmul.msk.bf16.gmra.mxu2 %vm378_vm1, %v7182_v9  ;;  %v4113_v40 = vld [vmem:[#allocation2 + $0xfa] sm:$0xff] }
 0x466   : > { %5025 = vmatmul.msk.bf16.gmra.mxu3 %vm378_vm1, %v6454_v3  ;;  %v4133_v3 = vpack.c.bf16 %v4107_v49, %v4106_v18  ;;  %v5060_v18 = vld [vmem:[%s5196_s16 + $0x19] sm:$0xff] }
 0x467   : > { %5048 = vmatmul.msk.bf16.gmra.mxu1 %vm378_vm1, %v4132_v55 }
 0x46c   : > { %v3382_v15 = vpop.f32.mrf.mxu1 }
 0x46d   : > { %v6754_v14 = vadd.f32 %v3382_v15, %v6606_v46  ;;  %v4136_v15 = vpack.c.bf16 %v4113_v40, %v4112_v23 }
 0x474   : > { %v3385_v21 = vpop.f32.mrf.mxu1  ;;  %5042 = vmatmul.msk.bf16.gmra.mxu0 %vm378_vm1, %v6663_v35  ;;  %v3685_v35 = vld [vmem:[#allocation2 + $0x1a0] sm:$0xff] }
 0x475   : > { %v6759_v54 = vadd.f32 %v3385_v21, %v6614_v37  ;;  %5010 = vmatmul.msk.bf16.gmra.mxu2 %vm378_vm1, %v6480_v26  ;;  %v3463_v37 = vld [vmem:[#allocation2 + $0x18a] sm:$0xff]  ;;  %v3701_v34 = vpack.c.bf16 %v3685_v35, %v3684_v56  ;;  %v6805_v21 = vpop.f32.mrf.mxu2  ;;  %v6816_v56 = vpop.f32.mrf.mxu3  ;;  %v5061_v35 = vld [vmem:[%s5196_s16 + $0x21] sm:$0xff] }
 0x476   : > { %5026 = vmatmul.msk.bf16.gmra.mxu3 %vm378_vm1, %v6478_v45  ;;  %v4109_v26 = vld [vmem:[#allocation2 + $0xca] sm:$0xff]  ;;  %v6769_v28 = vpack.c.bf16 %v3463_v37, %v3462_v13 }
 0x477   : > { %5049 = vmatmul.msk.bf16.gmra.mxu1 %vm378_vm1, %v4133_v3  ;;  %v4114_v37 = vld [vmem:[#allocation2 + $0x10a] sm:$0xff] }
 0x47c   : > { %v3387_v46 = vpop.f32.mrf.mxu1 }
 0x47d   : > { %v6767_v44 = vadd.f32 %v3387_v46, %v6625_v32  ;;  %v4134_v32 = vpack.c.bf16 %v4109_v26, %v4108_v38  ;;  %v6822_v26 = vpop.f32.mrf.mxu2 }
 0x484   : > { %v3390_v45 = vpop.f32.mrf.mxu1  ;;  %5043 = vmatmul.msk.bf16.gmra.mxu0 %vm378_vm1, %v3922_v57  ;;  %v4115_v57 = vld [vmem:[#allocation2 + $0x112] sm:$0xff] }
 0x485   : > { %v6773_v16 = vadd.f32 %v3390_v45, %v6633_v59  ;;  %5011 = vmatmul.msk.bf16.gmra.mxu2 %vm378_vm1, %v6769_v28 }
 0x486   : > { %5027 = vmatmul.msk.bf16.gmra.mxu3 %vm378_vm1, %v3701_v34  ;;  %v6820_v34 = vpop.f32.mrf.mxu0 }
 0x487   : > { %5050 = vmatmul.msk.bf16.gmra.mxu1 %vm378_vm1, %v4134_v32 }
 0x48c   : > { %v3392_v30 = vpop.f32.mrf.mxu1 }
 0x48d   : > { %v6780_v47 = vadd.f32 %v3392_v30, %v6644_v17  ;;  %v6792_v17 = vld [vmem:[%s7083_s5] ss:$0 sm:$0xff]  ;;  %v4137_v30 = vpack.c.bf16 %v4115_v57, %v4114_v37 }
 0x48e   : > { %v6833_v40 = vpop.f32.mrf.mxu0 }
 0x494   : > { %v3395_v42 = vpop.f32.mrf.mxu1 }
 0x495   : > { %v6783_v59 = vadd.f32 %v3395_v42, %v6652_v52  ;;  %v6798_v52 = vld [vmem:[%s7084_s6] ss:$0 sm:$0xff] }
 0x497   : > { %5051 = vmatmul.msk.bf16.gmra.mxu1 %vm378_vm1, %v4135_v4  ;;  %v6831_v4 = vpop.f32.mrf.mxu3 }
 0x49c   : > { %v3397_v12 = vpop.f32.mrf.mxu1 }
 0x49d   : > { %v6787_v2 = vadd.f32 %v3397_v12, %v6665_v62 }
 0x4a4   : > { %v4205_v9 = vpop.f32.mrf.mxu1 }
 0x4a5   : > { %v4285_v55 = vadd.f32 %v4205_v9, %v6673_v63 }
 0x4a7   : > { %v4353_v62 = vmul.f32 %v6792_v17, %v4285_v55  ;;  %5052 = vmatmul.msk.bf16.gmra.mxu1 %vm378_vm1, %v4136_v15  ;;  %v6836_v55 = vpop.f32.mrf.mxu2 }
 0x4a9   : > { %v4389_v49 = vadd.f32 %v6798_v52, %v4353_v62  ;;  %v5063_v62 = vld [vmem:[%s5196_s16 + $0x39] sm:$0xff] }
 0x4ab   : > { %v4421_v3 = vadd.f32 %v5060_v18, %v4389_v49  ;;  %v4116_v49 = vld [vmem:[#allocation2 + $0x122] sm:$0xff] }
 0x4ac   : > { %v4207_v63 = vpop.f32.mrf.mxu1 }
 0x4ad   : > { %v4453_v46 = vmax.f32 %v4421_v3, 0.0  ;;  %v4286_v8 = vadd.f32 %v4207_v63, %v6684_v48  ;;  %v4117_v3 = vld [vmem:[#allocation2 + $0x12a] sm:$0xff] }
 0x4af   : > { %4485 = vst.msk [vmem:[%s6810_s18] sm:$0xff] %vm378_vm1, %v4453_v46  ;;  %v4354_v22 = vmul.f32 %v6792_v17, %v4286_v8  ;;  %v6843_v46 = vpop.f32.mrf.mxu3  ;;  %v6852_v57 = vpop.f32.mrf.mxu2 }
 0x4b1   : > { %v4390_v13 = vadd.f32 %v6798_v52, %v4354_v22 }
 0x4b3   : > { %v4422_v38 = vadd.f32 %v5061_v35, %v4390_v13  ;;  %v4138_v35 = vpack.c.bf16 %v4117_v3, %v4116_v49  ;;  %v6846_v13 = vpop.f32.mrf.mxu0 }
 0x4b4   : > { %v4210_v45 = vpop.f32.mrf.mxu1 }
 0x4b5   : > { %v4454_v48 = vmax.f32 %v4422_v38, 0.0  ;;  %v4287_v32 = vadd.f32 %v4210_v45, %v6691_v6  ;;  %v5064_v38 = vld [vmem:[%s5196_s16 + $0x49] sm:$0xff] }
 0x4b7   : > { %4486 = vst.msk [vmem:[%s6810_s18 + $0x8] sm:$0xff] %vm378_vm1, %v4454_v48  ;;  %v4355_v19 = vmul.f32 %v6792_v17, %v4287_v32  ;;  %5053 = vmatmul.msk.bf16.gmra.mxu1 %vm378_vm1, %v4137_v30 }
 0x4b9   : > { %v4391_v42 = vadd.f32 %v6798_v52, %v4355_v19  ;;  %v6857_v19 = vpop.f32.mrf.mxu3 }
 0x4bb   : > { %v4423_v12 = vadd.f32 %v5062_v10, %v4391_v42  ;;  %v5065_v42 = vld [vmem:[%s5196_s16 + $0x51] sm:$0xff] }
 0x4bc   : > { %v4212_v23 = vpop.f32.mrf.mxu1 }
 0x4bd   : > { %v4455_v9 = vmax.f32 %v4423_v12, 0.0  ;;  %v4288_v6 = vadd.f32 %v4212_v23, %v6702_v58  ;;  %v6863_v12 = vpop.f32.mrf.mxu0 }
 0x4bf   : > { %4487 = vst.msk [vmem:[%s6810_s18 + $0x10] sm:$0xff] %vm378_vm1, %v4455_v9  ;;  %v4356_v15 = vmul.f32 %v6792_v17, %v4288_v6  ;;  %v6866_v9 = vpop.f32.mrf.mxu2  ;;  %v4118_v6 = vld [vmem:[#allocation2 + $0x13a] sm:$0xff] }
 0x4c1   : > { %v4392_v18 = vadd.f32 %v6798_v52, %v4356_v15  ;;  %v4119_v15 = vld [vmem:[#allocation2 + $0x142] sm:$0xff] }
 0x4c2   : > { %v4139_v3 = vpack.c.bf16 %v4119_v15, %v4118_v6  ;;  %v3630_v6 = vadd.f32 %v6822_v26, %v6612_v43  ;;  %v5068_v43 = vld [vmem:[%s5196_s16 + $0x79] sm:$0xff]  ;;  %v3631_v26 = vadd.f32 %v6836_v55, %v6619_v27  ;;  %v5069_v27 = vld [vmem:[%s5196_s16 + $0x81] sm:$0xff]  ;;  %v4122_v55 = vld [vmem:[#allocation2 + $0x16a] sm:$0xff] }
 0x4c3   : > { %v4424_v63 = vadd.f32 %v5063_v62, %v4392_v18 }
 0x4c4   : > { %v4215_v8 = vpop.f32.mrf.mxu1 }
 0x4c5   : > { %v4456_v22 = vmax.f32 %v4424_v63, 0.0  ;;  %v4289_v58 = vadd.f32 %v4215_v8, %v6709_v60  ;;  %v6873_v8 = vpop.f32.mrf.mxu3 }
 0x4c7   : > { %4488 = vst.msk [vmem:[%s6810_s18 + $0x18] sm:$0xff] %vm378_vm1, %v4456_v22  ;;  %v4357_v37 = vmul.f32 %v6792_v17, %v4289_v58  ;;  %5054 = vmatmul.msk.bf16.gmra.mxu1 %vm378_vm1, %v4138_v35  ;;  %v5066_v22 = vld [vmem:[%s5196_s16 + $0x61] sm:$0xff]  ;;  %v3629_v35 = vadd.f32 %v6805_v21, %v6600_v31  ;;  %v4120_v21 = vld [vmem:[#allocation2 + $0x152] sm:$0xff] }
 0x4c9   : > { %v4393_v45 = vadd.f32 %v6798_v52, %v4357_v37  ;;  %v6879_v37 = vpop.f32.mrf.mxu0 }
 0x4cb   : > { %v4425_v48 = vadd.f32 %v5064_v38, %v4393_v45  ;;  %v6881_v38 = vpop.f32.mrf.mxu2 }
 0x4cc   : > { %v4217_v32 = vpop.f32.mrf.mxu1 }
 0x4cd   : > { %v4457_v30 = vmax.f32 %v4425_v48, 0.0  ;;  %v4290_v60 = vadd.f32 %v4217_v32, %v6720_v41  ;;  %v6890_v31 = vpop.f32.mrf.mxu3 }
 0x4cf   : > { %4489 = vst.msk [vmem:[%s6810_s18 + $0x20] sm:$0xff] %vm378_vm1, %v4457_v30  ;;  %v4358_v10 = vmul.f32 %v6792_v17, %v4290_v60  ;;  %v3851_v30 = vadd.f32 %v6816_v56, %v3629_v35 }
 0x4d1   : > { %v4394_v23 = vadd.f32 %v6798_v52, %v4358_v10  ;;  %v5067_v10 = vld [vmem:[%s5196_s16 + $0x69] sm:$0xff] }
 0x4d3   : > { %v4426_v62 = vadd.f32 %v5065_v42, %v4394_v23  ;;  %v4121_v23 = vld [vmem:[#allocation2 + $0x15a] sm:$0xff] }
 0x4d4   : > { %v4220_v18 = vpop.f32.mrf.mxu1 }
 0x4d5   : > { %v4458_v49 = vmax.f32 %v4426_v62, 0.0  ;;  %v4291_v41 = vadd.f32 %v4220_v18, %v6727_v1  ;;  %v6895_v62 = vpop.f32.mrf.mxu0 }
 0x4d7   : > { %4490 = vst.msk [vmem:[%s6810_s18 + $0x28] sm:$0xff] %vm378_vm1, %v4458_v49  ;;  %v4359_v63 = vmul.f32 %v6792_v17, %v4291_v41  ;;  %5055 = vmatmul.msk.bf16.gmra.mxu1 %vm378_vm1, %v4139_v3  ;;  %v4140_v41 = vpack.c.bf16 %v4121_v23, %v4120_v21  ;;  %v6897_v3 = vpop.f32.mrf.mxu2  ;;  %v3632_v21 = vadd.f32 %v6852_v57, %v6631_v0 }
 0x4d9   : > { %v4395_v58 = vadd.f32 %v6798_v52, %v4359_v63  ;;  %v3852_v63 = vadd.f32 %v6831_v4, %v3630_v6 }
 0x4db   : > { %v4427_v1 = vadd.f32 %v5066_v22, %v4395_v58  ;;  %v4073_v35 = vadd.f32 %v6833_v40, %v3852_v63  ;;  %v5070_v63 = vld [vmem:[%s5196_s16 + $0x91] sm:$0xff] }
 0x4dc   : > { %v4222_v45 = vpop.f32.mrf.mxu1 }
 0x4dd   : > { %v4459_v48 = vmax.f32 %v4427_v1, 0.0  ;;  %v4292_v32 = vadd.f32 %v4222_v45, %v6738_v20  ;;  %v4072_v20 = vadd.f32 %v6820_v34, %v3851_v30  ;;  %v6909_v1 = vpop.f32.mrf.mxu3  ;;  %v6912_v30 = vpop.f32.mrf.mxu0 }
 0x4df   : > { %4491 = vst.msk [vmem:[%s6810_s18 + $0x30] sm:$0xff] %vm378_vm1, %v4459_v48  ;;  %v4360_v60 = vmul.f32 %v6792_v17, %v4292_v32  ;;  %v3853_v32 = vadd.f32 %v6843_v46, %v3631_v26 }
 0x4e1   : > { %v4396_v42 = vadd.f32 %v6798_v52, %v4360_v60  ;;  %v4074_v46 = vadd.f32 %v6846_v13, %v3853_v32 }
 0x4e3   : > { %v4428_v15 = vadd.f32 %v5067_v10, %v4396_v42  ;;  %v6917_v10 = vpop.f32.mrf.mxu2  ;;  %v4123_v42 = vld [vmem:[#allocation2 + $0x172] sm:$0xff] }
 0x4e4   : > { %v4225_v56 = vpop.f32.mrf.mxu1 }
 0x4e5   : > { %v4460_v18 = vmax.f32 %v4428_v15, 0.0  ;;  %v4293_v49 = vadd.f32 %v4225_v56, %v4072_v20  ;;  %v4141_v56 = vpack.c.bf16 %v4123_v42, %v4122_v55  ;;  %v6930_v0 = vpop.f32.mrf.mxu0 }
 0x4e7   : > { %4492 = vst.msk [vmem:[%s6810_s18 + $0x38] sm:$0xff] %vm378_vm1, %v4460_v18  ;;  %v4361_v22 = vmul.f32 %v6792_v17, %v4293_v49  ;;  %5056 = vmatmul.msk.bf16.gmra.mxu1 %vm378_vm1, %v4140_v41  ;;  %v3800_v18 = vpop.f32.mrf.mxu3  ;;  %v3854_v49 = vadd.f32 %v6857_v19, %v3632_v21 }
 0x4e9   : > { %v4397_v34 = vadd.f32 %v6798_v52, %v4361_v22  ;;  %v3633_v22 = vadd.f32 %v6866_v9, %v6638_v7  ;;  %v3634_v7 = vadd.f32 %v6881_v38, %v6650_v50  ;;  %v5072_v50 = vld [vmem:[%s5196_s16 + $0xa9] sm:$0xff] }
 0x4eb   : > { %v4429_v58 = vadd.f32 %v5068_v43, %v4397_v34  ;;  %v3581_v57 = vpop.f32.mrf.mxu2  ;;  %v4075_v34 = vadd.f32 %v6863_v12, %v3854_v49  ;;  %v3856_v42 = vadd.f32 %v6890_v31, %v3634_v7 }
 0x4ec   : > { %v4227_v45 = vpop.f32.mrf.mxu1 }
 0x4ed   : > { %v4461_v4 = vmax.f32 %v4429_v58, 0.0  ;;  %v4294_v48 = vadd.f32 %v4227_v45, %v4073_v35  ;;  %v3855_v35 = vadd.f32 %v6873_v8, %v3633_v22  ;;  %v4024_v9 = vpop.f32.mrf.mxu0  ;;  %v4127_v22 = vld [vmem:[#allocation2 + $0x1a2] sm:$0xff] }
 0x4ef   : > { %4493 = vst.msk [vmem:[%s6810_s18 + $0x40] sm:$0xff] %vm378_vm1, %v4461_v4  ;;  %v4362_v60 = vmul.f32 %v6792_v17, %v4294_v48  ;;  %v3803_v4 = vpop.f32.mrf.mxu3  ;;  %v5071_v48 = vld [vmem:[%s5196_s16 + $0x99] sm:$0xff] }
 0x4f1   : > { %v4398_v40 = vadd.f32 %v6798_v52, %v4362_v60  ;;  %v4076_v60 = vadd.f32 %v6879_v37, %v3855_v35  ;;  %v3635_v37 = vadd.f32 %v6897_v3, %v6657_v11 }
 0x4f3   : > { %v4430_v23 = vadd.f32 %v5069_v27, %v4398_v40  ;;  %v3583_v27 = vpop.f32.mrf.mxu2 }
 0x4f4   : > { %v4230_v6 = vpop.f32.mrf.mxu1 }
 0x4f5   : > { %v4462_v15 = vmax.f32 %v4430_v23, 0.0  ;;  %v4295_v20 = vadd.f32 %v4230_v6, %v4074_v46  ;;  %v4077_v6 = vadd.f32 %v6895_v62, %v3856_v42  ;;  %v3636_v62 = vadd.f32 %v6917_v10, %v6671_v33  ;;  %v5074_v33 = vld [vmem:[%s5196_s16 + $0xc1] sm:$0xff] }
 0x4f7   : > { %4494 = vst.msk [vmem:[%s6810_s18 + $0x48] sm:$0xff] %vm378_vm1, %v4462_v15  ;;  %v4363_v41 = vmul.f32 %v6792_v17, %v4295_v20  ;;  %5057 = vmatmul.msk.bf16.gmra.mxu1 %vm378_vm1, %v4141_v56  ;;  %v3805_v23 = vpop.f32.mrf.mxu3  ;;  %v4026_v15 = vpop.f32.mrf.mxu0  ;;  %v3858_v35 = vadd.f32 %v3800_v18, %v3636_v62 }
 0x4f9   : > { %v4399_v13 = vadd.f32 %v6798_v52, %v4363_v41  ;;  %v3857_v41 = vadd.f32 %v6909_v1, %v3635_v37 }
 0x4fb   : > { %v4431_v43 = vadd.f32 %v5070_v63, %v4399_v13  ;;  %v3586_v49 = vpop.f32.mrf.mxu2  ;;  %v5073_v63 = vld [vmem:[%s5196_s16 + $0xb1] sm:$0xff]  ;;  %v4126_v13 = vld [vmem:[#allocation2 + $0x19a] sm:$0xff] }
 0x4fc   : > { %v4232_v19 = vpop.f32.mrf.mxu1 }
 0x4fd   : > { %v4463_v26 = vmax.f32 %v4431_v43, 0.0  ;;  %v4296_v58 = vadd.f32 %v4232_v19, %v4075_v34  ;;  %v4078_v43 = vadd.f32 %v6912_v30, %v3857_v41  ;;  %v4143_v34 = vpack.c.bf16 %v4127_v22, %v4126_v13  ;;  %v5076_v41 = vld [vmem:[%s5196_s16 + $0xd9] sm:$0xff] }
 0x4fe   : > { %v3637_v30 = vadd.f32 %v3581_v57, %v6678_v24  ;;  %v3638_v24 = vadd.f32 %v3583_v27, %v6689_v53 }
 0x4ff   : > { %4495 = vst.msk [vmem:[%s6810_s18 + $0x50] sm:$0xff] %vm378_vm1, %v4463_v26  ;;  %v4364_v45 = vmul.f32 %v6792_v17, %v4296_v58  ;;  %v3808_v19 = vpop.f32.mrf.mxu3 }
 0x501   : > { %v4400_v32 = vadd.f32 %v6798_v52, %v4364_v45  ;;  %v4029_v45 = vpop.f32.mrf.mxu0 }
 0x503   : > { %v4432_v12 = vadd.f32 %v5071_v48, %v4400_v32  ;;  %v3588_v32 = vpop.f32.mrf.mxu2 }
 0x504   : > { %v4235_v40 = vpop.f32.mrf.mxu1 }
 0x505   : > { %v4464_v55 = vmax.f32 %v4432_v12, 0.0  ;;  %v4297_v8 = vadd.f32 %v4235_v40, %v4076_v60  ;;  %v4079_v12 = vadd.f32 %v6930_v0, %v3858_v35 }
 0x507   : > { %4496 = vst.msk [vmem:[%s6810_s18 + $0x58] sm:$0xff] %vm378_vm1, %v4464_v55  ;;  %v4365_v21 = vmul.f32 %v6792_v17, %v4297_v8  ;;  %5058 = vmatmul.msk.bf16.gmra.mxu1 %vm378_vm1, %v6769_v28  ;;  %v3810_v55 = vpop.f32.mrf.mxu3  ;;  %v3859_v8 = vadd.f32 %v3803_v4, %v3637_v30  ;;  %v5078_v30 = vld [vmem:[%s5196_s16 + $0xf1] sm:$0xff] }
 0x509   : > { %v4401_v38 = vadd.f32 %v6798_v52, %v4365_v21  ;;  %v5075_v21 = vld [vmem:[%s5196_s16 + $0xc9] sm:$0xff]  ;;  %v4080_v0 = vadd.f32 %v4024_v9, %v3859_v8 }
 0x50b   : > { %v4433_v46 = vadd.f32 %v5072_v50, %v4401_v38  ;;  %v4031_v50 = vpop.f32.mrf.mxu0  ;;  %v3591_v37 = vpop.f32.mrf.mxu2 }
 0x50c   : > { %v4237_v31 = vpop.f32.mrf.mxu1 }
 0x50d   : > { %v4465_v20 = vmax.f32 %v4433_v46, 0.0  ;;  %v4298_v56 = vadd.f32 %v4237_v31, %v4077_v6 }
 0x50f   : > { %4497 = vst.msk [vmem:[%s6810_s18 + $0x60] sm:$0xff] %vm378_vm1, %v4465_v20  ;;  %v4366_v28 = vmul.f32 %v6792_v17, %v4298_v56  ;;  %v3860_v20 = vadd.f32 %v3805_v23, %v3638_v24  ;;  %v3813_v56 = vpop.f32.mrf.mxu3 }
 0x511   : > { %v4402_v11 = vadd.f32 %v6798_v52, %v4366_v28  ;;  %v4081_v27 = vadd.f32 %v4026_v15, %v3860_v20 }
 0x513   : > { %v4434_v3 = vadd.f32 %v5073_v63, %v4402_v11  ;;  %v3639_v63 = vadd.f32 %v3586_v49, %v6696_v25  ;;  %v4034_v13 = vpop.f32.mrf.mxu0  ;;  %v3593_v9 = vpop.f32.mrf.mxu2  ;;  %v3640_v25 = vadd.f32 %v3588_v32, %v6707_v61 }
 0x514   : > { %v4240_v1 = vpop.f32.mrf.mxu1 }
 0x515   : > { %v4466_v26 = vmax.f32 %v4434_v3, 0.0  ;;  %v4299_v58 = vadd.f32 %v4240_v1, %v4078_v43  ;;  %v3861_v23 = vadd.f32 %v3808_v19, %v3639_v63  ;;  %v5077_v43 = vld [vmem:[%s5196_s16 + $0xe1] sm:$0xff]  ;;  %v3862_v19 = vadd.f32 %v3810_v55, %v3640_v25 }
 0x517   : > { %4498 = vst.msk [vmem:[%s6810_s18 + $0x68] sm:$0xff] %vm378_vm1, %v4466_v26  ;;  %v4367_v48 = vmul.f32 %v6792_v17, %v4299_v58  ;;  %5059 = vmatmul.msk.bf16.gmra.mxu1 %vm378_vm1, %v4143_v34  ;;  %v3815_v1 = vpop.f32.mrf.mxu3  ;;  %v4082_v26 = vadd.f32 %v4029_v45, %v3861_v23  ;;  %v4083_v32 = vadd.f32 %v4031_v50, %v3862_v19  ;;  %v5081_v23 = vld [vmem:[%s5196_s16 + $0x111] sm:$0xff] }
 0x519   : > { %v4403_v10 = vadd.f32 %v6798_v52, %v4367_v48 }
 0x51b   : > { %v4435_v7 = vadd.f32 %v5074_v33, %v4403_v10  ;;  %v4036_v58 = vpop.f32.mrf.mxu0  ;;  %v3596_v33 = vpop.f32.mrf.mxu2 }
 0x51c   : > { %v4242_v60 = vpop.f32.mrf.mxu1 }
 0x51d   : > { %v4467_v18 = vmax.f32 %v4435_v7, 0.0  ;;  %v4300_v40 = vadd.f32 %v4242_v60, %v4079_v12  ;;  %v3641_v12 = vadd.f32 %v3591_v37, %v6714_v51  ;;  %v3642_v51 = vadd.f32 %v3593_v9, %v6725_v5 }
 0x51e   : > { %v3643_v5 = vadd.f32 %v3596_v33, %v6732_v36 }
 0x51f   : > { %4499 = vst.msk [vmem:[%s6810_s18 + $0x70] sm:$0xff] %vm378_vm1, %v4467_v18  ;;  %v4368_v42 = vmul.f32 %v6792_v17, %v4300_v40  ;;  %v3818_v45 = vpop.f32.mrf.mxu3  ;;  %v3863_v8 = vadd.f32 %v3813_v56, %v3641_v12 }
 0x521   : > { %v4404_v38 = vadd.f32 %v6798_v52, %v4368_v42  ;;  %v4084_v50 = vadd.f32 %v4034_v13, %v3863_v8 }
 0x523   : > { %v4436_v57 = vadd.f32 %v5075_v21, %v4404_v38  ;;  %v4039_v42 = vpop.f32.mrf.mxu0  ;;  %v3598_v21 = vpop.f32.mrf.mxu2  ;;  %v5079_v38 = vld [vmem:[%s5196_s16 + $0xf9] sm:$0xff] }
 0x524   : > { %v4245_v46 = vpop.f32.mrf.mxu1 }
 0x525   : > { %v4468_v6 = vmax.f32 %v4436_v57, 0.0  ;;  %v4301_v31 = vadd.f32 %v4245_v46, %v4080_v0 }
 0x527   : > { %4500 = vst.msk [vmem:[%s6810_s18 + $0x78] sm:$0xff] %vm378_vm1, %v4468_v6  ;;  %v4369_v4 = vmul.f32 %v6792_v17, %v4301_v31  ;;  %v3820_v6 = vpop.f32.mrf.mxu3  ;;  %v3864_v31 = vadd.f32 %v3815_v1, %v3642_v51 }
 0x529   : > { %v4405_v28 = vadd.f32 %v6798_v52, %v4369_v4  ;;  %v5080_v4 = vld [vmem:[%s5196_s16 + $0x109] sm:$0xff]  ;;  %v4085_v13 = vadd.f32 %v4036_v58, %v3864_v31 }
 0x52b   : > { %v4437_v53 = vadd.f32 %v5076_v41, %v4405_v28  ;;  %v4041_v56 = vpop.f32.mrf.mxu0  ;;  %v3601_v28 = vpop.f32.mrf.mxu2 }
 0x52c   : > { %v4247_v22 = vpop.f32.mrf.mxu1 }
 0x52d   : > { %v4469_v11 = vmax.f32 %v4437_v53, 0.0  ;;  %v4302_v62 = vadd.f32 %v4247_v22, %v4081_v27  ;;  %v3865_v22 = vadd.f32 %v3818_v45, %v3643_v5 }
 0x52f   : > { %4501 = vst.msk [vmem:[%s6810_s18 + $0x80] sm:$0xff] %vm378_vm1, %v4469_v11  ;;  %v4370_v3 = vmul.f32 %v6792_v17, %v4302_v62  ;;  %v3823_v62 = vpop.f32.mrf.mxu3  ;;  %v4086_v1 = vadd.f32 %v4039_v42, %v3865_v22 }
 0x531   : > { %v4406_v34 = vadd.f32 %v6798_v52, %v4370_v3 }
 0x533   : > { %v4438_v49 = vadd.f32 %v5077_v43, %v4406_v34  ;;  %v3644_v43 = vadd.f32 %v3598_v21, %v6742_v29  ;;  %v4044_v34 = vpop.f32.mrf.mxu0  ;;  %v3603_v25 = vpop.f32.mrf.mxu2  ;;  %v3645_v29 = vadd.f32 %v3601_v28, %v6746_v39 }
 0x534   : > { %v4250_v15 = vpop.f32.mrf.mxu1  ;;  %v3646_v42 = vadd.f32 %v3603_v25, %v6754_v14 }
 0x535   : > { %v4470_v35 = vmax.f32 %v4438_v49, 0.0  ;;  %v4303_v48 = vadd.f32 %v4250_v15, %v4082_v26  ;;  %v3866_v58 = vadd.f32 %v3820_v6, %v3644_v43 }
 0x537   : > { %4502 = vst.msk [vmem:[%s6810_s18 + $0x88] sm:$0xff] %vm378_vm1, %v4470_v35  ;;  %v4371_v10 = vmul.f32 %v6792_v17, %v4303_v48  ;;  %v5082_v48 = vld [vmem:[%s5196_s16 + $0x121] sm:$0xff]  ;;  %v3825_v19 = vpop.f32.mrf.mxu3 }
 0x539   : > { %v4407_v7 = vadd.f32 %v6798_v52, %v4371_v10 }
 0x53b   : > { %v4439_v61 = vadd.f32 %v5078_v30, %v4407_v7  ;;  %v4087_v30 = vadd.f32 %v4041_v56, %v3866_v58  ;;  %v4046_v12 = vpop.f32.mrf.mxu0  ;;  %v3606_v45 = vpop.f32.mrf.mxu2 }
 0x53c   : > { %v4252_v60 = vpop.f32.mrf.mxu1  ;;  %v3647_v14 = vadd.f32 %v3606_v45, %v6759_v54 }
 0x53d   : > { %v4471_v18 = vmax.f32 %v4439_v61, 0.0  ;;  %v4304_v40 = vadd.f32 %v4252_v60, %v4083_v32  ;;  %v3867_v60 = vadd.f32 %v3823_v62, %v3645_v29 }
 0x53f   : > { %4503 = vst.msk [vmem:[%s6810_s18 + $0x90] sm:$0xff] %vm378_vm1, %v4471_v18  ;;  %v4372_v55 = vmul.f32 %v6792_v17, %v4304_v40  ;;  %v5083_v40 = vld [vmem:[%s5196_s16 + $0x129] sm:$0xff]  ;;  %v3828_v21 = vpop.f32.mrf.mxu3 }
 0x540   : > { %v3869_v5 = vadd.f32 %v3828_v21, %v3647_v14  ;;  %v5089_v14 = vld [vmem:[%s5196_s16 + $0x171] sm:$0xff] }
 0x541   : > { %v4408_v24 = vadd.f32 %v6798_v52, %v4372_v55  ;;  %v4088_v55 = vadd.f32 %v4044_v34, %v3867_v60 }
 0x543   : > { %v4440_v37 = vadd.f32 %v5079_v38, %v4408_v24 }
 0x544   : > { %v4255_v57 = vpop.f32.mrf.mxu1 }
 0x545   : > { %v4472_v0 = vmax.f32 %v4440_v37, 0.0  ;;  %v4305_v46 = vadd.f32 %v4255_v57, %v4084_v50  ;;  %v3868_v37 = vadd.f32 %v3825_v19, %v3646_v42  ;;  %v4049_v50 = vpop.f32.mrf.mxu0 }
 0x547   : > { %4504 = vst.msk [vmem:[%s6810_s18 + $0x98] sm:$0xff] %vm378_vm1, %v4472_v0  ;;  %v4373_v20 = vmul.f32 %v6792_v17, %v4305_v46  ;;  %v3608_v0 = vpop.f32.mrf.mxu2  ;;  %v5084_v46 = vld [vmem:[%s5196_s16 + $0x139] sm:$0xff]  ;;  %v3830_v28 = vpop.f32.mrf.mxu3 }
 0x548   : > { %v3648_v54 = vadd.f32 %v3608_v0, %v6767_v44 }
 0x549   : > { %v4409_v41 = vadd.f32 %v6798_v52, %v4373_v20  ;;  %v4089_v20 = vadd.f32 %v4046_v12, %v3868_v37 }
 0x54a   : > { %v3870_v43 = vadd.f32 %v3830_v28, %v3648_v54 }
 0x54b   : > { %v4441_v63 = vadd.f32 %v5080_v4, %v4409_v41 }
 0x54c   : > { %v4257_v53 = vpop.f32.mrf.mxu1 }
 0x54d   : > { %v4473_v27 = vmax.f32 %v4441_v63, 0.0  ;;  %v4306_v9 = vadd.f32 %v4257_v53, %v4085_v13  ;;  %v5085_v13 = vld [vmem:[%s5196_s16 + $0x141] sm:$0xff]  ;;  %v4051_v53 = vpop.f32.mrf.mxu0 }
 0x54f   : > { %4505 = vst.msk [vmem:[%s6810_s18 + $0xa0] sm:$0xff] %vm378_vm1, %v4473_v27  ;;  %v4374_v11 = vmul.f32 %v6792_v17, %v4306_v9  ;;  %v3611_v9 = vpop.f32.mrf.mxu2 }
 0x551   : > { %v4410_v3 = vadd.f32 %v6798_v52, %v4374_v11  ;;  %v4090_v11 = vadd.f32 %v4049_v50, %v3869_v5 }
 0x553   : > { %v4442_v36 = vadd.f32 %v5081_v23, %v4410_v3 }
 0x554   : > { %v4260_v49 = vpop.f32.mrf.mxu1 }
 0x555   : > { %v4474_v26 = vmax.f32 %v4442_v36, 0.0  ;;  %v4307_v15 = vadd.f32 %v4260_v49, %v4086_v1  ;;  %v3833_v36 = vpop.f32.mrf.mxu3  ;;  %v5086_v1 = vld [vmem:[%s5196_s16 + $0x151] sm:$0xff]  ;;  %v4054_v49 = vpop.f32.mrf.mxu0 }
 0x557   : > { %4506 = vst.msk [vmem:[%s6810_s18 + $0xa8] sm:$0xff] %vm378_vm1, %v4474_v26  ;;  %v4375_v35 = vmul.f32 %v6792_v17, %v4307_v15  ;;  %v3649_v26 = vadd.f32 %v3611_v9, %v6773_v16  ;;  %v4091_v15 = vadd.f32 %v4051_v53, %v3870_v43  ;;  %v3613_v58 = vpop.f32.mrf.mxu2 }
 0x558   : > { %v3650_v12 = vadd.f32 %v3613_v58, %v6780_v47 }
 0x559   : > { %v4411_v33 = vadd.f32 %v6798_v52, %v4375_v35  ;;  %v3871_v19 = vadd.f32 %v3833_v36, %v3649_v26 }
 0x55b   : > { %v4443_v10 = vadd.f32 %v5082_v48, %v4411_v33 }
 0x55c   : > { %v4262_v7 = vpop.f32.mrf.mxu1 }
 0x55d   : > { %v4475_v61 = vmax.f32 %v4443_v10, 0.0  ;;  %v4308_v32 = vadd.f32 %v4262_v7, %v4087_v30  ;;  %v5087_v10 = vld [vmem:[%s5196_s16 + $0x159] sm:$0xff]  ;;  %v3835_v7 = vpop.f32.mrf.mxu3 }
 0x55f   : > { %4507 = vst.msk [vmem:[%s6810_s18 + $0xb0] sm:$0xff] %vm378_vm1, %v4475_v61  ;;  %v4376_v18 = vmul.f32 %v6792_v17, %v4308_v32  ;;  %v4092_v61 = vadd.f32 %v4054_v49, %v3871_v19 }
 0x561   : > { %v4412_v8 = vadd.f32 %v6798_v52, %v4376_v18  ;;  %v4056_v18 = vpop.f32.mrf.mxu0 }
 0x563   : > { %v4444_v39 = vadd.f32 %v5083_v40, %v4412_v8  ;;  %v3616_v40 = vpop.f32.mrf.mxu2  ;;  %v3872_v8 = vadd.f32 %v3835_v7, %v3650_v12 }
 0x564   : > { %v4265_v38 = vpop.f32.mrf.mxu1  ;;  %v3651_v47 = vadd.f32 %v3616_v40, %v6783_v59 }
 0x565   : > { %v4476_v24 = vmax.f32 %v4444_v39, 0.0  ;;  %v4309_v51 = vadd.f32 %v4265_v38, %v4088_v55  ;;  %v5088_v39 = vld [vmem:[%s5196_s16 + $0x169] sm:$0xff]  ;;  %v3838_v21 = vpop.f32.mrf.mxu3 }
 0x566   : > { %v3873_v0 = vadd.f32 %v3838_v21, %v3651_v47 }
 0x567   : > { %4508 = vst.msk [vmem:[%s6810_s18 + $0xb8] sm:$0xff] %vm378_vm1, %v4476_v24  ;;  %v4377_v57 = vmul.f32 %v6792_v17, %v4309_v51  ;;  %v4093_v24 = vadd.f32 %v4056_v18, %v3872_v8 }
 0x569   : > { %v4413_v6 = vadd.f32 %v6798_v52, %v4377_v57  ;;  %v4059_v57 = vpop.f32.mrf.mxu0 }
 0x56b   : > { %v4445_v31 = vadd.f32 %v5084_v46, %v4413_v6  ;;  %v3618_v6 = vpop.f32.mrf.mxu2 }
 0x56c   : > { %v4267_v4 = vpop.f32.mrf.mxu1  ;;  %v3652_v59 = vadd.f32 %v3618_v6, %v6787_v2 }
 0x56d   : > { %v4477_v56 = vmax.f32 %v4445_v31, 0.0  ;;  %v4310_v41 = vadd.f32 %v4267_v4, %v4089_v20  ;;  %v4094_v20 = vadd.f32 %v4059_v57, %v3873_v0 }
 0x56f   : > { %4509 = vst.msk [vmem:[%s6810_s18 + $0xc0] sm:$0xff] %vm378_vm1, %v4477_v56  ;;  %v4378_v63 = vmul.f32 %v6792_v17, %v4310_v41  ;;  %v3840_v56 = vpop.f32.mrf.mxu3 }
 0x571   : > { %v4414_v27 = vadd.f32 %v6798_v52, %v4378_v63  ;;  %v3874_v63 = vadd.f32 %v3840_v56, %v3652_v59  ;;  %v4061_v53 = vpop.f32.mrf.mxu0 }
 0x573   : > { %v4446_v22 = vadd.f32 %v5085_v13, %v4414_v27  ;;  %v5090_v27 = vld [vmem:[%s5196_s16 + $0x181] sm:$0xff]  ;;  %v4095_v54 = vadd.f32 %v4061_v53, %v3874_v63 }
 0x574   : > { %v4270_v62 = vpop.f32.mrf.mxu1 }
 0x575   : > { %v4478_v23 = vmax.f32 %v4446_v22, 0.0  ;;  %v4311_v3 = vadd.f32 %v4270_v62, %v4090_v11 }
 0x577   : > { %4510 = vst.msk [vmem:[%s6810_s18 + $0xc8] sm:$0xff] %vm378_vm1, %v4478_v23  ;;  %v4379_v34 = vmul.f32 %v6792_v17, %v4311_v3  ;;  %v5091_v3 = vld [vmem:[%s5196_s16 + $0x189] sm:$0xff] }
 0x579   : > { %v4415_v25 = vadd.f32 %v6798_v52, %v4379_v34 }
 0x57b   : > { %v4447_v44 = vadd.f32 %v5086_v1, %v4415_v25 }
 0x57c   : > { %v4272_v35 = vpop.f32.mrf.mxu1 }
 0x57d   : > { %v4479_v48 = vmax.f32 %v4447_v44, 0.0  ;;  %v4312_v33 = vadd.f32 %v4272_v35, %v4091_v15 }
 0x57f   : > { %4511 = vst.msk [vmem:[%s6810_s18 + $0xd0] sm:$0xff] %vm378_vm1, %v4479_v48  ;;  %v4380_v29 = vmul.f32 %v6792_v17, %v4312_v33 }
 0x581   : > { %v4416_v30 = vadd.f32 %v6798_v52, %v4380_v29 }
 0x583   : > { %v4448_v16 = vadd.f32 %v5087_v10, %v4416_v30 }
 0x584   : > { %v4275_v32 = vpop.f32.mrf.mxu1 }
 0x585   : > { %v4480_v45 = vmax.f32 %v4448_v16, 0.0  ;;  %v4313_v60 = vadd.f32 %v4275_v32, %v4092_v61 }
 0x587   : > { %4512 = vst.msk [vmem:[%s6810_s18 + $0xd8] sm:$0xff] %vm378_vm1, %v4480_v45  ;;  %v4381_v42 = vmul.f32 %v6792_v17, %v4313_v60 }
 0x589   : > { %v4417_v55 = vadd.f32 %v6798_v52, %v4381_v42 }
 0x58b   : > { %v4449_v38 = vadd.f32 %v5088_v39, %v4417_v55 }
 0x58c   : > { %v4277_v51 = vpop.f32.mrf.mxu1 }
 0x58d   : > { %v4481_v37 = vmax.f32 %v4449_v38, 0.0  ;;  %v4314_v50 = vadd.f32 %v4277_v51, %v4093_v24 }
 0x58f   : > { %4513 = vst.msk [vmem:[%s6810_s18 + $0xe0] sm:$0xff] %vm378_vm1, %v4481_v37  ;;  %v4382_v46 = vmul.f32 %v6792_v17, %v4314_v50 }
 0x591   : > { %v4418_v31 = vadd.f32 %v6798_v52, %v4382_v46 }
 0x593   : > { %v4450_v4 = vadd.f32 %v5089_v14, %v4418_v31 }
 0x594   : > { %v4280_v41 = vpop.f32.mrf.mxu1 }
 0x595   : > { %v4482_v28 = vmax.f32 %v4450_v4, 0.0  ;;  %v4315_v5 = vadd.f32 %v4280_v41, %v4094_v20 }
 0x597   : > { %4514 = vst.msk [vmem:[%s6810_s18 + $0xe8] sm:$0xff] %vm378_vm1, %v4482_v28  ;;  %v4383_v13 = vmul.f32 %v6792_v17, %v4315_v5 }
 0x599   : > { %v4419_v9 = vadd.f32 %v6798_v52, %v4383_v13 }
 0x59b   : > { %v4451_v22 = vadd.f32 %v5090_v27, %v4419_v9 }
 0x59c   : > { %v4282_v2 = vpop.f32.mrf.mxu1 }
 0x59d   : > { %v4483_v11 = vmax.f32 %v4451_v22, 0.0  ;;  %v4316_v62 = vadd.f32 %v4282_v2, %v4095_v54 }
 0x59f   : > { %4515 = vst.msk [vmem:[%s6810_s18 + $0xf0] sm:$0xff] %vm378_vm1, %v4483_v11  ;;  %v4384_v23 = vmul.f32 %v6792_v17, %v4316_v62 }
 0x5a1   : > { %v4420_v43 = vadd.f32 %v6798_v52, %v4384_v23 }
 0x5a3   : > { %v4452_v34 = vadd.f32 %v5091_v3, %v4420_v43 }
 0x5a5   : > { %v4484_v36 = vmax.f32 %v4452_v34, 0.0 }
 0x5a7   : > { %4516 = vst.msk [vmem:[%s6810_s18 + $0xf8] sm:$0xff] %vm378_vm1, %v4484_v36 }
 0x5a8 PF: > { %s17_s24 = sadd.s32 1, %s5119_s24  }
 0x5a9   : > { %p14_p4 = scmp.ge.s32.totalorder %s17_s24, 4  }
 0x5ab   :  { %16 = sbr.rel (!%p14_p4) target bundleno = 1 (0x1), region = 83 }

// kernel: tpu_custom_call.1
= control target key start
LH: loop header
LB: loop body
LE: loop exit
PB: predicated region body
PF: predicated region fallthrough
CT: control target
= control target key end

     0   :  { %s5162_s24 = smov 0   ;;  %s7078_s0 = inlined_call_operand.vmem [shape: f32[2,18,18,8], index: 0, kind: input, shape index: {}]   ;;  %s7079_s1 = inlined_call_operand.vmem [shape: bf16[72,8], index: 1, kind: input, shape index: {}]   ;;  %s7080_s2 = inlined_call_operand.vmem [shape: f32[1,8], index: 2, kind: input, shape index: {}]   ;;  %s7081_s3 = inlined_call_operand.vmem [shape: f32[1,8], index: 3, kind: input, shape index: {}]   ;;  %s7082_s4 = inlined_call_operand.vmem [shape: bf16[72,8], index: 4, kind: input, shape index: {}]   ;;  %s7083_s5 = inlined_call_operand.vmem [shape: f32[1,8], index: 5, kind: input, shape index: {}]   ;;  %s7084_s6 = inlined_call_operand.vmem [shape: f32[1,8], index: 6, kind: input, shape index: {}]   ;;  %s7085_s7 = inlined_call_operand.vmem [shape: f32[2,16,16,8], index: 7, kind: output, shape index: {}]  }
   0x1 LB: > { %s4572_s25 = sadd.s32 4294967295, %s5119_s24   ;;  %p4576_p0 = scmp.ge.s32.totalorder %s5119_s24, 1  ;;  %s5119_s24 = sphi %s5162_s24, %s17_s24  }
   0x2   : > { %p237_p1 = scmp.lt.s32.totalorder %s5119_s24, 3 }
   0x4   : > { %p238_p2 = pnand %p4576_p0, %p237_p1 }
   0x6   : > { %241 = sbr.rel (%p238_p2) target bundleno = 1448 (0x5a8), region = 48 }
   0xb   : > { %v377_v0 = vld [vmem:[%s7079_s1 + $0x4] sm:$0xf]  ;;  %vm427_vm0 = vcmask 1043456   ;;  %v328_v1 = vld [vmem:[%s7079_s1] sm:$0xf]  ;;  %p269_p3 = scmp.lt.s32.totalorder %s4572_s25, 1 }
   0xc   : > { %v429_v2 = vsel %vm427_vm0, %v377_v0, 0  ;;  %v569_v3 = vsel %vm427_vm0, %v328_v1, 0  ;;  %v708_v4 = vld [vmem:[%s7079_s1 + $0x8] sm:$0xf]  ;;  %v930_v6 = vld [vmem:[%s7079_s1 + $0xc] sm:$0xf] }
   0xd   : > { %438 = vmatpush.bf16.msra.mxu0 %v429_v2  ;;  %5095 = vmatpush.bf16.msra.mxu2 %v429_v2  ;;  %s7184_s25 = smov (!%p269_p3, %s4572_s25), 1  ;;  %v758_v5 = vsel %vm427_vm0, %v708_v4, 0  ;;  %v1151_v7 = vld [vmem:[%s7079_s1 + $0x10] sm:$0xf]  ;;  %v980_v8 = vsel %vm427_vm0, %v930_v6, 0  ;;  %vm378_vm1 = vcmask 64512  }
   0xe   : > { %5096 = vmatpush.bf16.msra.mxu3 %v569_v3  ;;  %578 = vmatpush.bf16.msra.mxu1 %v569_v3  ;;  %v1201_v9 = vsel %vm427_vm0, %v1151_v7, 0  ;;  %s5097_s13 = smul.u32 432, %s7184_s25  ;;  %vm2315_vm2 = vcmask 58368   ;;  %vm2321_vm3 = vcmask 57344   ;;  %s5094_s14 = sshll.u32 %s7184_s25, 8 }
   0xf   : > { %s6810_s18 = scalar_lea.vmem %s7085_s7, %s5094_s14 }
  0x10   : > { %s5196_s16 = scalar_lea.vmem %s7078_s0, %s5097_s13 }
  0x11   : > { %767 = vmatpush.bf16.msrb.mxu2 %v758_v5  ;;  %1210 = vmatpush.bf16.msrb.mxu0 %v1201_v9  ;;  %v329_v10 = vld [vmem:[%s5196_s16 + $0x1] sm:$0xff]  ;;  %v330_v11 = vld [vmem:[%s5196_s16 + $0x9] sm:$0xff]  ;;  %v331_v22 = vld [vmem:[%s5196_s16 + $0x19] sm:$0xff] }
  0x12   : > { %989 = vmatpush.bf16.msrb.mxu3 %v980_v8  ;;  %v345_v12 = vld [vmem:[%s5196_s16 + $0xc1] sm:$0xff]  ;;  %v361_v13 = vpack.c.bf16 %v330_v11, %v329_v10  ;;  %v346_v14 = vld [vmem:[%s5196_s16 + $0xc9] sm:$0xff]  ;;  %v347_v24 = vld [vmem:[%s5196_s16 + $0xd9] sm:$0xff] }
  0x13   : > { %v296_v15 = vld [vmem:[%s5196_s16 + $0xc0] sm:$0xff]  ;;  %v297_v16 = vld [vmem:[%s5196_s16 + $0xc8] sm:$0xff]  ;;  %v5204_v17 = vpack.c.bf16 %v346_v14, %v345_v12  ;;  %v298_v26 = vld [vmem:[%s5196_s16 + $0xd8] sm:$0xff] }
  0x14   : > { %v5206_v18 = vpack.c.bf16 %v297_v16, %v296_v15  ;;  %v280_v19 = vld [vmem:[%s5196_s16] sm:$0xff]  ;;  %v281_v20 = vld [vmem:[%s5196_s16 + $0x8] sm:$0xff]  ;;  %4580 = vmatmul.msk.bf16.vlgmr.msra.gmra.mxu0 %vm378_vm1, %v361_v13  ;;  %v282_v28 = vld [vmem:[%s5196_s16 + $0x18] sm:$0xff] }
  0x15   : > { %v312_v21 = vpack.c.bf16 %v281_v20, %v280_v19  ;;  %4588 = vmatmul.msk.bf16.vlgmr.msra.gmra.mxu2 %vm378_vm1, %v5204_v17  ;;  %v332_v23 = vld [vmem:[%s5196_s16 + $0x21] sm:$0xff]  ;;  %v333_v34 = vld [vmem:[%s5196_s16 + $0x31] sm:$0xff]  ;;  %v334_v35 = vld [vmem:[%s5196_s16 + $0x39] sm:$0xff] }
  0x16   : > { %4604 = vmatmul.msk.bf16.vlgmr.msra.gmra.mxu3 %vm378_vm1, %v5206_v18  ;;  %v348_v25 = vld [vmem:[%s5196_s16 + $0xe1] sm:$0xff]  ;;  %v5224_v30 = vpack.c.bf16 %v332_v23, %v331_v22  ;;  %v349_v36 = vld [vmem:[%s5196_s16 + $0xf1] sm:$0xff]  ;;  %v350_v37 = vld [vmem:[%s5196_s16 + $0xf9] sm:$0xff]  ;;  %v5248_v42 = vpack.c.bf16 %v334_v35, %v333_v34 }
  0x17   : > { %4596 = vmatmul.msk.bf16.vlgmr.msra.gmra.mxu1 %vm378_vm1, %v312_v21  ;;  %v299_v27 = vld [vmem:[%s5196_s16 + $0xe0] sm:$0xff]  ;;  %v5226_v31 = vpack.c.bf16 %v348_v25, %v347_v24  ;;  %v300_v38 = vld [vmem:[%s5196_s16 + $0xf0] sm:$0xff]  ;;  %v301_v39 = vld [vmem:[%s5196_s16 + $0xf8] sm:$0xff]  ;;  %v5250_v43 = vpack.c.bf16 %v350_v37, %v349_v36 }
  0x18   : > { %v283_v29 = vld [vmem:[%s5196_s16 + $0x20] sm:$0xff]  ;;  %v5228_v32 = vpack.c.bf16 %v299_v27, %v298_v26  ;;  %v284_v40 = vld [vmem:[%s5196_s16 + $0x30] sm:$0xff]  ;;  %v285_v41 = vld [vmem:[%s5196_s16 + $0x38] sm:$0xff]  ;;  %v5252_v44 = vpack.c.bf16 %v301_v39, %v300_v38 }
  0x19   : > { %v5230_v33 = vpack.c.bf16 %v283_v29, %v282_v28  ;;  %v5254_v45 = vpack.c.bf16 %v285_v41, %v284_v40  ;;  %v335_v46 = vld [vmem:[%s5196_s16 + $0x49] sm:$0xff]  ;;  %v336_v47 = vld [vmem:[%s5196_s16 + $0x51] sm:$0xff]  ;;  %v337_v58 = vld [vmem:[%s5196_s16 + $0x61] sm:$0xff] }
  0x1a   : > { %v351_v48 = vld [vmem:[%s5196_s16 + $0x109] sm:$0xff]  ;;  %v352_v49 = vld [vmem:[%s5196_s16 + $0x111] sm:$0xff]  ;;  %v5272_v54 = vpack.c.bf16 %v336_v47, %v335_v46  ;;  %v353_v60 = vld [vmem:[%s5196_s16 + $0x121] sm:$0xff] }
  0x1b   : > { %v302_v50 = vld [vmem:[%s5196_s16 + $0x108] sm:$0xff]  ;;  %v303_v51 = vld [vmem:[%s5196_s16 + $0x110] sm:$0xff]  ;;  %v5274_v55 = vpack.c.bf16 %v352_v49, %v351_v48  ;;  %v304_v62 = vld [vmem:[%s5196_s16 + $0x120] sm:$0xff] }
  0x1c   : > { %v286_v52 = vld [vmem:[%s5196_s16 + $0x48] sm:$0xff]  ;;  %v287_v53 = vld [vmem:[%s5196_s16 + $0x50] sm:$0xff]  ;;  %v5276_v56 = vpack.c.bf16 %v303_v51, %v302_v50  ;;  %v288_v0 = vld [vmem:[%s5196_s16 + $0x60] sm:$0xff] }
  0x1d   : > { %v5278_v57 = vpack.c.bf16 %v287_v53, %v286_v52  ;;  %v338_v59 = vld [vmem:[%s5196_s16 + $0x69] sm:$0xff]  ;;  %v339_v6 = vld [vmem:[%s5196_s16 + $0x79] sm:$0xff]  ;;  %v340_v7 = vld [vmem:[%s5196_s16 + $0x81] sm:$0xff] }
  0x1e   : > { %v354_v61 = vld [vmem:[%s5196_s16 + $0x129] sm:$0xff]  ;;  %v5296_v2 = vpack.c.bf16 %v338_v59, %v337_v58  ;;  %v355_v8 = vld [vmem:[%s5196_s16 + $0x139] sm:$0xff]  ;;  %v356_v9 = vld [vmem:[%s5196_s16 + $0x141] sm:$0xff]  ;;  %v5320_v14 = vpack.c.bf16 %v340_v7, %v339_v6 }
  0x1f   : > { %v305_v63 = vld [vmem:[%s5196_s16 + $0x128] sm:$0xff]  ;;  %v5298_v3 = vpack.c.bf16 %v354_v61, %v353_v60  ;;  %v306_v10 = vld [vmem:[%s5196_s16 + $0x138] sm:$0xff]  ;;  %v307_v11 = vld [vmem:[%s5196_s16 + $0x140] sm:$0xff]  ;;  %v5322_v15 = vpack.c.bf16 %v356_v9, %v355_v8 }
  0x20   : > { %v289_v1 = vld [vmem:[%s5196_s16 + $0x68] sm:$0xff]  ;;  %v5300_v4 = vpack.c.bf16 %v305_v63, %v304_v62  ;;  %v290_v12 = vld [vmem:[%s5196_s16 + $0x78] sm:$0xff]  ;;  %v291_v13 = vld [vmem:[%s5196_s16 + $0x80] sm:$0xff]  ;;  %v5324_v16 = vpack.c.bf16 %v307_v11, %v306_v10 }
  0x21   : > { %v5302_v5 = vpack.c.bf16 %v289_v1, %v288_v0  ;;  %v5326_v19 = vpack.c.bf16 %v291_v13, %v290_v12  ;;  %v341_v20 = vld [vmem:[%s5196_s16 + $0x91] sm:$0xff]  ;;  %v342_v21 = vld [vmem:[%s5196_s16 + $0x99] sm:$0xff]  ;;  %v343_v46 = vld [vmem:[%s5196_s16 + $0xa9] sm:$0xff] }
  0x22   : > { %v357_v22 = vld [vmem:[%s5196_s16 + $0x151] sm:$0xff]  ;;  %v358_v23 = vld [vmem:[%s5196_s16 + $0x159] sm:$0xff]  ;;  %v5344_v28 = vpack.c.bf16 %v342_v21, %v341_v20  ;;  %v359_v48 = vld [vmem:[%s5196_s16 + $0x169] sm:$0xff] }
  0x23   : > { %v308_v24 = vld [vmem:[%s5196_s16 + $0x150] sm:$0xff]  ;;  %v309_v25 = vld [vmem:[%s5196_s16 + $0x158] sm:$0xff]  ;;  %v5346_v29 = vpack.c.bf16 %v358_v23, %v357_v22  ;;  %v2036_v41 = vld [vmem:[%s7079_s1 + $0x20] sm:$0xf] }
  0x24   : > { %4581 = vmatmul.msk.bf16.gmra.mxu0 %vm378_vm1, %v5224_v30  ;;  %v292_v26 = vld [vmem:[%s5196_s16 + $0x90] sm:$0xff]  ;;  %v293_v27 = vld [vmem:[%s5196_s16 + $0x98] sm:$0xff]  ;;  %v5348_v34 = vpack.c.bf16 %v309_v25, %v308_v24  ;;  %v2086_v50 = vsel %vm427_vm0, %v2036_v41, 0  ;;  %v310_v52 = vld [vmem:[%s5196_s16 + $0x168] sm:$0xff] }
  0x25   : > { %4589 = vmatmul.msk.bf16.gmra.mxu2 %vm378_vm1, %v5226_v31  ;;  %v5350_v35 = vpack.c.bf16 %v293_v27, %v292_v26  ;;  %v1594_v36 = vld [vmem:[%s7079_s1 + $0x18] sm:$0xf]  ;;  %v1815_v37 = vld [vmem:[%s7079_s1 + $0x1c] sm:$0xf]  ;;  %v1372_v40 = vld [vmem:[%s7079_s1 + $0x14] sm:$0xf]  ;;  %2095 = vmatpush.bf16.msra.mxu0 %v2086_v50 }
  0x26   : > { %4605 = vmatmul.msk.bf16.gmra.mxu3 %vm378_vm1, %v5228_v32  ;;  %v1644_v38 = vsel %vm427_vm0, %v1594_v36, 0  ;;  %v1865_v39 = vsel %vm427_vm0, %v1815_v37, 0  ;;  %v344_v47 = vld [vmem:[%s5196_s16 + $0xb1] sm:$0xff]  ;;  %v1422_v49 = vsel %vm427_vm0, %v1372_v40, 0  ;;  %v294_v58 = vld [vmem:[%s5196_s16 + $0xa8] sm:$0xff]  ;;  %v4724_v6 = vld [vmem:[%s5196_s16 + $0x1a] sm:$0xff] }
  0x27   : > { %4597 = vmatmul.msk.bf16.gmra.mxu1 %vm378_vm1, %v5230_v33  ;;  %1653 = vmatpush.bf16.msra.mxu2 %v1644_v38  ;;  %v360_v51 = vld [vmem:[%s5196_s16 + $0x171] sm:$0xff]  ;;  %v5384_v60 = vpack.c.bf16 %v344_v47, %v343_v46  ;;  %v660_v0 = vld [vmem:[%s5196_s16 + $0x2] sm:$0xff]  ;;  %v4727_v26 = vld [vmem:[%s5196_s16 + $0x3a] sm:$0xff] }
  0x28   : > { %1874 = vmatpush.bf16.msra.mxu3 %v1865_v39  ;;  %v311_v53 = vld [vmem:[%s5196_s16 + $0x170] sm:$0xff]  ;;  %1431 = vmatpush.bf16.msrb.mxu1 %v1422_v49  ;;  %v5386_v61 = vpack.c.bf16 %v360_v51, %v359_v48  ;;  %v4725_v7 = vld [vmem:[%s5196_s16 + $0x22] sm:$0xff] }
  0x29   : > { %v295_v59 = vld [vmem:[%s5196_s16 + $0xb0] sm:$0xff]  ;;  %v5388_v62 = vpack.c.bf16 %v311_v53, %v310_v52  ;;  %v1356_v10 = vpack.c.bf16 %v4725_v7, %v4724_v6 }
  0x2a   : > { %v5390_v63 = vpack.c.bf16 %v295_v59, %v294_v58  ;;  %v661_v1 = vld [vmem:[%s5196_s16 + $0xa] sm:$0xff]  ;;  %v4726_v25 = vld [vmem:[%s5196_s16 + $0x32] sm:$0xff] }
  0x2b   : > { %v692_v9 = vpack.c.bf16 %v661_v1, %v660_v0  ;;  %v4728_v50 = vld [vmem:[%s5196_s16 + $0x4a] sm:$0xff]  ;;  %v4729_v51 = vld [vmem:[%s5196_s16 + $0x52] sm:$0xff] }
  0x2c   : > { %v5439_v58 = vpack.c.bf16 %v4729_v51, %v4728_v50 }
  0x34   : > { %4582 = vmatmul.msk.bf16.gmra.mxu0 %vm378_vm1, %v5248_v42 }
  0x35   : > { %4590 = vmatmul.msk.bf16.gmra.mxu2 %vm378_vm1, %v5250_v43 }
  0x36   : > { %4606 = vmatmul.msk.bf16.gmra.mxu3 %vm378_vm1, %v5252_v44 }
  0x37   : > { %4598 = vmatmul.msk.bf16.gmra.mxu1 %vm378_vm1, %v5254_v45 }
  0x44   : > { %4583 = vmatmul.msk.bf16.gmra.mxu0 %vm378_vm1, %v5272_v54 }
  0x45   : > { %4591 = vmatmul.msk.bf16.gmra.mxu2 %vm378_vm1, %v5274_v55 }
  0x46   : > { %4607 = vmatmul.msk.bf16.gmra.mxu3 %vm378_vm1, %v5276_v56 }
  0x47   : > { %4599 = vmatmul.msk.bf16.gmra.mxu1 %vm378_vm1, %v5278_v57 }
  0x54   : > { %4584 = vmatmul.msk.bf16.gmra.mxu0 %vm378_vm1, %v5296_v2 }
  0x55   : > { %4592 = vmatmul.msk.bf16.gmra.mxu2 %vm378_vm1, %v5298_v3 }
  0x56   : > { %4608 = vmatmul.msk.bf16.gmra.mxu3 %vm378_vm1, %v5300_v4 }
  0x57   : > { %4600 = vmatmul.msk.bf16.gmra.mxu1 %vm378_vm1, %v5302_v5 }
  0x64   : > { %4585 = vmatmul.msk.bf16.gmra.mxu0 %vm378_vm1, %v5320_v14 }
  0x65   : > { %4593 = vmatmul.msk.bf16.gmra.mxu2 %vm378_vm1, %v5322_v15 }
  0x66   : > { %4609 = vmatmul.msk.bf16.gmra.mxu3 %vm378_vm1, %v5324_v16 }
  0x67   : > { %4601 = vmatmul.msk.bf16.gmra.mxu1 %vm378_vm1, %v5326_v19 }
  0x74   : > { %4586 = vmatmul.msk.bf16.gmra.mxu0 %vm378_vm1, %v5344_v28 }
  0x75   : > { %4594 = vmatmul.msk.bf16.gmra.mxu2 %vm378_vm1, %v5346_v29 }
  0x76   : > { %4610 = vmatmul.msk.bf16.gmra.mxu3 %vm378_vm1, %v5348_v34 }
  0x77   : > { %4602 = vmatmul.msk.bf16.gmra.mxu1 %vm378_vm1, %v5350_v35 }
  0x84   : > { %4587 = vmatmul.msk.bf16.gmra.mxu0 %vm378_vm1, %v5384_v60 }
  0x85   : > { %4595 = vmatmul.msk.bf16.gmra.mxu2 %vm378_vm1, %v5386_v61 }
  0x86   : > { %4611 = vmatmul.msk.bf16.gmra.mxu3 %vm378_vm1, %v5388_v62 }
  0x87   : > { %4603 = vmatmul.msk.bf16.gmra.mxu1 %vm378_vm1, %v5390_v63 }
  0x91   : > { %v440_v8 = vpop.f32.mrf.mxu0 }
  0x94   : > { %v580_v11 = vpop.f32.mrf.mxu1  ;;  %4708 = vmatmul.msk.bf16.vlgmr.msrb.gmra.mxu0 %vm378_vm1, %v5224_v30 }
  0x95   : > { %v5404_v12 = vadd.f32 %v580_v11, %v440_v8  ;;  %4612 = vmatmul.msk.bf16.vlgmr.msrb.gmra.mxu2 %vm378_vm1, %v692_v9  ;;  %v4730_v11 = vld [vmem:[%s5196_s16 + $0x62] sm:$0xff] }
  0x96   : > { %4660 = vmatmul.msk.bf16.vlgmr.msrb.gmra.mxu3 %vm378_vm1, %v5230_v33  ;;  %v5420_v33 = vpack.c.bf16 %v4727_v26, %v4726_v25 }
  0x97   : > { %4756 = vmatmul.msk.bf16.vlgmr.msrb.gmra.mxu1 %vm378_vm1, %v1356_v10 }
  0x98   : > { %v480_v13 = vpop.f32.mrf.mxu2 }
  0x99   : > { %v620_v20 = vpop.f32.mrf.mxu3  ;;  %v442_v22 = vpop.f32.mrf.mxu0 }
  0x9a   : > { %v5412_v21 = vadd.f32 %v620_v20, %v480_v13  ;;  %v4731_v13 = vld [vmem:[%s5196_s16 + $0x6a] sm:$0xff] }
  0x9c   : > { %v582_v23 = vpop.f32.mrf.mxu1 }
  0x9d   : > { %v5414_v24 = vadd.f32 %v582_v23, %v442_v22  ;;  %v5459_v23 = vpack.c.bf16 %v4731_v13, %v4730_v11  ;;  %v4734_v13 = vld [vmem:[%s5196_s16 + $0x92] sm:$0xff] }
  0xa0   : > { %v482_v27 = vpop.f32.mrf.mxu2 }
  0xa1   : > { %v622_v36 = vpop.f32.mrf.mxu3  ;;  %v445_v37 = vpop.f32.mrf.mxu0 }
  0xa2   : > { %v5418_v30 = vadd.f32 %v622_v36, %v482_v27 }
  0xa4   : > { %v585_v38 = vpop.f32.mrf.mxu1  ;;  %4709 = vmatmul.msk.bf16.gmra.mxu0 %vm378_vm1, %v5248_v42 }
  0xa5   : > { %v5422_v39 = vadd.f32 %v585_v38, %v445_v37  ;;  %4613 = vmatmul.msk.bf16.gmra.mxu2 %vm378_vm1, %v1356_v10 }
  0xa6   : > { %4661 = vmatmul.msk.bf16.gmra.mxu3 %vm378_vm1, %v5254_v45 }
  0xa7   : > { %4757 = vmatmul.msk.bf16.gmra.mxu1 %vm378_vm1, %v5420_v33 }
  0xa8   : > { %v485_v40 = vpop.f32.mrf.mxu2 }
  0xa9   : > { %v625_v41 = vpop.f32.mrf.mxu3  ;;  %v447_v47 = vpop.f32.mrf.mxu0 }
  0xaa   : > { %v5431_v46 = vadd.f32 %v625_v41, %v485_v40 }
  0xac   : > { %v587_v48 = vpop.f32.mrf.mxu1 }
  0xad   : > { %v5433_v49 = vadd.f32 %v587_v48, %v447_v47  ;;  %v4732_v47 = vld [vmem:[%s5196_s16 + $0x7a] sm:$0xff]  ;;  %v4733_v48 = vld [vmem:[%s5196_s16 + $0x82] sm:$0xff] }
  0xb0   : > { %v487_v52 = vpop.f32.mrf.mxu2 }
  0xb1   : > { %v627_v42 = vpop.f32.mrf.mxu3  ;;  %v450_v45 = vpop.f32.mrf.mxu0 }
  0xb2   : > { %v5437_v53 = vadd.f32 %v627_v42, %v487_v52  ;;  %v5479_v52 = vpack.c.bf16 %v4733_v48, %v4732_v47 }
  0xb4   : > { %v590_v59 = vpop.f32.mrf.mxu1  ;;  %4710 = vmatmul.msk.bf16.gmra.mxu0 %vm378_vm1, %v5272_v54 }
  0xb5   : > { %v5441_v0 = vadd.f32 %v590_v59, %v450_v45  ;;  %4614 = vmatmul.msk.bf16.gmra.mxu2 %vm378_vm1, %v5420_v33 }
  0xb6   : > { %4662 = vmatmul.msk.bf16.gmra.mxu3 %vm378_vm1, %v5278_v57 }
  0xb7   : > { %4758 = vmatmul.msk.bf16.gmra.mxu1 %vm378_vm1, %v5439_v58 }
  0xb8   : > { %v490_v1 = vpop.f32.mrf.mxu2 }
  0xb9   : > { %v630_v6 = vpop.f32.mrf.mxu3  ;;  %v452_v8 = vpop.f32.mrf.mxu0 }
  0xba   : > { %v5451_v7 = vadd.f32 %v630_v6, %v490_v1 }
  0xbc   : > { %v592_v9 = vpop.f32.mrf.mxu1 }
  0xbd   : > { %v5453_v10 = vadd.f32 %v592_v9, %v452_v8 }
  0xc0   : > { %v492_v54 = vpop.f32.mrf.mxu2 }
  0xc1   : > { %v632_v20 = vpop.f32.mrf.mxu3  ;;  %v455_v57 = vpop.f32.mrf.mxu0 }
  0xc2   : > { %v5457_v22 = vadd.f32 %v632_v20, %v492_v54  ;;  %v4735_v54 = vld [vmem:[%s5196_s16 + $0x9a] sm:$0xff] }
  0xc4   : > { %v595_v25 = vpop.f32.mrf.mxu1  ;;  %4711 = vmatmul.msk.bf16.gmra.mxu0 %vm378_vm1, %v5296_v2 }
  0xc5   : > { %v5461_v26 = vadd.f32 %v595_v25, %v455_v57  ;;  %4615 = vmatmul.msk.bf16.gmra.mxu2 %vm378_vm1, %v5439_v58  ;;  %v5499_v25 = vpack.c.bf16 %v4735_v54, %v4734_v13 }
  0xc6   : > { %4663 = vmatmul.msk.bf16.gmra.mxu3 %vm378_vm1, %v5302_v5 }
  0xc7   : > { %4759 = vmatmul.msk.bf16.gmra.mxu1 %vm378_vm1, %v5459_v23 }
  0xc8   : > { %v495_v27 = vpop.f32.mrf.mxu2 }
  0xc9   : > { %v635_v36 = vpop.f32.mrf.mxu3  ;;  %v457_v38 = vpop.f32.mrf.mxu0 }
  0xca   : > { %v5471_v37 = vadd.f32 %v635_v36, %v495_v27 }
  0xcc   : > { %v597_v40 = vpop.f32.mrf.mxu1 }
  0xcd   : > { %v5473_v41 = vadd.f32 %v597_v40, %v457_v38 }
  0xd0   : > { %v497_v2 = vpop.f32.mrf.mxu2 }
  0xd1   : > { %v637_v50 = vpop.f32.mrf.mxu3  ;;  %v460_v5 = vpop.f32.mrf.mxu0 }
  0xd2   : > { %v5477_v51 = vadd.f32 %v637_v50, %v497_v2 }
  0xd4   : > { %v600_v42 = vpop.f32.mrf.mxu1  ;;  %4712 = vmatmul.msk.bf16.gmra.mxu0 %vm378_vm1, %v5320_v14 }
  0xd5   : > { %v5481_v45 = vadd.f32 %v600_v42, %v460_v5  ;;  %4616 = vmatmul.msk.bf16.gmra.mxu2 %vm378_vm1, %v5459_v23  ;;  %v4736_v5 = vld [vmem:[%s5196_s16 + $0xaa] sm:$0xff]  ;;  %v4737_v42 = vld [vmem:[%s5196_s16 + $0xb2] sm:$0xff] }
  0xd6   : > { %4664 = vmatmul.msk.bf16.gmra.mxu3 %vm378_vm1, %v5326_v19 }
  0xd7   : > { %4760 = vmatmul.msk.bf16.gmra.mxu1 %vm378_vm1, %v5479_v52 }
  0xd8   : > { %v500_v59 = vpop.f32.mrf.mxu2 }
  0xd9   : > { %v640_v1 = vpop.f32.mrf.mxu3  ;;  %v462_v8 = vpop.f32.mrf.mxu0 }
  0xda   : > { %v5491_v6 = vadd.f32 %v640_v1, %v500_v59 }
  0xdc   : > { %v602_v9 = vpop.f32.mrf.mxu1 }
  0xdd   : > { %v5493_v11 = vadd.f32 %v602_v9, %v462_v8  ;;  %v5519_v8 = vpack.c.bf16 %v4737_v42, %v4736_v5 }
  0xe0   : > { %v502_v14 = vpop.f32.mrf.mxu2 }
  0xe1   : > { %v642_v20 = vpop.f32.mrf.mxu3  ;;  %v465_v19 = vpop.f32.mrf.mxu0 }
  0xe2   : > { %v5497_v57 = vadd.f32 %v642_v20, %v502_v14 }
  0xe4   : > { %v605_v27 = vpop.f32.mrf.mxu1  ;;  %4713 = vmatmul.msk.bf16.gmra.mxu0 %vm378_vm1, %v5344_v28 }
  0xe5   : > { %v5501_v36 = vadd.f32 %v605_v27, %v465_v19  ;;  %4617 = vmatmul.msk.bf16.gmra.mxu2 %vm378_vm1, %v5479_v52 }
  0xe6   : > { %4665 = vmatmul.msk.bf16.gmra.mxu3 %vm378_vm1, %v5350_v35 }
  0xe7   : > { %4761 = vmatmul.msk.bf16.gmra.mxu1 %vm378_vm1, %v5499_v25 }
  0xe8   : > { %v505_v38 = vpop.f32.mrf.mxu2 }
  0xe9   : > { %v645_v40 = vpop.f32.mrf.mxu3  ;;  %v467_v48 = vpop.f32.mrf.mxu0 }
  0xea   : > { %v5511_v47 = vadd.f32 %v645_v40, %v505_v38  ;;  %v4738_v40 = vld [vmem:[%s5196_s16 + $0xc2] sm:$0xff] }
  0xec   : > { %7107 = vst [vmem:[#allocation3_spill] sm:$0xff] %v5511_v47  ;;  %v607_v2 = vpop.f32.mrf.mxu1 }
  0xed   : > { %v5513_v50 = vadd.f32 %v607_v2, %v467_v48  ;;  %v4739_v48 = vld [vmem:[%s5196_s16 + $0xca] sm:$0xff] }
  0xf0   : > { %v507_v28 = vpop.f32.mrf.mxu2 }
  0xf1   : > { %v647_v59 = vpop.f32.mrf.mxu3  ;;  %v470_v35 = vpop.f32.mrf.mxu0 }
  0xf2   : > { %v5517_v1 = vadd.f32 %v647_v59, %v507_v28  ;;  %v5539_v28 = vpack.c.bf16 %v4739_v48, %v4738_v40  ;;  %v4740_v48 = vld [vmem:[%s5196_s16 + $0xda] sm:$0xff] }
  0xf4   : > { %7108 = vst [vmem:[#allocation4_spill] sm:$0xff] %v5517_v1  ;;  %v610_v9 = vpop.f32.mrf.mxu1  ;;  %4714 = vmatmul.msk.bf16.gmra.mxu0 %vm378_vm1, %v5384_v60 }
  0xf5   : > { %v5521_v13 = vadd.f32 %v610_v9, %v470_v35  ;;  %4618 = vmatmul.msk.bf16.gmra.mxu2 %vm378_vm1, %v5499_v25  ;;  %7111 = vst [vmem:[#allocation7_spill] sm:$0xff] %v5539_v28  ;;  %v2488_v35 = vld [vmem:[%s7082_s4 + $0x4] sm:$0xf] }
  0xf6   : > { %4666 = vmatmul.msk.bf16.gmra.mxu3 %vm378_vm1, %v5390_v63 }
  0xf7   : > { %4762 = vmatmul.msk.bf16.gmra.mxu1 %vm378_vm1, %v5519_v8 }
  0xf8   : > { %v510_v54 = vpop.f32.mrf.mxu2 }
  0xf9   : > { %v650_v14 = vpop.f32.mrf.mxu3  ;;  %v472_v19 = vpop.f32.mrf.mxu0 }
  0xfa   : > { %v5531_v20 = vadd.f32 %v650_v14, %v510_v54  ;;  %v2538_v14 = vsel %vm427_vm0, %v2488_v35, 0 }
  0xfb   : > { %2547 = vmatpush.bf16.msra.mxu1 %v2538_v14 }
  0xfc   : > { %7109 = vst [vmem:[#allocation5_spill] sm:$0xff] %v5531_v20  ;;  %v612_v27 = vpop.f32.mrf.mxu1 }
  0xfd   : > { %v5533_v38 = vadd.f32 %v612_v27, %v472_v19 }
 0x100   : > { %v512_v60 = vpop.f32.mrf.mxu2 }
 0x101   : > { %v652_v2 = vpop.f32.mrf.mxu3  ;;  %v475_v42 = vpop.f32.mrf.mxu0 }
 0x102   : > { %v5537_v5 = vadd.f32 %v652_v2, %v512_v60 }
 0x104   : > { %7110 = vst [vmem:[#allocation6_spill] sm:$0xff] %v5537_v5  ;;  %v615_v63 = vpop.f32.mrf.mxu1  ;;  %4715 = vmatmul.msk.bf16.gmra.mxu0 %vm378_vm1, %v5204_v17 }
 0x105   : > { %v5541_v59 = vadd.f32 %v615_v63, %v475_v42  ;;  %4619 = vmatmul.msk.bf16.gmra.mxu2 %vm378_vm1, %v5519_v8 }
 0x106   : > { %4667 = vmatmul.msk.bf16.gmra.mxu3 %vm378_vm1, %v5206_v18  ;;  %v4741_v18 = vld [vmem:[%s5196_s16 + $0xe2] sm:$0xff] }
 0x107   : > { %4763 = vmatmul.msk.bf16.gmra.mxu1 %vm378_vm1, %v5539_v28  ;;  %v5563_v5 = vpack.c.bf16 %v4741_v18, %v4740_v48 }
 0x108   : > { %v515_v9 = vpop.f32.mrf.mxu2 }
 0x109   : > { %v655_v54 = vpop.f32.mrf.mxu3  ;;  %v477_v17 = vpop.f32.mrf.mxu0 }
 0x10a   : > { %v5555_v19 = vadd.f32 %v655_v54, %v515_v9 }
 0x10c   : > { %7112 = vst [vmem:[#allocation8_spill] sm:$0xff] %v5555_v19  ;;  %v617_v27 = vpop.f32.mrf.mxu1 }
 0x10d   : > { %v5557_v40 = vadd.f32 %v617_v27, %v477_v17 }
 0x110   : > { %v517_v60 = vpop.f32.mrf.mxu2 }
 0x111   : > { %v657_v2 = vpop.f32.mrf.mxu3  ;;  %v1212_v63 = vpop.f32.mrf.mxu0 }
 0x112   : > { %v5561_v42 = vadd.f32 %v657_v2, %v517_v60  ;;  %v4743_v60 = vld [vmem:[%s5196_s16 + $0xfa] sm:$0xff] }
 0x114   : > { %7113 = vst [vmem:[#allocation9_spill] sm:$0xff] %v5561_v42  ;;  %v1433_v20 = vpop.f32.mrf.mxu1  ;;  %4716 = vmatmul.msk.bf16.gmra.mxu0 %vm378_vm1, %v5226_v31  ;;  %v4742_v31 = vld [vmem:[%s5196_s16 + $0xf2] sm:$0xff] }
 0x115   : > { %4620 = vmatmul.msk.bf16.gmra.mxu2 %vm378_vm1, %v5539_v28  ;;  %v5579_v28 = vpack.c.bf16 %v4743_v60, %v4742_v31 }
 0x116   : > { %4668 = vmatmul.msk.bf16.gmra.mxu3 %vm378_vm1, %v5228_v32 }
 0x117   : > { %4764 = vmatmul.msk.bf16.gmra.mxu1 %vm378_vm1, %v5563_v5 }
 0x118   : > { %v769_v35 = vpop.f32.mrf.mxu2 }
 0x119   : > { %v991_v9 = vpop.f32.mrf.mxu3  ;;  %v849_v54 = vadd.f32 %v769_v35, %v5404_v12  ;;  %v1214_v14 = vpop.f32.mrf.mxu0 }
 0x11b   : > { %v1071_v17 = vadd.f32 %v991_v9, %v849_v54 }
 0x11c   : > { %v1435_v27 = vpop.f32.mrf.mxu1 }
 0x11d   : > { %v1292_v48 = vadd.f32 %v1212_v63, %v1071_v17  ;;  %v4744_v17 = vld [vmem:[%s5196_s16 + $0x10a] sm:$0xff] }
 0x11f   : > { %v5574_v18 = vadd.f32 %v1433_v20, %v1292_v48  ;;  %v4745_v48 = vld [vmem:[%s5196_s16 + $0x112] sm:$0xff] }
 0x120   : > { %v771_v2 = vpop.f32.mrf.mxu2  ;;  %v5597_v60 = vpack.c.bf16 %v4745_v48, %v4744_v17  ;;  %v4747_v17 = vld [vmem:[%s5196_s16 + $0x12a] sm:$0xff] }
 0x121   : > { %v993_v42 = vpop.f32.mrf.mxu3  ;;  %v850_v19 = vadd.f32 %v771_v2, %v5414_v24  ;;  %v1217_v32 = vpop.f32.mrf.mxu0 }
 0x123   : > { %v1072_v1 = vadd.f32 %v993_v42, %v850_v19 }
 0x124   : > { %v1438_v47 = vpop.f32.mrf.mxu1  ;;  %4717 = vmatmul.msk.bf16.gmra.mxu0 %vm378_vm1, %v5250_v43 }
 0x125   : > { %4621 = vmatmul.msk.bf16.gmra.mxu2 %vm378_vm1, %v5563_v5  ;;  %v1293_v12 = vadd.f32 %v1214_v14, %v1072_v1 }
 0x126   : > { %4669 = vmatmul.msk.bf16.gmra.mxu3 %vm378_vm1, %v5252_v44 }
 0x127   : > { %4765 = vmatmul.msk.bf16.gmra.mxu1 %vm378_vm1, %v5579_v28  ;;  %v5589_v24 = vadd.f32 %v1435_v27, %v1293_v12 }
 0x128   : > { %v774_v20 = vpop.f32.mrf.mxu2 }
 0x129   : > { %v996_v19 = vpop.f32.mrf.mxu3  ;;  %v851_v42 = vadd.f32 %v774_v20, %v5422_v39  ;;  %v1219_v63 = vpop.f32.mrf.mxu0 }
 0x12b   : > { %v1073_v35 = vadd.f32 %v996_v19, %v851_v42 }
 0x12c   : > { %v1440_v9 = vpop.f32.mrf.mxu1 }
 0x12d   : > { %v1294_v43 = vadd.f32 %v1217_v32, %v1073_v35 }
 0x12f   : > { %v5592_v54 = vadd.f32 %v1438_v47, %v1294_v43  ;;  %v4746_v43 = vld [vmem:[%s5196_s16 + $0x122] sm:$0xff] }
 0x130   : > { %v776_v31 = vpop.f32.mrf.mxu2 }
 0x131   : > { %v998_v44 = vpop.f32.mrf.mxu3  ;;  %v852_v1 = vadd.f32 %v776_v31, %v5433_v49  ;;  %v1222_v14 = vpop.f32.mrf.mxu0 }
 0x133   : > { %v1074_v27 = vadd.f32 %v998_v44, %v852_v1  ;;  %v5615_v44 = vpack.c.bf16 %v4747_v17, %v4746_v43 }
 0x134   : > { %v1443_v2 = vpop.f32.mrf.mxu1  ;;  %4718 = vmatmul.msk.bf16.gmra.mxu0 %vm378_vm1, %v5274_v55 }
 0x135   : > { %4622 = vmatmul.msk.bf16.gmra.mxu2 %vm378_vm1, %v5579_v28  ;;  %v1295_v39 = vadd.f32 %v1219_v63, %v1074_v27 }
 0x136   : > { %4670 = vmatmul.msk.bf16.gmra.mxu3 %vm378_vm1, %v5276_v56 }
 0x137   : > { %4766 = vmatmul.msk.bf16.gmra.mxu1 %vm378_vm1, %v5597_v60  ;;  %v5607_v49 = vadd.f32 %v1440_v9, %v1295_v39 }
 0x138   : > { %v779_v47 = vpop.f32.mrf.mxu2 }
 0x139   : > { %v1001_v32 = vpop.f32.mrf.mxu3  ;;  %v853_v12 = vadd.f32 %v779_v47, %v5441_v0  ;;  %v1224_v20 = vpop.f32.mrf.mxu0 }
 0x13b   : > { %v1075_v19 = vadd.f32 %v1001_v32, %v853_v12 }
 0x13c   : > { %v1445_v42 = vpop.f32.mrf.mxu1 }
 0x13d   : > { %v1296_v55 = vadd.f32 %v1222_v14, %v1075_v19  ;;  %v4748_v19 = vld [vmem:[%s5196_s16 + $0x13a] sm:$0xff] }
 0x13f   : > { %v5610_v35 = vadd.f32 %v1443_v2, %v1296_v55  ;;  %v4749_v55 = vld [vmem:[%s5196_s16 + $0x142] sm:$0xff] }
 0x140   : > { %v781_v48 = vpop.f32.mrf.mxu2 }
 0x141   : > { %v1003_v56 = vpop.f32.mrf.mxu3  ;;  %v854_v63 = vadd.f32 %v781_v48, %v5453_v10  ;;  %v1227_v31 = vpop.f32.mrf.mxu0  ;;  %v5633_v48 = vpack.c.bf16 %v4749_v55, %v4748_v19 }
 0x143   : > { %v1076_v9 = vadd.f32 %v1003_v56, %v854_v63 }
 0x144   : > { %v1448_v1 = vpop.f32.mrf.mxu1  ;;  %4719 = vmatmul.msk.bf16.gmra.mxu0 %vm378_vm1, %v5298_v3 }
 0x145   : > { %4623 = vmatmul.msk.bf16.gmra.mxu2 %vm378_vm1, %v5597_v60  ;;  %v1297_v0 = vadd.f32 %v1224_v20, %v1076_v9 }
 0x146   : > { %4671 = vmatmul.msk.bf16.gmra.mxu3 %vm378_vm1, %v5300_v4 }
 0x147   : > { %4767 = vmatmul.msk.bf16.gmra.mxu1 %vm378_vm1, %v5615_v44  ;;  %v5625_v10 = vadd.f32 %v1445_v42, %v1297_v0 }
 0x148   : > { %v784_v14 = vpop.f32.mrf.mxu2 }
 0x149   : > { %v1006_v27 = vpop.f32.mrf.mxu3  ;;  %v855_v2 = vadd.f32 %v784_v14, %v5461_v26  ;;  %v1229_v39 = vpop.f32.mrf.mxu0 }
 0x14b   : > { %v1077_v47 = vadd.f32 %v1006_v27, %v855_v2  ;;  %v4750_v2 = vld [vmem:[%s5196_s16 + $0x152] sm:$0xff] }
 0x14c   : > { %v1450_v32 = vpop.f32.mrf.mxu1 }
 0x14d   : > { %v1298_v3 = vadd.f32 %v1227_v31, %v1077_v47  ;;  %v4751_v47 = vld [vmem:[%s5196_s16 + $0x15a] sm:$0xff] }
 0x14f   : > { %v5628_v12 = vadd.f32 %v1448_v1, %v1298_v3 }
 0x150   : > { %v786_v43 = vpop.f32.mrf.mxu2 }
 0x151   : > { %v1008_v4 = vpop.f32.mrf.mxu3  ;;  %v856_v20 = vadd.f32 %v786_v43, %v5473_v41  ;;  %v1232_v17 = vpop.f32.mrf.mxu0 }
 0x153   : > { %v1078_v42 = vadd.f32 %v1008_v4, %v856_v20 }
 0x154   : > { %v1453_v56 = vpop.f32.mrf.mxu1  ;;  %4720 = vmatmul.msk.bf16.gmra.mxu0 %vm378_vm1, %v5322_v15 }
 0x155   : > { %4624 = vmatmul.msk.bf16.gmra.mxu2 %vm378_vm1, %v5615_v44  ;;  %v1299_v26 = vadd.f32 %v1229_v39, %v1078_v42 }
 0x156   : > { %4672 = vmatmul.msk.bf16.gmra.mxu3 %vm378_vm1, %v5324_v16 }
 0x157   : > { %4768 = vmatmul.msk.bf16.gmra.mxu1 %vm378_vm1, %v5633_v48  ;;  %v5643_v41 = vadd.f32 %v1450_v32, %v1299_v26  ;;  %v5653_v32 = vpack.c.bf16 %v4751_v47, %v4750_v2 }
 0x158   : > { %v789_v63 = vpop.f32.mrf.mxu2 }
 0x159   : > { %v1011_v31 = vpop.f32.mrf.mxu3  ;;  %v857_v9 = vadd.f32 %v789_v63, %v5481_v45  ;;  %v1234_v1 = vpop.f32.mrf.mxu0  ;;  %v4752_v63 = vld [vmem:[%s5196_s16 + $0x16a] sm:$0xff] }
 0x15b   : > { %v1079_v0 = vadd.f32 %v1011_v31, %v857_v9  ;;  %v4753_v31 = vld [vmem:[%s5196_s16 + $0x172] sm:$0xff] }
 0x15c   : > { %v5646_v14 = vpop.f32.mrf.mxu1 }
 0x15d   : > { %v1300_v15 = vadd.f32 %v1232_v17, %v1079_v0 }
 0x15f   : > { %v5648_v27 = vadd.f32 %v1453_v56, %v1300_v15  ;;  %v5673_v15 = vpack.c.bf16 %v4753_v31, %v4752_v63 }
 0x160   : > { %v791_v16 = vpop.f32.mrf.mxu2 }
 0x161   : > { %v1013_v39 = vpop.f32.mrf.mxu3  ;;  %v858_v3 = vadd.f32 %v791_v16, %v5493_v11  ;;  %v1237_v19 = vpop.f32.mrf.mxu0 }
 0x163   : > { %v1080_v55 = vadd.f32 %v1013_v39, %v858_v3 }
 0x164   : > { %v1458_v45 = vpop.f32.mrf.mxu1  ;;  %4721 = vmatmul.msk.bf16.gmra.mxu0 %vm378_vm1, %v5346_v29 }
 0x165   : > { %4625 = vmatmul.msk.bf16.gmra.mxu2 %vm378_vm1, %v5633_v48  ;;  %v5661_v43 = vadd.f32 %v1234_v1, %v1080_v55 }
 0x166   : > { %4673 = vmatmul.msk.bf16.gmra.mxu3 %vm378_vm1, %v5348_v34 }
 0x167   : > { %4769 = vmatmul.msk.bf16.gmra.mxu1 %vm378_vm1, %v5653_v32 }
 0x168   : > { %v794_v11 = vpop.f32.mrf.mxu2 }
 0x169   : > { %v1016_v4 = vpop.f32.mrf.mxu3  ;;  %v859_v20 = vadd.f32 %v794_v11, %v5501_v36  ;;  %v1239_v17 = vpop.f32.mrf.mxu0  ;;  %v4707_v11 = vld [vmem:[%s5196_s16 + $0x189] sm:$0xff] }
 0x16b   : > { %v1081_v42 = vadd.f32 %v1016_v4, %v859_v20  ;;  %v4658_v4 = vld [vmem:[%s5196_s16 + $0x180] sm:$0xff]  ;;  %v4659_v20 = vld [vmem:[%s5196_s16 + $0x188] sm:$0xff] }
 0x16c   : > { %v5666_v56 = vpop.f32.mrf.mxu1 }
 0x16d   : > { %v1302_v29 = vadd.f32 %v1237_v19, %v1081_v42  ;;  %v4755_v42 = vld [vmem:[%s5196_s16 + $0x18a] sm:$0xff] }
 0x16f   : > { %v5668_v26 = vadd.f32 %v1458_v45, %v1302_v29  ;;  %v4706_v45 = vld [vmem:[%s5196_s16 + $0x181] sm:$0xff] }
 0x170   : > { %v796_v9 = vpop.f32.mrf.mxu2  ;;  %v5696_v31 = vpack.c.bf16 %v4707_v11, %v4706_v45  ;;  %v4772_v11 = vld [vmem:[%s5196_s16 + $0x30] sm:$0xff] }
 0x171   : > { %v1018_v34 = vpop.f32.mrf.mxu3  ;;  %v860_v1 = vadd.f32 %v796_v9, %v5513_v50  ;;  %v1242_v0 = vpop.f32.mrf.mxu0 }
 0x173   : > { %v1082_v2 = vadd.f32 %v1018_v34, %v860_v1  ;;  %v5699_v34 = vpack.c.bf16 %v4659_v20, %v4658_v4  ;;  %v4773_v4 = vld [vmem:[%s5196_s16 + $0x38] sm:$0xff] }
 0x174   : > { %v1463_v36 = vpop.f32.mrf.mxu1  ;;  %4722 = vmatmul.msk.bf16.gmra.mxu0 %vm378_vm1, %v5386_v61  ;;  %v4820_v20 = vld [vmem:[%s5196_s16 + $0x31] sm:$0xff] }
 0x175   : > { %4626 = vmatmul.msk.bf16.gmra.mxu2 %vm378_vm1, %v5653_v32  ;;  %v5681_v50 = vadd.f32 %v1239_v17, %v1082_v2  ;;  %v4754_v17 = vld [vmem:[%s5196_s16 + $0x182] sm:$0xff] }
 0x176   : > { %4674 = vmatmul.msk.bf16.gmra.mxu3 %vm378_vm1, %v5388_v62  ;;  %v5701_v1 = vpack.c.bf16 %v4755_v42, %v4754_v17  ;;  %v4821_v17 = vld [vmem:[%s5196_s16 + $0x39] sm:$0xff] }
 0x177   : > { %4770 = vmatmul.msk.bf16.gmra.mxu1 %vm378_vm1, %v5673_v15 }
 0x178   : > { %v799_v47 = vpop.f32.mrf.mxu2 }
 0x179   : > { %v1021_v16 = vpop.f32.mrf.mxu3  ;;  %v861_v39 = vadd.f32 %v799_v47, %v5521_v13  ;;  %v1244_v3 = vpop.f32.mrf.mxu0 }
 0x17b   : > { %v1083_v19 = vadd.f32 %v1021_v16, %v861_v39 }
 0x17c   : > { %v5686_v61 = vpop.f32.mrf.mxu1 }
 0x17d   : > { %v1304_v55 = vadd.f32 %v1242_v0, %v1083_v19 }
 0x17f   : > { %v5692_v62 = vadd.f32 %v1463_v36, %v1304_v55 }
 0x180   : > { %v801_v29 = vpop.f32.mrf.mxu2 }
 0x181   : > { %v1023_v63 = vpop.f32.mrf.mxu3  ;;  %v862_v9 = vadd.f32 %v801_v29, %v5533_v38  ;;  %v1247_v13 = vpop.f32.mrf.mxu0 }
 0x183   : > { %v1084_v0 = vadd.f32 %v1023_v63, %v862_v9 }
 0x184   : > { %v1468_v2 = vpop.f32.mrf.mxu1  ;;  %4723 = vmatmul.msk.bf16.gmra.mxu0 %vm378_vm1, %v5696_v31 }
 0x185   : > { %4627 = vmatmul.msk.bf16.gmra.mxu2 %vm378_vm1, %v5673_v15  ;;  %v5709_v38 = vadd.f32 %v1244_v3, %v1084_v0  ;;  %v1578_v0 = vpack.c.bf16 %v4773_v4, %v4772_v11 }
 0x186   : > { %4675 = vmatmul.msk.bf16.gmra.mxu3 %vm378_vm1, %v5699_v34 }
 0x187   : > { %4771 = vmatmul.msk.bf16.gmra.mxu1 %vm378_vm1, %v5701_v1 }
 0x188   : > { %v804_v36 = vpop.f32.mrf.mxu2 }
 0x189   : > { %v1026_v47 = vpop.f32.mrf.mxu3  ;;  %v863_v16 = vadd.f32 %v804_v36, %v5541_v59  ;;  %v1249_v39 = vpop.f32.mrf.mxu0  ;;  %v1799_v59 = vpack.c.bf16 %v4821_v17, %v4820_v20  ;;  %v4774_v20 = vld [vmem:[%s5196_s16 + $0x48] sm:$0xff]  ;;  %v4775_v17 = vld [vmem:[%s5196_s16 + $0x50] sm:$0xff] }
 0x18b   : > { %v1085_v19 = vadd.f32 %v1026_v47, %v863_v16 }
 0x18c   : > { %v5714_v55 = vpop.f32.mrf.mxu1 }
 0x18d   : > { %v1306_v45 = vadd.f32 %v1247_v13, %v1085_v19 }
 0x18f   : > { %v5720_v42 = vadd.f32 %v1468_v2, %v1306_v45 }
 0x190   : > { %v806_v3 = vpop.f32.mrf.mxu2 }
 0x191   : > { %v1028_v29 = vpop.f32.mrf.mxu3  ;;  %v864_v63 = vadd.f32 %v806_v3, %v5557_v40  ;;  %v1252_v9 = vpop.f32.mrf.mxu0  ;;  %v4822_v3 = vld [vmem:[%s5196_s16 + $0x49] sm:$0xff] }
 0x193   : > { %v1086_v36 = vadd.f32 %v1028_v29, %v864_v63  ;;  %v4823_v29 = vld [vmem:[%s5196_s16 + $0x51] sm:$0xff] }
 0x194   : > { %v1473_v47 = vpop.f32.mrf.mxu1  ;;  %4900 = vmatmul.msk.bf16.vlgmr.msra.gmra.mxu0 %vm378_vm1, %v5420_v33 }
 0x195   : > { %4804 = vmatmul.msk.bf16.vlgmr.msra.gmra.mxu2 %vm378_vm1, %v1578_v0  ;;  %v5727_v13 = vadd.f32 %v1249_v39, %v1086_v36  ;;  %v1579_v36 = vpack.c.bf16 %v4775_v17, %v4774_v20 }
 0x196   : > { %4852 = vmatmul.msk.bf16.vlgmr.msra.gmra.mxu3 %vm378_vm1, %v1799_v59 }
 0x198   : > { %v809_v2 = vpop.f32.mrf.mxu2 }
 0x199   : > { %v1031_v40 = vpop.f32.mrf.mxu3  ;;  %v865_v16 = vadd.f32 %v809_v2, %v5412_v21  ;;  %v1254_v19 = vpop.f32.mrf.mxu0  ;;  %v1800_v21 = vpack.c.bf16 %v4823_v29, %v4822_v3  ;;  %v4776_v3 = vld [vmem:[%s5196_s16 + $0x60] sm:$0xff]  ;;  %v4777_v29 = vld [vmem:[%s5196_s16 + $0x68] sm:$0xff] }
 0x19b   : > { %v1087_v45 = vadd.f32 %v1031_v40, %v865_v16 }
 0x19c   : > { %v5730_v11 = vpop.f32.mrf.mxu1 }
 0x19d   : > { %v1308_v4 = vadd.f32 %v1252_v9, %v1087_v45 }
 0x19f   : > { %v5736_v33 = vadd.f32 %v1473_v47, %v1308_v4 }
 0x1a0   : > { %v811_v63 = vpop.f32.mrf.mxu2 }
 0x1a1   : > { %v1033_v0 = vpop.f32.mrf.mxu3  ;;  %v866_v39 = vadd.f32 %v811_v63, %v5418_v30  ;;  %v1257_v59 = vpop.f32.mrf.mxu0  ;;  %v4824_v63 = vld [vmem:[%s5196_s16 + $0x61] sm:$0xff] }
 0x1a3   : > { %v1088_v2 = vadd.f32 %v1033_v0, %v866_v39  ;;  %v4825_v0 = vld [vmem:[%s5196_s16 + $0x69] sm:$0xff] }
 0x1a4   : > { %v1478_v40 = vpop.f32.mrf.mxu1  ;;  %4901 = vmatmul.msk.bf16.gmra.mxu0 %vm378_vm1, %v5439_v58 }
 0x1a5   : > { %4805 = vmatmul.msk.bf16.gmra.mxu2 %vm378_vm1, %v1579_v36  ;;  %v5743_v9 = vadd.f32 %v1254_v19, %v1088_v2  ;;  %v1580_v2 = vpack.c.bf16 %v4777_v29, %v4776_v3 }
 0x1a6   : > { %4853 = vmatmul.msk.bf16.gmra.mxu3 %vm378_vm1, %v1800_v21 }
 0x1a8   : > { %v814_v47 = vpop.f32.mrf.mxu2 }
 0x1a9   : > { %v1036_v30 = vpop.f32.mrf.mxu3  ;;  %v867_v16 = vadd.f32 %v814_v47, %v5431_v46  ;;  %v1259_v45 = vpop.f32.mrf.mxu0  ;;  %v1801_v46 = vpack.c.bf16 %v4825_v0, %v4824_v63  ;;  %v4778_v63 = vld [vmem:[%s5196_s16 + $0x78] sm:$0xff]  ;;  %v4779_v0 = vld [vmem:[%s5196_s16 + $0x80] sm:$0xff] }
 0x1ab   : > { %v1089_v4 = vadd.f32 %v1036_v30, %v867_v16 }
 0x1ac   : > { %v5746_v20 = vpop.f32.mrf.mxu1 }
 0x1ad   : > { %v1310_v17 = vadd.f32 %v1257_v59, %v1089_v4 }
 0x1af   : > { %v5752_v58 = vadd.f32 %v1478_v40, %v1310_v17 }
 0x1b0   : > { %v816_v39 = vpop.f32.mrf.mxu2 }
 0x1b1   : > { %v1038_v36 = vpop.f32.mrf.mxu3  ;;  %v868_v19 = vadd.f32 %v816_v39, %v5437_v53  ;;  %v1262_v21 = vpop.f32.mrf.mxu0  ;;  %v4826_v39 = vld [vmem:[%s5196_s16 + $0x79] sm:$0xff] }
 0x1b3   : > { %v1090_v47 = vadd.f32 %v1038_v36, %v868_v19  ;;  %v4827_v36 = vld [vmem:[%s5196_s16 + $0x81] sm:$0xff] }
 0x1b4   : > { %v1483_v30 = vpop.f32.mrf.mxu1  ;;  %4902 = vmatmul.msk.bf16.gmra.mxu0 %vm378_vm1, %v5459_v23 }
 0x1b5   : > { %4806 = vmatmul.msk.bf16.gmra.mxu2 %vm378_vm1, %v1580_v2  ;;  %v5759_v59 = vadd.f32 %v1259_v45, %v1090_v47  ;;  %v1581_v47 = vpack.c.bf16 %v4779_v0, %v4778_v63 }
 0x1b6   : > { %4854 = vmatmul.msk.bf16.gmra.mxu3 %vm378_vm1, %v1801_v46 }
 0x1b8   : > { %v819_v40 = vpop.f32.mrf.mxu2 }
 0x1b9   : > { %v1041_v53 = vpop.f32.mrf.mxu3  ;;  %v869_v16 = vadd.f32 %v819_v40, %v5451_v7  ;;  %v1264_v4 = vpop.f32.mrf.mxu0  ;;  %v1802_v7 = vpack.c.bf16 %v4827_v36, %v4826_v39  ;;  %v4780_v39 = vld [vmem:[%s5196_s16 + $0x90] sm:$0xff]  ;;  %v4781_v36 = vld [vmem:[%s5196_s16 + $0x98] sm:$0xff] }
 0x1bb   : > { %v1091_v17 = vadd.f32 %v1041_v53, %v869_v16 }
 0x1bc   : > { %v5762_v3 = vpop.f32.mrf.mxu1 }
 0x1bd   : > { %v1312_v29 = vadd.f32 %v1262_v21, %v1091_v17 }
 0x1bf   : > { %v5768_v23 = vadd.f32 %v1483_v30, %v1312_v29 }
 0x1c0   : > { %v821_v19 = vpop.f32.mrf.mxu2 }
 0x1c1   : > { %v1043_v2 = vpop.f32.mrf.mxu3  ;;  %v870_v45 = vadd.f32 %v821_v19, %v5457_v22  ;;  %v1267_v46 = vpop.f32.mrf.mxu0  ;;  %v4828_v19 = vld [vmem:[%s5196_s16 + $0x91] sm:$0xff] }
 0x1c3   : > { %v1092_v40 = vadd.f32 %v1043_v2, %v870_v45  ;;  %v4829_v2 = vld [vmem:[%s5196_s16 + $0x99] sm:$0xff] }
 0x1c4   : > { %v1488_v53 = vpop.f32.mrf.mxu1  ;;  %4903 = vmatmul.msk.bf16.gmra.mxu0 %vm378_vm1, %v5479_v52 }
 0x1c5   : > { %4807 = vmatmul.msk.bf16.gmra.mxu2 %vm378_vm1, %v1581_v47  ;;  %v5775_v21 = vadd.f32 %v1264_v4, %v1092_v40  ;;  %v1582_v40 = vpack.c.bf16 %v4781_v36, %v4780_v39 }
 0x1c6   : > { %4855 = vmatmul.msk.bf16.gmra.mxu3 %vm378_vm1, %v1802_v7 }
 0x1c8   : > { %v824_v30 = vpop.f32.mrf.mxu2 }
 0x1c9   : > { %v1046_v22 = vpop.f32.mrf.mxu3  ;;  %v871_v16 = vadd.f32 %v824_v30, %v5471_v37  ;;  %v1269_v17 = vpop.f32.mrf.mxu0  ;;  %v1803_v37 = vpack.c.bf16 %v4829_v2, %v4828_v19  ;;  %v4782_v19 = vld [vmem:[%s5196_s16 + $0xa8] sm:$0xff]  ;;  %v4783_v2 = vld [vmem:[%s5196_s16 + $0xb0] sm:$0xff] }
 0x1cb   : > { %v1093_v29 = vadd.f32 %v1046_v22, %v871_v16 }
 0x1cc   : > { %v5778_v63 = vpop.f32.mrf.mxu1 }
 0x1cd   : > { %7114 = vst [vmem:[#allocation10_spill] sm:$0xff] %v5778_v63  ;;  %v1314_v0 = vadd.f32 %v1267_v46, %v1093_v29 }
 0x1cf   : > { %v5784_v52 = vadd.f32 %v1488_v53, %v1314_v0 }
 0x1d0   : > { %v826_v45 = vpop.f32.mrf.mxu2 }
 0x1d1   : > { %v1048_v47 = vpop.f32.mrf.mxu3  ;;  %v872_v4 = vadd.f32 %v826_v45, %v5477_v51  ;;  %v1272_v7 = vpop.f32.mrf.mxu0  ;;  %v4830_v45 = vld [vmem:[%s5196_s16 + $0xa9] sm:$0xff] }
 0x1d3   : > { %v1094_v30 = vadd.f32 %v1048_v47, %v872_v4  ;;  %v4831_v47 = vld [vmem:[%s5196_s16 + $0xb1] sm:$0xff] }
 0x1d4   : > { %v1493_v22 = vpop.f32.mrf.mxu1  ;;  %4904 = vmatmul.msk.bf16.gmra.mxu0 %vm378_vm1, %v5499_v25 }
 0x1d5   : > { %4808 = vmatmul.msk.bf16.gmra.mxu2 %vm378_vm1, %v1582_v40  ;;  %v5791_v46 = vadd.f32 %v1269_v17, %v1094_v30  ;;  %v1583_v30 = vpack.c.bf16 %v4783_v2, %v4782_v19 }
 0x1d6   : > { %4856 = vmatmul.msk.bf16.gmra.mxu3 %vm378_vm1, %v1803_v37 }
 0x1d8   : > { %v829_v53 = vpop.f32.mrf.mxu2 }
 0x1d9   : > { %v1051_v51 = vpop.f32.mrf.mxu3  ;;  %v873_v16 = vadd.f32 %v829_v53, %v5491_v6  ;;  %v1274_v29 = vpop.f32.mrf.mxu0  ;;  %v1804_v6 = vpack.c.bf16 %v4831_v47, %v4830_v45  ;;  %v4784_v45 = vld [vmem:[%s5196_s16 + $0xc0] sm:$0xff] }
 0x1db   : > { %v1095_v0 = vadd.f32 %v1051_v51, %v873_v16  ;;  %v7118_v16 = vld [vmem:[#allocation3_spill] sm:$0xff] }
 0x1dc   : > { %v5794_v39 = vpop.f32.mrf.mxu1 }
 0x1dd   : > { %7115 = vst [vmem:[#allocation11_spill] sm:$0xff] %v5794_v39  ;;  %v1316_v36 = vadd.f32 %v1272_v7, %v1095_v0 }
 0x1df   : > { %v5800_v25 = vadd.f32 %v1493_v22, %v1316_v36 }
 0x1e0   : > { %v831_v4 = vpop.f32.mrf.mxu2 }
 0x1e1   : > { %7116 = vst [vmem:[#allocation12_spill] sm:$0xff] %v5800_v25  ;;  %v1053_v40 = vpop.f32.mrf.mxu3  ;;  %v874_v17 = vadd.f32 %v831_v4, %v5497_v57  ;;  %v1277_v37 = vpop.f32.mrf.mxu0  ;;  %v4785_v4 = vld [vmem:[%s5196_s16 + $0xc8] sm:$0xff] }
 0x1e3   : > { %v1096_v53 = vadd.f32 %v1053_v40, %v874_v17  ;;  %v4832_v40 = vld [vmem:[%s5196_s16 + $0xc1] sm:$0xff]  ;;  %v4833_v17 = vld [vmem:[%s5196_s16 + $0xc9] sm:$0xff] }
 0x1e4   : > { %v1498_v51 = vpop.f32.mrf.mxu1  ;;  %4905 = vmatmul.msk.bf16.gmra.mxu0 %vm378_vm1, %v5519_v8  ;;  %v1805_v25 = vpack.c.bf16 %v4833_v17, %v4832_v40  ;;  %v4835_v40 = vld [vmem:[%s5196_s16 + $0xe1] sm:$0xff] }
 0x1e5   : > { %4809 = vmatmul.msk.bf16.gmra.mxu2 %vm378_vm1, %v1583_v30  ;;  %v5807_v7 = vadd.f32 %v1274_v29, %v1096_v53 }
 0x1e6   : > { %4857 = vmatmul.msk.bf16.gmra.mxu3 %vm378_vm1, %v1804_v6  ;;  %v7121_v6 = vld [vmem:[#allocation4_spill] sm:$0xff] }
 0x1e7   : > { %7117 = vst [vmem:[#allocation13_spill] sm:$0xff] %v5807_v7  ;;  %v1584_v7 = vpack.c.bf16 %v4785_v4, %v4784_v45  ;;  %v4834_v4 = vld [vmem:[%s5196_s16 + $0xd9] sm:$0xff] }
 0x1e8   : > { %v834_v22 = vpop.f32.mrf.mxu2 }
 0x1e9   : > { %v1056_v57 = vpop.f32.mrf.mxu3  ;;  %v875_v0 = vadd.f32 %v834_v22, %v7118_v16  ;;  %v1279_v36 = vpop.f32.mrf.mxu0  ;;  %v7122_v22 = vld [vmem:[#allocation7_spill] sm:$0xff] }
 0x1eb   : > { %v1097_v19 = vadd.f32 %v1056_v57, %v875_v0 }
 0x1ec   : > { %v5811_v47 = vpop.f32.mrf.mxu1 }
 0x1ed   : > { %v1318_v2 = vadd.f32 %v1277_v37, %v1097_v19  ;;  %7119 = vst [vmem:[#allocation3_spill] sm:$0xff] %v5811_v47  ;;  %v4786_v19 = vld [vmem:[%s5196_s16 + $0xd8] sm:$0xff] }
 0x1ef   : > { %v5816_v8 = vadd.f32 %v1498_v51, %v1318_v2  ;;  %v5121_v51 = vmov 0.0   ;;  %v4787_v2 = vld [vmem:[%s5196_s16 + $0xe0] sm:$0xff] }
 0x1f0   : > { %v836_v30 = vpop.f32.mrf.mxu2  ;;  %2313 = vst.msk [vmem:[#allocation2] sm:$0xff] %vm378_vm1, %v5121_v51 }
 0x1f1   : > { %7120 = vst [vmem:[#allocation14_spill] sm:$0xff] %v5816_v8  ;;  %v1058_v39 = vpop.f32.mrf.mxu3  ;;  %v876_v29 = vadd.f32 %v836_v30, %v7121_v6  ;;  %v1282_v53 = vpop.f32.mrf.mxu0  ;;  %v1806_v8 = vpack.c.bf16 %v4835_v40, %v4834_v4  ;;  %v4788_v40 = vld [vmem:[%s5196_s16 + $0xf0] sm:$0xff] }
 0x1f2   : > { %2314 = vst.msk [vmem:[#allocation2 + $0x8] sm:$0xff] %vm378_vm1, %v5121_v51 }
 0x1f3   : > { %v1098_v63 = vadd.f32 %v1058_v39, %v876_v29  ;;  %2316 = vst.msk [vmem:[#allocation2 + $0x10] sm:$0x3] %vm2315_vm2, %v5121_v51 }
 0x1f4   : > { %4906 = vmatmul.msk.bf16.gmra.mxu0 %vm378_vm1, %v7122_v22  ;;  %v1503_v39 = vpop.f32.mrf.mxu1  ;;  %2318 = vst.msk [vmem:[#allocation2 + $0x198] sm:$0xff] %vm378_vm1, %v5121_v51 }
 0x1f5   : > { %4810 = vmatmul.msk.bf16.gmra.mxu2 %vm378_vm1, %v1584_v7  ;;  %v5823_v37 = vadd.f32 %v1279_v36, %v1098_v63  ;;  %v7124_v63 = vld [vmem:[#allocation5_spill] sm:$0xff]  ;;  %2319 = vst.msk [vmem:[#allocation2 + $0x1a0] sm:$0xff] %vm378_vm1, %v5121_v51 }
 0x1f6   : > { %4858 = vmatmul.msk.bf16.gmra.mxu3 %vm378_vm1, %v1805_v25  ;;  %2320 = vst.msk [vmem:[#allocation2 + $0x1a8] sm:$0x3] %vm2315_vm2, %v5121_v51 }
 0x1f7   : > { %7123 = vst [vmem:[#allocation4_spill] sm:$0xff] %v5823_v37  ;;  %v1585_v37 = vpack.c.bf16 %v4787_v2, %v4786_v19 }
 0x1f8   : > { %v839_v57 = vpop.f32.mrf.mxu2  ;;  %2322 = vst.msk [vmem:[#allocation2] sm:$0x1] %vm2321_vm3, %v5121_v51 }
 0x1f9   : > { %v1061_v7 = vpop.f32.mrf.mxu3  ;;  %v877_v25 = vadd.f32 %v839_v57, %v7124_v63  ;;  %v1284_v16 = vpop.f32.mrf.mxu0  ;;  %v2440_v45 = vld [vmem:[#allocation2 + $0x1] sm:$0xff]  ;;  %2323 = vst.msk [vmem:[#allocation2 + $0x18] sm:$0x1] %vm2321_vm3, %v5121_v51 }
 0x1fa   : > { %v2441_v17 = vld [vmem:[#allocation2 + $0x9] sm:$0xff]  ;;  %2324 = vst.msk [vmem:[#allocation2 + $0x30] sm:$0x1] %vm2321_vm3, %v5121_v51 }
 0x1fb   : > { %v1099_v0 = vadd.f32 %v1061_v7, %v877_v25  ;;  %v2472_v6 = vpack.c.bf16 %v2441_v17, %v2440_v45  ;;  %v7125_v57 = vld [vmem:[#allocation6_spill] sm:$0xff]  ;;  %v2439_v25 = vld [vmem:[%s7082_s4] sm:$0xf]  ;;  %2325 = vst.msk [vmem:[#allocation2 + $0x48] sm:$0x1] %vm2321_vm3, %v5121_v51  ;;  %v4789_v17 = vld [vmem:[%s5196_s16 + $0xf8] sm:$0xff] }
 0x1fc   : > { %v5844_v7 = vpop.f32.mrf.mxu1  ;;  %2326 = vst.msk [vmem:[#allocation2 + $0x60] sm:$0x1] %vm2321_vm3, %v5121_v51 }
 0x1fd   : > { %v1320_v36 = vadd.f32 %v1282_v53, %v1099_v0  ;;  %4916 = vmatmul.msk.bf16.vlgmr.msra.gmra.mxu1 %vm378_vm1, %v2472_v6  ;;  %v2817_v0 = vld [vmem:[%s7082_s4 + $0x8] sm:$0xf]  ;;  %2327 = vst.msk [vmem:[#allocation2 + $0x78] sm:$0x1] %vm2321_vm3, %v5121_v51 }
 0x1fe   : > { %2328 = vst.msk [vmem:[#allocation2 + $0x90] sm:$0x1] %vm2321_vm3, %v5121_v51 }
 0x1ff   : > { %v5840_v30 = vadd.f32 %v1503_v39, %v1320_v36  ;;  %v7126_v36 = vld [vmem:[#allocation8_spill] sm:$0xff]  ;;  %2329 = vst.msk [vmem:[#allocation2 + $0xa8] sm:$0x1] %vm2321_vm3, %v5121_v51 }
 0x200   : > { %v841_v29 = vpop.f32.mrf.mxu2  ;;  %2330 = vst.msk [vmem:[#allocation2 + $0xc0] sm:$0x1] %vm2321_vm3, %v5121_v51 }
 0x201   : > { %v1063_v22 = vpop.f32.mrf.mxu3  ;;  %v878_v63 = vadd.f32 %v841_v29, %v7125_v57  ;;  %v1287_v47 = vpop.f32.mrf.mxu0  ;;  %v3038_v29 = vld [vmem:[%s7082_s4 + $0xc] sm:$0xf]  ;;  %v4836_v57 = vld [vmem:[%s5196_s16 + $0xf1] sm:$0xff]  ;;  %2331 = vst.msk [vmem:[#allocation2 + $0xd8] sm:$0x1] %vm2321_vm3, %v5121_v51 }
 0x202   : > { %2332 = vst.msk [vmem:[#allocation2 + $0xf0] sm:$0x1] %vm2321_vm3, %v5121_v51 }
 0x203   : > { %v1100_v53 = vadd.f32 %v1063_v22, %v878_v63  ;;  %v3259_v22 = vld [vmem:[%s7082_s4 + $0x10] sm:$0xf]  ;;  %v4837_v63 = vld [vmem:[%s5196_s16 + $0xf9] sm:$0xff]  ;;  %2333 = vst.msk [vmem:[#allocation2 + $0x108] sm:$0x1] %vm2321_vm3, %v5121_v51 }
 0x204   : > { %4907 = vmatmul.msk.bf16.gmra.mxu0 %vm378_vm1, %v5563_v5  ;;  %v2678_v5 = vsel %vm427_vm0, %v2439_v25, 0  ;;  %v1508_v4 = vpop.f32.mrf.mxu1  ;;  %v3309_v25 = vsel %vm427_vm0, %v3259_v22, 0  ;;  %2334 = vst.msk [vmem:[#allocation2 + $0x120] sm:$0x1] %vm2321_vm3, %v5121_v51  ;;  %v5939_v22 = vld [vmem:[%s7081_s3] ss:$0 sm:$0xff] }
 0x205   : > { %4811 = vmatmul.msk.bf16.gmra.mxu2 %vm378_vm1, %v1585_v37  ;;  %v5850_v39 = vadd.f32 %v1284_v16, %v1100_v53  ;;  %v2867_v37 = vsel %vm427_vm0, %v2817_v0, 0  ;;  %v3088_v53 = vsel %vm427_vm0, %v3038_v29, 0  ;;  %3318 = vmatpush.bf16.msrb.mxu1 %v3309_v25  ;;  %2335 = vst.msk [vmem:[#allocation2 + $0x138] sm:$0x1] %vm2321_vm3, %v5121_v51  ;;  %v5930_v29 = vld [vmem:[%s7080_s2] ss:$0 sm:$0xff] }
 0x206   : > { %4859 = vmatmul.msk.bf16.gmra.mxu3 %vm378_vm1, %v1806_v8  ;;  %2687 = vmatpush.bf16.msrb.mxu2 %v2678_v5  ;;  %2336 = vst.msk [vmem:[#allocation2 + $0x150] sm:$0x1] %vm2321_vm3, %v5121_v51  ;;  %v4839_v25 = vld [vmem:[%s5196_s16 + $0x111] sm:$0xff] }
 0x207   : > { %2876 = vmatpush.bf16.msrb.mxu3 %v2867_v37  ;;  %3097 = vmatpush.bf16.msrb.mxu0 %v3088_v53  ;;  %v7127_v37 = vld [vmem:[#allocation9_spill] sm:$0xff]  ;;  %2337 = vst.msk [vmem:[#allocation2 + $0x168] sm:$0x1] %vm2321_vm3, %v5121_v51  ;;  %v4838_v53 = vld [vmem:[%s5196_s16 + $0x109] sm:$0xff] }
 0x208   : > { %v844_v8 = vpop.f32.mrf.mxu2  ;;  %2338 = vst.msk [vmem:[#allocation2 + $0x180] sm:$0x1] %vm2321_vm3, %v5121_v51 }
 0x209   : > { %v1066_v16 = vpop.f32.mrf.mxu3  ;;  %v879_v19 = vadd.f32 %v844_v8, %v7126_v36  ;;  %v1289_v2 = vpop.f32.mrf.mxu0  ;;  %v1586_v36 = vpack.c.bf16 %v4789_v17, %v4788_v40  ;;  %2339 = vst.msk [vmem:[#allocation2 + $0x198] sm:$0x1] %vm2321_vm3, %v5121_v51 }
 0x20a   : > { %2340 = vst.msk [vmem:[#allocation2 + $0x11] sm:$0x1] %vm2321_vm3, %v5121_v51 }
 0x20b   : > { %v1101_v45 = vadd.f32 %v1066_v16, %v879_v19  ;;  %v1807_v19 = vpack.c.bf16 %v4837_v63, %v4836_v57  ;;  %2341 = vst.msk [vmem:[#allocation2 + $0x29] sm:$0x1] %vm2321_vm3, %v5121_v51  ;;  %v4790_v57 = vld [vmem:[%s5196_s16 + $0x108] sm:$0xff]  ;;  %v4791_v63 = vld [vmem:[%s5196_s16 + $0x110] sm:$0xff] }
 0x20c   : > { %2342 = vst.msk [vmem:[#allocation2 + $0x41] sm:$0x1] %vm2321_vm3, %v5121_v51 }
 0x20d   : > { %v1322_v6 = vadd.f32 %v1287_v47, %v1101_v45  ;;  %2343 = vst.msk [vmem:[#allocation2 + $0x59] sm:$0x1] %vm2321_vm3, %v5121_v51 }
 0x20e   : > { %2344 = vst.msk [vmem:[#allocation2 + $0x71] sm:$0x1] %vm2321_vm3, %v5121_v51 }
 0x20f   : > { %v5893_v47 = vadd.f32 %v1508_v4, %v1322_v6  ;;  %2345 = vst.msk [vmem:[#allocation2 + $0x89] sm:$0x1] %vm2321_vm3, %v5121_v51 }
 0x210   : > { %v846_v0 = vpop.f32.mrf.mxu2  ;;  %2346 = vst.msk [vmem:[#allocation2 + $0xa1] sm:$0x1] %vm2321_vm3, %v5121_v51 }
 0x211   : > { %v1068_v5 = vpop.f32.mrf.mxu3  ;;  %v880_v8 = vadd.f32 %v846_v0, %v7127_v37  ;;  %v2097_v16 = vpop.f32.mrf.mxu0  ;;  %2347 = vst.msk [vmem:[#allocation2 + $0xb9] sm:$0x1] %vm2321_vm3, %v5121_v51 }
 0x212   : > { %2348 = vst.msk [vmem:[#allocation2 + $0xd1] sm:$0x1] %vm2321_vm3, %v5121_v51 }
 0x213   : > { %v1102_v45 = vadd.f32 %v1068_v5, %v880_v8  ;;  %2349 = vst.msk [vmem:[#allocation2 + $0xe9] sm:$0x1] %vm2321_vm3, %v5121_v51 }
 0x214   : > { %4908 = vmatmul.msk.bf16.gmra.mxu0 %vm378_vm1, %v5579_v28  ;;  %2350 = vst.msk [vmem:[#allocation2 + $0x101] sm:$0x1] %vm2321_vm3, %v5121_v51 }
 0x215   : > { %4812 = vmatmul.msk.bf16.gmra.mxu2 %vm378_vm1, %v1586_v36  ;;  %v5912_v4 = vadd.f32 %v1289_v2, %v1102_v45  ;;  %v1808_v45 = vpack.c.bf16 %v4839_v25, %v4838_v53  ;;  %2351 = vst.msk [vmem:[#allocation2 + $0x119] sm:$0x1] %vm2321_vm3, %v5121_v51 }
 0x216   : > { %4860 = vmatmul.msk.bf16.gmra.mxu3 %vm378_vm1, %v1807_v19  ;;  %v1587_v19 = vpack.c.bf16 %v4791_v63, %v4790_v57  ;;  %2352 = vst.msk [vmem:[#allocation2 + $0x131] sm:$0x1] %vm2321_vm3, %v5121_v51 }
 0x217   : > { %2353 = vst.msk [vmem:[#allocation2 + $0x149] sm:$0x1] %vm2321_vm3, %v5121_v51 }
 0x218   : > { %v1655_v28 = vpop.f32.mrf.mxu2  ;;  %2354 = vst.msk [vmem:[#allocation2 + $0x161] sm:$0x1] %vm2321_vm3, %v5121_v51 }
 0x219   : > { %v1876_v40 = vpop.f32.mrf.mxu3  ;;  %v1735_v2 = vadd.f32 %v1655_v28, %v5574_v18  ;;  %v2099_v17 = vpop.f32.mrf.mxu0  ;;  %2355 = vst.msk [vmem:[#allocation2 + $0x179] sm:$0x1] %vm2321_vm3, %v5121_v51 }
 0x21a   : > { %2356 = vst.msk [vmem:[#allocation2 + $0x191] sm:$0x1] %vm2321_vm3, %v5121_v51 }
 0x21b   : > { %v1956_v6 = vadd.f32 %v1876_v40, %v1735_v2  ;;  %2357 = vst.msk [vmem:[#allocation2 + $0x1a9] sm:$0x1] %vm2321_vm3, %v5121_v51 }
 0x21d   : > { %v2177_v18 = vadd.f32 %v2097_v16, %v1956_v6 }
 0x21f   : > { %v2213_v0 = vmul.f32 %v5930_v29, %v2177_v18 }
 0x220   : > { %v1657_v5 = vpop.f32.mrf.mxu2 }
 0x221   : > { %v1878_v37 = vpop.f32.mrf.mxu3  ;;  %v2249_v8 = vadd.f32 %v5939_v22, %v2213_v0  ;;  %v1736_v16 = vadd.f32 %v1657_v5, %v5589_v24  ;;  %v2102_v36 = vpop.f32.mrf.mxu0  ;;  %v4792_v0 = vld [vmem:[%s5196_s16 + $0x120] sm:$0xff]  ;;  %v4793_v5 = vld [vmem:[%s5196_s16 + $0x128] sm:$0xff] }
 0x223   : > { %v2281_v28 = vmax.f32 %v2249_v8, 0.0  ;;  %v1957_v40 = vadd.f32 %v1878_v37, %v1736_v16  ;;  %v4840_v37 = vld [vmem:[%s5196_s16 + $0x121] sm:$0xff]  ;;  %v4841_v8 = vld [vmem:[%s5196_s16 + $0x129] sm:$0xff] }
 0x224   : > { %4909 = vmatmul.msk.bf16.gmra.mxu0 %vm378_vm1, %v5597_v60  ;;  %v1809_v51 = vpack.c.bf16 %v4841_v8, %v4840_v37  ;;  %v4794_v8 = vld [vmem:[%s5196_s16 + $0x138] sm:$0xff] }
 0x225   : > { %2359 = vst.msk [vmem:[#allocation2 + $0x19] sm:$0xff] %vm378_vm1, %v2281_v28  ;;  %v2178_v24 = vadd.f32 %v2099_v17, %v1957_v40  ;;  %4813 = vmatmul.msk.bf16.gmra.mxu2 %vm378_vm1, %v1587_v19 }
 0x226   : > { %4861 = vmatmul.msk.bf16.gmra.mxu3 %vm378_vm1, %v1808_v45 }
 0x227   : > { %v2214_v2 = vmul.f32 %v5930_v29, %v2178_v24  ;;  %v1588_v24 = vpack.c.bf16 %v4793_v5, %v4792_v0 }
 0x228   : > { %v1660_v60 = vpop.f32.mrf.mxu2 }
 0x229   : > { %v1881_v6 = vpop.f32.mrf.mxu3  ;;  %v2250_v17 = vadd.f32 %v5939_v22, %v2214_v2  ;;  %v1737_v18 = vadd.f32 %v1660_v60, %v5592_v54  ;;  %v2104_v57 = vpop.f32.mrf.mxu0 }
 0x22b   : > { %v2282_v63 = vmax.f32 %v2250_v17, 0.0  ;;  %v1958_v53 = vadd.f32 %v1881_v6, %v1737_v18 }
 0x22d   : > { %2360 = vst.msk [vmem:[#allocation2 + $0x21] sm:$0xff] %vm378_vm1, %v2282_v63  ;;  %v2179_v25 = vadd.f32 %v2102_v36, %v1958_v53  ;;  %v2442_v36 = vld [vmem:[#allocation2 + $0x19] sm:$0xff] }
 0x22f   : > { %v2215_v16 = vmul.f32 %v5930_v29, %v2179_v25 }
 0x230   : > { %v1662_v19 = vpop.f32.mrf.mxu2 }
 0x231   : > { %v1883_v45 = vpop.f32.mrf.mxu3  ;;  %v2251_v28 = vadd.f32 %v5939_v22, %v2215_v16  ;;  %v1738_v54 = vadd.f32 %v1662_v19, %v5607_v49  ;;  %v2107_v40 = vpop.f32.mrf.mxu0  ;;  %v4795_v16 = vld [vmem:[%s5196_s16 + $0x140] sm:$0xff] }
 0x232   : > { %v4842_v19 = vld [vmem:[%s5196_s16 + $0x139] sm:$0xff] }
 0x233   : > { %v2283_v2 = vmax.f32 %v2251_v28, 0.0  ;;  %v1959_v60 = vadd.f32 %v1883_v45, %v1738_v54  ;;  %v4843_v45 = vld [vmem:[%s5196_s16 + $0x141] sm:$0xff] }
 0x234   : > { %4910 = vmatmul.msk.bf16.gmra.mxu0 %vm378_vm1, %v5615_v44  ;;  %v2443_v6 = vld [vmem:[#allocation2 + $0x21] sm:$0xff] }
 0x235   : > { %2361 = vst.msk [vmem:[#allocation2 + $0x31] sm:$0xff] %vm378_vm1, %v2283_v2  ;;  %v2180_v17 = vadd.f32 %v2104_v57, %v1959_v60  ;;  %4814 = vmatmul.msk.bf16.gmra.mxu2 %vm378_vm1, %v1588_v24  ;;  %v2473_v49 = vpack.c.bf16 %v2443_v6, %v2442_v36  ;;  %v1810_v36 = vpack.c.bf16 %v4843_v45, %v4842_v19  ;;  %v4844_v19 = vld [vmem:[%s5196_s16 + $0x151] sm:$0xff]  ;;  %v4845_v45 = vld [vmem:[%s5196_s16 + $0x159] sm:$0xff] }
 0x236   : > { %4862 = vmatmul.msk.bf16.gmra.mxu3 %vm378_vm1, %v1809_v51 }
 0x237   : > { %v2216_v18 = vmul.f32 %v5930_v29, %v2180_v17  ;;  %4917 = vmatmul.msk.bf16.gmra.mxu1 %vm378_vm1, %v2473_v49 }
 0x238   : > { %v1665_v63 = vpop.f32.mrf.mxu2 }
 0x239   : > { %v1886_v44 = vpop.f32.mrf.mxu3  ;;  %v2252_v53 = vadd.f32 %v5939_v22, %v2216_v18  ;;  %v1739_v25 = vadd.f32 %v1665_v63, %v5610_v35  ;;  %v2109_v0 = vpop.f32.mrf.mxu0  ;;  %v1589_v35 = vpack.c.bf16 %v4795_v16, %v4794_v8  ;;  %v4796_v8 = vld [vmem:[%s5196_s16 + $0x150] sm:$0xff]  ;;  %v4797_v16 = vld [vmem:[%s5196_s16 + $0x158] sm:$0xff] }
 0x23b   : > { %v2284_v57 = vmax.f32 %v2252_v53, 0.0  ;;  %v1960_v5 = vadd.f32 %v1886_v44, %v1739_v25 }
 0x23d   : > { %2362 = vst.msk [vmem:[#allocation2 + $0x39] sm:$0xff] %vm378_vm1, %v2284_v57  ;;  %v2181_v37 = vadd.f32 %v2107_v40, %v1960_v5  ;;  %v2444_v40 = vld [vmem:[#allocation2 + $0x31] sm:$0xff] }
 0x23f   : > { %v2217_v28 = vmul.f32 %v5930_v29, %v2181_v37 }
 0x240   : > { %v1667_v54 = vpop.f32.mrf.mxu2 }
 0x241   : > { %v1888_v24 = vpop.f32.mrf.mxu3  ;;  %v2253_v51 = vadd.f32 %v5939_v22, %v2217_v28  ;;  %v1740_v2 = vadd.f32 %v1667_v54, %v5625_v10  ;;  %v2112_v60 = vpop.f32.mrf.mxu0 }
 0x243   : > { %v2285_v6 = vmax.f32 %v2253_v51, 0.0  ;;  %v1961_v17 = vadd.f32 %v1888_v24, %v1740_v2 }
 0x244   : > { %4911 = vmatmul.msk.bf16.gmra.mxu0 %vm378_vm1, %v5633_v48  ;;  %v2445_v49 = vld [vmem:[#allocation2 + $0x39] sm:$0xff] }
 0x245   : > { %2363 = vst.msk [vmem:[#allocation2 + $0x49] sm:$0xff] %vm378_vm1, %v2285_v6  ;;  %v2182_v18 = vadd.f32 %v2109_v0, %v1961_v17  ;;  %4815 = vmatmul.msk.bf16.gmra.mxu2 %vm378_vm1, %v1589_v35  ;;  %v2474_v10 = vpack.c.bf16 %v2445_v49, %v2444_v40 }
 0x246   : > { %4863 = vmatmul.msk.bf16.gmra.mxu3 %vm378_vm1, %v1810_v36  ;;  %v1811_v36 = vpack.c.bf16 %v4845_v45, %v4844_v19 }
 0x247   : > { %v2218_v63 = vmul.f32 %v5930_v29, %v2182_v18  ;;  %4918 = vmatmul.msk.bf16.gmra.mxu1 %vm378_vm1, %v2474_v10 }
 0x248   : > { %v1670_v44 = vpop.f32.mrf.mxu2 }
 0x249   : > { %v1891_v48 = vpop.f32.mrf.mxu3  ;;  %v2254_v53 = vadd.f32 %v5939_v22, %v2218_v63  ;;  %v1741_v25 = vadd.f32 %v1670_v44, %v5628_v12  ;;  %v2114_v57 = vpop.f32.mrf.mxu0  ;;  %v1590_v12 = vpack.c.bf16 %v4797_v16, %v4796_v8  ;;  %v4847_v8 = vld [vmem:[%s5196_s16 + $0x171] sm:$0xff]  ;;  %v1522_v16 = vadd.f32 %v5646_v14, %v5661_v43 }
 0x24b   : > { %v2286_v0 = vmax.f32 %v2254_v53, 0.0  ;;  %v1962_v5 = vadd.f32 %v1891_v48, %v1741_v25 }
 0x24d   : > { %2364 = vst.msk [vmem:[#allocation2 + $0x51] sm:$0xff] %vm378_vm1, %v2286_v0  ;;  %v2183_v37 = vadd.f32 %v2112_v60, %v1962_v5  ;;  %v2446_v60 = vld [vmem:[#allocation2 + $0x49] sm:$0xff] }
 0x24e   : > { %v4798_v0 = vld [vmem:[%s5196_s16 + $0x168] sm:$0xff]  ;;  %v4799_v5 = vld [vmem:[%s5196_s16 + $0x170] sm:$0xff] }
 0x24f   : > { %v2219_v28 = vmul.f32 %v5930_v29, %v2183_v37  ;;  %v4846_v37 = vld [vmem:[%s5196_s16 + $0x169] sm:$0xff] }
 0x250   : > { %v1672_v54 = vpop.f32.mrf.mxu2 }
 0x251   : > { %v1893_v24 = vpop.f32.mrf.mxu3  ;;  %v2255_v51 = vadd.f32 %v5939_v22, %v2219_v28  ;;  %v1742_v2 = vadd.f32 %v1672_v54, %v5643_v41  ;;  %v2117_v35 = vpop.f32.mrf.mxu0 }
 0x253   : > { %v2287_v6 = vmax.f32 %v2255_v51, 0.0  ;;  %v1963_v17 = vadd.f32 %v1893_v24, %v1742_v2  ;;  %v1591_v51 = vpack.c.bf16 %v4799_v5, %v4798_v0  ;;  %v1812_v2 = vpack.c.bf16 %v4847_v8, %v4846_v37 }
 0x254   : > { %4912 = vmatmul.msk.bf16.gmra.mxu0 %vm378_vm1, %v5653_v32  ;;  %v2447_v40 = vld [vmem:[#allocation2 + $0x51] sm:$0xff] }
 0x255   : > { %2365 = vst.msk [vmem:[#allocation2 + $0x61] sm:$0xff] %vm378_vm1, %v2287_v6  ;;  %v2184_v49 = vadd.f32 %v2114_v57, %v1963_v17  ;;  %4816 = vmatmul.msk.bf16.gmra.mxu2 %vm378_vm1, %v1590_v12  ;;  %v2475_v41 = vpack.c.bf16 %v2447_v40, %v2446_v60 }
 0x256   : > { %4864 = vmatmul.msk.bf16.gmra.mxu3 %vm378_vm1, %v1811_v36 }
 0x257   : > { %v2220_v18 = vmul.f32 %v5930_v29, %v2184_v49  ;;  %4919 = vmatmul.msk.bf16.gmra.mxu1 %vm378_vm1, %v2475_v41 }
 0x258   : > { %v1675_v10 = vpop.f32.mrf.mxu2 }
 0x259   : > { %v1896_v32 = vpop.f32.mrf.mxu3  ;;  %v2256_v63 = vadd.f32 %v5939_v22, %v2220_v18  ;;  %v1743_v44 = vadd.f32 %v1675_v10, %v5648_v27  ;;  %v2119_v48 = vpop.f32.mrf.mxu0 }
 0x25b   : > { %v2288_v53 = vmax.f32 %v2256_v63, 0.0  ;;  %v1964_v25 = vadd.f32 %v1896_v32, %v1743_v44  ;;  %v1524_v63 = vadd.f32 %v5666_v56, %v5681_v50 }
 0x25d   : > { %2366 = vst.msk [vmem:[#allocation2 + $0x69] sm:$0xff] %vm378_vm1, %v2288_v53  ;;  %v2185_v57 = vadd.f32 %v2117_v35, %v1964_v25  ;;  %v2448_v35 = vld [vmem:[#allocation2 + $0x61] sm:$0xff] }
 0x25f   : > { %v2221_v19 = vmul.f32 %v5930_v29, %v2185_v57 }
 0x260   : > { %v1677_v45 = vpop.f32.mrf.mxu2 }
 0x261   : > { %v1898_v28 = vpop.f32.mrf.mxu3  ;;  %v2257_v54 = vadd.f32 %v5939_v22, %v2221_v19  ;;  %v1744_v27 = vadd.f32 %v1677_v45, %v1522_v16  ;;  %v2122_v24 = vpop.f32.mrf.mxu0 }
 0x263   : > { %v2289_v12 = vmax.f32 %v2257_v54, 0.0  ;;  %v1965_v36 = vadd.f32 %v1898_v28, %v1744_v27 }
 0x264   : > { %4913 = vmatmul.msk.bf16.gmra.mxu0 %vm378_vm1, %v5673_v15  ;;  %v2449_v6 = vld [vmem:[#allocation2 + $0x69] sm:$0xff] }
 0x265   : > { %2367 = vst.msk [vmem:[#allocation2 + $0x79] sm:$0xff] %vm378_vm1, %v2289_v12  ;;  %v2186_v14 = vadd.f32 %v2119_v48, %v1965_v36  ;;  %4817 = vmatmul.msk.bf16.gmra.mxu2 %vm378_vm1, %v1591_v51  ;;  %v2476_v43 = vpack.c.bf16 %v2449_v6, %v2448_v35  ;;  %v4898_v51 = vld [vmem:[%s5196_s16 + $0x19a] sm:$0xff]  ;;  %v1526_v6 = vadd.f32 %v5686_v61, %v5709_v38 }
 0x266   : > { %4865 = vmatmul.msk.bf16.gmra.mxu3 %vm378_vm1, %v1812_v2  ;;  %v4899_v2 = vld [vmem:[%s5196_s16 + $0x1a2] sm:$0xff]  ;;  %v4850_v36 = vld [vmem:[%s5196_s16 + $0x199] sm:$0xff] }
 0x267   : > { %v2222_v17 = vmul.f32 %v5930_v29, %v2186_v14  ;;  %4920 = vmatmul.msk.bf16.gmra.mxu1 %vm378_vm1, %v2476_v43  ;;  %v4803_v12 = vld [vmem:[%s5196_s16 + $0x1a0] sm:$0xff] }
 0x268   : > { %v1680_v60 = vpop.f32.mrf.mxu2  ;;  %v4851_v35 = vld [vmem:[%s5196_s16 + $0x1a1] sm:$0xff] }
 0x269   : > { %v1901_v40 = vpop.f32.mrf.mxu3  ;;  %v2258_v49 = vadd.f32 %v5939_v22, %v2222_v17  ;;  %v1745_v15 = vadd.f32 %v1680_v60, %v5668_v26  ;;  %v2124_v41 = vpop.f32.mrf.mxu0 }
 0x26b   : > { %v2290_v18 = vmax.f32 %v2258_v49, 0.0  ;;  %v1966_v10 = vadd.f32 %v1901_v40, %v1745_v15 }
 0x26c   : > { %v2450_v26 = vld [vmem:[#allocation2 + $0x79] sm:$0xff] }
 0x26d   : > { %2368 = vst.msk [vmem:[#allocation2 + $0x81] sm:$0xff] %vm378_vm1, %v2290_v18  ;;  %v2187_v32 = vadd.f32 %v2122_v24, %v1966_v10  ;;  %v4802_v24 = vld [vmem:[%s5196_s16 + $0x198] sm:$0xff] }
 0x26e   : > { %v1593_v15 = vpack.c.bf16 %v4803_v12, %v4802_v24 }
 0x26f   : > { %v2223_v44 = vmul.f32 %v5930_v29, %v2187_v32 }
 0x270   : > { %v1682_v48 = vpop.f32.mrf.mxu2 }
 0x271   : > { %v1903_v53 = vpop.f32.mrf.mxu3  ;;  %v2259_v25 = vadd.f32 %v5939_v22, %v2223_v44  ;;  %v1746_v57 = vadd.f32 %v1682_v48, %v1524_v63  ;;  %v2127_v0 = vpop.f32.mrf.mxu0 }
 0x273   : > { %v2291_v5 = vmax.f32 %v2259_v25, 0.0  ;;  %v1967_v37 = vadd.f32 %v1903_v53, %v1746_v57 }
 0x274   : > { %4914 = vmatmul.msk.bf16.gmra.mxu0 %vm378_vm1, %v5701_v1  ;;  %v2451_v8 = vld [vmem:[#allocation2 + $0x81] sm:$0xff] }
 0x275   : > { %2369 = vst.msk [vmem:[#allocation2 + $0x91] sm:$0xff] %vm378_vm1, %v2291_v5  ;;  %v2188_v16 = vadd.f32 %v2124_v41, %v1967_v37  ;;  %4818 = vmatmul.msk.bf16.gmra.mxu2 %vm378_vm1, %v5699_v34  ;;  %v2477_v56 = vpack.c.bf16 %v2451_v8, %v2450_v26  ;;  %v1814_v41 = vpack.c.bf16 %v4851_v35, %v4850_v36  ;;  %v2391_v8 = vld [vmem:[#allocation2] sm:$0xff] }
 0x276   : > { %4866 = vmatmul.msk.bf16.gmra.mxu3 %vm378_vm1, %v5696_v31 }
 0x277   : > { %v2224_v50 = vmul.f32 %v5930_v29, %v2188_v16  ;;  %4921 = vmatmul.msk.bf16.gmra.mxu1 %vm378_vm1, %v2477_v56  ;;  %v2392_v16 = vld [vmem:[#allocation2 + $0x8] sm:$0xff] }
 0x278   : > { %v1685_v1 = vpop.f32.mrf.mxu2  ;;  %v2769_v56 = vld [vmem:[#allocation2 + $0x2] sm:$0xff] }
 0x279   : > { %v1906_v19 = vpop.f32.mrf.mxu3  ;;  %v2260_v45 = vadd.f32 %v5939_v22, %v2224_v50  ;;  %v1747_v28 = vadd.f32 %v1685_v1, %v5692_v62  ;;  %v2129_v54 = vpop.f32.mrf.mxu0  ;;  %v2035_v62 = vpack.c.bf16 %v4899_v2, %v4898_v51  ;;  %v2770_v50 = vld [vmem:[#allocation2 + $0xa] sm:$0xff]  ;;  %v1528_v1 = vadd.f32 %v5714_v55, %v5727_v13  ;;  %v2990_v51 = vld [vmem:[#allocation2 + $0x18] sm:$0xff] }
 0x27a   : > { %v2801_v24 = vpack.c.bf16 %v2770_v50, %v2769_v56 }
 0x27b   : > { %v2292_v34 = vmax.f32 %v2260_v45, 0.0  ;;  %v1968_v27 = vadd.f32 %v1906_v19, %v1747_v28  ;;  %v2991_v45 = vld [vmem:[#allocation2 + $0x20] sm:$0xff] }
 0x27c   : > { %v2452_v32 = vld [vmem:[#allocation2 + $0x91] sm:$0xff]  ;;  %v3022_v2 = vpack.c.bf16 %v2991_v45, %v2990_v51 }
 0x27d   : > { %2370 = vst.msk [vmem:[#allocation2 + $0x99] sm:$0xff] %vm378_vm1, %v2292_v34  ;;  %v2189_v31 = vadd.f32 %v2127_v0, %v1968_v27 }
 0x27f   : > { %v2225_v14 = vmul.f32 %v5930_v29, %v2189_v31  ;;  %v2423_v31 = vpack.c.bf16 %v2392_v16, %v2391_v8 }
 0x280   : > { %v1687_v43 = vpop.f32.mrf.mxu2 }
 0x281   : > { %v1908_v17 = vpop.f32.mrf.mxu3  ;;  %v2261_v60 = vadd.f32 %v5939_v22, %v2225_v14  ;;  %v1748_v40 = vadd.f32 %v1687_v43, %v1526_v6  ;;  %v2132_v49 = vpop.f32.mrf.mxu0 }
 0x283   : > { %v2293_v18 = vmax.f32 %v2261_v60, 0.0  ;;  %v1969_v10 = vadd.f32 %v1908_v17, %v1748_v40 }
 0x284   : > { %4915 = vmatmul.msk.bf16.gmra.mxu0 %vm378_vm1, %v2035_v62  ;;  %v2453_v63 = vld [vmem:[#allocation2 + $0x99] sm:$0xff] }
 0x285   : > { %2371 = vst.msk [vmem:[#allocation2 + $0xa9] sm:$0xff] %vm378_vm1, %v2293_v18  ;;  %v2190_v61 = vadd.f32 %v2129_v54, %v1969_v10  ;;  %4819 = vmatmul.msk.bf16.gmra.mxu2 %vm378_vm1, %v1593_v15  ;;  %v2478_v38 = vpack.c.bf16 %v2453_v63, %v2452_v32  ;;  %v1530_v10 = vadd.f32 %v5730_v11, %v5743_v9  ;;  %v2993_v63 = vld [vmem:[#allocation2 + $0x38] sm:$0xff] }
 0x286   : > { %4867 = vmatmul.msk.bf16.gmra.mxu3 %vm378_vm1, %v1814_v41 }
 0x287   : > { %v2226_v44 = vmul.f32 %v5930_v29, %v2190_v61  ;;  %4922 = vmatmul.msk.bf16.gmra.mxu1 %vm378_vm1, %v2478_v38 }
 0x288   : > { %v1690_v48 = vpop.f32.mrf.mxu2 }
 0x289   : > { %v1911_v53 = vpop.f32.mrf.mxu3  ;;  %v2262_v25 = vadd.f32 %v5939_v22, %v2226_v44  ;;  %v1749_v57 = vadd.f32 %v1690_v48, %v5720_v42  ;;  %v2134_v0 = vpop.f32.mrf.mxu0  ;;  %v2771_v44 = vld [vmem:[#allocation2 + $0x1a] sm:$0xff]  ;;  %v2772_v48 = vld [vmem:[#allocation2 + $0x22] sm:$0xff] }
 0x28a   : > { %v6111_v8 = vpack.c.bf16 %v2772_v48, %v2771_v44 }
 0x28b   : > { %v2294_v5 = vmax.f32 %v2262_v25, 0.0  ;;  %v1970_v37 = vadd.f32 %v1911_v53, %v1749_v57  ;;  %v2992_v57 = vld [vmem:[#allocation2 + $0x30] sm:$0xff] }
 0x28c   : > { %v2454_v35 = vld [vmem:[#allocation2 + $0xa9] sm:$0xff] }
 0x28d   : > { %2372 = vst.msk [vmem:[#allocation2 + $0xb1] sm:$0xff] %vm378_vm1, %v2294_v5  ;;  %v2191_v26 = vadd.f32 %v2132_v49, %v1970_v37  ;;  %v6100_v49 = vpop.f32.mrf.mxu1  ;;  %v6109_v5 = vpack.c.bf16 %v2993_v63, %v2992_v57  ;;  %v1534_v57 = vadd.f32 %v5762_v3, %v5775_v21 }
 0x28f   : > { %v2227_v19 = vmul.f32 %v5930_v29, %v2191_v26 }
 0x290   : > { %v1692_v28 = vpop.f32.mrf.mxu2 }
 0x291   : > { %v1913_v54 = vpop.f32.mrf.mxu3  ;;  %v2263_v42 = vadd.f32 %v5939_v22, %v2227_v19  ;;  %v1750_v34 = vadd.f32 %v1692_v28, %v1528_v1  ;;  %v2137_v27 = vpop.f32.mrf.mxu0 }
 0x293   : > { %v2295_v12 = vmax.f32 %v2263_v42, 0.0  ;;  %v1971_v36 = vadd.f32 %v1913_v54, %v1750_v34 }
 0x294   : > { %4964 = vmatmul.msk.bf16.vlgmr.msrb.gmra.mxu0 %vm378_vm1, %v3022_v2  ;;  %v2455_v6 = vld [vmem:[#allocation2 + $0xb1] sm:$0xff] }
 0x295   : > { %2373 = vst.msk [vmem:[#allocation2 + $0xc1] sm:$0xff] %vm378_vm1, %v2295_v12  ;;  %v2192_v55 = vadd.f32 %v2134_v0, %v1971_v36  ;;  %4932 = vmatmul.msk.bf16.vlgmr.msrb.gmra.mxu2 %vm378_vm1, %v2423_v31  ;;  %v6093_v13 = vpack.c.bf16 %v2455_v6, %v2454_v35  ;;  %v6107_v0 = vpop.f32.mrf.mxu1  ;;  %v2773_v35 = vld [vmem:[#allocation2 + $0x32] sm:$0xff]  ;;  %v2774_v6 = vld [vmem:[#allocation2 + $0x3a] sm:$0xff] }
 0x296   : > { %4948 = vmatmul.msk.bf16.vlgmr.msrb.gmra.mxu3 %vm378_vm1, %v2801_v24  ;;  %v1532_v24 = vadd.f32 %v5746_v20, %v5759_v59 }
 0x297   : > { %v2228_v14 = vmul.f32 %v5930_v29, %v2192_v55  ;;  %4923 = vmatmul.msk.bf16.gmra.mxu1 %vm378_vm1, %v6093_v13 }
 0x298   : > { %v1695_v43 = vpop.f32.mrf.mxu2 }
 0x299   : > { %v1916_v17 = vpop.f32.mrf.mxu3  ;;  %v2264_v62 = vadd.f32 %v5939_v22, %v2228_v14  ;;  %v1751_v60 = vadd.f32 %v1695_v43, %v5736_v33  ;;  %v2139_v40 = vpop.f32.mrf.mxu0  ;;  %v2994_v43 = vld [vmem:[#allocation2 + $0x48] sm:$0xff] }
 0x29b   : > { %v2296_v15 = vmax.f32 %v2264_v62, 0.0  ;;  %v1972_v41 = vadd.f32 %v1916_v17, %v1751_v60 }
 0x29c   : > { %v2456_v11 = vld [vmem:[#allocation2 + $0xc1] sm:$0xff] }
 0x29d   : > { %2374 = vst.msk [vmem:[#allocation2 + $0xc9] sm:$0xff] %vm378_vm1, %v2296_v15  ;;  %v2193_v18 = vadd.f32 %v2137_v27, %v1972_v41  ;;  %v6126_v27 = vpop.f32.mrf.mxu1 }
 0x29f   : > { %v2229_v32 = vmul.f32 %v5930_v29, %v2193_v18 }
 0x2a0   : > { %v1697_v61 = vpop.f32.mrf.mxu2 }
 0x2a1   : > { %v1918_v38 = vpop.f32.mrf.mxu3  ;;  %v2265_v33 = vadd.f32 %v5939_v22, %v2229_v32  ;;  %v1752_v53 = vadd.f32 %v1697_v61, %v1530_v10  ;;  %v2142_v25 = vpop.f32.mrf.mxu0 }
 0x2a3   : > { %v2297_v37 = vmax.f32 %v2265_v33, 0.0  ;;  %v1973_v26 = vadd.f32 %v1918_v38, %v1752_v53 }
 0x2a4   : > { %4965 = vmatmul.msk.bf16.gmra.mxu0 %vm378_vm1, %v6109_v5  ;;  %v2457_v9 = vld [vmem:[#allocation2 + $0xc9] sm:$0xff] }
 0x2a5   : > { %2375 = vst.msk [vmem:[#allocation2 + $0xd9] sm:$0xff] %vm378_vm1, %v2297_v37  ;;  %v2194_v16 = vadd.f32 %v2139_v40, %v1973_v26  ;;  %4933 = vmatmul.msk.bf16.gmra.mxu2 %vm378_vm1, %v3022_v2  ;;  %v6119_v56 = vpack.c.bf16 %v2457_v9, %v2456_v11  ;;  %v2995_v2 = vld [vmem:[#allocation2 + $0x50] sm:$0xff]  ;;  %v6135_v40 = vpack.c.bf16 %v2774_v6, %v2773_v35  ;;  %v2997_v26 = vld [vmem:[#allocation2 + $0x68] sm:$0xff] }
 0x2a6   : > { %4949 = vmatmul.msk.bf16.gmra.mxu3 %vm378_vm1, %v6111_v8  ;;  %v6133_v17 = vpack.c.bf16 %v2995_v2, %v2994_v43 }
 0x2a7   : > { %v2230_v50 = vmul.f32 %v5930_v29, %v2194_v16  ;;  %4924 = vmatmul.msk.bf16.gmra.mxu1 %vm378_vm1, %v6119_v56  ;;  %v2775_v16 = vld [vmem:[#allocation2 + $0x4a] sm:$0xff] }
 0x2a8   : > { %v1700_v1 = vpop.f32.mrf.mxu2 }
 0x2a9   : > { %v1921_v19 = vpop.f32.mrf.mxu3  ;;  %v2266_v45 = vadd.f32 %v5939_v22, %v2230_v50  ;;  %v1753_v28 = vadd.f32 %v1700_v1, %v5752_v58  ;;  %v2144_v54 = vpop.f32.mrf.mxu0  ;;  %v2776_v50 = vld [vmem:[#allocation2 + $0x52] sm:$0xff] }
 0x2ab   : > { %v2298_v42 = vmax.f32 %v2266_v45, 0.0  ;;  %v1974_v34 = vadd.f32 %v1921_v19, %v1753_v28  ;;  %v2996_v45 = vld [vmem:[#allocation2 + $0x60] sm:$0xff] }
 0x2ac   : > { %v2458_v20 = vld [vmem:[#allocation2 + $0xd9] sm:$0xff]  ;;  %v6160_v28 = vpack.c.bf16 %v2997_v26, %v2996_v45 }
 0x2ad   : > { %2376 = vst.msk [vmem:[#allocation2 + $0xe1] sm:$0xff] %vm378_vm1, %v2298_v42  ;;  %v2195_v31 = vadd.f32 %v2142_v25, %v1974_v34  ;;  %v6162_v34 = vpack.c.bf16 %v2776_v50, %v2775_v16  ;;  %v7129_v45 = vld [vmem:[#allocation12_spill] sm:$0xff] }
 0x2af   : > { %v2231_v51 = vmul.f32 %v5930_v29, %v2195_v31 }
 0x2b0   : > { %v1702_v12 = vpop.f32.mrf.mxu2 }
 0x2b1   : > { %v1923_v36 = vpop.f32.mrf.mxu3  ;;  %v2267_v58 = vadd.f32 %v5939_v22, %v2231_v51  ;;  %v1754_v55 = vadd.f32 %v1702_v12, %v1532_v24  ;;  %v2147_v14 = vpop.f32.mrf.mxu0 }
 0x2b3   : > { %v2299_v62 = vmax.f32 %v2267_v58, 0.0  ;;  %v1975_v60 = vadd.f32 %v1923_v36, %v1754_v55 }
 0x2b4   : > { %v6137_v15 = vpop.f32.mrf.mxu1  ;;  %4966 = vmatmul.msk.bf16.gmra.mxu0 %vm378_vm1, %v6133_v17  ;;  %v2459_v59 = vld [vmem:[#allocation2 + $0xe1] sm:$0xff] }
 0x2b5   : > { %2377 = vst.msk [vmem:[#allocation2 + $0xf1] sm:$0xff] %vm378_vm1, %v2299_v62  ;;  %v2196_v41 = vadd.f32 %v2144_v54, %v1975_v60  ;;  %4934 = vmatmul.msk.bf16.gmra.mxu2 %vm378_vm1, %v6109_v5  ;;  %v6146_v18 = vpack.c.bf16 %v2459_v59, %v2458_v20  ;;  %v7128_v60 = vld [vmem:[#allocation10_spill] sm:$0xff] }
 0x2b6   : > { %4950 = vmatmul.msk.bf16.gmra.mxu3 %vm378_vm1, %v6135_v40  ;;  %v1536_v20 = vadd.f32 %v7128_v60, %v5791_v46  ;;  %v2780_v60 = vld [vmem:[#allocation2 + $0x82] sm:$0xff] }
 0x2b7   : > { %v2232_v10 = vmul.f32 %v5930_v29, %v2196_v41  ;;  %4925 = vmatmul.msk.bf16.gmra.mxu1 %vm378_vm1, %v6146_v18  ;;  %v2999_v41 = vld [vmem:[#allocation2 + $0x80] sm:$0xff] }
 0x2b8   : > { %v1705_v32 = vpop.f32.mrf.mxu2 }
 0x2b9   : > { %v1926_v63 = vpop.f32.mrf.mxu3  ;;  %v2268_v61 = vadd.f32 %v5939_v22, %v2232_v10  ;;  %v1755_v38 = vadd.f32 %v1705_v32, %v5768_v23  ;;  %v2149_v44 = vpop.f32.mrf.mxu0 }
 0x2bb   : > { %v2300_v48 = vmax.f32 %v2268_v61, 0.0  ;;  %v1976_v33 = vadd.f32 %v1926_v63, %v1755_v38  ;;  %v2777_v63 = vld [vmem:[#allocation2 + $0x62] sm:$0xff]  ;;  %v2778_v61 = vld [vmem:[#allocation2 + $0x6a] sm:$0xff] }
 0x2bc   : > { %v6153_v53 = vpop.f32.mrf.mxu1  ;;  %v2460_v3 = vld [vmem:[#allocation2 + $0xf1] sm:$0xff] }
 0x2bd   : > { %2378 = vst.msk [vmem:[#allocation2 + $0xf9] sm:$0xff] %vm378_vm1, %v2300_v48  ;;  %v2197_v25 = vadd.f32 %v2147_v14, %v1976_v33  ;;  %v2998_v48 = vld [vmem:[#allocation2 + $0x78] sm:$0xff] }
 0x2be   : > { %v6187_v33 = vpack.c.bf16 %v2999_v41, %v2998_v48 }
 0x2bf   : > { %v2233_v37 = vmul.f32 %v5930_v29, %v2197_v25 }
 0x2c0   : > { %v1707_v11 = vpop.f32.mrf.mxu2 }
 0x2c1   : > { %v1928_v9 = vpop.f32.mrf.mxu3  ;;  %v2269_v23 = vadd.f32 %v5939_v22, %v2233_v37  ;;  %v1756_v1 = vadd.f32 %v1707_v11, %v1534_v57  ;;  %v2152_v19 = vpop.f32.mrf.mxu0  ;;  %v6189_v37 = vpack.c.bf16 %v2778_v61, %v2777_v63 }
 0x2c3   : > { %v2301_v54 = vmax.f32 %v2269_v23, 0.0  ;;  %v1977_v42 = vadd.f32 %v1928_v9, %v1756_v1 }
 0x2c4   : > { %v6164_v31 = vpop.f32.mrf.mxu1  ;;  %4967 = vmatmul.msk.bf16.gmra.mxu0 %vm378_vm1, %v6160_v28  ;;  %v2461_v21 = vld [vmem:[#allocation2 + $0xf9] sm:$0xff] }
 0x2c5   : > { %2379 = vst.msk [vmem:[#allocation2 + $0x109] sm:$0xff] %vm378_vm1, %v2301_v54  ;;  %v2198_v24 = vadd.f32 %v2149_v44, %v1977_v42  ;;  %4935 = vmatmul.msk.bf16.gmra.mxu2 %vm378_vm1, %v6133_v17  ;;  %v6173_v51 = vpack.c.bf16 %v2461_v21, %v2460_v3 }
 0x2c6   : > { %4951 = vmatmul.msk.bf16.gmra.mxu3 %vm378_vm1, %v6162_v34 }
 0x2c7   : > { %v2234_v2 = vmul.f32 %v5930_v29, %v2198_v24  ;;  %4926 = vmatmul.msk.bf16.gmra.mxu1 %vm378_vm1, %v6173_v51 }
 0x2c8   : > { %v1710_v12 = vpop.f32.mrf.mxu2 }
 0x2c9   : > { %v1931_v36 = vpop.f32.mrf.mxu3  ;;  %v2270_v35 = vadd.f32 %v5939_v22, %v2234_v2  ;;  %v1757_v6 = vadd.f32 %v1710_v12, %v5784_v52  ;;  %v2154_v58 = vpop.f32.mrf.mxu0  ;;  %v7130_v12 = vld [vmem:[#allocation13_spill] sm:$0xff] }
 0x2cb   : > { %v2302_v55 = vmax.f32 %v2270_v35, 0.0  ;;  %v1978_v14 = vadd.f32 %v1931_v36, %v1757_v6  ;;  %v7131_v36 = vld [vmem:[#allocation11_spill] sm:$0xff] }
 0x2cc   : > { %v6180_v43 = vpop.f32.mrf.mxu1  ;;  %v2462_v46 = vld [vmem:[#allocation2 + $0x109] sm:$0xff]  ;;  %v1538_v35 = vadd.f32 %v7131_v36, %v7130_v12 }
 0x2cd   : > { %2380 = vst.msk [vmem:[#allocation2 + $0x111] sm:$0xff] %vm378_vm1, %v2302_v55  ;;  %v2199_v62 = vadd.f32 %v2152_v19, %v1978_v14 }
 0x2cf   : > { %v2235_v59 = vmul.f32 %v5930_v29, %v2199_v62  ;;  %v2779_v62 = vld [vmem:[#allocation2 + $0x7a] sm:$0xff] }
 0x2d0   : > { %v1712_v10 = vpop.f32.mrf.mxu2 }
 0x2d1   : > { %v1933_v32 = vpop.f32.mrf.mxu3  ;;  %v2271_v52 = vadd.f32 %v5939_v22, %v2235_v59  ;;  %v1758_v38 = vadd.f32 %v1712_v10, %v1536_v20  ;;  %v2157_v44 = vpop.f32.mrf.mxu0  ;;  %v3000_v10 = vld [vmem:[#allocation2 + $0x90] sm:$0xff] }
 0x2d3   : > { %v2303_v25 = vmax.f32 %v2271_v52, 0.0  ;;  %v1979_v57 = vadd.f32 %v1933_v32, %v1758_v38  ;;  %v6216_v52 = vpack.c.bf16 %v2780_v60, %v2779_v62 }
 0x2d4   : > { %v6191_v26 = vpop.f32.mrf.mxu1  ;;  %4968 = vmatmul.msk.bf16.gmra.mxu0 %vm378_vm1, %v6187_v33  ;;  %v2463_v11 = vld [vmem:[#allocation2 + $0x111] sm:$0xff] }
 0x2d5   : > { %2381 = vst.msk [vmem:[#allocation2 + $0x121] sm:$0xff] %vm378_vm1, %v2303_v25  ;;  %v2200_v9 = vadd.f32 %v2154_v58, %v1979_v57  ;;  %4936 = vmatmul.msk.bf16.gmra.mxu2 %vm378_vm1, %v6160_v28  ;;  %v6200_v16 = vpack.c.bf16 %v2463_v11, %v2462_v46  ;;  %v3001_v58 = vld [vmem:[#allocation2 + $0x98] sm:$0xff] }
 0x2d6   : > { %4952 = vmatmul.msk.bf16.gmra.mxu3 %vm378_vm1, %v6189_v37  ;;  %v6214_v32 = vpack.c.bf16 %v3001_v58, %v3000_v10 }
 0x2d7   : > { %v2236_v50 = vmul.f32 %v5930_v29, %v2200_v9  ;;  %4927 = vmatmul.msk.bf16.gmra.mxu1 %vm378_vm1, %v6200_v16 }
 0x2d8   : > { %v1715_v23 = vpop.f32.mrf.mxu2 }
 0x2d9   : > { %v1936_v1 = vpop.f32.mrf.mxu3  ;;  %v2272_v19 = vadd.f32 %v5939_v22, %v2236_v50  ;;  %v1759_v54 = vadd.f32 %v1715_v23, %v7129_v45  ;;  %v2159_v42 = vpop.f32.mrf.mxu0  ;;  %v7132_v23 = vld [vmem:[#allocation14_spill] sm:$0xff] }
 0x2db   : > { %v2304_v3 = vmax.f32 %v2272_v19, 0.0  ;;  %v1980_v21 = vadd.f32 %v1936_v1, %v1759_v54 }
 0x2dc   : > { %v6207_v24 = vpop.f32.mrf.mxu1 }
 0x2dd   : > { %2382 = vst.msk [vmem:[#allocation2 + $0x129] sm:$0xff] %vm378_vm1, %v2304_v3  ;;  %v2201_v2 = vadd.f32 %v2157_v44, %v1980_v21  ;;  %v2464_v44 = vld [vmem:[#allocation2 + $0x121] sm:$0xff]  ;;  %v7133_v21 = vld [vmem:[#allocation4_spill] sm:$0xff] }
 0x2df   : > { %v2237_v6 = vmul.f32 %v5930_v29, %v2201_v2  ;;  %v7134_v2 = vld [vmem:[#allocation3_spill] sm:$0xff] }
 0x2e0   : > { %v1717_v55 = vpop.f32.mrf.mxu2  ;;  %v1540_v12 = vadd.f32 %v7134_v2, %v7133_v21 }
 0x2e1   : > { %v1938_v14 = vpop.f32.mrf.mxu3  ;;  %v2273_v20 = vadd.f32 %v5939_v22, %v2237_v6  ;;  %v1760_v59 = vadd.f32 %v1717_v55, %v1538_v35  ;;  %v2162_v41 = vpop.f32.mrf.mxu0  ;;  %v3003_v35 = vld [vmem:[#allocation2 + $0xb0] sm:$0xff] }
 0x2e2   : > { %v2781_v55 = vld [vmem:[#allocation2 + $0x92] sm:$0xff] }
 0x2e3   : > { %v2305_v63 = vmax.f32 %v2273_v20, 0.0  ;;  %v1981_v61 = vadd.f32 %v1938_v14, %v1760_v59  ;;  %v2782_v14 = vld [vmem:[#allocation2 + $0x9a] sm:$0xff]  ;;  %v3002_v59 = vld [vmem:[#allocation2 + $0xa8] sm:$0xff] }
 0x2e4   : > { %v6218_v38 = vpop.f32.mrf.mxu1  ;;  %4969 = vmatmul.msk.bf16.gmra.mxu0 %vm378_vm1, %v6214_v32  ;;  %v2465_v48 = vld [vmem:[#allocation2 + $0x129] sm:$0xff]  ;;  %v6241_v10 = vpack.c.bf16 %v3003_v35, %v3002_v59 }
 0x2e5   : > { %2383 = vst.msk [vmem:[#allocation2 + $0x139] sm:$0xff] %vm378_vm1, %v2305_v63  ;;  %v2202_v25 = vadd.f32 %v2159_v42, %v1981_v61  ;;  %4937 = vmatmul.msk.bf16.gmra.mxu2 %vm378_vm1, %v6187_v33  ;;  %v6227_v57 = vpack.c.bf16 %v2465_v48, %v2464_v44 }
 0x2e6   : > { %4953 = vmatmul.msk.bf16.gmra.mxu3 %vm378_vm1, %v6216_v52  ;;  %7135 = vst [vmem:[#allocation7_spill] sm:$0xff] %v6241_v10 }
 0x2e7   : > { %v2238_v46 = vmul.f32 %v5930_v29, %v2202_v25  ;;  %4928 = vmatmul.msk.bf16.gmra.mxu1 %vm378_vm1, %v6227_v57 }
 0x2e8   : > { %v1720_v11 = vpop.f32.mrf.mxu2 }
 0x2e9   : > { %v1941_v9 = vpop.f32.mrf.mxu3  ;;  %v2274_v50 = vadd.f32 %v5939_v22, %v2238_v46  ;;  %v1761_v1 = vadd.f32 %v1720_v11, %v7132_v23  ;;  %v2164_v19 = vpop.f32.mrf.mxu0 }
 0x2eb   : > { %v2306_v45 = vmax.f32 %v2274_v50, 0.0  ;;  %v1982_v54 = vadd.f32 %v1941_v9, %v1761_v1 }
 0x2ec   : > { %v6234_v42 = vpop.f32.mrf.mxu1  ;;  %v2466_v48 = vld [vmem:[#allocation2 + $0x139] sm:$0xff] }
 0x2ed   : > { %2384 = vst.msk [vmem:[#allocation2 + $0x141] sm:$0xff] %vm378_vm1, %v2306_v45  ;;  %v2203_v3 = vadd.f32 %v2162_v41, %v1982_v54  ;;  %v6243_v41 = vpack.c.bf16 %v2782_v14, %v2781_v55  ;;  %v3005_v55 = vld [vmem:[#allocation2 + $0xc8] sm:$0xff] }
 0x2ef   : > { %v2239_v36 = vmul.f32 %v5930_v29, %v2203_v3  ;;  %7136 = vst [vmem:[#allocation5_spill] sm:$0xff] %v6243_v41 }
 0x2f0   : > { %v1722_v6 = vpop.f32.mrf.mxu2 }
 0x2f1   : > { %v1943_v58 = vpop.f32.mrf.mxu3  ;;  %v2275_v62 = vadd.f32 %v5939_v22, %v2239_v36  ;;  %v1762_v60 = vadd.f32 %v1722_v6, %v1540_v12  ;;  %v2167_v20 = vpop.f32.mrf.mxu0  ;;  %v3480_v12 = vld [vmem:[%s7082_s4 + $0x14] sm:$0xf]  ;;  %v3702_v36 = vld [vmem:[%s7082_s4 + $0x18] sm:$0xf]  ;;  %v1542_v6 = vadd.f32 %v5844_v7, %v5850_v39 }
 0x2f2   : > { %v3530_v35 = vsel %vm427_vm0, %v3480_v12, 0 }
 0x2f3   : > { %v2307_v63 = vmax.f32 %v2275_v62, 0.0  ;;  %v1983_v61 = vadd.f32 %v1943_v58, %v1762_v60  ;;  %3539 = vmatpush.bf16.msra.mxu2 %v3530_v35  ;;  %v2783_v60 = vld [vmem:[#allocation2 + $0xaa] sm:$0xff]  ;;  %v5112_v35 = vld [vmem:[%s7081_s3] ss:$0 sm:$0xff] }
 0x2f4   : > { %v6245_v44 = vpop.f32.mrf.mxu1  ;;  %4970 = vmatmul.msk.bf16.gmra.mxu0 %vm378_vm1, %v6241_v10  ;;  %v2467_v25 = vld [vmem:[#allocation2 + $0x141] sm:$0xff] }
 0x2f5   : > { %2385 = vst.msk [vmem:[#allocation2 + $0x151] sm:$0xff] %vm378_vm1, %v2307_v63  ;;  %v2204_v46 = vadd.f32 %v2164_v19, %v1983_v61  ;;  %4938 = vmatmul.msk.bf16.gmra.mxu2 %vm378_vm1, %v6214_v32  ;;  %v6254_v11 = vpack.c.bf16 %v2467_v25, %v2466_v48  ;;  %v3004_v48 = vld [vmem:[#allocation2 + $0xc0] sm:$0xff] }
 0x2f6   : > { %4954 = vmatmul.msk.bf16.gmra.mxu3 %vm378_vm1, %v6243_v41  ;;  %v6276_v25 = vpack.c.bf16 %v3005_v55, %v3004_v48 }
 0x2f7   : > { %7137 = vst [vmem:[#allocation6_spill] sm:$0xff] %v6254_v11  ;;  %v2240_v9 = vmul.f32 %v5930_v29, %v2204_v46  ;;  %4929 = vmatmul.msk.bf16.gmra.mxu1 %vm378_vm1, %v6254_v11 }
 0x2f8   : > { %v1725_v50 = vpop.f32.mrf.mxu2  ;;  %7138 = vst [vmem:[#allocation8_spill] sm:$0xff] %v6276_v25 }
 0x2f9   : > { %v1946_v23 = vpop.f32.mrf.mxu3  ;;  %v2276_v1 = vadd.f32 %v5939_v22, %v2240_v9  ;;  %v1763_v45 = vadd.f32 %v1725_v50, %v5840_v30  ;;  %v2169_v19 = vpop.f32.mrf.mxu0  ;;  %v3752_v30 = vsel %vm427_vm0, %v3702_v36, 0 }
 0x2fa   : > { %3761 = vmatpush.bf16.msra.mxu3 %v3752_v30 }
 0x2fb   : > { %v2308_v54 = vmax.f32 %v2276_v1, 0.0  ;;  %v1984_v3 = vadd.f32 %v1946_v23, %v1763_v45  ;;  %v3923_v1 = vld [vmem:[%s7082_s4 + $0x1c] sm:$0xf] }
 0x2fc   : > { %v6261_v21 = vpop.f32.mrf.mxu1  ;;  %v2468_v39 = vld [vmem:[#allocation2 + $0x151] sm:$0xff]  ;;  %v3973_v45 = vsel %vm427_vm0, %v3923_v1, 0 }
 0x2fd   : > { %2386 = vst.msk [vmem:[#allocation2 + $0x159] sm:$0xff] %vm378_vm1, %v2308_v54  ;;  %v2205_v2 = vadd.f32 %v2167_v20, %v1984_v3  ;;  %v2784_v20 = vld [vmem:[#allocation2 + $0xb2] sm:$0xff]  ;;  %v5111_v54 = vld [vmem:[%s7080_s2] ss:$0 sm:$0xff]  ;;  %3982 = vmatpush.bf16.msra.mxu0 %v3973_v45 }
 0x2fe   : > { %v6278_v50 = vpack.c.bf16 %v2784_v20, %v2783_v60  ;;  %v1544_v20 = vadd.f32 %v6100_v49, %v5912_v4  ;;  %v3006_v1 = vld [vmem:[#allocation2 + $0xd8] sm:$0xff] }
 0x2ff   : > { %v2241_v58 = vmul.f32 %v5930_v29, %v2205_v2 }
 0x300   : > { %v1727_v14 = vpop.f32.mrf.mxu2  ;;  %7139 = vst [vmem:[#allocation9_spill] sm:$0xff] %v6278_v50 }
 0x301   : > { %v1948_v62 = vpop.f32.mrf.mxu3  ;;  %v2277_v59 = vadd.f32 %v5939_v22, %v2241_v58  ;;  %v1764_v63 = vadd.f32 %v1727_v14, %v1542_v6  ;;  %v2172_v61 = vpop.f32.mrf.mxu0 }
 0x303   : > { %v2309_v46 = vmax.f32 %v2277_v59, 0.0  ;;  %v1985_v9 = vadd.f32 %v1948_v62, %v1764_v63  ;;  %v3007_v63 = vld [vmem:[#allocation2 + $0xe0] sm:$0xff] }
 0x304   : > { %v6280_v7 = vpop.f32.mrf.mxu1  ;;  %4971 = vmatmul.msk.bf16.gmra.mxu0 %vm378_vm1, %v6276_v25  ;;  %v2469_v29 = vld [vmem:[#allocation2 + $0x159] sm:$0xff]  ;;  %v6313_v45 = vpack.c.bf16 %v3007_v63, %v3006_v1 }
 0x305   : > { %2387 = vst.msk [vmem:[#allocation2 + $0x169] sm:$0xff] %vm378_vm1, %v2309_v46  ;;  %v2206_v23 = vadd.f32 %v2169_v19, %v1985_v9  ;;  %4939 = vmatmul.msk.bf16.gmra.mxu2 %vm378_vm1, %v6241_v10  ;;  %v6289_v22 = vpack.c.bf16 %v2469_v29, %v2468_v39  ;;  %v4144_v19 = vld [vmem:[%s7082_s4 + $0x20] sm:$0xf]  ;;  %v2786_v39 = vld [vmem:[#allocation2 + $0xca] sm:$0xff] }
 0x306   : > { %4955 = vmatmul.msk.bf16.gmra.mxu3 %vm378_vm1, %v6278_v50  ;;  %v4194_v36 = vsel %vm427_vm0, %v4144_v19, 0  ;;  %v2785_v9 = vld [vmem:[#allocation2 + $0xc2] sm:$0xff]  ;;  %7141 = vst [vmem:[#allocation12_spill] sm:$0xff] %v6313_v45  ;;  %v3222_v10 = vld [vmem:[#allocation2 + $0x99] sm:$0xff] }
 0x307   : > { %7140 = vst [vmem:[#allocation10_spill] sm:$0xff] %v6289_v22  ;;  %v2242_v3 = vmul.f32 %v5111_v54, %v2206_v23  ;;  %4930 = vmatmul.msk.bf16.gmra.mxu1 %vm378_vm1, %v6289_v22  ;;  %v3220_v50 = vld [vmem:[#allocation2 + $0x81] sm:$0xff] }
 0x308   : > { %v1730_v2 = vpop.f32.mrf.mxu2  ;;  %4203 = vmatpush.bf16.msra.mxu1 %v4194_v36 }
 0x309   : > { %v1951_v12 = vpop.f32.mrf.mxu3  ;;  %v2278_v30 = vadd.f32 %v5112_v35, %v2242_v3  ;;  %v1765_v6 = vadd.f32 %v1730_v2, %v5893_v47  ;;  %v2174_v58 = vpop.f32.mrf.mxu0  ;;  %v6315_v2 = vpack.c.bf16 %v2786_v39, %v2785_v9  ;;  %v2787_v39 = vld [vmem:[#allocation2 + $0xda] sm:$0xff] }
 0x30b   : > { %v2310_v55 = vmax.f32 %v2278_v30, 0.0  ;;  %v1986_v14 = vadd.f32 %v1951_v12, %v1765_v6  ;;  %7142 = vst [vmem:[#allocation13_spill] sm:$0xff] %v6315_v2 }
 0x30c   : > { %v6308_v62 = vpop.f32.mrf.mxu1  ;;  %v2470_v4 = vld [vmem:[#allocation2 + $0x169] sm:$0xff] }
 0x30d   : > { %2388 = vst.msk [vmem:[#allocation2 + $0x171] sm:$0xff] %vm378_vm1, %v2310_v55  ;;  %v2207_v60 = vadd.f32 %v2172_v61, %v1986_v14 }
 0x30f   : > { %v2243_v59 = vmul.f32 %v5111_v54, %v2207_v60 }
 0x310   : > { %v1732_v48 = vpop.f32.mrf.mxu2 }
 0x311   : > { %v1953_v46 = vpop.f32.mrf.mxu3  ;;  %v2279_v29 = vadd.f32 %v5112_v35, %v2243_v59  ;;  %v1766_v47 = vadd.f32 %v1732_v48, %v1544_v20  ;;  %v3099_v23 = vpop.f32.mrf.mxu0 }
 0x313   : > { %v2311_v3 = vmax.f32 %v2279_v29, 0.0  ;;  %v1987_v19 = vadd.f32 %v1953_v46, %v1766_v47  ;;  %v3009_v46 = vld [vmem:[#allocation2 + $0xf8] sm:$0xff]  ;;  %v2788_v29 = vld [vmem:[#allocation2 + $0xe2] sm:$0xff] }
 0x314   : > { %v6317_v61 = vpop.f32.mrf.mxu1  ;;  %4972 = vmatmul.msk.bf16.gmra.mxu0 %vm378_vm1, %v6313_v45  ;;  %v2471_v49 = vld [vmem:[#allocation2 + $0x171] sm:$0xff] }
 0x315   : > { %2389 = vst.msk [vmem:[#allocation2 + $0x181] sm:$0xff] %vm378_vm1, %v2311_v3  ;;  %v2208_v12 = vadd.f32 %v2174_v58, %v1987_v19  ;;  %4940 = vmatmul.msk.bf16.gmra.mxu2 %vm378_vm1, %v6276_v25  ;;  %v6326_v36 = vpack.c.bf16 %v2471_v49, %v2470_v4  ;;  %v6339_v4 = vpack.c.bf16 %v2788_v29, %v2787_v39  ;;  %v2789_v39 = vld [vmem:[#allocation2 + $0xf2] sm:$0xff]  ;;  %v2790_v29 = vld [vmem:[#allocation2 + $0xfa] sm:$0xff] }
 0x316   : > { %4956 = vmatmul.msk.bf16.gmra.mxu3 %vm378_vm1, %v6315_v2  ;;  %v3218_v2 = vld [vmem:[#allocation2 + $0x69] sm:$0xff] }
 0x317   : > { %7143 = vst [vmem:[#allocation11_spill] sm:$0xff] %v6326_v36  ;;  %v2244_v30 = vmul.f32 %v5111_v54, %v2208_v12  ;;  %4931 = vmatmul.msk.bf16.gmra.mxu1 %vm378_vm1, %v6326_v36 }
 0x318   : > { %v2689_v6 = vpop.f32.mrf.mxu2  ;;  %7145 = vst [vmem:[#allocation4_spill] sm:$0xff] %v6339_v4 }
 0x319   : > { %v2878_v55 = vpop.f32.mrf.mxu3  ;;  %v2280_v14 = vadd.f32 %v5112_v35, %v2244_v30  ;;  %v2690_v60 = vadd.f32 %v2689_v6, %v6107_v0  ;;  %v3101_v20 = vpop.f32.mrf.mxu0  ;;  %v3008_v35 = vld [vmem:[#allocation2 + $0xf0] sm:$0xff]  ;;  %v3212_v0 = vld [vmem:[#allocation2 + $0x21] sm:$0xff] }
 0x31a   : > { %v6337_v3 = vpack.c.bf16 %v3009_v46, %v3008_v35  ;;  %v3011_v46 = vld [vmem:[#allocation2 + $0x110] sm:$0xff]  ;;  %v3010_v35 = vld [vmem:[#allocation2 + $0x108] sm:$0xff] }
 0x31b   : > { %v2312_v59 = vmax.f32 %v2280_v14, 0.0  ;;  %v2958_v58 = vadd.f32 %v2878_v55, %v2690_v60 }
 0x31c   : > { %v6331_v63 = vpop.f32.mrf.mxu1  ;;  %7144 = vst [vmem:[#allocation14_spill] sm:$0xff] %v6337_v3 }
 0x31d   : > { %2390 = vst.msk [vmem:[#allocation2 + $0x189] sm:$0xff] %vm378_vm1, %v2312_v59  ;;  %v6334_v48 = vadd.f32 %v3099_v23, %v2958_v58  ;;  %v3211_v23 = vld [vmem:[#allocation2 + $0x19] sm:$0xff] }
 0x320   : > { %v2691_v9 = vpop.f32.mrf.mxu2 }
 0x321   : > { %v2880_v54 = vpop.f32.mrf.mxu3  ;;  %v2692_v47 = vadd.f32 %v2691_v9, %v6126_v27  ;;  %v3104_v1 = vpop.f32.mrf.mxu0  ;;  %v3243_v27 = vpack.c.bf16 %v3212_v0, %v3211_v23  ;;  %v6358_v0 = vpack.c.bf16 %v3011_v46, %v3010_v35 }
 0x323   : > { %v2959_v19 = vadd.f32 %v2880_v54, %v2692_v47  ;;  %7146 = vst [vmem:[#allocation3_spill] sm:$0xff] %v6358_v0 }
 0x324   : > { %v6341_v49 = vpop.f32.mrf.mxu1  ;;  %4973 = vmatmul.msk.bf16.gmra.mxu0 %vm378_vm1, %v6337_v3 }
 0x325   : > { %4941 = vmatmul.msk.bf16.gmra.mxu2 %vm378_vm1, %v6313_v45  ;;  %v6349_v12 = vadd.f32 %v3101_v20, %v2959_v19  ;;  %v3214_v19 = vld [vmem:[#allocation2 + $0x39] sm:$0xff] }
 0x326   : > { %4957 = vmatmul.msk.bf16.gmra.mxu3 %vm378_vm1, %v6339_v4  ;;  %v3216_v4 = vld [vmem:[#allocation2 + $0x51] sm:$0xff] }
 0x327   : > { %4980 = vmatmul.msk.bf16.vlgmr.msrb.gmra.mxu1 %vm378_vm1, %v3243_v27 }
 0x328   : > { %v2694_v30 = vpop.f32.mrf.mxu2 }
 0x329   : > { %v2883_v6 = vpop.f32.mrf.mxu3  ;;  %v2695_v55 = vadd.f32 %v2694_v30, %v6137_v15  ;;  %v3106_v14 = vpop.f32.mrf.mxu0  ;;  %v6360_v15 = vpack.c.bf16 %v2790_v29, %v2789_v39  ;;  %v3013_v29 = vld [vmem:[#allocation2 + $0x128] sm:$0xff] }
 0x32b   : > { %v2960_v60 = vadd.f32 %v2883_v6, %v2695_v55  ;;  %7147 = vst [vmem:[#allocation15_spill] sm:$0xff] %v6360_v15 }
 0x32c   : > { %v6353_v59 = vpop.f32.mrf.mxu1 }
 0x32d   : > { %v6355_v58 = vadd.f32 %v3104_v1, %v2960_v60  ;;  %v3213_v1 = vld [vmem:[#allocation2 + $0x31] sm:$0xff] }
 0x330   : > { %v2696_v9 = vpop.f32.mrf.mxu2 }
 0x331   : > { %v2885_v54 = vpop.f32.mrf.mxu3  ;;  %v2697_v20 = vadd.f32 %v2696_v9, %v6153_v53  ;;  %v3109_v47 = vpop.f32.mrf.mxu0  ;;  %v6370_v53 = vpack.c.bf16 %v3214_v19, %v3213_v1  ;;  %v2791_v19 = vld [vmem:[#allocation2 + $0x10a] sm:$0xff]  ;;  %v2792_v1 = vld [vmem:[#allocation2 + $0x112] sm:$0xff] }
 0x333   : > { %v2961_v23 = vadd.f32 %v2885_v54, %v2697_v20 }
 0x334   : > { %v6362_v27 = vpop.f32.mrf.mxu1  ;;  %4974 = vmatmul.msk.bf16.gmra.mxu0 %vm378_vm1, %v6358_v0 }
 0x335   : > { %4942 = vmatmul.msk.bf16.gmra.mxu2 %vm378_vm1, %v6337_v3  ;;  %v6372_v30 = vadd.f32 %v3106_v14, %v2961_v23 }
 0x336   : > { %4958 = vmatmul.msk.bf16.gmra.mxu3 %vm378_vm1, %v6360_v15  ;;  %v3012_v15 = vld [vmem:[#allocation2 + $0x120] sm:$0xff] }
 0x337   : > { %4981 = vmatmul.msk.bf16.gmra.mxu1 %vm378_vm1, %v6370_v53  ;;  %v6382_v3 = vpack.c.bf16 %v3013_v29, %v3012_v15 }
 0x338   : > { %v2699_v6 = vpop.f32.mrf.mxu2 }
 0x339   : > { %v2888_v55 = vpop.f32.mrf.mxu3  ;;  %v2700_v60 = vadd.f32 %v2699_v6, %v6164_v31  ;;  %v3111_v46 = vpop.f32.mrf.mxu0  ;;  %7148 = vst [vmem:[#allocation16_spill] sm:$0xff] %v6382_v3  ;;  %v6384_v31 = vpack.c.bf16 %v2792_v1, %v2791_v19  ;;  %v3015_v1 = vld [vmem:[#allocation2 + $0x140] sm:$0xff] }
 0x33b   : > { %v2962_v9 = vadd.f32 %v2888_v55, %v2700_v60  ;;  %7149 = vst [vmem:[#allocation17_spill] sm:$0xff] %v6384_v31 }
 0x33c   : > { %v6377_v54 = vpop.f32.mrf.mxu1 }
 0x33d   : > { %v6379_v39 = vadd.f32 %v3109_v47, %v2962_v9  ;;  %v3215_v47 = vld [vmem:[#allocation2 + $0x49] sm:$0xff] }
 0x340   : > { %v2701_v20 = vpop.f32.mrf.mxu2 }
 0x341   : > { %v2890_v35 = vpop.f32.mrf.mxu3  ;;  %v2702_v14 = vadd.f32 %v2701_v20, %v6180_v43  ;;  %v3114_v23 = vpop.f32.mrf.mxu0  ;;  %v6394_v43 = vpack.c.bf16 %v3216_v4, %v3215_v47  ;;  %v2793_v4 = vld [vmem:[#allocation2 + $0x122] sm:$0xff]  ;;  %v2794_v47 = vld [vmem:[#allocation2 + $0x12a] sm:$0xff] }
 0x343   : > { %v2963_v36 = vadd.f32 %v2890_v35, %v2702_v14 }
 0x344   : > { %v6386_v6 = vpop.f32.mrf.mxu1  ;;  %4975 = vmatmul.msk.bf16.gmra.mxu0 %vm378_vm1, %v6382_v3 }
 0x345   : > { %4943 = vmatmul.msk.bf16.gmra.mxu2 %vm378_vm1, %v6358_v0  ;;  %v6396_v15 = vadd.f32 %v3111_v46, %v2963_v36  ;;  %v3014_v0 = vld [vmem:[#allocation2 + $0x138] sm:$0xff] }
 0x346   : > { %4959 = vmatmul.msk.bf16.gmra.mxu3 %vm378_vm1, %v6384_v31  ;;  %v6406_v45 = vpack.c.bf16 %v3015_v1, %v3014_v0 }
 0x347   : > { %4982 = vmatmul.msk.bf16.gmra.mxu1 %vm378_vm1, %v6394_v43 }
 0x348   : > { %v2704_v55 = vpop.f32.mrf.mxu2  ;;  %7150 = vst [vmem:[#allocation18_spill] sm:$0xff] %v6406_v45 }
 0x349   : > { %v2893_v60 = vpop.f32.mrf.mxu3  ;;  %v2705_v9 = vadd.f32 %v2704_v55, %v6191_v26  ;;  %v3116_v29 = vpop.f32.mrf.mxu0  ;;  %v6408_v26 = vpack.c.bf16 %v2794_v47, %v2793_v4  ;;  %v3017_v47 = vld [vmem:[#allocation2 + $0x158] sm:$0xff] }
 0x34b   : > { %v2964_v20 = vadd.f32 %v2893_v60, %v2705_v9  ;;  %7151 = vst [vmem:[#allocation19_spill] sm:$0xff] %v6408_v26 }
 0x34c   : > { %v6401_v35 = vpop.f32.mrf.mxu1 }
 0x34d   : > { %v6403_v19 = vadd.f32 %v3114_v23, %v2964_v20  ;;  %v3217_v23 = vld [vmem:[#allocation2 + $0x61] sm:$0xff] }
 0x350   : > { %v2706_v14 = vpop.f32.mrf.mxu2 }
 0x351   : > { %v2895_v31 = vpop.f32.mrf.mxu3  ;;  %v2707_v36 = vadd.f32 %v2706_v14, %v6207_v24  ;;  %v3119_v46 = vpop.f32.mrf.mxu0  ;;  %v6418_v24 = vpack.c.bf16 %v3218_v2, %v3217_v23  ;;  %v2795_v2 = vld [vmem:[#allocation2 + $0x13a] sm:$0xff]  ;;  %v2796_v23 = vld [vmem:[#allocation2 + $0x142] sm:$0xff] }
 0x353   : > { %v2965_v22 = vadd.f32 %v2895_v31, %v2707_v36 }
 0x354   : > { %v6410_v55 = vpop.f32.mrf.mxu1  ;;  %4976 = vmatmul.msk.bf16.gmra.mxu0 %vm378_vm1, %v6406_v45 }
 0x355   : > { %4944 = vmatmul.msk.bf16.gmra.mxu2 %vm378_vm1, %v6382_v3  ;;  %v6420_v0 = vadd.f32 %v3116_v29, %v2965_v22  ;;  %v3016_v3 = vld [vmem:[#allocation2 + $0x150] sm:$0xff] }
 0x356   : > { %4960 = vmatmul.msk.bf16.gmra.mxu3 %vm378_vm1, %v6408_v26  ;;  %v6430_v25 = vpack.c.bf16 %v3017_v47, %v3016_v3 }
 0x357   : > { %4983 = vmatmul.msk.bf16.gmra.mxu1 %vm378_vm1, %v6418_v24 }
 0x358   : > { %v2709_v31 = vpop.f32.mrf.mxu2  ;;  %7152 = vst [vmem:[#allocation20_spill] sm:$0xff] %v6430_v25 }
 0x359   : > { %v2898_v60 = vpop.f32.mrf.mxu3  ;;  %v2710_v9 = vadd.f32 %v2709_v31, %v6218_v38  ;;  %v3121_v20 = vpop.f32.mrf.mxu0  ;;  %v6432_v38 = vpack.c.bf16 %v2796_v23, %v2795_v2  ;;  %v3019_v23 = vld [vmem:[#allocation2 + $0x170] sm:$0xff] }
 0x35b   : > { %v2966_v1 = vadd.f32 %v2898_v60, %v2710_v9  ;;  %7153 = vst [vmem:[#allocation21_spill] sm:$0xff] %v6432_v38 }
 0x35c   : > { %v6425_v14 = vpop.f32.mrf.mxu1 }
 0x35d   : > { %v6427_v4 = vadd.f32 %v3119_v46, %v2966_v1  ;;  %v3219_v46 = vld [vmem:[#allocation2 + $0x79] sm:$0xff] }
 0x360   : > { %v2711_v36 = vpop.f32.mrf.mxu2 }
 0x361   : > { %v2900_v26 = vpop.f32.mrf.mxu3  ;;  %v2712_v22 = vadd.f32 %v2711_v36, %v6234_v42  ;;  %v3124_v29 = vpop.f32.mrf.mxu0  ;;  %v6442_v42 = vpack.c.bf16 %v3220_v50, %v3219_v46  ;;  %v2797_v50 = vld [vmem:[#allocation2 + $0x152] sm:$0xff]  ;;  %v2798_v46 = vld [vmem:[#allocation2 + $0x15a] sm:$0xff] }
 0x363   : > { %v2967_v11 = vadd.f32 %v2900_v26, %v2712_v22 }
 0x364   : > { %v6434_v31 = vpop.f32.mrf.mxu1  ;;  %4977 = vmatmul.msk.bf16.gmra.mxu0 %vm378_vm1, %v6430_v25 }
 0x365   : > { %4945 = vmatmul.msk.bf16.gmra.mxu2 %vm378_vm1, %v6406_v45  ;;  %v6444_v3 = vadd.f32 %v3121_v20, %v2967_v11  ;;  %v3018_v45 = vld [vmem:[#allocation2 + $0x168] sm:$0xff] }
 0x366   : > { %4961 = vmatmul.msk.bf16.gmra.mxu3 %vm378_vm1, %v6432_v38 }
 0x367   : > { %7154 = vst [vmem:[#allocation22_spill] sm:$0xff] %v6444_v3  ;;  %4984 = vmatmul.msk.bf16.gmra.mxu1 %vm378_vm1, %v6442_v42  ;;  %v6454_v3 = vpack.c.bf16 %v3019_v23, %v3018_v45 }
 0x368   : > { %v2714_v26 = vpop.f32.mrf.mxu2 }
 0x369   : > { %v2903_v60 = vpop.f32.mrf.mxu3  ;;  %v2715_v9 = vadd.f32 %v2714_v26, %v6245_v44  ;;  %v3126_v1 = vpop.f32.mrf.mxu0  ;;  %v6456_v44 = vpack.c.bf16 %v2798_v46, %v2797_v50  ;;  %v3021_v46 = vld [vmem:[#allocation2 + $0x188] sm:$0xff] }
 0x36b   : > { %v2968_v47 = vadd.f32 %v2903_v60, %v2715_v9  ;;  %7156 = vst [vmem:[#allocation24_spill] sm:$0xff] %v6456_v44 }
 0x36c   : > { %v6449_v36 = vpop.f32.mrf.mxu1 }
 0x36d   : > { %v6451_v2 = vadd.f32 %v3124_v29, %v2968_v47  ;;  %v3221_v29 = vld [vmem:[#allocation2 + $0x91] sm:$0xff] }
 0x36f   : > { %7155 = vst [vmem:[#allocation23_spill] sm:$0xff] %v6451_v2 }
 0x370   : > { %v2716_v22 = vpop.f32.mrf.mxu2 }
 0x371   : > { %v2905_v38 = vpop.f32.mrf.mxu3  ;;  %v2717_v11 = vadd.f32 %v2716_v22, %v6261_v21  ;;  %v3129_v20 = vpop.f32.mrf.mxu0  ;;  %v6466_v21 = vpack.c.bf16 %v3222_v10, %v3221_v29  ;;  %v2799_v10 = vld [vmem:[#allocation2 + $0x16a] sm:$0xff]  ;;  %v2800_v29 = vld [vmem:[#allocation2 + $0x172] sm:$0xff] }
 0x373   : > { %v2969_v41 = vadd.f32 %v2905_v38, %v2717_v11 }
 0x374   : > { %v6458_v26 = vpop.f32.mrf.mxu1  ;;  %4978 = vmatmul.msk.bf16.gmra.mxu0 %vm378_vm1, %v6454_v3 }
 0x375   : > { %7157 = vst [vmem:[#allocation25_spill] sm:$0xff] %v6458_v26  ;;  %4946 = vmatmul.msk.bf16.gmra.mxu2 %vm378_vm1, %v6430_v25  ;;  %v6468_v45 = vadd.f32 %v3126_v1, %v2969_v41  ;;  %v3020_v25 = vld [vmem:[#allocation2 + $0x180] sm:$0xff]  ;;  %v6480_v26 = vpack.c.bf16 %v2800_v29, %v2799_v10 }
 0x376   : > { %4962 = vmatmul.msk.bf16.gmra.mxu3 %vm378_vm1, %v6456_v44 }
 0x377   : > { %7158 = vst [vmem:[#allocation26_spill] sm:$0xff] %v6468_v45  ;;  %4985 = vmatmul.msk.bf16.gmra.mxu1 %vm378_vm1, %v6466_v21  ;;  %v6478_v45 = vpack.c.bf16 %v3021_v46, %v3020_v25 }
 0x378   : > { %v2719_v38 = vpop.f32.mrf.mxu2 }
 0x379   : > { %v2908_v60 = vpop.f32.mrf.mxu3  ;;  %v2720_v9 = vadd.f32 %v2719_v38, %v6280_v7  ;;  %v3131_v47 = vpop.f32.mrf.mxu0 }
 0x37b   : > { %v2970_v23 = vadd.f32 %v2908_v60, %v2720_v9 }
 0x37c   : > { %v6473_v22 = vpop.f32.mrf.mxu1 }
 0x37d   : > { %v6475_v50 = vadd.f32 %v3129_v20, %v2970_v23 }
 0x380   : > { %v2721_v11 = vpop.f32.mrf.mxu2 }
 0x381   : > { %v2910_v44 = vpop.f32.mrf.mxu3  ;;  %v2722_v41 = vadd.f32 %v2721_v11, %v6308_v62  ;;  %v3134_v1 = vpop.f32.mrf.mxu0 }
 0x383   : > { %v2971_v2 = vadd.f32 %v2910_v44, %v2722_v41 }
 0x384   : > { %v6482_v7 = vpop.f32.mrf.mxu1  ;;  %4979 = vmatmul.msk.bf16.gmra.mxu0 %vm378_vm1, %v6478_v45 }
 0x385   : > { %4947 = vmatmul.msk.bf16.gmra.mxu2 %vm378_vm1, %v6454_v3  ;;  %v6490_v20 = vadd.f32 %v3131_v47, %v2971_v2 }
 0x386   : > { %4963 = vmatmul.msk.bf16.gmra.mxu3 %vm378_vm1, %v6480_v26 }
 0x387   : > { %4986 = vmatmul.msk.bf16.gmra.mxu1 %vm378_vm1, %v6093_v13 }
 0x388   : > { %v2724_v25 = vpop.f32.mrf.mxu2 }
 0x389   : > { %v2913_v62 = vpop.f32.mrf.mxu3  ;;  %v2725_v44 = vadd.f32 %v2724_v25, %v6317_v61  ;;  %v3136_v38 = vpop.f32.mrf.mxu0 }
 0x38b   : > { %v2972_v60 = vadd.f32 %v2913_v62, %v2725_v44 }
 0x38c   : > { %v6495_v9 = vpop.f32.mrf.mxu1 }
 0x38d   : > { %v6497_v23 = vadd.f32 %v3134_v1, %v2972_v60 }
 0x390   : > { %v2726_v46 = vpop.f32.mrf.mxu2 }
 0x391   : > { %v2915_v11 = vpop.f32.mrf.mxu3  ;;  %v2727_v10 = vadd.f32 %v2726_v46, %v6331_v63  ;;  %v3139_v29 = vpop.f32.mrf.mxu0 }
 0x393   : > { %v2973_v2 = vadd.f32 %v2915_v11, %v2727_v10 }
 0x394   : > { %v6500_v47 = vpop.f32.mrf.mxu1  ;;  %5028 = vmatmul.msk.bf16.vlgmr.msra.gmra.mxu0 %vm378_vm1, %v6370_v53 }
 0x395   : > { %4996 = vmatmul.msk.bf16.vlgmr.msra.gmra.mxu2 %vm378_vm1, %v6111_v8  ;;  %v6508_v13 = vadd.f32 %v3136_v38, %v2973_v2 }
 0x396   : > { %5012 = vmatmul.msk.bf16.vlgmr.msra.gmra.mxu3 %vm378_vm1, %v6109_v5 }
 0x397   : > { %4987 = vmatmul.msk.bf16.gmra.mxu1 %vm378_vm1, %v6119_v56 }
 0x398   : > { %v2729_v61 = vpop.f32.mrf.mxu2 }
 0x399   : > { %v2918_v63 = vpop.f32.mrf.mxu3  ;;  %v2730_v41 = vadd.f32 %v2729_v61, %v6341_v49  ;;  %v3141_v1 = vpop.f32.mrf.mxu0 }
 0x39b   : > { %v2974_v25 = vadd.f32 %v2918_v63, %v2730_v41 }
 0x39c   : > { %v6513_v62 = vpop.f32.mrf.mxu1 }
 0x39d   : > { %v6515_v53 = vadd.f32 %v3139_v29, %v2974_v25 }
 0x3a0   : > { %v2731_v44 = vpop.f32.mrf.mxu2 }
 0x3a1   : > { %v2920_v8 = vpop.f32.mrf.mxu3  ;;  %v2732_v60 = vadd.f32 %v2731_v44, %v6353_v59  ;;  %v3144_v5 = vpop.f32.mrf.mxu0 }
 0x3a3   : > { %v2975_v38 = vadd.f32 %v2920_v8, %v2732_v60 }
 0x3a4   : > { %v3320_v46 = vpop.f32.mrf.mxu1  ;;  %5029 = vmatmul.msk.bf16.gmra.mxu0 %vm378_vm1, %v6394_v43 }
 0x3a5   : > { %v6521_v56 = vadd.f32 %v3320_v46, %v6334_v48  ;;  %4997 = vmatmul.msk.bf16.gmra.mxu2 %vm378_vm1, %v6135_v40  ;;  %v6527_v49 = vadd.f32 %v3141_v1, %v2975_v38 }
 0x3a6   : > { %5013 = vmatmul.msk.bf16.gmra.mxu3 %vm378_vm1, %v6133_v17 }
 0x3a7   : > { %4988 = vmatmul.msk.bf16.gmra.mxu1 %vm378_vm1, %v6146_v18 }
 0x3a8   : > { %v2734_v59 = vpop.f32.mrf.mxu2 }
 0x3a9   : > { %v2923_v11 = vpop.f32.mrf.mxu3  ;;  %v2735_v10 = vadd.f32 %v2734_v59, %v6362_v27  ;;  %v3146_v29 = vpop.f32.mrf.mxu0 }
 0x3ab   : > { %v2976_v43 = vadd.f32 %v2923_v11, %v2735_v10 }
 0x3ac   : > { %v3322_v2 = vpop.f32.mrf.mxu1 }
 0x3ad   : > { %v6533_v48 = vadd.f32 %v3322_v2, %v6349_v12  ;;  %v6535_v61 = vadd.f32 %v3144_v5, %v2976_v43 }
 0x3b0   : > { %v2736_v40 = vpop.f32.mrf.mxu2 }
 0x3b1   : > { %v2925_v63 = vpop.f32.mrf.mxu3  ;;  %v2737_v17 = vadd.f32 %v2736_v40, %v6377_v54  ;;  %v3149_v41 = vpop.f32.mrf.mxu0 }
 0x3b3   : > { %v2977_v1 = vadd.f32 %v2925_v63, %v2737_v17 }
 0x3b4   : > { %v3325_v25 = vpop.f32.mrf.mxu1  ;;  %5030 = vmatmul.msk.bf16.gmra.mxu0 %vm378_vm1, %v6418_v24 }
 0x3b5   : > { %v6541_v18 = vadd.f32 %v3325_v25, %v6355_v58  ;;  %4998 = vmatmul.msk.bf16.gmra.mxu2 %vm378_vm1, %v6162_v34  ;;  %v6547_v12 = vadd.f32 %v3146_v29, %v2977_v1 }
 0x3b6   : > { %5014 = vmatmul.msk.bf16.gmra.mxu3 %vm378_vm1, %v6160_v28 }
 0x3b7   : > { %4989 = vmatmul.msk.bf16.gmra.mxu1 %vm378_vm1, %v6173_v51 }
 0x3b8   : > { %v2739_v27 = vpop.f32.mrf.mxu2 }
 0x3b9   : > { %v2928_v54 = vpop.f32.mrf.mxu3  ;;  %v2740_v44 = vadd.f32 %v2739_v27, %v6386_v6  ;;  %v3151_v8 = vpop.f32.mrf.mxu0 }
 0x3bb   : > { %v2978_v24 = vadd.f32 %v2928_v54, %v2740_v44 }
 0x3bc   : > { %v3327_v60 = vpop.f32.mrf.mxu1 }
 0x3bd   : > { %v6553_v58 = vadd.f32 %v3327_v60, %v6372_v30  ;;  %v6555_v5 = vadd.f32 %v3149_v41, %v2978_v24  ;;  %v3885_v60 = vld [vmem:[#allocation2 + $0xa9] sm:$0xff] }
 0x3c0   : > { %v2741_v34 = vpop.f32.mrf.mxu2 }
 0x3c1   : > { %v2930_v38 = vpop.f32.mrf.mxu3  ;;  %v2742_v28 = vadd.f32 %v2741_v34, %v6401_v35  ;;  %v3154_v46 = vpop.f32.mrf.mxu0 }
 0x3c3   : > { %v2979_v59 = vadd.f32 %v2930_v38, %v2742_v28  ;;  %v7159_v28 = vld [vmem:[#allocation5_spill] sm:$0xff] }
 0x3c4   : > { %v3330_v11 = vpop.f32.mrf.mxu1  ;;  %5031 = vmatmul.msk.bf16.gmra.mxu0 %vm378_vm1, %v6442_v42 }
 0x3c5   : > { %v6561_v51 = vadd.f32 %v3330_v11, %v6379_v39  ;;  %4999 = vmatmul.msk.bf16.gmra.mxu2 %vm378_vm1, %v6189_v37  ;;  %v6567_v30 = vadd.f32 %v3151_v8, %v2979_v59  ;;  %v7161_v59 = vld [vmem:[#allocation6_spill] sm:$0xff] }
 0x3c6   : > { %5015 = vmatmul.msk.bf16.gmra.mxu3 %vm378_vm1, %v6187_v33 }
 0x3c7   : > { %4990 = vmatmul.msk.bf16.gmra.mxu1 %vm378_vm1, %v6200_v16 }
 0x3c8   : > { %v2744_v6 = vpop.f32.mrf.mxu2 }
 0x3c9   : > { %v2933_v35 = vpop.f32.mrf.mxu3  ;;  %v2745_v10 = vadd.f32 %v2744_v6, %v6410_v55  ;;  %v3156_v29 = vpop.f32.mrf.mxu0  ;;  %v7162_v6 = vld [vmem:[#allocation25_spill] sm:$0xff] }
 0x3cb   : > { %v2980_v42 = vadd.f32 %v2933_v35, %v2745_v10 }
 0x3cc   : > { %v3332_v43 = vpop.f32.mrf.mxu1 }
 0x3cd   : > { %v6573_v39 = vadd.f32 %v3332_v43, %v6396_v15  ;;  %v6575_v2 = vadd.f32 %v3154_v46, %v2980_v42 }
 0x3d0   : > { %v2746_v37 = vpop.f32.mrf.mxu2 }
 0x3d1   : > { %v2935_v40 = vpop.f32.mrf.mxu3  ;;  %v2747_v33 = vadd.f32 %v2746_v37, %v6425_v14  ;;  %v3159_v63 = vpop.f32.mrf.mxu0 }
 0x3d3   : > { %v2981_v17 = vadd.f32 %v2935_v40, %v2747_v33  ;;  %v3888_v40 = vld [vmem:[#allocation2 + $0xc9] sm:$0xff] }
 0x3d4   : > { %v3335_v41 = vpop.f32.mrf.mxu1  ;;  %5032 = vmatmul.msk.bf16.gmra.mxu0 %vm378_vm1, %v6466_v21 }
 0x3d5   : > { %v6581_v16 = vadd.f32 %v3335_v41, %v6403_v19  ;;  %5000 = vmatmul.msk.bf16.gmra.mxu2 %vm378_vm1, %v6216_v52  ;;  %v6587_v15 = vadd.f32 %v3156_v29, %v2981_v17  ;;  %v3886_v52 = vld [vmem:[#allocation2 + $0xb1] sm:$0xff] }
 0x3d6   : > { %5016 = vmatmul.msk.bf16.gmra.mxu3 %vm378_vm1, %v6214_v32 }
 0x3d7   : > { %4991 = vmatmul.msk.bf16.gmra.mxu1 %vm378_vm1, %v6227_v57  ;;  %v3912_v57 = vpack.c.bf16 %v3886_v52, %v3885_v60  ;;  %v7165_v52 = vld [vmem:[#allocation9_spill] sm:$0xff] }
 0x3d8   : > { %v2749_v55 = vpop.f32.mrf.mxu2 }
 0x3d9   : > { %v2938_v14 = vpop.f32.mrf.mxu3  ;;  %v2750_v1 = vadd.f32 %v2749_v55, %v6434_v31  ;;  %v3161_v25 = vpop.f32.mrf.mxu0  ;;  %v3887_v55 = vld [vmem:[#allocation2 + $0xc1] sm:$0xff] }
 0x3db   : > { %v2982_v21 = vadd.f32 %v2938_v14, %v2750_v1  ;;  %v3913_v14 = vpack.c.bf16 %v3888_v40, %v3887_v55 }
 0x3dc   : > { %v3337_v27 = vpop.f32.mrf.mxu1 }
 0x3dd   : > { %v6593_v19 = vadd.f32 %v3337_v27, %v6420_v0  ;;  %v6595_v54 = vadd.f32 %v3159_v63, %v2982_v21  ;;  %v7160_v0 = vld [vmem:[#allocation7_spill] sm:$0xff] }
 0x3de   : > { %v7164_v21 = vld [vmem:[#allocation23_spill] sm:$0xff] }
 0x3e0   : > { %v2751_v44 = vpop.f32.mrf.mxu2 }
 0x3e1   : > { %v2940_v32 = vpop.f32.mrf.mxu3  ;;  %v2752_v8 = vadd.f32 %v2751_v44, %v6449_v36  ;;  %v3164_v24 = vpop.f32.mrf.mxu0  ;;  %v7166_v44 = vld [vmem:[#allocation8_spill] sm:$0xff] }
 0x3e3   : > { %v2983_v34 = vadd.f32 %v2940_v32, %v2752_v8  ;;  %v7167_v8 = vld [vmem:[#allocation10_spill] sm:$0xff] }
 0x3e4   : > { %v3340_v38 = vpop.f32.mrf.mxu1  ;;  %5033 = vmatmul.msk.bf16.gmra.mxu0 %vm378_vm1, %v3912_v57 }
 0x3e5   : > { %v6600_v31 = vadd.f32 %v3340_v38, %v6427_v4  ;;  %5001 = vmatmul.msk.bf16.gmra.mxu2 %vm378_vm1, %v7159_v28  ;;  %v6606_v46 = vadd.f32 %v3161_v25, %v2983_v34  ;;  %v7163_v4 = vld [vmem:[#allocation22_spill] sm:$0xff] }
 0x3e6   : > { %5017 = vmatmul.msk.bf16.gmra.mxu3 %vm378_vm1, %v7160_v0  ;;  %v7168_v28 = vld [vmem:[#allocation26_spill] sm:$0xff] }
 0x3e7   : > { %4992 = vmatmul.msk.bf16.gmra.mxu1 %vm378_vm1, %v7161_v59 }
 0x3e8   : > { %v2754_v36 = vpop.f32.mrf.mxu2 }
 0x3e9   : > { %v2943_v11 = vpop.f32.mrf.mxu3  ;;  %v2755_v35 = vadd.f32 %v2754_v36, %v7162_v6  ;;  %v3166_v10 = vpop.f32.mrf.mxu0  ;;  %v3890_v36 = vld [vmem:[#allocation2 + $0xe1] sm:$0xff] }
 0x3eb   : > { %v2984_v29 = vadd.f32 %v2943_v11, %v2755_v35 }
 0x3ec   : > { %v3342_v42 = vpop.f32.mrf.mxu1 }
 0x3ed   : > { %v6612_v43 = vadd.f32 %v3342_v42, %v7163_v4  ;;  %v6614_v37 = vadd.f32 %v3164_v24, %v2984_v29  ;;  %v3889_v29 = vld [vmem:[#allocation2 + $0xd9] sm:$0xff] }
 0x3ee   : > { %v3914_v42 = vpack.c.bf16 %v3890_v36, %v3889_v29 }
 0x3f0   : > { %v2756_v33 = vpop.f32.mrf.mxu2 }
 0x3f1   : > { %v2945_v63 = vpop.f32.mrf.mxu3  ;;  %v2757_v17 = vadd.f32 %v2756_v33, %v6473_v22  ;;  %v3169_v41 = vpop.f32.mrf.mxu0  ;;  %v7169_v33 = vld [vmem:[#allocation13_spill] sm:$0xff] }
 0x3f3   : > { %v2985_v1 = vadd.f32 %v2945_v63, %v2757_v17  ;;  %v7170_v63 = vld [vmem:[#allocation12_spill] sm:$0xff] }
 0x3f4   : > { %v3345_v25 = vpop.f32.mrf.mxu1  ;;  %5034 = vmatmul.msk.bf16.gmra.mxu0 %vm378_vm1, %v3913_v14 }
 0x3f5   : > { %v6619_v27 = vadd.f32 %v3345_v25, %v7164_v21  ;;  %5002 = vmatmul.msk.bf16.gmra.mxu2 %vm378_vm1, %v7165_v52  ;;  %v6625_v32 = vadd.f32 %v3166_v10, %v2985_v1 }
 0x3f6   : > { %5018 = vmatmul.msk.bf16.gmra.mxu3 %vm378_vm1, %v7166_v44  ;;  %v3892_v44 = vld [vmem:[#allocation2 + $0xf9] sm:$0xff] }
 0x3f7   : > { %4993 = vmatmul.msk.bf16.gmra.mxu1 %vm378_vm1, %v7167_v8 }
 0x3f8   : > { %v2759_v22 = vpop.f32.mrf.mxu2 }
 0x3f9   : > { %v2948_v24 = vpop.f32.mrf.mxu3  ;;  %v2760_v60 = vadd.f32 %v2759_v22, %v6482_v7  ;;  %v3171_v57 = vpop.f32.mrf.mxu0 }
 0x3fb   : > { %v2986_v34 = vadd.f32 %v2948_v24, %v2760_v60 }
 0x3fc   : > { %v3347_v38 = vpop.f32.mrf.mxu1 }
 0x3fd   : > { %v6631_v0 = vadd.f32 %v3347_v38, %v7168_v28  ;;  %v6633_v59 = vadd.f32 %v3169_v41, %v2986_v34  ;;  %v7171_v41 = vld [vmem:[#allocation11_spill] sm:$0xff] }
 0x3fe   : > { %v3242_v38 = vld [vmem:[#allocation2 + $0x189] sm:$0xff] }
 0x400   : > { %v2761_v11 = vpop.f32.mrf.mxu2 }
 0x401   : > { %v2950_v6 = vpop.f32.mrf.mxu3  ;;  %v2762_v35 = vadd.f32 %v2761_v11, %v6495_v9  ;;  %v3174_v10 = vpop.f32.mrf.mxu0 }
 0x403   : > { %v2987_v4 = vadd.f32 %v2950_v6, %v2762_v35  ;;  %v7173_v6 = vld [vmem:[#allocation14_spill] sm:$0xff] }
 0x404   : > { %v3350_v40 = vpop.f32.mrf.mxu1  ;;  %5035 = vmatmul.msk.bf16.gmra.mxu0 %vm378_vm1, %v3914_v42 }
 0x405   : > { %v6638_v7 = vadd.f32 %v3350_v40, %v6475_v50  ;;  %5003 = vmatmul.msk.bf16.gmra.mxu2 %vm378_vm1, %v7169_v33  ;;  %v6644_v17 = vadd.f32 %v3171_v57, %v2987_v4  ;;  %v3891_v57 = vld [vmem:[#allocation2 + $0xf1] sm:$0xff] }
 0x406   : > { %5019 = vmatmul.msk.bf16.gmra.mxu3 %vm378_vm1, %v7170_v63  ;;  %v3915_v34 = vpack.c.bf16 %v3892_v44, %v3891_v57  ;;  %v4096_v44 = vld [vmem:[#allocation2 + $0x32] sm:$0xff] }
 0x407   : > { %4994 = vmatmul.msk.bf16.gmra.mxu1 %vm378_vm1, %v7171_v41  ;;  %v3894_v41 = vld [vmem:[#allocation2 + $0x111] sm:$0xff] }
 0x408   : > { %v2764_v9 = vpop.f32.mrf.mxu2 }
 0x409   : > { %v2953_v55 = vpop.f32.mrf.mxu3  ;;  %v2765_v14 = vadd.f32 %v2764_v9, %v6500_v47  ;;  %v3176_v1 = vpop.f32.mrf.mxu0  ;;  %v3241_v47 = vld [vmem:[#allocation2 + $0x181] sm:$0xff] }
 0x40a   : > { %v6663_v35 = vpack.c.bf16 %v3242_v38, %v3241_v47 }
 0x40b   : > { %v2988_v25 = vadd.f32 %v2953_v55, %v2765_v14 }
 0x40c   : > { %v3352_v21 = vpop.f32.mrf.mxu1 }
 0x40d   : > { %v6650_v50 = vadd.f32 %v3352_v21, %v6490_v20  ;;  %v6652_v52 = vadd.f32 %v3174_v10, %v2988_v25  ;;  %v7172_v20 = vld [vmem:[#allocation4_spill] sm:$0xff]  ;;  %v3893_v25 = vld [vmem:[#allocation2 + $0x109] sm:$0xff] }
 0x40e   : > { %v3916_v21 = vpack.c.bf16 %v3894_v41, %v3893_v25  ;;  %v4098_v41 = vld [vmem:[#allocation2 + $0x4a] sm:$0xff] }
 0x410   : > { %v2766_v8 = vpop.f32.mrf.mxu2 }
 0x411   : > { %v2955_v22 = vpop.f32.mrf.mxu3  ;;  %v2767_v24 = vadd.f32 %v2766_v8, %v6513_v62  ;;  %v3984_v60 = vpop.f32.mrf.mxu0  ;;  %v4097_v8 = vld [vmem:[#allocation2 + $0x3a] sm:$0xff] }
 0x412   : > { %v4128_v57 = vpack.c.bf16 %v4097_v8, %v4096_v44 }
 0x413   : > { %v2989_v28 = vadd.f32 %v2955_v22, %v2767_v24 }
 0x414   : > { %v3355_v36 = vpop.f32.mrf.mxu1  ;;  %5036 = vmatmul.msk.bf16.gmra.mxu0 %vm378_vm1, %v3915_v34 }
 0x415   : > { %v6657_v11 = vadd.f32 %v3355_v36, %v6497_v23  ;;  %5004 = vmatmul.msk.bf16.gmra.mxu2 %vm378_vm1, %v7172_v20  ;;  %v6665_v62 = vadd.f32 %v3176_v1, %v2989_v28 }
 0x416   : > { %5020 = vmatmul.msk.bf16.gmra.mxu3 %vm378_vm1, %v7173_v6 }
 0x417   : > { %4995 = vmatmul.msk.bf16.gmra.mxu1 %vm378_vm1, %v6663_v35 }
 0x418   : > { %v3541_v10 = vpop.f32.mrf.mxu2 }
 0x419   : > { %v3763_v29 = vpop.f32.mrf.mxu3  ;;  %v3621_v42 = vadd.f32 %v3541_v10, %v6521_v56  ;;  %v3986_v4 = vpop.f32.mrf.mxu0  ;;  %v3896_v10 = vld [vmem:[#allocation2 + $0x129] sm:$0xff] }
 0x41b   : > { %v3843_v23 = vadd.f32 %v3763_v29, %v3621_v42 }
 0x41c   : > { %v3357_v40 = vpop.f32.mrf.mxu1 }
 0x41d   : > { %v6671_v33 = vadd.f32 %v3357_v40, %v6508_v13  ;;  %v6673_v63 = vadd.f32 %v3984_v60, %v3843_v23  ;;  %v7174_v13 = vld [vmem:[#allocation15_spill] sm:$0xff]  ;;  %v3895_v23 = vld [vmem:[#allocation2 + $0x121] sm:$0xff] }
 0x41e   : > { %v7175_v60 = vld [vmem:[#allocation3_spill] sm:$0xff]  ;;  %v3917_v40 = vpack.c.bf16 %v3896_v10, %v3895_v23  ;;  %v4100_v10 = vld [vmem:[#allocation2 + $0x62] sm:$0xff] }
 0x41f   : > { %v7179_v23 = vld [vmem:[#allocation18_spill] sm:$0xff] }
 0x420   : > { %v3543_v9 = vpop.f32.mrf.mxu2 }
 0x421   : > { %v3765_v55 = vpop.f32.mrf.mxu3  ;;  %v3622_v14 = vadd.f32 %v3543_v9, %v6533_v48  ;;  %v3989_v1 = vpop.f32.mrf.mxu0  ;;  %v4099_v9 = vld [vmem:[#allocation2 + $0x52] sm:$0xff] }
 0x423   : > { %v3844_v22 = vadd.f32 %v3765_v55, %v3622_v14 }
 0x424   : > { %v3360_v56 = vpop.f32.mrf.mxu1  ;;  %5037 = vmatmul.msk.bf16.gmra.mxu0 %vm378_vm1, %v3916_v21  ;;  %v4129_v21 = vpack.c.bf16 %v4099_v9, %v4098_v41 }
 0x425   : > { %v6678_v24 = vadd.f32 %v3360_v56, %v6515_v53  ;;  %5005 = vmatmul.msk.bf16.gmra.mxu2 %vm378_vm1, %v7174_v13  ;;  %v6684_v48 = vadd.f32 %v3986_v4, %v3844_v22 }
 0x426   : > { %5021 = vmatmul.msk.bf16.gmra.mxu3 %vm378_vm1, %v7175_v60 }
 0x427   : > { %5044 = vmatmul.msk.bf16.vlgmr.msra.gmra.mxu1 %vm378_vm1, %v4128_v57 }
 0x428   : > { %v3546_v34 = vpop.f32.mrf.mxu2 }
 0x429   : > { %v3768_v38 = vpop.f32.mrf.mxu3  ;;  %v3623_v28 = vadd.f32 %v3546_v34, %v6541_v18  ;;  %v3991_v47 = vpop.f32.mrf.mxu0  ;;  %v3898_v34 = vld [vmem:[#allocation2 + $0x141] sm:$0xff] }
 0x42b   : > { %v3845_v36 = vadd.f32 %v3768_v38, %v3623_v28 }
 0x42c   : > { %v3362_v20 = vpop.f32.mrf.mxu1 }
 0x42d   : > { %v6689_v53 = vadd.f32 %v3362_v20, %v6527_v49  ;;  %v6691_v6 = vadd.f32 %v3989_v1, %v3845_v36  ;;  %v7176_v49 = vld [vmem:[#allocation17_spill] sm:$0xff]  ;;  %v7177_v1 = vld [vmem:[#allocation16_spill] sm:$0xff] }
 0x430   : > { %v3548_v29 = vpop.f32.mrf.mxu2 }
 0x431   : > { %v3770_v42 = vpop.f32.mrf.mxu3  ;;  %v3624_v4 = vadd.f32 %v3548_v29, %v6553_v58  ;;  %v3994_v18 = vpop.f32.mrf.mxu0  ;;  %v4101_v29 = vld [vmem:[#allocation2 + $0x6a] sm:$0xff] }
 0x433   : > { %v3846_v55 = vadd.f32 %v3770_v42, %v3624_v4 }
 0x434   : > { %v3365_v14 = vpop.f32.mrf.mxu1  ;;  %5038 = vmatmul.msk.bf16.gmra.mxu0 %vm378_vm1, %v3917_v40  ;;  %v4130_v40 = vpack.c.bf16 %v4101_v29, %v4100_v10 }
 0x435   : > { %v6696_v25 = vadd.f32 %v3365_v14, %v6535_v61  ;;  %5006 = vmatmul.msk.bf16.gmra.mxu2 %vm378_vm1, %v7176_v49  ;;  %v6702_v58 = vadd.f32 %v3991_v47, %v3846_v55  ;;  %v3897_v47 = vld [vmem:[#allocation2 + $0x139] sm:$0xff] }
 0x436   : > { %5022 = vmatmul.msk.bf16.gmra.mxu3 %vm378_vm1, %v7177_v1  ;;  %v3918_v20 = vpack.c.bf16 %v3898_v34, %v3897_v47  ;;  %v4103_v34 = vld [vmem:[#allocation2 + $0x82] sm:$0xff]  ;;  %v7181_v47 = vld [vmem:[#allocation20_spill] sm:$0xff] }
 0x437   : > { %5045 = vmatmul.msk.bf16.gmra.mxu1 %vm378_vm1, %v4129_v21  ;;  %v3900_v21 = vld [vmem:[#allocation2 + $0x159] sm:$0xff] }
 0x438   : > { %v3551_v44 = vpop.f32.mrf.mxu2 }
 0x439   : > { %v3773_v8 = vpop.f32.mrf.mxu3  ;;  %v3625_v22 = vadd.f32 %v3551_v44, %v6561_v51  ;;  %v3996_v57 = vpop.f32.mrf.mxu0 }
 0x43b   : > { %v3847_v56 = vadd.f32 %v3773_v8, %v3625_v22  ;;  %v3899_v22 = vld [vmem:[#allocation2 + $0x151] sm:$0xff] }
 0x43c   : > { %v3367_v13 = vpop.f32.mrf.mxu1 }
 0x43d   : > { %v6707_v61 = vadd.f32 %v3367_v13, %v6547_v12  ;;  %v6709_v60 = vadd.f32 %v3994_v18, %v3847_v56  ;;  %v7178_v12 = vld [vmem:[#allocation19_spill] sm:$0xff]  ;;  %v3919_v13 = vpack.c.bf16 %v3900_v21, %v3899_v22  ;;  %v3906_v22 = vld [vmem:[#allocation2 + $0x1a1] sm:$0xff] }
 0x440   : > { %v3553_v38 = vpop.f32.mrf.mxu2 }
 0x441   : > { %v3775_v28 = vpop.f32.mrf.mxu3  ;;  %v3626_v36 = vadd.f32 %v3553_v38, %v6573_v39  ;;  %v3999_v14 = vpop.f32.mrf.mxu0 }
 0x443   : > { %v3848_v42 = vadd.f32 %v3775_v28, %v3626_v36 }
 0x444   : > { %v3370_v4 = vpop.f32.mrf.mxu1  ;;  %5039 = vmatmul.msk.bf16.gmra.mxu0 %vm378_vm1, %v3918_v20 }
 0x445   : > { %v6714_v51 = vadd.f32 %v3370_v4, %v6555_v5  ;;  %5007 = vmatmul.msk.bf16.gmra.mxu2 %vm378_vm1, %v7178_v12  ;;  %v6720_v41 = vadd.f32 %v3996_v57, %v3848_v42  ;;  %v4102_v57 = vld [vmem:[#allocation2 + $0x7a] sm:$0xff]  ;;  %v3902_v42 = vld [vmem:[#allocation2 + $0x171] sm:$0xff]  ;;  %v3901_v4 = vld [vmem:[#allocation2 + $0x169] sm:$0xff] }
 0x446   : > { %5023 = vmatmul.msk.bf16.gmra.mxu3 %vm378_vm1, %v7179_v23  ;;  %v3920_v12 = vpack.c.bf16 %v3902_v42, %v3901_v4  ;;  %v4105_v23 = vld [vmem:[#allocation2 + $0x9a] sm:$0xff] }
 0x447   : > { %5046 = vmatmul.msk.bf16.gmra.mxu1 %vm378_vm1, %v4130_v40 }
 0x448   : > { %v3556_v39 = vpop.f32.mrf.mxu2 }
 0x449   : > { %v3778_v9 = vpop.f32.mrf.mxu3  ;;  %v3627_v55 = vadd.f32 %v3556_v39, %v6581_v16  ;;  %v4001_v28 = vpop.f32.mrf.mxu0 }
 0x44b   : > { %v3849_v18 = vadd.f32 %v3778_v9, %v3627_v55  ;;  %v7182_v9 = vld [vmem:[#allocation24_spill] sm:$0xff] }
 0x44c   : > { %v3372_v49 = vpop.f32.mrf.mxu1 }
 0x44d   : > { %v6725_v5 = vadd.f32 %v3372_v49, %v6567_v30  ;;  %v6727_v1 = vadd.f32 %v3999_v14, %v3849_v18  ;;  %v7180_v30 = vld [vmem:[#allocation21_spill] sm:$0xff]  ;;  %v4106_v18 = vld [vmem:[#allocation2 + $0xaa] sm:$0xff]  ;;  %v4107_v49 = vld [vmem:[#allocation2 + $0xb2] sm:$0xff] }
 0x450   : > { %v3558_v44 = vpop.f32.mrf.mxu2 }
 0x451   : > { %v3628_v8 = vadd.f32 %v3558_v44, %v6593_v19  ;;  %v3780_v56 = vpop.f32.mrf.mxu3  ;;  %v4131_v19 = vpack.c.bf16 %v4103_v34, %v4102_v57 }
 0x453   : > { %v3850_v38 = vadd.f32 %v3780_v56, %v3628_v8  ;;  %v3905_v8 = vld [vmem:[#allocation2 + $0x199] sm:$0xff] }
 0x454   : > { %v3375_v16 = vpop.f32.mrf.mxu1  ;;  %5040 = vmatmul.msk.bf16.gmra.mxu0 %vm378_vm1, %v3919_v13  ;;  %v3684_v56 = vld [vmem:[#allocation2 + $0x198] sm:$0xff]  ;;  %v3462_v13 = vld [vmem:[#allocation2 + $0x182] sm:$0xff]  ;;  %v3922_v57 = vpack.c.bf16 %v3906_v22, %v3905_v8 }
 0x455   : > { %v6732_v36 = vadd.f32 %v3375_v16, %v6575_v2  ;;  %5008 = vmatmul.msk.bf16.gmra.mxu2 %vm378_vm1, %v7180_v30  ;;  %v6738_v20 = vadd.f32 %v4001_v28, %v3850_v38  ;;  %v4104_v2 = vld [vmem:[#allocation2 + $0x92] sm:$0xff]  ;;  %v4108_v38 = vld [vmem:[#allocation2 + $0xc2] sm:$0xff] }
 0x456   : > { %5024 = vmatmul.msk.bf16.gmra.mxu3 %vm378_vm1, %v7181_v47  ;;  %v4132_v55 = vpack.c.bf16 %v4105_v23, %v4104_v2  ;;  %v4112_v23 = vld [vmem:[#allocation2 + $0xf2] sm:$0xff] }
 0x457   : > { %5047 = vmatmul.msk.bf16.gmra.mxu1 %vm378_vm1, %v4131_v19  ;;  %v4110_v19 = vld [vmem:[#allocation2 + $0xda] sm:$0xff] }
 0x45c   : > { %v3377_v10 = vpop.f32.mrf.mxu1 }
 0x45d   : > { %v6742_v29 = vadd.f32 %v3377_v10, %v6587_v15  ;;  %v4111_v10 = vld [vmem:[#allocation2 + $0xe2] sm:$0xff] }
 0x45e   : > { %v4135_v4 = vpack.c.bf16 %v4111_v10, %v4110_v19  ;;  %v5062_v10 = vld [vmem:[%s5196_s16 + $0x31] sm:$0xff] }
 0x464   : > { %v3380_v40 = vpop.f32.mrf.mxu1  ;;  %5041 = vmatmul.msk.bf16.gmra.mxu0 %vm378_vm1, %v3920_v12 }
 0x465   : > { %v6746_v39 = vadd.f32 %v3380_v40, %v6595_v54  ;;  %5009 = vmatmul.msk.bf16.gmra.mxu2 %vm378_vm1, %v7182_v9  ;;  %v4113_v40 = vld [vmem:[#allocation2 + $0xfa] sm:$0xff] }
 0x466   : > { %5025 = vmatmul.msk.bf16.gmra.mxu3 %vm378_vm1, %v6454_v3  ;;  %v4133_v3 = vpack.c.bf16 %v4107_v49, %v4106_v18  ;;  %v5060_v18 = vld [vmem:[%s5196_s16 + $0x19] sm:$0xff] }
 0x467   : > { %5048 = vmatmul.msk.bf16.gmra.mxu1 %vm378_vm1, %v4132_v55 }
 0x46c   : > { %v3382_v15 = vpop.f32.mrf.mxu1 }
 0x46d   : > { %v6754_v14 = vadd.f32 %v3382_v15, %v6606_v46  ;;  %v4136_v15 = vpack.c.bf16 %v4113_v40, %v4112_v23 }
 0x474   : > { %v3385_v21 = vpop.f32.mrf.mxu1  ;;  %5042 = vmatmul.msk.bf16.gmra.mxu0 %vm378_vm1, %v6663_v35  ;;  %v3685_v35 = vld [vmem:[#allocation2 + $0x1a0] sm:$0xff] }
 0x475   : > { %v6759_v54 = vadd.f32 %v3385_v21, %v6614_v37  ;;  %5010 = vmatmul.msk.bf16.gmra.mxu2 %vm378_vm1, %v6480_v26  ;;  %v3463_v37 = vld [vmem:[#allocation2 + $0x18a] sm:$0xff]  ;;  %v3701_v34 = vpack.c.bf16 %v3685_v35, %v3684_v56  ;;  %v6805_v21 = vpop.f32.mrf.mxu2  ;;  %v6816_v56 = vpop.f32.mrf.mxu3  ;;  %v5061_v35 = vld [vmem:[%s5196_s16 + $0x21] sm:$0xff] }
 0x476   : > { %5026 = vmatmul.msk.bf16.gmra.mxu3 %vm378_vm1, %v6478_v45  ;;  %v4109_v26 = vld [vmem:[#allocation2 + $0xca] sm:$0xff]  ;;  %v6769_v28 = vpack.c.bf16 %v3463_v37, %v3462_v13 }
 0x477   : > { %5049 = vmatmul.msk.bf16.gmra.mxu1 %vm378_vm1, %v4133_v3  ;;  %v4114_v37 = vld [vmem:[#allocation2 + $0x10a] sm:$0xff] }
 0x47c   : > { %v3387_v46 = vpop.f32.mrf.mxu1 }
 0x47d   : > { %v6767_v44 = vadd.f32 %v3387_v46, %v6625_v32  ;;  %v4134_v32 = vpack.c.bf16 %v4109_v26, %v4108_v38  ;;  %v6822_v26 = vpop.f32.mrf.mxu2 }
 0x484   : > { %v3390_v45 = vpop.f32.mrf.mxu1  ;;  %5043 = vmatmul.msk.bf16.gmra.mxu0 %vm378_vm1, %v3922_v57  ;;  %v4115_v57 = vld [vmem:[#allocation2 + $0x112] sm:$0xff] }
 0x485   : > { %v6773_v16 = vadd.f32 %v3390_v45, %v6633_v59  ;;  %5011 = vmatmul.msk.bf16.gmra.mxu2 %vm378_vm1, %v6769_v28 }
 0x486   : > { %5027 = vmatmul.msk.bf16.gmra.mxu3 %vm378_vm1, %v3701_v34  ;;  %v6820_v34 = vpop.f32.mrf.mxu0 }
 0x487   : > { %5050 = vmatmul.msk.bf16.gmra.mxu1 %vm378_vm1, %v4134_v32 }
 0x48c   : > { %v3392_v30 = vpop.f32.mrf.mxu1 }
 0x48d   : > { %v6780_v47 = vadd.f32 %v3392_v30, %v6644_v17  ;;  %v6792_v17 = vld [vmem:[%s7083_s5] ss:$0 sm:$0xff]  ;;  %v4137_v30 = vpack.c.bf16 %v4115_v57, %v4114_v37 }
 0x48e   : > { %v6833_v40 = vpop.f32.mrf.mxu0 }
 0x494   : > { %v3395_v42 = vpop.f32.mrf.mxu1 }
 0x495   : > { %v6783_v59 = vadd.f32 %v3395_v42, %v6652_v52  ;;  %v6798_v52 = vld [vmem:[%s7084_s6] ss:$0 sm:$0xff] }
 0x497   : > { %5051 = vmatmul.msk.bf16.gmra.mxu1 %vm378_vm1, %v4135_v4  ;;  %v6831_v4 = vpop.f32.mrf.mxu3 }
 0x49c   : > { %v3397_v12 = vpop.f32.mrf.mxu1 }
 0x49d   : > { %v6787_v2 = vadd.f32 %v3397_v12, %v6665_v62 }
 0x4a4   : > { %v4205_v9 = vpop.f32.mrf.mxu1 }
 0x4a5   : > { %v4285_v55 = vadd.f32 %v4205_v9, %v6673_v63 }
 0x4a7   : > { %v4353_v62 = vmul.f32 %v6792_v17, %v4285_v55  ;;  %5052 = vmatmul.msk.bf16.gmra.mxu1 %vm378_vm1, %v4136_v15  ;;  %v6836_v55 = vpop.f32.mrf.mxu2 }
 0x4a9   : > { %v4389_v49 = vadd.f32 %v6798_v52, %v4353_v62  ;;  %v5063_v62 = vld [vmem:[%s5196_s16 + $0x39] sm:$0xff] }
 0x4ab   : > { %v4421_v3 = vadd.f32 %v5060_v18, %v4389_v49  ;;  %v4116_v49 = vld [vmem:[#allocation2 + $0x122] sm:$0xff] }
 0x4ac   : > { %v4207_v63 = vpop.f32.mrf.mxu1 }
 0x4ad   : > { %v4453_v46 = vmax.f32 %v4421_v3, 0.0  ;;  %v4286_v8 = vadd.f32 %v4207_v63, %v6684_v48  ;;  %v4117_v3 = vld [vmem:[#allocation2 + $0x12a] sm:$0xff] }
 0x4af   : > { %4485 = vst.msk [vmem:[%s6810_s18] sm:$0xff] %vm378_vm1, %v4453_v46  ;;  %v4354_v22 = vmul.f32 %v6792_v17, %v4286_v8  ;;  %v6843_v46 = vpop.f32.mrf.mxu3  ;;  %v6852_v57 = vpop.f32.mrf.mxu2 }
 0x4b1   : > { %v4390_v13 = vadd.f32 %v6798_v52, %v4354_v22 }
 0x4b3   : > { %v4422_v38 = vadd.f32 %v5061_v35, %v4390_v13  ;;  %v4138_v35 = vpack.c.bf16 %v4117_v3, %v4116_v49  ;;  %v6846_v13 = vpop.f32.mrf.mxu0 }
 0x4b4   : > { %v4210_v45 = vpop.f32.mrf.mxu1 }
 0x4b5   : > { %v4454_v48 = vmax.f32 %v4422_v38, 0.0  ;;  %v4287_v32 = vadd.f32 %v4210_v45, %v6691_v6  ;;  %v5064_v38 = vld [vmem:[%s5196_s16 + $0x49] sm:$0xff] }
 0x4b7   : > { %4486 = vst.msk [vmem:[%s6810_s18 + $0x8] sm:$0xff] %vm378_vm1, %v4454_v48  ;;  %v4355_v19 = vmul.f32 %v6792_v17, %v4287_v32  ;;  %5053 = vmatmul.msk.bf16.gmra.mxu1 %vm378_vm1, %v4137_v30 }
 0x4b9   : > { %v4391_v42 = vadd.f32 %v6798_v52, %v4355_v19  ;;  %v6857_v19 = vpop.f32.mrf.mxu3 }
 0x4bb   : > { %v4423_v12 = vadd.f32 %v5062_v10, %v4391_v42  ;;  %v5065_v42 = vld [vmem:[%s5196_s16 + $0x51] sm:$0xff] }
 0x4bc   : > { %v4212_v23 = vpop.f32.mrf.mxu1 }
 0x4bd   : > { %v4455_v9 = vmax.f32 %v4423_v12, 0.0  ;;  %v4288_v6 = vadd.f32 %v4212_v23, %v6702_v58  ;;  %v6863_v12 = vpop.f32.mrf.mxu0 }
 0x4bf   : > { %4487 = vst.msk [vmem:[%s6810_s18 + $0x10] sm:$0xff] %vm378_vm1, %v4455_v9  ;;  %v4356_v15 = vmul.f32 %v6792_v17, %v4288_v6  ;;  %v6866_v9 = vpop.f32.mrf.mxu2  ;;  %v4118_v6 = vld [vmem:[#allocation2 + $0x13a] sm:$0xff] }
 0x4c1   : > { %v4392_v18 = vadd.f32 %v6798_v52, %v4356_v15  ;;  %v4119_v15 = vld [vmem:[#allocation2 + $0x142] sm:$0xff] }
 0x4c2   : > { %v4139_v3 = vpack.c.bf16 %v4119_v15, %v4118_v6  ;;  %v3630_v6 = vadd.f32 %v6822_v26, %v6612_v43  ;;  %v5068_v43 = vld [vmem:[%s5196_s16 + $0x79] sm:$0xff]  ;;  %v3631_v26 = vadd.f32 %v6836_v55, %v6619_v27  ;;  %v5069_v27 = vld [vmem:[%s5196_s16 + $0x81] sm:$0xff]  ;;  %v4122_v55 = vld [vmem:[#allocation2 + $0x16a] sm:$0xff] }
 0x4c3   : > { %v4424_v63 = vadd.f32 %v5063_v62, %v4392_v18 }
 0x4c4   : > { %v4215_v8 = vpop.f32.mrf.mxu1 }
 0x4c5   : > { %v4456_v22 = vmax.f32 %v4424_v63, 0.0  ;;  %v4289_v58 = vadd.f32 %v4215_v8, %v6709_v60  ;;  %v6873_v8 = vpop.f32.mrf.mxu3 }
 0x4c7   : > { %4488 = vst.msk [vmem:[%s6810_s18 + $0x18] sm:$0xff] %vm378_vm1, %v4456_v22  ;;  %v4357_v37 = vmul.f32 %v6792_v17, %v4289_v58  ;;  %5054 = vmatmul.msk.bf16.gmra.mxu1 %vm378_vm1, %v4138_v35  ;;  %v5066_v22 = vld [vmem:[%s5196_s16 + $0x61] sm:$0xff]  ;;  %v3629_v35 = vadd.f32 %v6805_v21, %v6600_v31  ;;  %v4120_v21 = vld [vmem:[#allocation2 + $0x152] sm:$0xff] }
 0x4c9   : > { %v4393_v45 = vadd.f32 %v6798_v52, %v4357_v37  ;;  %v6879_v37 = vpop.f32.mrf.mxu0 }
 0x4cb   : > { %v4425_v48 = vadd.f32 %v5064_v38, %v4393_v45  ;;  %v6881_v38 = vpop.f32.mrf.mxu2 }
 0x4cc   : > { %v4217_v32 = vpop.f32.mrf.mxu1 }
 0x4cd   : > { %v4457_v30 = vmax.f32 %v4425_v48, 0.0  ;;  %v4290_v60 = vadd.f32 %v4217_v32, %v6720_v41  ;;  %v6890_v31 = vpop.f32.mrf.mxu3 }
 0x4cf   : > { %4489 = vst.msk [vmem:[%s6810_s18 + $0x20] sm:$0xff] %vm378_vm1, %v4457_v30  ;;  %v4358_v10 = vmul.f32 %v6792_v17, %v4290_v60  ;;  %v3851_v30 = vadd.f32 %v6816_v56, %v3629_v35 }
 0x4d1   : > { %v4394_v23 = vadd.f32 %v6798_v52, %v4358_v10  ;;  %v5067_v10 = vld [vmem:[%s5196_s16 + $0x69] sm:$0xff] }
 0x4d3   : > { %v4426_v62 = vadd.f32 %v5065_v42, %v4394_v23  ;;  %v4121_v23 = vld [vmem:[#allocation2 + $0x15a] sm:$0xff] }
 0x4d4   : > { %v4220_v18 = vpop.f32.mrf.mxu1 }
 0x4d5   : > { %v4458_v49 = vmax.f32 %v4426_v62, 0.0  ;;  %v4291_v41 = vadd.f32 %v4220_v18, %v6727_v1  ;;  %v6895_v62 = vpop.f32.mrf.mxu0 }
 0x4d7   : > { %4490 = vst.msk [vmem:[%s6810_s18 + $0x28] sm:$0xff] %vm378_vm1, %v4458_v49  ;;  %v4359_v63 = vmul.f32 %v6792_v17, %v4291_v41  ;;  %5055 = vmatmul.msk.bf16.gmra.mxu1 %vm378_vm1, %v4139_v3  ;;  %v4140_v41 = vpack.c.bf16 %v4121_v23, %v4120_v21  ;;  %v6897_v3 = vpop.f32.mrf.mxu2  ;;  %v3632_v21 = vadd.f32 %v6852_v57, %v6631_v0 }
 0x4d9   : > { %v4395_v58 = vadd.f32 %v6798_v52, %v4359_v63  ;;  %v3852_v63 = vadd.f32 %v6831_v4, %v3630_v6 }
 0x4db   : > { %v4427_v1 = vadd.f32 %v5066_v22, %v4395_v58  ;;  %v4073_v35 = vadd.f32 %v6833_v40, %v3852_v63  ;;  %v5070_v63 = vld [vmem:[%s5196_s16 + $0x91] sm:$0xff] }
 0x4dc   : > { %v4222_v45 = vpop.f32.mrf.mxu1 }
 0x4dd   : > { %v4459_v48 = vmax.f32 %v4427_v1, 0.0  ;;  %v4292_v32 = vadd.f32 %v4222_v45, %v6738_v20  ;;  %v4072_v20 = vadd.f32 %v6820_v34, %v3851_v30  ;;  %v6909_v1 = vpop.f32.mrf.mxu3  ;;  %v6912_v30 = vpop.f32.mrf.mxu0 }
 0x4df   : > { %4491 = vst.msk [vmem:[%s6810_s18 + $0x30] sm:$0xff] %vm378_vm1, %v4459_v48  ;;  %v4360_v60 = vmul.f32 %v6792_v17, %v4292_v32  ;;  %v3853_v32 = vadd.f32 %v6843_v46, %v3631_v26 }
 0x4e1   : > { %v4396_v42 = vadd.f32 %v6798_v52, %v4360_v60  ;;  %v4074_v46 = vadd.f32 %v6846_v13, %v3853_v32 }
 0x4e3   : > { %v4428_v15 = vadd.f32 %v5067_v10, %v4396_v42  ;;  %v6917_v10 = vpop.f32.mrf.mxu2  ;;  %v4123_v42 = vld [vmem:[#allocation2 + $0x172] sm:$0xff] }
 0x4e4   : > { %v4225_v56 = vpop.f32.mrf.mxu1 }
 0x4e5   : > { %v4460_v18 = vmax.f32 %v4428_v15, 0.0  ;;  %v4293_v49 = vadd.f32 %v4225_v56, %v4072_v20  ;;  %v4141_v56 = vpack.c.bf16 %v4123_v42, %v4122_v55  ;;  %v6930_v0 = vpop.f32.mrf.mxu0 }
 0x4e7   : > { %4492 = vst.msk [vmem:[%s6810_s18 + $0x38] sm:$0xff] %vm378_vm1, %v4460_v18  ;;  %v4361_v22 = vmul.f32 %v6792_v17, %v4293_v49  ;;  %5056 = vmatmul.msk.bf16.gmra.mxu1 %vm378_vm1, %v4140_v41  ;;  %v3800_v18 = vpop.f32.mrf.mxu3  ;;  %v3854_v49 = vadd.f32 %v6857_v19, %v3632_v21 }
 0x4e9   : > { %v4397_v34 = vadd.f32 %v6798_v52, %v4361_v22  ;;  %v3633_v22 = vadd.f32 %v6866_v9, %v6638_v7  ;;  %v3634_v7 = vadd.f32 %v6881_v38, %v6650_v50  ;;  %v5072_v50 = vld [vmem:[%s5196_s16 + $0xa9] sm:$0xff] }
 0x4eb   : > { %v4429_v58 = vadd.f32 %v5068_v43, %v4397_v34  ;;  %v3581_v57 = vpop.f32.mrf.mxu2  ;;  %v4075_v34 = vadd.f32 %v6863_v12, %v3854_v49  ;;  %v3856_v42 = vadd.f32 %v6890_v31, %v3634_v7 }
 0x4ec   : > { %v4227_v45 = vpop.f32.mrf.mxu1 }
 0x4ed   : > { %v4461_v4 = vmax.f32 %v4429_v58, 0.0  ;;  %v4294_v48 = vadd.f32 %v4227_v45, %v4073_v35  ;;  %v3855_v35 = vadd.f32 %v6873_v8, %v3633_v22  ;;  %v4024_v9 = vpop.f32.mrf.mxu0  ;;  %v4127_v22 = vld [vmem:[#allocation2 + $0x1a2] sm:$0xff] }
 0x4ef   : > { %4493 = vst.msk [vmem:[%s6810_s18 + $0x40] sm:$0xff] %vm378_vm1, %v4461_v4  ;;  %v4362_v60 = vmul.f32 %v6792_v17, %v4294_v48  ;;  %v3803_v4 = vpop.f32.mrf.mxu3  ;;  %v5071_v48 = vld [vmem:[%s5196_s16 + $0x99] sm:$0xff] }
 0x4f1   : > { %v4398_v40 = vadd.f32 %v6798_v52, %v4362_v60  ;;  %v4076_v60 = vadd.f32 %v6879_v37, %v3855_v35  ;;  %v3635_v37 = vadd.f32 %v6897_v3, %v6657_v11 }
 0x4f3   : > { %v4430_v23 = vadd.f32 %v5069_v27, %v4398_v40  ;;  %v3583_v27 = vpop.f32.mrf.mxu2 }
 0x4f4   : > { %v4230_v6 = vpop.f32.mrf.mxu1 }
 0x4f5   : > { %v4462_v15 = vmax.f32 %v4430_v23, 0.0  ;;  %v4295_v20 = vadd.f32 %v4230_v6, %v4074_v46  ;;  %v4077_v6 = vadd.f32 %v6895_v62, %v3856_v42  ;;  %v3636_v62 = vadd.f32 %v6917_v10, %v6671_v33  ;;  %v5074_v33 = vld [vmem:[%s5196_s16 + $0xc1] sm:$0xff] }
 0x4f7   : > { %4494 = vst.msk [vmem:[%s6810_s18 + $0x48] sm:$0xff] %vm378_vm1, %v4462_v15  ;;  %v4363_v41 = vmul.f32 %v6792_v17, %v4295_v20  ;;  %5057 = vmatmul.msk.bf16.gmra.mxu1 %vm378_vm1, %v4141_v56  ;;  %v3805_v23 = vpop.f32.mrf.mxu3  ;;  %v4026_v15 = vpop.f32.mrf.mxu0  ;;  %v3858_v35 = vadd.f32 %v3800_v18, %v3636_v62 }
 0x4f9   : > { %v4399_v13 = vadd.f32 %v6798_v52, %v4363_v41  ;;  %v3857_v41 = vadd.f32 %v6909_v1, %v3635_v37 }
 0x4fb   : > { %v4431_v43 = vadd.f32 %v5070_v63, %v4399_v13  ;;  %v3586_v49 = vpop.f32.mrf.mxu2  ;;  %v5073_v63 = vld [vmem:[%s5196_s16 + $0xb1] sm:$0xff]  ;;  %v4126_v13 = vld [vmem:[#allocation2 + $0x19a] sm:$0xff] }
 0x4fc   : > { %v4232_v19 = vpop.f32.mrf.mxu1 }
 0x4fd   : > { %v4463_v26 = vmax.f32 %v4431_v43, 0.0  ;;  %v4296_v58 = vadd.f32 %v4232_v19, %v4075_v34  ;;  %v4078_v43 = vadd.f32 %v6912_v30, %v3857_v41  ;;  %v4143_v34 = vpack.c.bf16 %v4127_v22, %v4126_v13  ;;  %v5076_v41 = vld [vmem:[%s5196_s16 + $0xd9] sm:$0xff] }
 0x4fe   : > { %v3637_v30 = vadd.f32 %v3581_v57, %v6678_v24  ;;  %v3638_v24 = vadd.f32 %v3583_v27, %v6689_v53 }
 0x4ff   : > { %4495 = vst.msk [vmem:[%s6810_s18 + $0x50] sm:$0xff] %vm378_vm1, %v4463_v26  ;;  %v4364_v45 = vmul.f32 %v6792_v17, %v4296_v58  ;;  %v3808_v19 = vpop.f32.mrf.mxu3 }
 0x501   : > { %v4400_v32 = vadd.f32 %v6798_v52, %v4364_v45  ;;  %v4029_v45 = vpop.f32.mrf.mxu0 }
 0x503   : > { %v4432_v12 = vadd.f32 %v5071_v48, %v4400_v32  ;;  %v3588_v32 = vpop.f32.mrf.mxu2 }
 0x504   : > { %v4235_v40 = vpop.f32.mrf.mxu1 }
 0x505   : > { %v4464_v55 = vmax.f32 %v4432_v12, 0.0  ;;  %v4297_v8 = vadd.f32 %v4235_v40, %v4076_v60  ;;  %v4079_v12 = vadd.f32 %v6930_v0, %v3858_v35 }
 0x507   : > { %4496 = vst.msk [vmem:[%s6810_s18 + $0x58] sm:$0xff] %vm378_vm1, %v4464_v55  ;;  %v4365_v21 = vmul.f32 %v6792_v17, %v4297_v8  ;;  %5058 = vmatmul.msk.bf16.gmra.mxu1 %vm378_vm1, %v6769_v28  ;;  %v3810_v55 = vpop.f32.mrf.mxu3  ;;  %v3859_v8 = vadd.f32 %v3803_v4, %v3637_v30  ;;  %v5078_v30 = vld [vmem:[%s5196_s16 + $0xf1] sm:$0xff] }
 0x509   : > { %v4401_v38 = vadd.f32 %v6798_v52, %v4365_v21  ;;  %v5075_v21 = vld [vmem:[%s5196_s16 + $0xc9] sm:$0xff]  ;;  %v4080_v0 = vadd.f32 %v4024_v9, %v3859_v8 }
 0x50b   : > { %v4433_v46 = vadd.f32 %v5072_v50, %v4401_v38  ;;  %v4031_v50 = vpop.f32.mrf.mxu0  ;;  %v3591_v37 = vpop.f32.mrf.mxu2 }
 0x50c   : > { %v4237_v31 = vpop.f32.mrf.mxu1 }
 0x50d   : > { %v4465_v20 = vmax.f32 %v4433_v46, 0.0  ;;  %v4298_v56 = vadd.f32 %v4237_v31, %v4077_v6 }
 0x50f   : > { %4497 = vst.msk [vmem:[%s6810_s18 + $0x60] sm:$0xff] %vm378_vm1, %v4465_v20  ;;  %v4366_v28 = vmul.f32 %v6792_v17, %v4298_v56  ;;  %v3860_v20 = vadd.f32 %v3805_v23, %v3638_v24  ;;  %v3813_v56 = vpop.f32.mrf.mxu3 }
 0x511   : > { %v4402_v11 = vadd.f32 %v6798_v52, %v4366_v28  ;;  %v4081_v27 = vadd.f32 %v4026_v15, %v3860_v20 }
 0x513   : > { %v4434_v3 = vadd.f32 %v5073_v63, %v4402_v11  ;;  %v3639_v63 = vadd.f32 %v3586_v49, %v6696_v25  ;;  %v4034_v13 = vpop.f32.mrf.mxu0  ;;  %v3593_v9 = vpop.f32.mrf.mxu2  ;;  %v3640_v25 = vadd.f32 %v3588_v32, %v6707_v61 }
 0x514   : > { %v4240_v1 = vpop.f32.mrf.mxu1 }
 0x515   : > { %v4466_v26 = vmax.f32 %v4434_v3, 0.0  ;;  %v4299_v58 = vadd.f32 %v4240_v1, %v4078_v43  ;;  %v3861_v23 = vadd.f32 %v3808_v19, %v3639_v63  ;;  %v5077_v43 = vld [vmem:[%s5196_s16 + $0xe1] sm:$0xff]  ;;  %v3862_v19 = vadd.f32 %v3810_v55, %v3640_v25 }
 0x517   : > { %4498 = vst.msk [vmem:[%s6810_s18 + $0x68] sm:$0xff] %vm378_vm1, %v4466_v26  ;;  %v4367_v48 = vmul.f32 %v6792_v17, %v4299_v58  ;;  %5059 = vmatmul.msk.bf16.gmra.mxu1 %vm378_vm1, %v4143_v34  ;;  %v3815_v1 = vpop.f32.mrf.mxu3  ;;  %v4082_v26 = vadd.f32 %v4029_v45, %v3861_v23  ;;  %v4083_v32 = vadd.f32 %v4031_v50, %v3862_v19  ;;  %v5081_v23 = vld [vmem:[%s5196_s16 + $0x111] sm:$0xff] }
 0x519   : > { %v4403_v10 = vadd.f32 %v6798_v52, %v4367_v48 }
 0x51b   : > { %v4435_v7 = vadd.f32 %v5074_v33, %v4403_v10  ;;  %v4036_v58 = vpop.f32.mrf.mxu0  ;;  %v3596_v33 = vpop.f32.mrf.mxu2 }
 0x51c   : > { %v4242_v60 = vpop.f32.mrf.mxu1 }
 0x51d   : > { %v4467_v18 = vmax.f32 %v4435_v7, 0.0  ;;  %v4300_v40 = vadd.f32 %v4242_v60, %v4079_v12  ;;  %v3641_v12 = vadd.f32 %v3591_v37, %v6714_v51  ;;  %v3642_v51 = vadd.f32 %v3593_v9, %v6725_v5 }
 0x51e   : > { %v3643_v5 = vadd.f32 %v3596_v33, %v6732_v36 }
 0x51f   : > { %4499 = vst.msk [vmem:[%s6810_s18 + $0x70] sm:$0xff] %vm378_vm1, %v4467_v18  ;;  %v4368_v42 = vmul.f32 %v6792_v17, %v4300_v40  ;;  %v3818_v45 = vpop.f32.mrf.mxu3  ;;  %v3863_v8 = vadd.f32 %v3813_v56, %v3641_v12 }
 0x521   : > { %v4404_v38 = vadd.f32 %v6798_v52, %v4368_v42  ;;  %v4084_v50 = vadd.f32 %v4034_v13, %v3863_v8 }
 0x523   : > { %v4436_v57 = vadd.f32 %v5075_v21, %v4404_v38  ;;  %v4039_v42 = vpop.f32.mrf.mxu0  ;;  %v3598_v21 = vpop.f32.mrf.mxu2  ;;  %v5079_v38 = vld [vmem:[%s5196_s16 + $0xf9] sm:$0xff] }
 0x524   : > { %v4245_v46 = vpop.f32.mrf.mxu1 }
 0x525   : > { %v4468_v6 = vmax.f32 %v4436_v57, 0.0  ;;  %v4301_v31 = vadd.f32 %v4245_v46, %v4080_v0 }
 0x527   : > { %4500 = vst.msk [vmem:[%s6810_s18 + $0x78] sm:$0xff] %vm378_vm1, %v4468_v6  ;;  %v4369_v4 = vmul.f32 %v6792_v17, %v4301_v31  ;;  %v3820_v6 = vpop.f32.mrf.mxu3  ;;  %v3864_v31 = vadd.f32 %v3815_v1, %v3642_v51 }
 0x529   : > { %v4405_v28 = vadd.f32 %v6798_v52, %v4369_v4  ;;  %v5080_v4 = vld [vmem:[%s5196_s16 + $0x109] sm:$0xff]  ;;  %v4085_v13 = vadd.f32 %v4036_v58, %v3864_v31 }
 0x52b   : > { %v4437_v53 = vadd.f32 %v5076_v41, %v4405_v28  ;;  %v4041_v56 = vpop.f32.mrf.mxu0  ;;  %v3601_v28 = vpop.f32.mrf.mxu2 }
 0x52c   : > { %v4247_v22 = vpop.f32.mrf.mxu1 }
 0x52d   : > { %v4469_v11 = vmax.f32 %v4437_v53, 0.0  ;;  %v4302_v62 = vadd.f32 %v4247_v22, %v4081_v27  ;;  %v3865_v22 = vadd.f32 %v3818_v45, %v3643_v5 }
 0x52f   : > { %4501 = vst.msk [vmem:[%s6810_s18 + $0x80] sm:$0xff] %vm378_vm1, %v4469_v11  ;;  %v4370_v3 = vmul.f32 %v6792_v17, %v4302_v62  ;;  %v3823_v62 = vpop.f32.mrf.mxu3  ;;  %v4086_v1 = vadd.f32 %v4039_v42, %v3865_v22 }
 0x531   : > { %v4406_v34 = vadd.f32 %v6798_v52, %v4370_v3 }
 0x533   : > { %v4438_v49 = vadd.f32 %v5077_v43, %v4406_v34  ;;  %v3644_v43 = vadd.f32 %v3598_v21, %v6742_v29  ;;  %v4044_v34 = vpop.f32.mrf.mxu0  ;;  %v3603_v25 = vpop.f32.mrf.mxu2  ;;  %v3645_v29 = vadd.f32 %v3601_v28, %v6746_v39 }
 0x534   : > { %v4250_v15 = vpop.f32.mrf.mxu1  ;;  %v3646_v42 = vadd.f32 %v3603_v25, %v6754_v14 }
 0x535   : > { %v4470_v35 = vmax.f32 %v4438_v49, 0.0  ;;  %v4303_v48 = vadd.f32 %v4250_v15, %v4082_v26  ;;  %v3866_v58 = vadd.f32 %v3820_v6, %v3644_v43 }
 0x537   : > { %4502 = vst.msk [vmem:[%s6810_s18 + $0x88] sm:$0xff] %vm378_vm1, %v4470_v35  ;;  %v4371_v10 = vmul.f32 %v6792_v17, %v4303_v48  ;;  %v5082_v48 = vld [vmem:[%s5196_s16 + $0x121] sm:$0xff]  ;;  %v3825_v19 = vpop.f32.mrf.mxu3 }
 0x539   : > { %v4407_v7 = vadd.f32 %v6798_v52, %v4371_v10 }
 0x53b   : > { %v4439_v61 = vadd.f32 %v5078_v30, %v4407_v7  ;;  %v4087_v30 = vadd.f32 %v4041_v56, %v3866_v58  ;;  %v4046_v12 = vpop.f32.mrf.mxu0  ;;  %v3606_v45 = vpop.f32.mrf.mxu2 }
 0x53c   : > { %v4252_v60 = vpop.f32.mrf.mxu1  ;;  %v3647_v14 = vadd.f32 %v3606_v45, %v6759_v54 }
 0x53d   : > { %v4471_v18 = vmax.f32 %v4439_v61, 0.0  ;;  %v4304_v40 = vadd.f32 %v4252_v60, %v4083_v32  ;;  %v3867_v60 = vadd.f32 %v3823_v62, %v3645_v29 }
 0x53f   : > { %4503 = vst.msk [vmem:[%s6810_s18 + $0x90] sm:$0xff] %vm378_vm1, %v4471_v18  ;;  %v4372_v55 = vmul.f32 %v6792_v17, %v4304_v40  ;;  %v5083_v40 = vld [vmem:[%s5196_s16 + $0x129] sm:$0xff]  ;;  %v3828_v21 = vpop.f32.mrf.mxu3 }
 0x540   : > { %v3869_v5 = vadd.f32 %v3828_v21, %v3647_v14  ;;  %v5089_v14 = vld [vmem:[%s5196_s16 + $0x171] sm:$0xff] }
 0x541   : > { %v4408_v24 = vadd.f32 %v6798_v52, %v4372_v55  ;;  %v4088_v55 = vadd.f32 %v4044_v34, %v3867_v60 }
 0x543   : > { %v4440_v37 = vadd.f32 %v5079_v38, %v4408_v24 }
 0x544   : > { %v4255_v57 = vpop.f32.mrf.mxu1 }
 0x545   : > { %v4472_v0 = vmax.f32 %v4440_v37, 0.0  ;;  %v4305_v46 = vadd.f32 %v4255_v57, %v4084_v50  ;;  %v3868_v37 = vadd.f32 %v3825_v19, %v3646_v42  ;;  %v4049_v50 = vpop.f32.mrf.mxu0 }
 0x547   : > { %4504 = vst.msk [vmem:[%s6810_s18 + $0x98] sm:$0xff] %vm378_vm1, %v4472_v0  ;;  %v4373_v20 = vmul.f32 %v6792_v17, %v4305_v46  ;;  %v3608_v0 = vpop.f32.mrf.mxu2  ;;  %v5084_v46 = vld [vmem:[%s5196_s16 + $0x139] sm:$0xff]  ;;  %v3830_v28 = vpop.f32.mrf.mxu3 }
 0x548   : > { %v3648_v54 = vadd.f32 %v3608_v0, %v6767_v44 }
 0x549   : > { %v4409_v41 = vadd.f32 %v6798_v52, %v4373_v20  ;;  %v4089_v20 = vadd.f32 %v4046_v12, %v3868_v37 }
 0x54a   : > { %v3870_v43 = vadd.f32 %v3830_v28, %v3648_v54 }
 0x54b   : > { %v4441_v63 = vadd.f32 %v5080_v4, %v4409_v41 }
 0x54c   : > { %v4257_v53 = vpop.f32.mrf.mxu1 }
 0x54d   : > { %v4473_v27 = vmax.f32 %v4441_v63, 0.0  ;;  %v4306_v9 = vadd.f32 %v4257_v53, %v4085_v13  ;;  %v5085_v13 = vld [vmem:[%s5196_s16 + $0x141] sm:$0xff]  ;;  %v4051_v53 = vpop.f32.mrf.mxu0 }
 0x54f   : > { %4505 = vst.msk [vmem:[%s6810_s18 + $0xa0] sm:$0xff] %vm378_vm1, %v4473_v27  ;;  %v4374_v11 = vmul.f32 %v6792_v17, %v4306_v9  ;;  %v3611_v9 = vpop.f32.mrf.mxu2 }
 0x551   : > { %v4410_v3 = vadd.f32 %v6798_v52, %v4374_v11  ;;  %v4090_v11 = vadd.f32 %v4049_v50, %v3869_v5 }
 0x553   : > { %v4442_v36 = vadd.f32 %v5081_v23, %v4410_v3 }
 0x554   : > { %v4260_v49 = vpop.f32.mrf.mxu1 }
 0x555   : > { %v4474_v26 = vmax.f32 %v4442_v36, 0.0  ;;  %v4307_v15 = vadd.f32 %v4260_v49, %v4086_v1  ;;  %v3833_v36 = vpop.f32.mrf.mxu3  ;;  %v5086_v1 = vld [vmem:[%s5196_s16 + $0x151] sm:$0xff]  ;;  %v4054_v49 = vpop.f32.mrf.mxu0 }
 0x557   : > { %4506 = vst.msk [vmem:[%s6810_s18 + $0xa8] sm:$0xff] %vm378_vm1, %v4474_v26  ;;  %v4375_v35 = vmul.f32 %v6792_v17, %v4307_v15  ;;  %v3649_v26 = vadd.f32 %v3611_v9, %v6773_v16  ;;  %v4091_v15 = vadd.f32 %v4051_v53, %v3870_v43  ;;  %v3613_v58 = vpop.f32.mrf.mxu2 }
 0x558   : > { %v3650_v12 = vadd.f32 %v3613_v58, %v6780_v47 }
 0x559   : > { %v4411_v33 = vadd.f32 %v6798_v52, %v4375_v35  ;;  %v3871_v19 = vadd.f32 %v3833_v36, %v3649_v26 }
 0x55b   : > { %v4443_v10 = vadd.f32 %v5082_v48, %v4411_v33 }
 0x55c   : > { %v4262_v7 = vpop.f32.mrf.mxu1 }
 0x55d   : > { %v4475_v61 = vmax.f32 %v4443_v10, 0.0  ;;  %v4308_v32 = vadd.f32 %v4262_v7, %v4087_v30  ;;  %v5087_v10 = vld [vmem:[%s5196_s16 + $0x159] sm:$0xff]  ;;  %v3835_v7 = vpop.f32.mrf.mxu3 }
 0x55f   : > { %4507 = vst.msk [vmem:[%s6810_s18 + $0xb0] sm:$0xff] %vm378_vm1, %v4475_v61  ;;  %v4376_v18 = vmul.f32 %v6792_v17, %v4308_v32  ;;  %v4092_v61 = vadd.f32 %v4054_v49, %v3871_v19 }
 0x561   : > { %v4412_v8 = vadd.f32 %v6798_v52, %v4376_v18  ;;  %v4056_v18 = vpop.f32.mrf.mxu0 }
 0x563   : > { %v4444_v39 = vadd.f32 %v5083_v40, %v4412_v8  ;;  %v3616_v40 = vpop.f32.mrf.mxu2  ;;  %v3872_v8 = vadd.f32 %v3835_v7, %v3650_v12 }
 0x564   : > { %v4265_v38 = vpop.f32.mrf.mxu1  ;;  %v3651_v47 = vadd.f32 %v3616_v40, %v6783_v59 }
 0x565   : > { %v4476_v24 = vmax.f32 %v4444_v39, 0.0  ;;  %v4309_v51 = vadd.f32 %v4265_v38, %v4088_v55  ;;  %v5088_v39 = vld [vmem:[%s5196_s16 + $0x169] sm:$0xff]  ;;  %v3838_v21 = vpop.f32.mrf.mxu3 }
 0x566   : > { %v3873_v0 = vadd.f32 %v3838_v21, %v3651_v47 }
 0x567   : > { %4508 = vst.msk [vmem:[%s6810_s18 + $0xb8] sm:$0xff] %vm378_vm1, %v4476_v24  ;;  %v4377_v57 = vmul.f32 %v6792_v17, %v4309_v51  ;;  %v4093_v24 = vadd.f32 %v4056_v18, %v3872_v8 }
 0x569   : > { %v4413_v6 = vadd.f32 %v6798_v52, %v4377_v57  ;;  %v4059_v57 = vpop.f32.mrf.mxu0 }
 0x56b   : > { %v4445_v31 = vadd.f32 %v5084_v46, %v4413_v6  ;;  %v3618_v6 = vpop.f32.mrf.mxu2 }
 0x56c   : > { %v4267_v4 = vpop.f32.mrf.mxu1  ;;  %v3652_v59 = vadd.f32 %v3618_v6, %v6787_v2 }
 0x56d   : > { %v4477_v56 = vmax.f32 %v4445_v31, 0.0  ;;  %v4310_v41 = vadd.f32 %v4267_v4, %v4089_v20  ;;  %v4094_v20 = vadd.f32 %v4059_v57, %v3873_v0 }
 0x56f   : > { %4509 = vst.msk [vmem:[%s6810_s18 + $0xc0] sm:$0xff] %vm378_vm1, %v4477_v56  ;;  %v4378_v63 = vmul.f32 %v6792_v17, %v4310_v41  ;;  %v3840_v56 = vpop.f32.mrf.mxu3 }
 0x571   : > { %v4414_v27 = vadd.f32 %v6798_v52, %v4378_v63  ;;  %v3874_v63 = vadd.f32 %v3840_v56, %v3652_v59  ;;  %v4061_v53 = vpop.f32.mrf.mxu0 }
 0x573   : > { %v4446_v22 = vadd.f32 %v5085_v13, %v4414_v27  ;;  %v5090_v27 = vld [vmem:[%s5196_s16 + $0x181] sm:$0xff]  ;;  %v4095_v54 = vadd.f32 %v4061_v53, %v3874_v63 }
 0x574   : > { %v4270_v62 = vpop.f32.mrf.mxu1 }
 0x575   : > { %v4478_v23 = vmax.f32 %v4446_v22, 0.0  ;;  %v4311_v3 = vadd.f32 %v4270_v62, %v4090_v11 }
 0x577   : > { %4510 = vst.msk [vmem:[%s6810_s18 + $0xc8] sm:$0xff] %vm378_vm1, %v4478_v23  ;;  %v4379_v34 = vmul.f32 %v6792_v17, %v4311_v3  ;;  %v5091_v3 = vld [vmem:[%s5196_s16 + $0x189] sm:$0xff] }
 0x579   : > { %v4415_v25 = vadd.f32 %v6798_v52, %v4379_v34 }
 0x57b   : > { %v4447_v44 = vadd.f32 %v5086_v1, %v4415_v25 }
 0x57c   : > { %v4272_v35 = vpop.f32.mrf.mxu1 }
 0x57d   : > { %v4479_v48 = vmax.f32 %v4447_v44, 0.0  ;;  %v4312_v33 = vadd.f32 %v4272_v35, %v4091_v15 }
 0x57f   : > { %4511 = vst.msk [vmem:[%s6810_s18 + $0xd0] sm:$0xff] %vm378_vm1, %v4479_v48  ;;  %v4380_v29 = vmul.f32 %v6792_v17, %v4312_v33 }
 0x581   : > { %v4416_v30 = vadd.f32 %v6798_v52, %v4380_v29 }
 0x583   : > { %v4448_v16 = vadd.f32 %v5087_v10, %v4416_v30 }
 0x584   : > { %v4275_v32 = vpop.f32.mrf.mxu1 }
 0x585   : > { %v4480_v45 = vmax.f32 %v4448_v16, 0.0  ;;  %v4313_v60 = vadd.f32 %v4275_v32, %v4092_v61 }
 0x587   : > { %4512 = vst.msk [vmem:[%s6810_s18 + $0xd8] sm:$0xff] %vm378_vm1, %v4480_v45  ;;  %v4381_v42 = vmul.f32 %v6792_v17, %v4313_v60 }
 0x589   : > { %v4417_v55 = vadd.f32 %v6798_v52, %v4381_v42 }
 0x58b   : > { %v4449_v38 = vadd.f32 %v5088_v39, %v4417_v55 }
 0x58c   : > { %v4277_v51 = vpop.f32.mrf.mxu1 }
 0x58d   : > { %v4481_v37 = vmax.f32 %v4449_v38, 0.0  ;;  %v4314_v50 = vadd.f32 %v4277_v51, %v4093_v24 }
 0x58f   : > { %4513 = vst.msk [vmem:[%s6810_s18 + $0xe0] sm:$0xff] %vm378_vm1, %v4481_v37  ;;  %v4382_v46 = vmul.f32 %v6792_v17, %v4314_v50 }
 0x591   : > { %v4418_v31 = vadd.f32 %v6798_v52, %v4382_v46 }
 0x593   : > { %v4450_v4 = vadd.f32 %v5089_v14, %v4418_v31 }
 0x594   : > { %v4280_v41 = vpop.f32.mrf.mxu1 }
 0x595   : > { %v4482_v28 = vmax.f32 %v4450_v4, 0.0  ;;  %v4315_v5 = vadd.f32 %v4280_v41, %v4094_v20 }
 0x597   : > { %4514 = vst.msk [vmem:[%s6810_s18 + $0xe8] sm:$0xff] %vm378_vm1, %v4482_v28  ;;  %v4383_v13 = vmul.f32 %v6792_v17, %v4315_v5 }
 0x599   : > { %v4419_v9 = vadd.f32 %v6798_v52, %v4383_v13 }
 0x59b   : > { %v4451_v22 = vadd.f32 %v5090_v27, %v4419_v9 }
 0x59c   : > { %v4282_v2 = vpop.f32.mrf.mxu1 }
 0x59d   : > { %v4483_v11 = vmax.f32 %v4451_v22, 0.0  ;;  %v4316_v62 = vadd.f32 %v4282_v2, %v4095_v54 }
 0x59f   : > { %4515 = vst.msk [vmem:[%s6810_s18 + $0xf0] sm:$0xff] %vm378_vm1, %v4483_v11  ;;  %v4384_v23 = vmul.f32 %v6792_v17, %v4316_v62 }
 0x5a1   : > { %v4420_v43 = vadd.f32 %v6798_v52, %v4384_v23 }
 0x5a3   : > { %v4452_v34 = vadd.f32 %v5091_v3, %v4420_v43 }
 0x5a5   : > { %v4484_v36 = vmax.f32 %v4452_v34, 0.0 }
 0x5a7   : > { %4516 = vst.msk [vmem:[%s6810_s18 + $0xf8] sm:$0xff] %vm378_vm1, %v4484_v36 }
 0x5a8 PF: > { %s17_s24 = sadd.s32 1, %s5119_s24  }
 0x5a9   : > { %p14_p4 = scmp.ge.s32.totalorder %s17_s24, 4  }
 0x5ab   :  { %16 = sbr.rel (!%p14_p4) target bundleno = 1 (0x1), region = 83 }

</bundles_post_ra>
